<compile_context>
chip_gen: v6e
topology: v6e:2x2x1
jax: 0.10.0
libtpu: 0.0.40
codegen_flags: <defaults>
</compile_context>

<pallas_src>
import functools

import jax
import jax.numpy as jnp
import numpy as np
from jax import lax
from jax.experimental import pallas as pl
from jax.experimental.pallas import tpu as pltpu

# --- constants from the PyTorch module --------------------------------------
INDICES_FOR_ACTION = [0, 1, 2, 3, 4, 5, 12, 13, 14, 15, 16, 17]
ACTION_DIM = len(INDICES_FOR_ACTION)                      # 12
INDICES_FOR_STATE = list(range(13)) + list(range(20, 31))
STATE_DIM = len(INDICES_FOR_STATE)                        # 24

# --- small synthetic sizes (real model: hidden=512, vis_dim=4096) -----------
HIDDEN = 128                      # hidden_dim
VIS_DIM = 256                     # vis_dim
WINDOW = 8                        # window_size
HEAD_DIM = 64                     # module: n_heads = hidden_dim // 64
N_HEADS = HIDDEN // HEAD_DIM
MLP_RATIO = 4
OUT_DIM = WINDOW * ACTION_DIM     # 96
OUT_PAD = 128                     # lane-dense padded output width
NH_PAD = 128                      # head columns padded to one full lane tile
STATE_PAD = 128                   # proprio lanes padded to one full lane tile

BATCH = 2
N_VIS_TOKENS = 16
N_LAT_TOKENS = 6                  # forward keeps only the last 4
LAT_KEEP = 4
LAT_PAD = 8                       # latent tokens padded to a full sublane tile

LN_EPS = 1e-5                     # torch nn.LayerNorm default


# --- shared math (used by the kernel and by the pure-JAX reference) ----------
def _mm(a, w):
    """MXU matmul: cast the activation to the (bf16) weight dtype, accumulate f32."""
    return jnp.dot(a.astype(w.dtype), w, preferred_element_type=jnp.float32)


def _gelu(x):
    # TODO(synk): nn.GELU() default is exact erf-GELU; tanh approximation used
    # for guaranteed EUP lowering (max deviation ~1e-3).
    c = 0.7978845608028654
    return 0.5 * x * (1.0 + jnp.tanh(c * (x + 0.044715 * x * x * x)))


def _layernorm(x, g, b, eps=LN_EPS):
    mu = jnp.mean(x, axis=-1, keepdims=True)
    var = jnp.mean((x - mu) ** 2, axis=-1, keepdims=True)
    return (x - mu) * lax.rsqrt(var + eps) * g + b


def _head_masks():
    """Narrow (H, 128) head-membership mask + its (128, H) expansion, bf16.

    mask_n[c, h] = 1 iff channel c belongs to head h (h < N_HEADS).
    (q*k) @ mask_n  -> per-head scores on 128 lanes (exp only per head);
    probs @ mask_e  -> per-channel attention weights for the weighted sum.
    """
    head = np.arange(HIDDEN) // HEAD_DIM
    mask_n = np.zeros((HIDDEN, NH_PAD), np.float32)
    mask_n[np.arange(HIDDEN), head] = 1.0
    return (jnp.asarray(mask_n, dtype=jnp.bfloat16),
            jnp.asarray(mask_n.T, dtype=jnp.bfloat16))


# --- in-kernel MAP pooling block ---------------------------------------------
# weight slab column layout (units of HIDDEN): q [0,1) | kv [1,3) | o [3,4) | m1 [4,8)
# bias  slab column layout (units of HIDDEN):
#   proj_b [0,1) | latents [1,2) | q_b [2,3) | kv_b [3,5) | o_b [5,6) |
#   ln1_g [6,7) | ln1_b [7,8) | m1_b [8,12) | m2_b [12,13) | ln2_g [13,14) | ln2_b [14,15)
def _map_pool(x2d, bc, n_tok, n_valid, init_embed, mask_n, mask_e,
              projw_ref, wslab_ref, m2w_ref, bslab_ref):
    H = HIDDEN
    bf = jnp.bfloat16
    R = bc * n_tok

    def bias(lo, hi):                              # load f32 slab slice at use
        return bslab_ref[:, lo * H:hi * H]

    latents = bias(1, 2)                                           # (1, H)
    lat_q = latents if init_embed is None else latents + init_embed

    # token projection + kv, batched over ALL bc*n_tok tokens (MXU, bf16)
    xp = (_mm(x2d, projw_ref[...]) + bias(0, 1)).astype(bf)        # (R, H)
    kv = _mm(xp, wslab_ref[:, H:3 * H]) + bias(3, 5)               # (R, 2H) f32 acc
    k = kv[:, :H].astype(bf)
    v = kv[:, H:].astype(bf)

    # single-latent multi-head attention: per-head scores for all heads at once
    q = _mm(lat_q, wslab_ref[:, :H]) + bias(2, 3)                  # (1|bc, H) f32
    qh = q.astype(bf).reshape(-1, 1, H)                            # query per segment
    qk = (qh * k.reshape(bc, n_tok, H)).reshape(R, H)              # (R, H) bf16
    s = jnp.dot(qk, mask_n, preferred_element_type=jnp.float32)    # (R, 128) heads
    s = s * (HEAD_DIM ** -0.5)

    if n_valid < n_tok:            # mask zero-padded latent tokens out of softmax
        assert n_tok & (n_tok - 1) == 0, "padded segment length must be pow2"
        row = lax.broadcasted_iota(jnp.int32, s.shape, 0)
        s = jnp.where((row & (n_tok - 1)) < n_valid, s, -1e30)

    # segment softmax over tokens (3-D view, no per-batch Python loop)
    s3 = s.reshape(bc, n_tok, NH_PAD)
    e = jnp.exp(s3 - jnp.max(s3, axis=1, keepdims=True))
    inv = pl.reciprocal(jnp.sum(e, axis=1, keepdims=True), approx=True)
    p = (e * inv).astype(bf).reshape(R, NH_PAD)                    # per-head probs

    # broadcast probs back to channels and do the weighted token sum
    w = jnp.dot(p, mask_e, preferred_element_type=jnp.float32)     # (R, H)
    pooled = jnp.sum((w * v.astype(jnp.float32)).reshape(bc, n_tok, H),
                     axis=1)                                       # (bc, H)

    attn = _mm(pooled, wslab_ref[:, 3 * H:4 * H]) + bias(5, 6)     # (bc, H)
    lat = _layernorm(lat_q + attn, bias(6, 7), bias(7, 8))
    h = _gelu(_mm(lat, wslab_ref[:, 4 * H:8 * H]) + bias(8, 12)).astype(bf)
    h = _mm(h, m2w_ref[...]) + bias(12, 13)
    return _layernorm(lat + h, bias(13, 14), bias(14, 15))         # (bc, H)


# --- Pallas kernel ------------------------------------------------------------
def _decoder_kernel(lat_ref, vis_ref, pro_ref,
                    ap_projw, ap_wslab, ap_m2w, ap_bslab,
                    vp_projw, vp_wslab, vp_m2w, vp_bslab,
                    p_w1, p_w2, p_bias, f_w, f_b, mask_n_ref, mask_e_ref,
                    out_ref):
    H = HIDDEN
    bc = out_ref.shape[0]
    n_vis = vis_ref.shape[0] // bc
    n_lat = lat_ref.shape[0] // bc

    mask_n = mask_n_ref[...]
    mask_e = mask_e_ref[...]

    # proprio_proj: Linear -> GELU -> Linear (proprio lanes padded to 128 with
    # zeros; the matching p_w1 rows are zero so padding contributes nothing)
    ph = _gelu(_mm(pro_ref[...], p_w1[...]) + p_bias[:, :H])
    proprio_e = _mm(ph, p_w2[...]) + p_bias[:, H:]                 # (bc, H)

    # visual_pool: MAP block over visual tokens (shared learnable latent query)
    vis_pooled = _map_pool(vis_ref[...], bc, n_vis, n_vis, None, mask_n, mask_e,
                           vp_projw, vp_wslab, vp_m2w, vp_bslab)
    # attn_pool: MAP block over latent action tokens, query = latents + vis_pooled
    act_pooled = _map_pool(lat_ref[...], bc, n_lat, LAT_KEEP, vis_pooled,
                           mask_n, mask_e,
                           ap_projw, ap_wslab, ap_m2w, ap_bslab)

    # final projection, split to avoid a lane-axis concat; OUT padded to 128 lanes
    out = _mm(act_pooled, f_w[:H, :]) + _mm(proprio_e, f_w[H:, :]) + f_b[...]
    out_ref[...] = out                                             # (bc, 128) lane-dense


@functools.partial(jax.jit, static_argnames=("batch_chunk", "single_buffer_params"))
def action_decoder_head(latent_action_tokens, visual_embed, proprio, packed_params,
                        batch_chunk=None, single_buffer_params=True):
    # glue: the [:, -4:] slice from the PyTorch forward + token flattening.
    lat4 = latent_action_tokens[:, -LAT_KEEP:]
    B, T4, V = lat4.shape
    N = visual_embed.shape[1]
    assert N % 8 == 0, "visual token count must be a multiple of 8 (pad upstream)"

    # grid >= 2 steps by default so v7x's 2 TensorCores both get work.
    if batch_chunk is not None:
        bc = batch_chunk
    else:
        bc = B // 2 if (B >= 2 and B % 2 == 0) else B
    assert B % bc == 0
    G = B // bc

    bf = jnp.bfloat16
    # bf16 activations: halves the dominant HBM->VMEM DMA bytes.
    lat_p = jnp.pad(lat4, ((0, 0), (0, LAT_PAD - T4), (0, 0)))     # pad to 8 tokens
    lat2d = lat_p.reshape(B * LAT_PAD, V).astype(bf)
    vis2d = visual_embed.reshape(B * N, V).astype(bf)
    pro3 = jnp.pad(proprio, ((0, 0), (0, STATE_PAD - proprio.shape[1])))
    pro3 = pro3.astype(bf).reshape(G, bc, STATE_PAD)

    act_specs = [
        pl.BlockSpec((bc * LAT_PAD, V), lambda i: (i, 0)),
        pl.BlockSpec((bc * N, V), lambda i: (i, 0)),
        pl.BlockSpec((None, bc, STATE_PAD), lambda i: (i, 0, 0)),
    ]

    # Constant parameter slabs: single-buffer them (block index never changes).
    if single_buffer_params and hasattr(pl, "Buffered"):
        par_kw = dict(pipeline_mode=pl.Buffered(1))
    else:
        par_kw = {}
    par_specs = [pl.BlockSpec(p.shape, lambda i: (0, 0), **par_kw)
                 for p in packed_params]

    # explicit VMEM budget: params (x buffers) + double-buffered activation
    # blocks + headroom, capped for v7x's 64 MiB physical VMEM.
    param_bytes = sum(int(np.prod(p.shape)) * p.dtype.itemsize for p in packed_params)
    act_bytes = 2 * ((bc * LAT_PAD * V + bc * N * V + bc * STATE_PAD) * 2
                     + bc * OUT_PAD * 4)
    buf = 1 if par_kw else 2
    vmem_limit = int(min(64 << 20, max(32 << 20,
                                       buf * param_bytes + act_bytes + (8 << 20))))

    # advisory cost estimate so XLA schedules neighbouring ops sensibly.
    H = HIDDEN
    r_l, r_v = B * LAT_PAD, B * N

    def mmf(m, k, n):
        return 2 * m * k * n

    flops = (mmf(r_v, V, H) + mmf(r_l, V, H)                        # token proj
             + mmf(r_v, H, 2 * H) + mmf(r_l, H, 2 * H)              # kv
             + 2 * (mmf(r_v, H, NH_PAD) + mmf(r_l, H, NH_PAD))      # score + expand
             + 4 * mmf(B, H, H)                                     # q, o (both pools)
             + 2 * (mmf(B, H, MLP_RATIO * H) + mmf(B, MLP_RATIO * H, H))  # MLPs
             + mmf(B, STATE_PAD, H) + mmf(B, H, H)                  # proprio
             + mmf(B, 2 * H, OUT_PAD))                              # final
    transcendentals = (r_v + r_l) * NH_PAD + B * (2 * MLP_RATIO * H + H) + 6 * B
    bytes_accessed = (lat2d.size * 2 + vis2d.size * 2 + pro3.size * 2
                      + param_bytes + B * OUT_PAD * 4)
    cost = pl.CostEstimate(flops=int(flops), transcendentals=int(transcendentals),
                           bytes_accessed=int(bytes_accessed))

    # TODO(synk): at real sizes (vis_dim=4096, hidden=512) with long visual
    # sequences, tile the visual-token axis with an inner pltpu.emit_pipeline
    # (online softmax is trivial with a single latent query) to bound VMEM on
    # v7x; optionally quantize proj_w to fp8 there if the projection matmul is
    # MXU-bound rather than DMA-bound.
    out3 = pl.pallas_call(
        _decoder_kernel,
        out_shape=jax.ShapeDtypeStruct((G, bc, OUT_PAD), jnp.float32),
        grid=(G,),
        in_specs=act_specs + par_specs,
        out_specs=pl.BlockSpec((None, bc, OUT_PAD), lambda i: (i, 0, 0)),
        compiler_params=pltpu.CompilerParams(
            dimension_semantics=("parallel",),
            vmem_limit_bytes=vmem_limit),
        cost_estimate=cost,
    )(lat2d, vis2d, pro3, *packed_params)
    return out3.reshape(B, OUT_PAD)[:, :OUT_DIM]


# --- deterministic parameter construction ------------------------------------
def _init_map_block(key, vis_dim, h):
    ks = jax.random.split(key, 17)
    w = lambda k, s: 0.02 * jax.random.normal(k, s, jnp.float32)
    bf = jnp.bfloat16
    return dict(
        proj_w=w(ks[0], (vis_dim, h)).astype(bf), proj_b=w(ks[1], (1, h)),
        latents=w(ks[2], (1, h)),
        q_w=w(ks[3], (h, h)).astype(bf),              q_b=w(ks[4], (1, h)),
        kv_w=w(ks[5], (h, 2 * h)).astype(bf),         kv_b=w(ks[6], (1, 2 * h)),
        o_w=w(ks[7], (h, h)).astype(bf),              o_b=w(ks[8], (1, h)),
        ln1_g=1.0 + w(ks[9], (1, h)),                 ln1_b=w(ks[10], (1, h)),
        m1_w=w(ks[11], (h, MLP_RATIO * h)).astype(bf), m1_b=w(ks[12], (1, MLP_RATIO * h)),
        m2_w=w(ks[13], (MLP_RATIO * h, h)).astype(bf), m2_b=w(ks[14], (1, h)),
        ln2_g=1.0 + w(ks[15], (1, h)),                ln2_b=w(ks[16], (1, h)),
    )


def init_params(key):
    k_ap, k_vp, k1, k2, k3, k4, k5, k6 = jax.random.split(key, 8)
    w = lambda k, s: 0.02 * jax.random.normal(k, s, jnp.float32)
    bf = jnp.bfloat16
    return dict(
        attn_pool=_init_map_block(k_ap, VIS_DIM, HIDDEN),
        visual_pool=_init_map_block(k_vp, VIS_DIM, HIDDEN),
        p_w1=w(k1, (STATE_DIM, HIDDEN)).astype(bf), p_b1=w(k2, (1, HIDDEN)),
        p_w2=w(k3, (HIDDEN, HIDDEN)).astype(bf),    p_b2=w(k4, (1, HIDDEN)),
        f_w=w(k5, (2 * HIDDEN, OUT_DIM)).astype(bf), f_b=w(k6, (1, OUT_DIM)),
    )


def pack_params(raw):
    """Pack ~40 parameter tensors into 15 slabs (bf16 weights/masks, f32 bias/LN)."""
    def pack_block(p):
        wslab = jnp.concatenate([p["q_w"], p["kv_w"], p["o_w"], p["m1_w"]], axis=1)
        bslab = jnp.concatenate(
            [p["proj_b"], p["latents"], p["q_b"], p["kv_b"], p["o_b"],
             p["ln1_g"], p["ln1_b"], p["m1_b"], p["m2_b"], p["ln2_g"], p["ln2_b"]],
            axis=1)                                            # (1, 15H)
        return [p["proj_w"], wslab, p["m2_w"], bslab]

    p_w1 = jnp.pad(raw["p_w1"], ((0, STATE_PAD - STATE_DIM), (0, 0)))  # zero pad rows
    p_bias = jnp.concatenate([raw["p_b1"], raw["p_b2"]], axis=1)       # (1, 2H)
    f_w = jnp.pad(raw["f_w"], ((0, 0), (0, OUT_PAD - OUT_DIM)))        # (2H, 128) bf16
    f_b = jnp.pad(raw["f_b"], ((0, 0), (0, OUT_PAD - OUT_DIM)))        # (1, 128) f32
    mask_n, mask_e = _head_masks()
    return (pack_block(raw["attn_pool"]) + pack_block(raw["visual_pool"]) +
            [p_w1, raw["p_w2"], p_bias, f_w, f_b, mask_n, mask_e])


# --- pure-JAX reference (conventional per-head attention formulation) ---------
def _map_block_ref(x, init_embed, p):
    B, N, V = x.shape
    H = HIDDEN
    lat = p["latents"]
    lat = jnp.broadcast_to(lat, (B, H)) if init_embed is None else lat + init_embed

    xp = (_mm(x.reshape(B * N, V), p["proj_w"]) + p["proj_b"]).reshape(B, N, H)
    q = _mm(lat, p["q_w"]) + p["q_b"]
    kv = (_mm(xp.reshape(B * N, H), p["kv_w"]) + p["kv_b"]).reshape(B, N, 2 * H)
    k, v = kv[..., :H], kv[..., H:]

    qh = q.reshape(B, N_HEADS, HEAD_DIM)
    kh = k.reshape(B, N, N_HEADS, HEAD_DIM)
    vh = v.reshape(B, N, N_HEADS, HEAD_DIM)
    s = jnp.einsum("bhd,bnhd->bhn", qh, kh) * HEAD_DIM ** -0.5
    a = jax.nn.softmax(s, axis=-1)
    o = jnp.einsum("bhn,bnhd->bhd", a, vh).reshape(B, H)
    o = _mm(o, p["o_w"]) + p["o_b"]

    lat = _layernorm(lat + o, p["ln1_g"], p["ln1_b"])
    h = _gelu(_mm(lat, p["m1_w"]) + p["m1_b"])
    h = _mm(h, p["m2_w"]) + p["m2_b"]
    return _layernorm(lat + h, p["ln2_g"], p["ln2_b"])


def reference(latent_action_tokens, visual_embed, proprio, raw):
    lat4 = latent_action_tokens[:, -LAT_KEEP:]
    ph = _gelu(_mm(proprio, raw["p_w1"]) + raw["p_b1"])
    proprio_e = _mm(ph, raw["p_w2"]) + raw["p_b2"]
    vis_pooled = _map_block_ref(visual_embed, None, raw["visual_pool"])
    act_pooled = _map_block_ref(lat4, vis_pooled, raw["attn_pool"])
    feat = jnp.concatenate([act_pooled, proprio_e], axis=-1)
    return _mm(feat, raw["f_w"]) + raw["f_b"]


# --- main ---------------------------------------------------------------------
if __name__ == "__main__":
    key = jax.random.PRNGKey(0)
    k_lat, k_vis, k_pro, k_par = jax.random.split(key, 4)

    latent_action_tokens = jax.random.normal(
        k_lat, (BATCH, N_LAT_TOKENS, VIS_DIM), jnp.float32)
    visual_embed = jax.random.normal(
        k_vis, (BATCH, N_VIS_TOKENS, VIS_DIM), jnp.float32)
    proprio = jax.random.normal(k_pro, (BATCH, STATE_DIM), jnp.float32)

    raw = init_params(k_par)
    packed = pack_params(raw)

    def run(single_buffer):
        o = action_decoder_head(latent_action_tokens, visual_embed, proprio,
                                packed, single_buffer_params=single_buffer)
        return jax.block_until_ready(o)

    try:
        out = run(True)       # pl.Buffered(1) single-buffers the constant param slabs
    except Exception:         # jax build without BlockSpec pipeline_mode support
        out = run(False)

    assert out.shape == (BATCH, WINDOW * ACTION_DIM)

    with jax.default_matmul_precision("float32"):
        ref = reference(latent_action_tokens, visual_embed, proprio, raw)
    ref = jax.block_until_ready(ref)

    np.testing.assert_allclose(np.asarray(out), np.asarray(ref),
                               rtol=2e-2, atol=5e-3)
    print("KERNEL_OK")
</pallas_src>

<mosaic_0001>
module attributes {stable_mosaic.version = 11 : i64} {
  func.func @_decoder_kernel(%arg0: i32, %arg1: memref<8x256xbf16, #tpu.memory_space<vmem>>, %arg2: memref<16x256xbf16, #tpu.memory_space<vmem>>, %arg3: memref<1x1x128xbf16, #tpu.memory_space<vmem>>, %arg4: memref<256x128xbf16, #tpu.memory_space<vmem>>, %arg5: memref<128x1024xbf16, #tpu.memory_space<vmem>>, %arg6: memref<512x128xbf16, #tpu.memory_space<vmem>>, %arg7: memref<1x1920xf32, #tpu.memory_space<vmem>>, %arg8: memref<256x128xbf16, #tpu.memory_space<vmem>>, %arg9: memref<128x1024xbf16, #tpu.memory_space<vmem>>, %arg10: memref<512x128xbf16, #tpu.memory_space<vmem>>, %arg11: memref<1x1920xf32, #tpu.memory_space<vmem>>, %arg12: memref<128x128xbf16, #tpu.memory_space<vmem>>, %arg13: memref<128x128xbf16, #tpu.memory_space<vmem>>, %arg14: memref<1x256xf32, #tpu.memory_space<vmem>>, %arg15: memref<256x128xbf16, #tpu.memory_space<vmem>>, %arg16: memref<1x128xf32, #tpu.memory_space<vmem>>, %arg17: memref<128x128xbf16, #tpu.memory_space<vmem>>, %arg18: memref<128x128xbf16, #tpu.memory_space<vmem>>, %arg19: memref<1x1x128xf32, #tpu.memory_space<vmem>>) attributes {dimension_semantics = [#tpu.dimension_semantics<parallel>], iteration_bounds = array<i64: 2>, scalar_prefetch = 0 : i64, scratch_operands = 0 : i64, tpu.core_type = #tpu.core_type<tc>, window_params = [{transform_indices = @transform_0, window_bounds = array<i64: 8, 256>}, {transform_indices = @transform_1, window_bounds = array<i64: 16, 256>}, {transform_indices = @transform_2, window_bounds = array<i64: 1, 1, 128>}, {pipeline_mode = #tpu.pipeline_mode<synchronous>, transform_indices = @transform_3, window_bounds = array<i64: 256, 128>}, {pipeline_mode = #tpu.pipeline_mode<synchronous>, transform_indices = @transform_4, window_bounds = array<i64: 128, 1024>}, {pipeline_mode = #tpu.pipeline_mode<synchronous>, transform_indices = @transform_5, window_bounds = array<i64: 512, 128>}, {pipeline_mode = #tpu.pipeline_mode<synchronous>, transform_indices = @transform_6, window_bounds = array<i64: 1, 1920>}, {pipeline_mode = #tpu.pipeline_mode<synchronous>, transform_indices = @transform_7, window_bounds = array<i64: 256, 128>}, {pipeline_mode = #tpu.pipeline_mode<synchronous>, transform_indices = @transform_8, window_bounds = array<i64: 128, 1024>}, {pipeline_mode = #tpu.pipeline_mode<synchronous>, transform_indices = @transform_9, window_bounds = array<i64: 512, 128>}, {pipeline_mode = #tpu.pipeline_mode<synchronous>, transform_indices = @transform_10, window_bounds = array<i64: 1, 1920>}, {pipeline_mode = #tpu.pipeline_mode<synchronous>, transform_indices = @transform_11, window_bounds = array<i64: 128, 128>}, {pipeline_mode = #tpu.pipeline_mode<synchronous>, transform_indices = @transform_12, window_bounds = array<i64: 128, 128>}, {pipeline_mode = #tpu.pipeline_mode<synchronous>, transform_indices = @transform_13, window_bounds = array<i64: 1, 256>}, {pipeline_mode = #tpu.pipeline_mode<synchronous>, transform_indices = @transform_14, window_bounds = array<i64: 256, 128>}, {pipeline_mode = #tpu.pipeline_mode<synchronous>, transform_indices = @transform_15, window_bounds = array<i64: 1, 128>}, {pipeline_mode = #tpu.pipeline_mode<synchronous>, transform_indices = @transform_16, window_bounds = array<i64: 128, 128>}, {pipeline_mode = #tpu.pipeline_mode<synchronous>, transform_indices = @transform_17, window_bounds = array<i64: 128, 128>}, {transform_indices = @transform_18, window_bounds = array<i64: 1, 1, 128>}]} {
    %c0 = arith.constant 0 : index
    %c0_0 = arith.constant 0 : index
    %0 = vector.load %arg17[%c0, %c0_0] : memref<128x128xbf16, #tpu.memory_space<vmem>>, vector<128x128xbf16>
    %c0_1 = arith.constant 0 : index
    %c0_2 = arith.constant 0 : index
    %1 = vector.load %arg18[%c0_1, %c0_2] : memref<128x128xbf16, #tpu.memory_space<vmem>>, vector<128x128xbf16>
    %c0_3 = arith.constant 0 : index
    %c0_4 = arith.constant 0 : index
    %c0_5 = arith.constant 0 : index
    %2 = vector.load %arg3[%c0_3, %c0_4, %c0_5] : memref<1x1x128xbf16, #tpu.memory_space<vmem>>, vector<1x1x128xbf16>
    %3 = vector.shape_cast %2 : vector<1x1x128xbf16> to vector<1x128xbf16>
    %c0_6 = arith.constant 0 : index
    %c0_7 = arith.constant 0 : index
    %4 = vector.load %arg12[%c0_6, %c0_7] : memref<128x128xbf16, #tpu.memory_space<vmem>>, vector<128x128xbf16>
    %cst = arith.constant dense<0.000000e+00> : vector<1x128xf32>
    %5 = tpu.matmul %3, %4, %cst {dimension_numbers = #tpu.dot_dimension_numbers<[1], [0], [0], [1], [0, 0, 1, 1], [], []>} : vector<1x128xbf16>, vector<128x128xbf16>, vector<1x128xf32> -> vector<1x128xf32>
    %c0_8 = arith.constant 0 : index
    %c0_9 = arith.constant 0 : index
    %6 = vector.load %arg14[%c0_8, %c0_9] : memref<1x256xf32, #tpu.memory_space<vmem>>, vector<1x128xf32>
    %7 = arith.addf %5, %6 : vector<1x128xf32>
    %cst_10 = arith.constant 5.000000e-01 : f32
    %8 = vector.broadcast %cst_10 : f32 to vector<1x128xf32>
    %9 = arith.mulf %8, %7 : vector<1x128xf32>
    %cst_11 = arith.constant 4.471500e-02 : f32
    %10 = vector.broadcast %cst_11 : f32 to vector<1x128xf32>
    %11 = arith.mulf %10, %7 : vector<1x128xf32>
    %12 = arith.mulf %11, %7 : vector<1x128xf32>
    %13 = arith.mulf %12, %7 : vector<1x128xf32>
    %14 = arith.addf %7, %13 : vector<1x128xf32>
    %cst_12 = arith.constant 0.797884583 : f32
    %15 = vector.broadcast %cst_12 : f32 to vector<1x128xf32>
    %16 = arith.mulf %15, %14 : vector<1x128xf32>
    %17 = math.tanh %16 : vector<1x128xf32>
    %cst_13 = arith.constant 1.000000e+00 : f32
    %18 = vector.broadcast %cst_13 : f32 to vector<1x128xf32>
    %19 = arith.addf %18, %17 : vector<1x128xf32>
    %20 = arith.mulf %9, %19 : vector<1x128xf32>
    %c0_14 = arith.constant 0 : index
    %c0_15 = arith.constant 0 : index
    %21 = vector.load %arg13[%c0_14, %c0_15] : memref<128x128xbf16, #tpu.memory_space<vmem>>, vector<128x128xbf16>
    %22 = arith.truncf %20 : vector<1x128xf32> to vector<1x128xbf16>
    %cst_16 = arith.constant dense<0.000000e+00> : vector<1x128xf32>
    %23 = tpu.matmul %22, %21, %cst_16 {dimension_numbers = #tpu.dot_dimension_numbers<[1], [0], [0], [1], [0, 0, 1, 1], [], []>} : vector<1x128xbf16>, vector<128x128xbf16>, vector<1x128xf32> -> vector<1x128xf32>
    %c0_17 = arith.constant 0 : index
    %c128 = arith.constant 128 : index
    %24 = vector.load %arg14[%c0_17, %c128] : memref<1x256xf32, #tpu.memory_space<vmem>>, vector<1x128xf32>
    %25 = arith.addf %23, %24 : vector<1x128xf32>
    %c0_18 = arith.constant 0 : index
    %c0_19 = arith.constant 0 : index
    %26 = vector.load %arg2[%c0_18, %c0_19] : memref<16x256xbf16, #tpu.memory_space<vmem>>, vector<16x256xbf16>
    %c0_20 = arith.constant 0 : index
    %c128_21 = arith.constant 128 : index
    %27 = vector.load %arg11[%c0_20, %c128_21] : memref<1x1920xf32, #tpu.memory_space<vmem>>, vector<1x128xf32>
    %c0_22 = arith.constant 0 : index
    %c0_23 = arith.constant 0 : index
    %28 = vector.load %arg8[%c0_22, %c0_23] : memref<256x128xbf16, #tpu.memory_space<vmem>>, vector<256x128xbf16>
    %cst_24 = arith.constant dense<0.000000e+00> : vector<16x128xf32>
    %29 = tpu.matmul %26, %28, %cst_24 {dimension_numbers = #tpu.dot_dimension_numbers<[1], [0], [0], [1], [0, 0, 1, 1], [], []>} : vector<16x256xbf16>, vector<256x128xbf16>, vector<16x128xf32> -> vector<16x128xf32>
    %c0_25 = arith.constant 0 : index
    %c0_26 = arith.constant 0 : index
    %30 = vector.load %arg11[%c0_25, %c0_26] : memref<1x1920xf32, #tpu.memory_space<vmem>>, vector<1x128xf32>
    %31 = vector.broadcast %30 : vector<1x128xf32> to vector<16x128xf32>
    %32 = arith.addf %29, %31 : vector<16x128xf32>
    %33 = arith.truncf %32 : vector<16x128xf32> to vector<16x128xbf16>
    %c0_27 = arith.constant 0 : index
    %c128_28 = arith.constant 128 : index
    %34 = vector.load %arg9[%c0_27, %c128_28] : memref<128x1024xbf16, #tpu.memory_space<vmem>>, vector<128x256xbf16>
    %cst_29 = arith.constant dense<0.000000e+00> : vector<16x256xf32>
    %35 = tpu.matmul %33, %34, %cst_29 {dimension_numbers = #tpu.dot_dimension_numbers<[1], [0], [0], [1], [0, 0, 1, 1], [], []>} : vector<16x128xbf16>, vector<128x256xbf16>, vector<16x256xf32> -> vector<16x256xf32>
    %c0_30 = arith.constant 0 : index
    %c384 = arith.constant 384 : index
    %36 = vector.load %arg11[%c0_30, %c384] : memref<1x1920xf32, #tpu.memory_space<vmem>>, vector<1x256xf32>
    %37 = vector.broadcast %36 : vector<1x256xf32> to vector<16x256xf32>
    %38 = arith.addf %35, %37 : vector<16x256xf32>
    %39 = vector.extract_strided_slice %38 {offsets = [0, 0], sizes = [16, 128], strides = [1, 1]} : vector<16x256xf32> to vector<16x128xf32>
    %40 = arith.truncf %39 : vector<16x128xf32> to vector<16x128xbf16>
    %41 = vector.extract_strided_slice %38 {offsets = [0, 128], sizes = [16, 128], strides = [1, 1]} : vector<16x256xf32> to vector<16x128xf32>
    %42 = arith.truncf %41 : vector<16x128xf32> to vector<16x128xbf16>
    %c0_31 = arith.constant 0 : index
    %c0_32 = arith.constant 0 : index
    %43 = vector.load %arg9[%c0_31, %c0_32] : memref<128x1024xbf16, #tpu.memory_space<vmem>>, vector<128x128xbf16>
    %44 = arith.truncf %27 : vector<1x128xf32> to vector<1x128xbf16>
    %cst_33 = arith.constant dense<0.000000e+00> : vector<1x128xf32>
    %45 = tpu.matmul %44, %43, %cst_33 {dimension_numbers = #tpu.dot_dimension_numbers<[1], [0], [0], [1], [0, 0, 1, 1], [], []>} : vector<1x128xbf16>, vector<128x128xbf16>, vector<1x128xf32> -> vector<1x128xf32>
    %c0_34 = arith.constant 0 : index
    %c256 = arith.constant 256 : index
    %46 = vector.load %arg11[%c0_34, %c256] : memref<1x1920xf32, #tpu.memory_space<vmem>>, vector<1x128xf32>
    %47 = arith.addf %45, %46 : vector<1x128xf32>
    %48 = arith.truncf %47 : vector<1x128xf32> to vector<1x128xbf16>
    %49 = vector.shape_cast %48 : vector<1x128xbf16> to vector<1x1x128xbf16>
    %50 = vector.shape_cast %40 : vector<16x128xbf16> to vector<1x16x128xbf16>
    %51 = vector.broadcast %49 : vector<1x1x128xbf16> to vector<1x16x128xbf16>
    %52 = arith.mulf %51, %50 : vector<1x16x128xbf16>
    %53 = vector.shape_cast %52 : vector<1x16x128xbf16> to vector<16x128xbf16>
    %cst_35 = arith.constant dense<0.000000e+00> : vector<16x128xf32>
    %54 = tpu.matmul %53, %0, %cst_35 {dimension_numbers = #tpu.dot_dimension_numbers<[1], [0], [0], [1], [0, 0, 1, 1], [], []>} : vector<16x128xbf16>, vector<128x128xbf16>, vector<16x128xf32> -> vector<16x128xf32>
    %cst_36 = arith.constant 1.250000e-01 : f32
    %55 = vector.broadcast %cst_36 : f32 to vector<16x128xf32>
    %56 = arith.mulf %54, %55 : vector<16x128xf32>
    %57 = vector.shape_cast %56 : vector<16x128xf32> to vector<1x16x128xf32>
    %cst_37 = arith.constant dense<0xFF800000> : vector<1x128xf32>
    %58 = vector.multi_reduction <maximumf>, %57, %cst_37 [1] : vector<1x16x128xf32> to vector<1x128xf32>
    %59 = vector.shape_cast %58 : vector<1x128xf32> to vector<1x1x128xf32>
    %60 = vector.broadcast %59 : vector<1x1x128xf32> to vector<1x16x128xf32>
    %61 = arith.subf %57, %60 : vector<1x16x128xf32>
    %62 = math.exp %61 : vector<1x16x128xf32>
    %cst_38 = arith.constant dense<0.000000e+00> : vector<1x128xf32>
    %63 = vector.multi_reduction <add>, %62, %cst_38 [1] : vector<1x16x128xf32> to vector<1x128xf32>
    %64 = vector.shape_cast %63 : vector<1x128xf32> to vector<1x1x128xf32>
    %65 = tpu.reciprocal %64 {approx = true} : vector<1x1x128xf32> -> vector<1x1x128xf32>
    %66 = vector.broadcast %65 : vector<1x1x128xf32> to vector<1x16x128xf32>
    %67 = arith.mulf %62, %66 : vector<1x16x128xf32>
    %68 = arith.truncf %67 : vector<1x16x128xf32> to vector<1x16x128xbf16>
    %69 = vector.shape_cast %68 : vector<1x16x128xbf16> to vector<16x128xbf16>
    %cst_39 = arith.constant dense<0.000000e+00> : vector<16x128xf32>
    %70 = tpu.matmul %69, %1, %cst_39 {dimension_numbers = #tpu.dot_dimension_numbers<[1], [0], [0], [1], [0, 0, 1, 1], [], []>} : vector<16x128xbf16>, vector<128x128xbf16>, vector<16x128xf32> -> vector<16x128xf32>
    %71 = arith.extf %42 : vector<16x128xbf16> to vector<16x128xf32>
    %72 = arith.mulf %70, %71 : vector<16x128xf32>
    %73 = vector.shape_cast %72 : vector<16x128xf32> to vector<1x16x128xf32>
    %cst_40 = arith.constant dense<0.000000e+00> : vector<1x128xf32>
    %74 = vector.multi_reduction <add>, %73, %cst_40 [1] : vector<1x16x128xf32> to vector<1x128xf32>
    %c0_41 = arith.constant 0 : index
    %c384_42 = arith.constant 384 : index
    %75 = vector.load %arg9[%c0_41, %c384_42] : memref<128x1024xbf16, #tpu.memory_space<vmem>>, vector<128x128xbf16>
    %76 = arith.truncf %74 : vector<1x128xf32> to vector<1x128xbf16>
    %cst_43 = arith.constant dense<0.000000e+00> : vector<1x128xf32>
    %77 = tpu.matmul %76, %75, %cst_43 {dimension_numbers = #tpu.dot_dimension_numbers<[1], [0], [0], [1], [0, 0, 1, 1], [], []>} : vector<1x128xbf16>, vector<128x128xbf16>, vector<1x128xf32> -> vector<1x128xf32>
    %c0_44 = arith.constant 0 : index
    %c640 = arith.constant 640 : index
    %78 = vector.load %arg11[%c0_44, %c640] : memref<1x1920xf32, #tpu.memory_space<vmem>>, vector<1x128xf32>
    %79 = arith.addf %77, %78 : vector<1x128xf32>
    %80 = arith.addf %27, %79 : vector<1x128xf32>
    %c0_45 = arith.constant 0 : index
    %c768 = arith.constant 768 : index
    %81 = vector.load %arg11[%c0_45, %c768] : memref<1x1920xf32, #tpu.memory_space<vmem>>, vector<1x128xf32>
    %c0_46 = arith.constant 0 : index
    %c896 = arith.constant 896 : index
    %82 = vector.load %arg11[%c0_46, %c896] : memref<1x1920xf32, #tpu.memory_space<vmem>>, vector<1x128xf32>
    %cst_47 = arith.constant dense<0.000000e+00> : vector<1xf32>
    %83 = vector.multi_reduction <add>, %80, %cst_47 [1] : vector<1x128xf32> to vector<1xf32>
    %84 = vector.shape_cast %83 : vector<1xf32> to vector<1x1xf32>
    %cst_48 = arith.constant 1.280000e+02 : f32
    %85 = vector.broadcast %cst_48 : f32 to vector<1x1xf32>
    %86 = arith.divf %84, %85 : vector<1x1xf32>
    %87 = vector.broadcast %86 : vector<1x1xf32> to vector<1x128xf32>
    %88 = arith.subf %80, %87 : vector<1x128xf32>
    %89 = arith.mulf %88, %88 : vector<1x128xf32>
    %cst_49 = arith.constant dense<0.000000e+00> : vector<1xf32>
    %90 = vector.multi_reduction <add>, %89, %cst_49 [1] : vector<1x128xf32> to vector<1xf32>
    %91 = vector.shape_cast %90 : vector<1xf32> to vector<1x1xf32>
    %cst_50 = arith.constant 1.280000e+02 : f32
    %92 = vector.broadcast %cst_50 : f32 to vector<1x1xf32>
    %93 = arith.divf %91, %92 : vector<1x1xf32>
    %94 = vector.broadcast %86 : vector<1x1xf32> to vector<1x128xf32>
    %95 = arith.subf %80, %94 : vector<1x128xf32>
    %cst_51 = arith.constant 9.99999974E-6 : f32
    %96 = vector.broadcast %cst_51 : f32 to vector<1x1xf32>
    %97 = arith.addf %93, %96 : vector<1x1xf32>
    %98 = math.rsqrt %97 : vector<1x1xf32>
    %99 = vector.broadcast %98 : vector<1x1xf32> to vector<1x128xf32>
    %100 = arith.mulf %95, %99 : vector<1x128xf32>
    %101 = arith.mulf %100, %81 : vector<1x128xf32>
    %102 = arith.addf %101, %82 : vector<1x128xf32>
    %c0_52 = arith.constant 0 : index
    %c512 = arith.constant 512 : index
    %103 = vector.load %arg9[%c0_52, %c512] : memref<128x1024xbf16, #tpu.memory_space<vmem>>, vector<128x512xbf16>
    %104 = arith.truncf %102 : vector<1x128xf32> to vector<1x128xbf16>
    %cst_53 = arith.constant dense<0.000000e+00> : vector<1x512xf32>
    %105 = tpu.matmul %104, %103, %cst_53 {dimension_numbers = #tpu.dot_dimension_numbers<[1], [0], [0], [1], [0, 0, 1, 1], [], []>} : vector<1x128xbf16>, vector<128x512xbf16>, vector<1x512xf32> -> vector<1x512xf32>
    %c0_54 = arith.constant 0 : index
    %c1024 = arith.constant 1024 : index
    %106 = vector.load %arg11[%c0_54, %c1024] : memref<1x1920xf32, #tpu.memory_space<vmem>>, vector<1x512xf32>
    %107 = arith.addf %105, %106 : vector<1x512xf32>
    %cst_55 = arith.constant 5.000000e-01 : f32
    %108 = vector.broadcast %cst_55 : f32 to vector<1x512xf32>
    %109 = arith.mulf %108, %107 : vector<1x512xf32>
    %cst_56 = arith.constant 4.471500e-02 : f32
    %110 = vector.broadcast %cst_56 : f32 to vector<1x512xf32>
    %111 = arith.mulf %110, %107 : vector<1x512xf32>
    %112 = arith.mulf %111, %107 : vector<1x512xf32>
    %113 = arith.mulf %112, %107 : vector<1x512xf32>
    %114 = arith.addf %107, %113 : vector<1x512xf32>
    %cst_57 = arith.constant 0.797884583 : f32
    %115 = vector.broadcast %cst_57 : f32 to vector<1x512xf32>
    %116 = arith.mulf %115, %114 : vector<1x512xf32>
    %117 = math.tanh %116 : vector<1x512xf32>
    %cst_58 = arith.constant 1.000000e+00 : f32
    %118 = vector.broadcast %cst_58 : f32 to vector<1x512xf32>
    %119 = arith.addf %118, %117 : vector<1x512xf32>
    %120 = arith.mulf %109, %119 : vector<1x512xf32>
    %121 = arith.truncf %120 : vector<1x512xf32> to vector<1x512xbf16>
    %c0_59 = arith.constant 0 : index
    %c0_60 = arith.constant 0 : index
    %122 = vector.load %arg10[%c0_59, %c0_60] : memref<512x128xbf16, #tpu.memory_space<vmem>>, vector<512x128xbf16>
    %cst_61 = arith.constant dense<0.000000e+00> : vector<1x128xf32>
    %123 = tpu.matmul %121, %122, %cst_61 {dimension_numbers = #tpu.dot_dimension_numbers<[1], [0], [0], [1], [0, 0, 1, 1], [], []>} : vector<1x512xbf16>, vector<512x128xbf16>, vector<1x128xf32> -> vector<1x128xf32>
    %c0_62 = arith.constant 0 : index
    %c1536 = arith.constant 1536 : index
    %124 = vector.load %arg11[%c0_62, %c1536] : memref<1x1920xf32, #tpu.memory_space<vmem>>, vector<1x128xf32>
    %125 = arith.addf %123, %124 : vector<1x128xf32>
    %126 = arith.addf %102, %125 : vector<1x128xf32>
    %c0_63 = arith.constant 0 : index
    %c1664 = arith.constant 1664 : index
    %127 = vector.load %arg11[%c0_63, %c1664] : memref<1x1920xf32, #tpu.memory_space<vmem>>, vector<1x128xf32>
    %c0_64 = arith.constant 0 : index
    %c1792 = arith.constant 1792 : index
    %128 = vector.load %arg11[%c0_64, %c1792] : memref<1x1920xf32, #tpu.memory_space<vmem>>, vector<1x128xf32>
    %cst_65 = arith.constant dense<0.000000e+00> : vector<1xf32>
    %129 = vector.multi_reduction <add>, %126, %cst_65 [1] : vector<1x128xf32> to vector<1xf32>
    %130 = vector.shape_cast %129 : vector<1xf32> to vector<1x1xf32>
    %cst_66 = arith.constant 1.280000e+02 : f32
    %131 = vector.broadcast %cst_66 : f32 to vector<1x1xf32>
    %132 = arith.divf %130, %131 : vector<1x1xf32>
    %133 = vector.broadcast %132 : vector<1x1xf32> to vector<1x128xf32>
    %134 = arith.subf %126, %133 : vector<1x128xf32>
    %135 = arith.mulf %134, %134 : vector<1x128xf32>
    %cst_67 = arith.constant dense<0.000000e+00> : vector<1xf32>
    %136 = vector.multi_reduction <add>, %135, %cst_67 [1] : vector<1x128xf32> to vector<1xf32>
    %137 = vector.shape_cast %136 : vector<1xf32> to vector<1x1xf32>
    %cst_68 = arith.constant 1.280000e+02 : f32
    %138 = vector.broadcast %cst_68 : f32 to vector<1x1xf32>
    %139 = arith.divf %137, %138 : vector<1x1xf32>
    %140 = vector.broadcast %132 : vector<1x1xf32> to vector<1x128xf32>
    %141 = arith.subf %126, %140 : vector<1x128xf32>
    %cst_69 = arith.constant 9.99999974E-6 : f32
    %142 = vector.broadcast %cst_69 : f32 to vector<1x1xf32>
    %143 = arith.addf %139, %142 : vector<1x1xf32>
    %144 = math.rsqrt %143 : vector<1x1xf32>
    %145 = vector.broadcast %144 : vector<1x1xf32> to vector<1x128xf32>
    %146 = arith.mulf %141, %145 : vector<1x128xf32>
    %147 = arith.mulf %146, %127 : vector<1x128xf32>
    %148 = arith.addf %147, %128 : vector<1x128xf32>
    %c0_70 = arith.constant 0 : index
    %c0_71 = arith.constant 0 : index
    %149 = vector.load %arg1[%c0_70, %c0_71] : memref<8x256xbf16, #tpu.memory_space<vmem>>, vector<8x256xbf16>
    %c0_72 = arith.constant 0 : index
    %c128_73 = arith.constant 128 : index
    %150 = vector.load %arg7[%c0_72, %c128_73] : memref<1x1920xf32, #tpu.memory_space<vmem>>, vector<1x128xf32>
    %151 = arith.addf %150, %148 : vector<1x128xf32>
    %c0_74 = arith.constant 0 : index
    %c0_75 = arith.constant 0 : index
    %152 = vector.load %arg4[%c0_74, %c0_75] : memref<256x128xbf16, #tpu.memory_space<vmem>>, vector<256x128xbf16>
    %cst_76 = arith.constant dense<0.000000e+00> : vector<8x128xf32>
    %153 = tpu.matmul %149, %152, %cst_76 {dimension_numbers = #tpu.dot_dimension_numbers<[1], [0], [0], [1], [0, 0, 1, 1], [], []>} : vector<8x256xbf16>, vector<256x128xbf16>, vector<8x128xf32> -> vector<8x128xf32>
    %c0_77 = arith.constant 0 : index
    %c0_78 = arith.constant 0 : index
    %154 = vector.load %arg7[%c0_77, %c0_78] : memref<1x1920xf32, #tpu.memory_space<vmem>>, vector<1x128xf32>
    %155 = vector.broadcast %154 : vector<1x128xf32> to vector<8x128xf32>
    %156 = arith.addf %153, %155 : vector<8x128xf32>
    %157 = arith.truncf %156 : vector<8x128xf32> to vector<8x128xbf16>
    %c0_79 = arith.constant 0 : index
    %c128_80 = arith.constant 128 : index
    %158 = vector.load %arg5[%c0_79, %c128_80] : memref<128x1024xbf16, #tpu.memory_space<vmem>>, vector<128x256xbf16>
    %cst_81 = arith.constant dense<0.000000e+00> : vector<8x256xf32>
    %159 = tpu.matmul %157, %158, %cst_81 {dimension_numbers = #tpu.dot_dimension_numbers<[1], [0], [0], [1], [0, 0, 1, 1], [], []>} : vector<8x128xbf16>, vector<128x256xbf16>, vector<8x256xf32> -> vector<8x256xf32>
    %c0_82 = arith.constant 0 : index
    %c384_83 = arith.constant 384 : index
    %160 = vector.load %arg7[%c0_82, %c384_83] : memref<1x1920xf32, #tpu.memory_space<vmem>>, vector<1x256xf32>
    %161 = vector.broadcast %160 : vector<1x256xf32> to vector<8x256xf32>
    %162 = arith.addf %159, %161 : vector<8x256xf32>
    %163 = vector.extract_strided_slice %162 {offsets = [0, 0], sizes = [8, 128], strides = [1, 1]} : vector<8x256xf32> to vector<8x128xf32>
    %164 = arith.truncf %163 : vector<8x128xf32> to vector<8x128xbf16>
    %165 = vector.extract_strided_slice %162 {offsets = [0, 128], sizes = [8, 128], strides = [1, 1]} : vector<8x256xf32> to vector<8x128xf32>
    %166 = arith.truncf %165 : vector<8x128xf32> to vector<8x128xbf16>
    %c0_84 = arith.constant 0 : index
    %c0_85 = arith.constant 0 : index
    %167 = vector.load %arg5[%c0_84, %c0_85] : memref<128x1024xbf16, #tpu.memory_space<vmem>>, vector<128x128xbf16>
    %168 = arith.truncf %151 : vector<1x128xf32> to vector<1x128xbf16>
    %cst_86 = arith.constant dense<0.000000e+00> : vector<1x128xf32>
    %169 = tpu.matmul %168, %167, %cst_86 {dimension_numbers = #tpu.dot_dimension_numbers<[1], [0], [0], [1], [0, 0, 1, 1], [], []>} : vector<1x128xbf16>, vector<128x128xbf16>, vector<1x128xf32> -> vector<1x128xf32>
    %c0_87 = arith.constant 0 : index
    %c256_88 = arith.constant 256 : index
    %170 = vector.load %arg7[%c0_87, %c256_88] : memref<1x1920xf32, #tpu.memory_space<vmem>>, vector<1x128xf32>
    %171 = arith.addf %169, %170 : vector<1x128xf32>
    %172 = arith.truncf %171 : vector<1x128xf32> to vector<1x128xbf16>
    %173 = vector.shape_cast %172 : vector<1x128xbf16> to vector<1x1x128xbf16>
    %174 = vector.shape_cast %164 : vector<8x128xbf16> to vector<1x8x128xbf16>
    %175 = vector.broadcast %173 : vector<1x1x128xbf16> to vector<1x8x128xbf16>
    %176 = arith.mulf %175, %174 : vector<1x8x128xbf16>
    %177 = vector.shape_cast %176 : vector<1x8x128xbf16> to vector<8x128xbf16>
    %cst_89 = arith.constant dense<0.000000e+00> : vector<8x128xf32>
    %178 = tpu.matmul %177, %0, %cst_89 {dimension_numbers = #tpu.dot_dimension_numbers<[1], [0], [0], [1], [0, 0, 1, 1], [], []>} : vector<8x128xbf16>, vector<128x128xbf16>, vector<8x128xf32> -> vector<8x128xf32>
    %cst_90 = arith.constant 1.250000e-01 : f32
    %179 = vector.broadcast %cst_90 : f32 to vector<8x128xf32>
    %180 = arith.mulf %178, %179 : vector<8x128xf32>
    %181 = tpu.iota {dimensions = array<i32: 0>} : vector<8x128xi32>
    %c7_i32 = arith.constant 7 : i32
    %182 = vector.broadcast %c7_i32 : i32 to vector<8x128xi32>
    %183 = arith.andi %181, %182 : vector<8x128xi32>
    %c4_i32 = arith.constant 4 : i32
    %184 = vector.broadcast %c4_i32 : i32 to vector<8x128xi32>
    %185 = arith.cmpi slt, %183, %184 : vector<8x128xi32>
    %cst_91 = arith.constant -1.000000e+30 : f32
    %186 = vector.broadcast %cst_91 : f32 to vector<8x128xf32>
    %187 = arith.select %185, %180, %186 : vector<8x128xi1>, vector<8x128xf32>
    %188 = vector.shape_cast %187 : vector<8x128xf32> to vector<1x8x128xf32>
    %cst_92 = arith.constant dense<0xFF800000> : vector<1x128xf32>
    %189 = vector.multi_reduction <maximumf>, %188, %cst_92 [1] : vector<1x8x128xf32> to vector<1x128xf32>
    %190 = vector.shape_cast %189 : vector<1x128xf32> to vector<1x1x128xf32>
    %191 = vector.broadcast %190 : vector<1x1x128xf32> to vector<1x8x128xf32>
    %192 = arith.subf %188, %191 : vector<1x8x128xf32>
    %193 = math.exp %192 : vector<1x8x128xf32>
    %cst_93 = arith.constant dense<0.000000e+00> : vector<1x128xf32>
    %194 = vector.multi_reduction <add>, %193, %cst_93 [1] : vector<1x8x128xf32> to vector<1x128xf32>
    %195 = vector.shape_cast %194 : vector<1x128xf32> to vector<1x1x128xf32>
    %196 = tpu.reciprocal %195 {approx = true} : vector<1x1x128xf32> -> vector<1x1x128xf32>
    %197 = vector.broadcast %196 : vector<1x1x128xf32> to vector<1x8x128xf32>
    %198 = arith.mulf %193, %197 : vector<1x8x128xf32>
    %199 = arith.truncf %198 : vector<1x8x128xf32> to vector<1x8x128xbf16>
    %200 = vector.shape_cast %199 : vector<1x8x128xbf16> to vector<8x128xbf16>
    %cst_94 = arith.constant dense<0.000000e+00> : vector<8x128xf32>
    %201 = tpu.matmul %200, %1, %cst_94 {dimension_numbers = #tpu.dot_dimension_numbers<[1], [0], [0], [1], [0, 0, 1, 1], [], []>} : vector<8x128xbf16>, vector<128x128xbf16>, vector<8x128xf32> -> vector<8x128xf32>
    %202 = arith.extf %166 : vector<8x128xbf16> to vector<8x128xf32>
    %203 = arith.mulf %201, %202 : vector<8x128xf32>
    %204 = vector.shape_cast %203 : vector<8x128xf32> to vector<1x8x128xf32>
    %cst_95 = arith.constant dense<0.000000e+00> : vector<1x128xf32>
    %205 = vector.multi_reduction <add>, %204, %cst_95 [1] : vector<1x8x128xf32> to vector<1x128xf32>
    %c0_96 = arith.constant 0 : index
    %c384_97 = arith.constant 384 : index
    %206 = vector.load %arg5[%c0_96, %c384_97] : memref<128x1024xbf16, #tpu.memory_space<vmem>>, vector<128x128xbf16>
    %207 = arith.truncf %205 : vector<1x128xf32> to vector<1x128xbf16>
    %cst_98 = arith.constant dense<0.000000e+00> : vector<1x128xf32>
    %208 = tpu.matmul %207, %206, %cst_98 {dimension_numbers = #tpu.dot_dimension_numbers<[1], [0], [0], [1], [0, 0, 1, 1], [], []>} : vector<1x128xbf16>, vector<128x128xbf16>, vector<1x128xf32> -> vector<1x128xf32>
    %c0_99 = arith.constant 0 : index
    %c640_100 = arith.constant 640 : index
    %209 = vector.load %arg7[%c0_99, %c640_100] : memref<1x1920xf32, #tpu.memory_space<vmem>>, vector<1x128xf32>
    %210 = arith.addf %208, %209 : vector<1x128xf32>
    %211 = arith.addf %151, %210 : vector<1x128xf32>
    %c0_101 = arith.constant 0 : index
    %c768_102 = arith.constant 768 : index
    %212 = vector.load %arg7[%c0_101, %c768_102] : memref<1x1920xf32, #tpu.memory_space<vmem>>, vector<1x128xf32>
    %c0_103 = arith.constant 0 : index
    %c896_104 = arith.constant 896 : index
    %213 = vector.load %arg7[%c0_103, %c896_104] : memref<1x1920xf32, #tpu.memory_space<vmem>>, vector<1x128xf32>
    %cst_105 = arith.constant dense<0.000000e+00> : vector<1xf32>
    %214 = vector.multi_reduction <add>, %211, %cst_105 [1] : vector<1x128xf32> to vector<1xf32>
    %215 = vector.shape_cast %214 : vector<1xf32> to vector<1x1xf32>
    %cst_106 = arith.constant 1.280000e+02 : f32
    %216 = vector.broadcast %cst_106 : f32 to vector<1x1xf32>
    %217 = arith.divf %215, %216 : vector<1x1xf32>
    %218 = vector.broadcast %217 : vector<1x1xf32> to vector<1x128xf32>
    %219 = arith.subf %211, %218 : vector<1x128xf32>
    %220 = arith.mulf %219, %219 : vector<1x128xf32>
    %cst_107 = arith.constant dense<0.000000e+00> : vector<1xf32>
    %221 = vector.multi_reduction <add>, %220, %cst_107 [1] : vector<1x128xf32> to vector<1xf32>
    %222 = vector.shape_cast %221 : vector<1xf32> to vector<1x1xf32>
    %cst_108 = arith.constant 1.280000e+02 : f32
    %223 = vector.broadcast %cst_108 : f32 to vector<1x1xf32>
    %224 = arith.divf %222, %223 : vector<1x1xf32>
    %225 = vector.broadcast %217 : vector<1x1xf32> to vector<1x128xf32>
    %226 = arith.subf %211, %225 : vector<1x128xf32>
    %cst_109 = arith.constant 9.99999974E-6 : f32
    %227 = vector.broadcast %cst_109 : f32 to vector<1x1xf32>
    %228 = arith.addf %224, %227 : vector<1x1xf32>
    %229 = math.rsqrt %228 : vector<1x1xf32>
    %230 = vector.broadcast %229 : vector<1x1xf32> to vector<1x128xf32>
    %231 = arith.mulf %226, %230 : vector<1x128xf32>
    %232 = arith.mulf %231, %212 : vector<1x128xf32>
    %233 = arith.addf %232, %213 : vector<1x128xf32>
    %c0_110 = arith.constant 0 : index
    %c512_111 = arith.constant 512 : index
    %234 = vector.load %arg5[%c0_110, %c512_111] : memref<128x1024xbf16, #tpu.memory_space<vmem>>, vector<128x512xbf16>
    %235 = arith.truncf %233 : vector<1x128xf32> to vector<1x128xbf16>
    %cst_112 = arith.constant dense<0.000000e+00> : vector<1x512xf32>
    %236 = tpu.matmul %235, %234, %cst_112 {dimension_numbers = #tpu.dot_dimension_numbers<[1], [0], [0], [1], [0, 0, 1, 1], [], []>} : vector<1x128xbf16>, vector<128x512xbf16>, vector<1x512xf32> -> vector<1x512xf32>
    %c0_113 = arith.constant 0 : index
    %c1024_114 = arith.constant 1024 : index
    %237 = vector.load %arg7[%c0_113, %c1024_114] : memref<1x1920xf32, #tpu.memory_space<vmem>>, vector<1x512xf32>
    %238 = arith.addf %236, %237 : vector<1x512xf32>
    %cst_115 = arith.constant 5.000000e-01 : f32
    %239 = vector.broadcast %cst_115 : f32 to vector<1x512xf32>
    %240 = arith.mulf %239, %238 : vector<1x512xf32>
    %cst_116 = arith.constant 4.471500e-02 : f32
    %241 = vector.broadcast %cst_116 : f32 to vector<1x512xf32>
    %242 = arith.mulf %241, %238 : vector<1x512xf32>
    %243 = arith.mulf %242, %238 : vector<1x512xf32>
    %244 = arith.mulf %243, %238 : vector<1x512xf32>
    %245 = arith.addf %238, %244 : vector<1x512xf32>
    %cst_117 = arith.constant 0.797884583 : f32
    %246 = vector.broadcast %cst_117 : f32 to vector<1x512xf32>
    %247 = arith.mulf %246, %245 : vector<1x512xf32>
    %248 = math.tanh %247 : vector<1x512xf32>
    %cst_118 = arith.constant 1.000000e+00 : f32
    %249 = vector.broadcast %cst_118 : f32 to vector<1x512xf32>
    %250 = arith.addf %249, %248 : vector<1x512xf32>
    %251 = arith.mulf %240, %250 : vector<1x512xf32>
    %252 = arith.truncf %251 : vector<1x512xf32> to vector<1x512xbf16>
    %c0_119 = arith.constant 0 : index
    %c0_120 = arith.constant 0 : index
    %253 = vector.load %arg6[%c0_119, %c0_120] : memref<512x128xbf16, #tpu.memory_space<vmem>>, vector<512x128xbf16>
    %cst_121 = arith.constant dense<0.000000e+00> : vector<1x128xf32>
    %254 = tpu.matmul %252, %253, %cst_121 {dimension_numbers = #tpu.dot_dimension_numbers<[1], [0], [0], [1], [0, 0, 1, 1], [], []>} : vector<1x512xbf16>, vector<512x128xbf16>, vector<1x128xf32> -> vector<1x128xf32>
    %c0_122 = arith.constant 0 : index
    %c1536_123 = arith.constant 1536 : index
    %255 = vector.load %arg7[%c0_122, %c1536_123] : memref<1x1920xf32, #tpu.memory_space<vmem>>, vector<1x128xf32>
    %256 = arith.addf %254, %255 : vector<1x128xf32>
    %257 = arith.addf %233, %256 : vector<1x128xf32>
    %c0_124 = arith.constant 0 : index
    %c1664_125 = arith.constant 1664 : index
    %258 = vector.load %arg7[%c0_124, %c1664_125] : memref<1x1920xf32, #tpu.memory_space<vmem>>, vector<1x128xf32>
    %c0_126 = arith.constant 0 : index
    %c1792_127 = arith.constant 1792 : index
    %259 = vector.load %arg7[%c0_126, %c1792_127] : memref<1x1920xf32, #tpu.memory_space<vmem>>, vector<1x128xf32>
    %cst_128 = arith.constant dense<0.000000e+00> : vector<1xf32>
    %260 = vector.multi_reduction <add>, %257, %cst_128 [1] : vector<1x128xf32> to vector<1xf32>
    %261 = vector.shape_cast %260 : vector<1xf32> to vector<1x1xf32>
    %cst_129 = arith.constant 1.280000e+02 : f32
    %262 = vector.broadcast %cst_129 : f32 to vector<1x1xf32>
    %263 = arith.divf %261, %262 : vector<1x1xf32>
    %264 = vector.broadcast %263 : vector<1x1xf32> to vector<1x128xf32>
    %265 = arith.subf %257, %264 : vector<1x128xf32>
    %266 = arith.mulf %265, %265 : vector<1x128xf32>
    %cst_130 = arith.constant dense<0.000000e+00> : vector<1xf32>
    %267 = vector.multi_reduction <add>, %266, %cst_130 [1] : vector<1x128xf32> to vector<1xf32>
    %268 = vector.shape_cast %267 : vector<1xf32> to vector<1x1xf32>
    %cst_131 = arith.constant 1.280000e+02 : f32
    %269 = vector.broadcast %cst_131 : f32 to vector<1x1xf32>
    %270 = arith.divf %268, %269 : vector<1x1xf32>
    %271 = vector.broadcast %263 : vector<1x1xf32> to vector<1x128xf32>
    %272 = arith.subf %257, %271 : vector<1x128xf32>
    %cst_132 = arith.constant 9.99999974E-6 : f32
    %273 = vector.broadcast %cst_132 : f32 to vector<1x1xf32>
    %274 = arith.addf %270, %273 : vector<1x1xf32>
    %275 = math.rsqrt %274 : vector<1x1xf32>
    %276 = vector.broadcast %275 : vector<1x1xf32> to vector<1x128xf32>
    %277 = arith.mulf %272, %276 : vector<1x128xf32>
    %278 = arith.mulf %277, %258 : vector<1x128xf32>
    %279 = arith.addf %278, %259 : vector<1x128xf32>
    %c0_133 = arith.constant 0 : index
    %c0_134 = arith.constant 0 : index
    %280 = vector.load %arg15[%c0_133, %c0_134] : memref<256x128xbf16, #tpu.memory_space<vmem>>, vector<128x128xbf16>
    %281 = arith.truncf %279 : vector<1x128xf32> to vector<1x128xbf16>
    %cst_135 = arith.constant dense<0.000000e+00> : vector<1x128xf32>
    %282 = tpu.matmul %281, %280, %cst_135 {dimension_numbers = #tpu.dot_dimension_numbers<[1], [0], [0], [1], [0, 0, 1, 1], [], []>} : vector<1x128xbf16>, vector<128x128xbf16>, vector<1x128xf32> -> vector<1x128xf32>
    %c128_136 = arith.constant 128 : index
    %c0_137 = arith.constant 0 : index
    %283 = vector.load %arg15[%c128_136, %c0_137] : memref<256x128xbf16, #tpu.memory_space<vmem>>, vector<128x128xbf16>
    %284 = arith.truncf %25 : vector<1x128xf32> to vector<1x128xbf16>
    %cst_138 = arith.constant dense<0.000000e+00> : vector<1x128xf32>
    %285 = tpu.matmul %284, %283, %cst_138 {dimension_numbers = #tpu.dot_dimension_numbers<[1], [0], [0], [1], [0, 0, 1, 1], [], []>} : vector<1x128xbf16>, vector<128x128xbf16>, vector<1x128xf32> -> vector<1x128xf32>
    %286 = arith.addf %282, %285 : vector<1x128xf32>
    %c0_139 = arith.constant 0 : index
    %c0_140 = arith.constant 0 : index
    %287 = vector.load %arg16[%c0_139, %c0_140] : memref<1x128xf32, #tpu.memory_space<vmem>>, vector<1x128xf32>
    %288 = arith.addf %286, %287 : vector<1x128xf32>
    %c0_141 = arith.constant 0 : index
    %c0_142 = arith.constant 0 : index
    %c0_143 = arith.constant 0 : index
    %289 = vector.load %arg19[%c0_141, %c0_142, %c0_143] : memref<1x1x128xf32, #tpu.memory_space<vmem>>, vector<1x1x128xf32>
    %290 = vector.shape_cast %289 : vector<1x1x128xf32> to vector<1x128xf32>
    %291 = vector.shape_cast %288 : vector<1x128xf32> to vector<1x1x128xf32>
    tpu.vector_store %arg19[%c0_141, %c0_142, %c0_143], %291 {strides = array<i32>} : memref<1x1x128xf32, #tpu.memory_space<vmem>>, vector<1x1x128xf32>,
    return
  }
  func.func @transform_0(%arg0: i32) -> (i32, i32) {
    %c0_i32 = arith.constant 0 : i32
    %c0_i32_0 = arith.constant 0 : i32
    return %arg0, %c0_i32 : i32, i32
  }
  func.func @transform_1(%arg0: i32) -> (i32, i32) {
    %c0_i32 = arith.constant 0 : i32
    %c0_i32_0 = arith.constant 0 : i32
    return %arg0, %c0_i32 : i32, i32
  }
  func.func @transform_2(%arg0: i32) -> (i32, i32, i32) {
    %c0_i32 = arith.constant 0 : i32
    %c0_i32_0 = arith.constant 0 : i32
    %c0_i32_1 = arith.constant 0 : i32
    return %arg0, %c0_i32, %c0_i32_0 : i32, i32, i32
  }
  func.func @transform_3(%arg0: i32) -> (i32, i32) {
    %c0_i32 = arith.constant 0 : i32
    %c0_i32_0 = arith.constant 0 : i32
    %c0_i32_1 = arith.constant 0 : i32
    return %c0_i32, %c0_i32_0 : i32, i32
  }
  func.func @transform_4(%arg0: i32) -> (i32, i32) {
    %c0_i32 = arith.constant 0 : i32
    %c0_i32_0 = arith.constant 0 : i32
    %c0_i32_1 = arith.constant 0 : i32
    return %c0_i32, %c0_i32_0 : i32, i32
  }
  func.func @transform_5(%arg0: i32) -> (i32, i32) {
    %c0_i32 = arith.constant 0 : i32
    %c0_i32_0 = arith.constant 0 : i32
    %c0_i32_1 = arith.constant 0 : i32
    return %c0_i32, %c0_i32_0 : i32, i32
  }
  func.func @transform_6(%arg0: i32) -> (i32, i32) {
    %c0_i32 = arith.constant 0 : i32
    %c0_i32_0 = arith.constant 0 : i32
    %c0_i32_1 = arith.constant 0 : i32
    return %c0_i32, %c0_i32_0 : i32, i32
  }
  func.func @transform_7(%arg0: i32) -> (i32, i32) {
    %c0_i32 = arith.constant 0 : i32
    %c0_i32_0 = arith.constant 0 : i32
    %c0_i32_1 = arith.constant 0 : i32
    return %c0_i32, %c0_i32_0 : i32, i32
  }
  func.func @transform_8(%arg0: i32) -> (i32, i32) {
    %c0_i32 = arith.constant 0 : i32
    %c0_i32_0 = arith.constant 0 : i32
    %c0_i32_1 = arith.constant 0 : i32
    return %c0_i32, %c0_i32_0 : i32, i32
  }
  func.func @transform_9(%arg0: i32) -> (i32, i32) {
    %c0_i32 = arith.constant 0 : i32
    %c0_i32_0 = arith.constant 0 : i32
    %c0_i32_1 = arith.constant 0 : i32
    return %c0_i32, %c0_i32_0 : i32, i32
  }
  func.func @transform_10(%arg0: i32) -> (i32, i32) {
    %c0_i32 = arith.constant 0 : i32
    %c0_i32_0 = arith.constant 0 : i32
    %c0_i32_1 = arith.constant 0 : i32
    return %c0_i32, %c0_i32_0 : i32, i32
  }
  func.func @transform_11(%arg0: i32) -> (i32, i32) {
    %c0_i32 = arith.constant 0 : i32
    %c0_i32_0 = arith.constant 0 : i32
    %c0_i32_1 = arith.constant 0 : i32
    return %c0_i32, %c0_i32_0 : i32, i32
  }
  func.func @transform_12(%arg0: i32) -> (i32, i32) {
    %c0_i32 = arith.constant 0 : i32
    %c0_i32_0 = arith.constant 0 : i32
    %c0_i32_1 = arith.constant 0 : i32
    return %c0_i32, %c0_i32_0 : i32, i32
  }
  func.func @transform_13(%arg0: i32) -> (i32, i32) {
    %c0_i32 = arith.constant 0 : i32
    %c0_i32_0 = arith.constant 0 : i32
    %c0_i32_1 = arith.constant 0 : i32
    return %c0_i32, %c0_i32_0 : i32, i32
  }
  func.func @transform_14(%arg0: i32) -> (i32, i32) {
    %c0_i32 = arith.constant 0 : i32
    %c0_i32_0 = arith.constant 0 : i32
    %c0_i32_1 = arith.constant 0 : i32
    return %c0_i32, %c0_i32_0 : i32, i32
  }
  func.func @transform_15(%arg0: i32) -> (i32, i32) {
    %c0_i32 = arith.constant 0 : i32
    %c0_i32_0 = arith.constant 0 : i32
    %c0_i32_1 = arith.constant 0 : i32
    return %c0_i32, %c0_i32_0 : i32, i32
  }
  func.func @transform_16(%arg0: i32) -> (i32, i32) {
    %c0_i32 = arith.constant 0 : i32
    %c0_i32_0 = arith.constant 0 : i32
    %c0_i32_1 = arith.constant 0 : i32
    return %c0_i32, %c0_i32_0 : i32, i32
  }
  func.func @transform_17(%arg0: i32) -> (i32, i32) {
    %c0_i32 = arith.constant 0 : i32
    %c0_i32_0 = arith.constant 0 : i32
    %c0_i32_1 = arith.constant 0 : i32
    return %c0_i32, %c0_i32_0 : i32, i32
  }
  func.func @transform_18(%arg0: i32) -> (i32, i32, i32) {
    %c0_i32 = arith.constant 0 : i32
    %c0_i32_0 = arith.constant 0 : i32
    %c0_i32_1 = arith.constant 0 : i32
    return %arg0, %c0_i32, %c0_i32_0 : i32, i32, i32
  }
}

module attributes {stable_mosaic.version = 11 : i64} {
  func.func @_decoder_kernel(%arg0: i32, %arg1: memref<8x256xbf16, #tpu.memory_space<vmem>>, %arg2: memref<16x256xbf16, #tpu.memory_space<vmem>>, %arg3: memref<1x1x128xbf16, #tpu.memory_space<vmem>>, %arg4: memref<256x128xbf16, #tpu.memory_space<vmem>>, %arg5: memref<128x1024xbf16, #tpu.memory_space<vmem>>, %arg6: memref<512x128xbf16, #tpu.memory_space<vmem>>, %arg7: memref<1x1920xf32, #tpu.memory_space<vmem>>, %arg8: memref<256x128xbf16, #tpu.memory_space<vmem>>, %arg9: memref<128x1024xbf16, #tpu.memory_space<vmem>>, %arg10: memref<512x128xbf16, #tpu.memory_space<vmem>>, %arg11: memref<1x1920xf32, #tpu.memory_space<vmem>>, %arg12: memref<128x128xbf16, #tpu.memory_space<vmem>>, %arg13: memref<128x128xbf16, #tpu.memory_space<vmem>>, %arg14: memref<1x256xf32, #tpu.memory_space<vmem>>, %arg15: memref<256x128xbf16, #tpu.memory_space<vmem>>, %arg16: memref<1x128xf32, #tpu.memory_space<vmem>>, %arg17: memref<128x128xbf16, #tpu.memory_space<vmem>>, %arg18: memref<128x128xbf16, #tpu.memory_space<vmem>>, %arg19: memref<1x1x128xf32, #tpu.memory_space<vmem>>) attributes {dimension_semantics = [#tpu.dimension_semantics<parallel>], iteration_bounds = array<i64: 2>, scalar_prefetch = 0 : i64, scratch_operands = 0 : i64, tpu.core_type = #tpu.core_type<tc>, window_params = [{transform_indices = @transform_0, window_bounds = array<i64: 8, 256>}, {transform_indices = @transform_1, window_bounds = array<i64: 16, 256>}, {transform_indices = @transform_2, window_bounds = array<i64: 1, 1, 128>}, {pipeline_mode = #tpu.pipeline_mode<synchronous>, transform_indices = @transform_3, window_bounds = array<i64: 256, 128>}, {pipeline_mode = #tpu.pipeline_mode<synchronous>, transform_indices = @transform_4, window_bounds = array<i64: 128, 1024>}, {pipeline_mode = #tpu.pipeline_mode<synchronous>, transform_indices = @transform_5, window_bounds = array<i64: 512, 128>}, {pipeline_mode = #tpu.pipeline_mode<synchronous>, transform_indices = @transform_6, window_bounds = array<i64: 1, 1920>}, {pipeline_mode = #tpu.pipeline_mode<synchronous>, transform_indices = @transform_7, window_bounds = array<i64: 256, 128>}, {pipeline_mode = #tpu.pipeline_mode<synchronous>, transform_indices = @transform_8, window_bounds = array<i64: 128, 1024>}, {pipeline_mode = #tpu.pipeline_mode<synchronous>, transform_indices = @transform_9, window_bounds = array<i64: 512, 128>}, {pipeline_mode = #tpu.pipeline_mode<synchronous>, transform_indices = @transform_10, window_bounds = array<i64: 1, 1920>}, {pipeline_mode = #tpu.pipeline_mode<synchronous>, transform_indices = @transform_11, window_bounds = array<i64: 128, 128>}, {pipeline_mode = #tpu.pipeline_mode<synchronous>, transform_indices = @transform_12, window_bounds = array<i64: 128, 128>}, {pipeline_mode = #tpu.pipeline_mode<synchronous>, transform_indices = @transform_13, window_bounds = array<i64: 1, 256>}, {pipeline_mode = #tpu.pipeline_mode<synchronous>, transform_indices = @transform_14, window_bounds = array<i64: 256, 128>}, {pipeline_mode = #tpu.pipeline_mode<synchronous>, transform_indices = @transform_15, window_bounds = array<i64: 1, 128>}, {pipeline_mode = #tpu.pipeline_mode<synchronous>, transform_indices = @transform_16, window_bounds = array<i64: 128, 128>}, {pipeline_mode = #tpu.pipeline_mode<synchronous>, transform_indices = @transform_17, window_bounds = array<i64: 128, 128>}, {transform_indices = @transform_18, window_bounds = array<i64: 1, 1, 128>}]} {
    %c0 = arith.constant 0 : index
    %c0_0 = arith.constant 0 : index
    %0 = vector.load %arg17[%c0, %c0_0] : memref<128x128xbf16, #tpu.memory_space<vmem>>, vector<128x128xbf16>
    %c0_1 = arith.constant 0 : index
    %c0_2 = arith.constant 0 : index
    %1 = vector.load %arg18[%c0_1, %c0_2] : memref<128x128xbf16, #tpu.memory_space<vmem>>, vector<128x128xbf16>
    %c0_3 = arith.constant 0 : index
    %c0_4 = arith.constant 0 : index
    %c0_5 = arith.constant 0 : index
    %2 = vector.load %arg3[%c0_3, %c0_4, %c0_5] : memref<1x1x128xbf16, #tpu.memory_space<vmem>>, vector<1x1x128xbf16>
    %3 = vector.shape_cast %2 : vector<1x1x128xbf16> to vector<1x128xbf16>
    %c0_6 = arith.constant 0 : index
    %c0_7 = arith.constant 0 : index
    %4 = vector.load %arg12[%c0_6, %c0_7] : memref<128x128xbf16, #tpu.memory_space<vmem>>, vector<128x128xbf16>
    %cst = arith.constant dense<0.000000e+00> : vector<1x128xf32>
    %5 = tpu.matmul %3, %4, %cst {dimension_numbers = #tpu.dot_dimension_numbers<[1], [0], [0], [1], [0, 0, 1, 1], [], []>} : vector<1x128xbf16>, vector<128x128xbf16>, vector<1x128xf32> -> vector<1x128xf32>
    %c0_8 = arith.constant 0 : index
    %c0_9 = arith.constant 0 : index
    %6 = vector.load %arg14[%c0_8, %c0_9] : memref<1x256xf32, #tpu.memory_space<vmem>>, vector<1x128xf32>
    %7 = arith.addf %5, %6 : vector<1x128xf32>
    %cst_10 = arith.constant 5.000000e-01 : f32
    %8 = vector.broadcast %cst_10 : f32 to vector<1x128xf32>
    %9 = arith.mulf %8, %7 : vector<1x128xf32>
    %cst_11 = arith.constant 4.471500e-02 : f32
    %10 = vector.broadcast %cst_11 : f32 to vector<1x128xf32>
    %11 = arith.mulf %10, %7 : vector<1x128xf32>
    %12 = arith.mulf %11, %7 : vector<1x128xf32>
    %13 = arith.mulf %12, %7 : vector<1x128xf32>
    %14 = arith.addf %7, %13 : vector<1x128xf32>
    %cst_12 = arith.constant 0.797884583 : f32
    %15 = vector.broadcast %cst_12 : f32 to vector<1x128xf32>
    %16 = arith.mulf %15, %14 : vector<1x128xf32>
    %17 = math.tanh %16 : vector<1x128xf32>
    %cst_13 = arith.constant 1.000000e+00 : f32
    %18 = vector.broadcast %cst_13 : f32 to vector<1x128xf32>
    %19 = arith.addf %18, %17 : vector<1x128xf32>
    %20 = arith.mulf %9, %19 : vector<1x128xf32>
    %c0_14 = arith.constant 0 : index
    %c0_15 = arith.constant 0 : index
    %21 = vector.load %arg13[%c0_14, %c0_15] : memref<128x128xbf16, #tpu.memory_space<vmem>>, vector<128x128xbf16>
    %22 = arith.truncf %20 : vector<1x128xf32> to vector<1x128xbf16>
    %cst_16 = arith.constant dense<0.000000e+00> : vector<1x128xf32>
    %23 = tpu.matmul %22, %21, %cst_16 {dimension_numbers = #tpu.dot_dimension_numbers<[1], [0], [0], [1], [0, 0, 1, 1], [], []>} : vector<1x128xbf16>, vector<128x128xbf16>, vector<1x128xf32> -> vector<1x128xf32>
    %c0_17 = arith.constant 0 : index
    %c128 = arith.constant 128 : index
    %24 = vector.load %arg14[%c0_17, %c128] : memref<1x256xf32, #tpu.memory_space<vmem>>, vector<1x128xf32>
    %25 = arith.addf %23, %24 : vector<1x128xf32>
    %c0_18 = arith.constant 0 : index
    %c0_19 = arith.constant 0 : index
    %26 = vector.load %arg2[%c0_18, %c0_19] : memref<16x256xbf16, #tpu.memory_space<vmem>>, vector<16x256xbf16>
    %c0_20 = arith.constant 0 : index
    %c128_21 = arith.constant 128 : index
    %27 = vector.load %arg11[%c0_20, %c128_21] : memref<1x1920xf32, #tpu.memory_space<vmem>>, vector<1x128xf32>
    %c0_22 = arith.constant 0 : index
    %c0_23 = arith.constant 0 : index
    %28 = vector.load %arg8[%c0_22, %c0_23] : memref<256x128xbf16, #tpu.memory_space<vmem>>, vector<256x128xbf16>
    %cst_24 = arith.constant dense<0.000000e+00> : vector<16x128xf32>
    %29 = tpu.matmul %26, %28, %cst_24 {dimension_numbers = #tpu.dot_dimension_numbers<[1], [0], [0], [1], [0, 0, 1, 1], [], []>} : vector<16x256xbf16>, vector<256x128xbf16>, vector<16x128xf32> -> vector<16x128xf32>
    %c0_25 = arith.constant 0 : index
    %c0_26 = arith.constant 0 : index
    %30 = vector.load %arg11[%c0_25, %c0_26] : memref<1x1920xf32, #tpu.memory_space<vmem>>, vector<1x128xf32>
    %31 = vector.broadcast %30 : vector<1x128xf32> to vector<16x128xf32>
    %32 = arith.addf %29, %31 : vector<16x128xf32>
    %33 = arith.truncf %32 : vector<16x128xf32> to vector<16x128xbf16>
    %c0_27 = arith.constant 0 : index
    %c128_28 = arith.constant 128 : index
    %34 = vector.load %arg9[%c0_27, %c128_28] : memref<128x1024xbf16, #tpu.memory_space<vmem>>, vector<128x256xbf16>
    %cst_29 = arith.constant dense<0.000000e+00> : vector<16x256xf32>
    %35 = tpu.matmul %33, %34, %cst_29 {dimension_numbers = #tpu.dot_dimension_numbers<[1], [0], [0], [1], [0, 0, 1, 1], [], []>} : vector<16x128xbf16>, vector<128x256xbf16>, vector<16x256xf32> -> vector<16x256xf32>
    %c0_30 = arith.constant 0 : index
    %c384 = arith.constant 384 : index
    %36 = vector.load %arg11[%c0_30, %c384] : memref<1x1920xf32, #tpu.memory_space<vmem>>, vector<1x256xf32>
    %37 = vector.broadcast %36 : vector<1x256xf32> to vector<16x256xf32>
    %38 = arith.addf %35, %37 : vector<16x256xf32>
    %39 = vector.extract_strided_slice %38 {offsets = [0, 0], sizes = [16, 128], strides = [1, 1]} : vector<16x256xf32> to vector<16x128xf32>
    %40 = arith.truncf %39 : vector<16x128xf32> to vector<16x128xbf16>
    %41 = vector.extract_strided_slice %38 {offsets = [0, 128], sizes = [16, 128], strides = [1, 1]} : vector<16x256xf32> to vector<16x128xf32>
    %42 = arith.truncf %41 : vector<16x128xf32> to vector<16x128xbf16>
    %c0_31 = arith.constant 0 : index
    %c0_32 = arith.constant 0 : index
    %43 = vector.load %arg9[%c0_31, %c0_32] : memref<128x1024xbf16, #tpu.memory_space<vmem>>, vector<128x128xbf16>
    %44 = arith.truncf %27 : vector<1x128xf32> to vector<1x128xbf16>
    %cst_33 = arith.constant dense<0.000000e+00> : vector<1x128xf32>
    %45 = tpu.matmul %44, %43, %cst_33 {dimension_numbers = #tpu.dot_dimension_numbers<[1], [0], [0], [1], [0, 0, 1, 1], [], []>} : vector<1x128xbf16>, vector<128x128xbf16>, vector<1x128xf32> -> vector<1x128xf32>
    %c0_34 = arith.constant 0 : index
    %c256 = arith.constant 256 : index
    %46 = vector.load %arg11[%c0_34, %c256] : memref<1x1920xf32, #tpu.memory_space<vmem>>, vector<1x128xf32>
    %47 = arith.addf %45, %46 : vector<1x128xf32>
    %48 = arith.truncf %47 : vector<1x128xf32> to vector<1x128xbf16>
    %49 = vector.shape_cast %48 : vector<1x128xbf16> to vector<1x1x128xbf16>
    %50 = vector.shape_cast %40 : vector<16x128xbf16> to vector<1x16x128xbf16>
    %51 = vector.broadcast %49 : vector<1x1x128xbf16> to vector<1x16x128xbf16>
    %52 = arith.mulf %51, %50 : vector<1x16x128xbf16>
    %53 = vector.shape_cast %52 : vector<1x16x128xbf16> to vector<16x128xbf16>
    %cst_35 = arith.constant dense<0.000000e+00> : vector<16x128xf32>
    %54 = tpu.matmul %53, %0, %cst_35 {dimension_numbers = #tpu.dot_dimension_numbers<[1], [0], [0], [1], [0, 0, 1, 1], [], []>} : vector<16x128xbf16>, vector<128x128xbf16>, vector<16x128xf32> -> vector<16x128xf32>
    %cst_36 = arith.constant 1.250000e-01 : f32
    %55 = vector.broadcast %cst_36 : f32 to vector<16x128xf32>
    %56 = arith.mulf %54, %55 : vector<16x128xf32>
    %57 = vector.shape_cast %56 : vector<16x128xf32> to vector<1x16x128xf32>
    %cst_37 = arith.constant dense<0xFF800000> : vector<1x128xf32>
    %58 = vector.multi_reduction <maximumf>, %57, %cst_37 [1] : vector<1x16x128xf32> to vector<1x128xf32>
    %59 = vector.shape_cast %58 : vector<1x128xf32> to vector<1x1x128xf32>
    %60 = vector.broadcast %59 : vector<1x1x128xf32> to vector<1x16x128xf32>
    %61 = arith.subf %57, %60 : vector<1x16x128xf32>
    %62 = math.exp %61 : vector<1x16x128xf32>
    %cst_38 = arith.constant dense<0.000000e+00> : vector<1x128xf32>
    %63 = vector.multi_reduction <add>, %62, %cst_38 [1] : vector<1x16x128xf32> to vector<1x128xf32>
    %64 = vector.shape_cast %63 : vector<1x128xf32> to vector<1x1x128xf32>
    %65 = tpu.reciprocal %64 {approx = true} : vector<1x1x128xf32> -> vector<1x1x128xf32>
    %66 = vector.broadcast %65 : vector<1x1x128xf32> to vector<1x16x128xf32>
    %67 = arith.mulf %62, %66 : vector<1x16x128xf32>
    %68 = arith.truncf %67 : vector<1x16x128xf32> to vector<1x16x128xbf16>
    %69 = vector.shape_cast %68 : vector<1x16x128xbf16> to vector<16x128xbf16>
    %cst_39 = arith.constant dense<0.000000e+00> : vector<16x128xf32>
    %70 = tpu.matmul %69, %1, %cst_39 {dimension_numbers = #tpu.dot_dimension_numbers<[1], [0], [0], [1], [0, 0, 1, 1], [], []>} : vector<16x128xbf16>, vector<128x128xbf16>, vector<16x128xf32> -> vector<16x128xf32>
    %71 = arith.extf %42 : vector<16x128xbf16> to vector<16x128xf32>
    %72 = arith.mulf %70, %71 : vector<16x128xf32>
    %73 = vector.shape_cast %72 : vector<16x128xf32> to vector<1x16x128xf32>
    %cst_40 = arith.constant dense<0.000000e+00> : vector<1x128xf32>
    %74 = vector.multi_reduction <add>, %73, %cst_40 [1] : vector<1x16x128xf32> to vector<1x128xf32>
    %c0_41 = arith.constant 0 : index
    %c384_42 = arith.constant 384 : index
    %75 = vector.load %arg9[%c0_41, %c384_42] : memref<128x1024xbf16, #tpu.memory_space<vmem>>, vector<128x128xbf16>
    %76 = arith.truncf %74 : vector<1x128xf32> to vector<1x128xbf16>
    %cst_43 = arith.constant dense<0.000000e+00> : vector<1x128xf32>
    %77 = tpu.matmul %76, %75, %cst_43 {dimension_numbers = #tpu.dot_dimension_numbers<[1], [0], [0], [1], [0, 0, 1, 1], [], []>} : vector<1x128xbf16>, vector<128x128xbf16>, vector<1x128xf32> -> vector<1x128xf32>
    %c0_44 = arith.constant 0 : index
    %c640 = arith.constant 640 : index
    %78 = vector.load %arg11[%c0_44, %c640] : memref<1x1920xf32, #tpu.memory_space<vmem>>, vector<1x128xf32>
    %79 = arith.addf %77, %78 : vector<1x128xf32>
    %80 = arith.addf %27, %79 : vector<1x128xf32>
    %c0_45 = arith.constant 0 : index
    %c768 = arith.constant 768 : index
    %81 = vector.load %arg11[%c0_45, %c768] : memref<1x1920xf32, #tpu.memory_space<vmem>>, vector<1x128xf32>
    %c0_46 = arith.constant 0 : index
    %c896 = arith.constant 896 : index
    %82 = vector.load %arg11[%c0_46, %c896] : memref<1x1920xf32, #tpu.memory_space<vmem>>, vector<1x128xf32>
    %cst_47 = arith.constant dense<0.000000e+00> : vector<1xf32>
    %83 = vector.multi_reduction <add>, %80, %cst_47 [1] : vector<1x128xf32> to vector<1xf32>
    %84 = vector.shape_cast %83 : vector<1xf32> to vector<1x1xf32>
    %cst_48 = arith.constant 1.280000e+02 : f32
    %85 = vector.broadcast %cst_48 : f32 to vector<1x1xf32>
    %86 = arith.divf %84, %85 : vector<1x1xf32>
    %87 = vector.broadcast %86 : vector<1x1xf32> to vector<1x128xf32>
    %88 = arith.subf %80, %87 : vector<1x128xf32>
    %89 = arith.mulf %88, %88 : vector<1x128xf32>
    %cst_49 = arith.constant dense<0.000000e+00> : vector<1xf32>
    %90 = vector.multi_reduction <add>, %89, %cst_49 [1] : vector<1x128xf32> to vector<1xf32>
    %91 = vector.shape_cast %90 : vector<1xf32> to vector<1x1xf32>
    %cst_50 = arith.constant 1.280000e+02 : f32
    %92 = vector.broadcast %cst_50 : f32 to vector<1x1xf32>
    %93 = arith.divf %91, %92 : vector<1x1xf32>
    %94 = vector.broadcast %86 : vector<1x1xf32> to vector<1x128xf32>
    %95 = arith.subf %80, %94 : vector<1x128xf32>
    %cst_51 = arith.constant 9.99999974E-6 : f32
    %96 = vector.broadcast %cst_51 : f32 to vector<1x1xf32>
    %97 = arith.addf %93, %96 : vector<1x1xf32>
    %98 = math.rsqrt %97 : vector<1x1xf32>
    %99 = vector.broadcast %98 : vector<1x1xf32> to vector<1x128xf32>
    %100 = arith.mulf %95, %99 : vector<1x128xf32>
    %101 = arith.mulf %100, %81 : vector<1x128xf32>
    %102 = arith.addf %101, %82 : vector<1x128xf32>
    %c0_52 = arith.constant 0 : index
    %c512 = arith.constant 512 : index
    %103 = vector.load %arg9[%c0_52, %c512] : memref<128x1024xbf16, #tpu.memory_space<vmem>>, vector<128x512xbf16>
    %104 = arith.truncf %102 : vector<1x128xf32> to vector<1x128xbf16>
    %cst_53 = arith.constant dense<0.000000e+00> : vector<1x512xf32>
    %105 = tpu.matmul %104, %103, %cst_53 {dimension_numbers = #tpu.dot_dimension_numbers<[1], [0], [0], [1], [0, 0, 1, 1], [], []>} : vector<1x128xbf16>, vector<128x512xbf16>, vector<1x512xf32> -> vector<1x512xf32>
    %c0_54 = arith.constant 0 : index
    %c1024 = arith.constant 1024 : index
    %106 = vector.load %arg11[%c0_54, %c1024] : memref<1x1920xf32, #tpu.memory_space<vmem>>, vector<1x512xf32>
    %107 = arith.addf %105, %106 : vector<1x512xf32>
    %cst_55 = arith.constant 5.000000e-01 : f32
    %108 = vector.broadcast %cst_55 : f32 to vector<1x512xf32>
    %109 = arith.mulf %108, %107 : vector<1x512xf32>
    %cst_56 = arith.constant 4.471500e-02 : f32
    %110 = vector.broadcast %cst_56 : f32 to vector<1x512xf32>
    %111 = arith.mulf %110, %107 : vector<1x512xf32>
    %112 = arith.mulf %111, %107 : vector<1x512xf32>
    %113 = arith.mulf %112, %107 : vector<1x512xf32>
    %114 = arith.addf %107, %113 : vector<1x512xf32>
    %cst_57 = arith.constant 0.797884583 : f32
    %115 = vector.broadcast %cst_57 : f32 to vector<1x512xf32>
    %116 = arith.mulf %115, %114 : vector<1x512xf32>
    %117 = math.tanh %116 : vector<1x512xf32>
    %cst_58 = arith.constant 1.000000e+00 : f32
    %118 = vector.broadcast %cst_58 : f32 to vector<1x512xf32>
    %119 = arith.addf %118, %117 : vector<1x512xf32>
    %120 = arith.mulf %109, %119 : vector<1x512xf32>
    %121 = arith.truncf %120 : vector<1x512xf32> to vector<1x512xbf16>
    %c0_59 = arith.constant 0 : index
    %c0_60 = arith.constant 0 : index
    %122 = vector.load %arg10[%c0_59, %c0_60] : memref<512x128xbf16, #tpu.memory_space<vmem>>, vector<512x128xbf16>
    %cst_61 = arith.constant dense<0.000000e+00> : vector<1x128xf32>
    %123 = tpu.matmul %121, %122, %cst_61 {dimension_numbers = #tpu.dot_dimension_numbers<[1], [0], [0], [1], [0, 0, 1, 1], [], []>} : vector<1x512xbf16>, vector<512x128xbf16>, vector<1x128xf32> -> vector<1x128xf32>
    %c0_62 = arith.constant 0 : index
    %c1536 = arith.constant 1536 : index
    %124 = vector.load %arg11[%c0_62, %c1536] : memref<1x1920xf32, #tpu.memory_space<vmem>>, vector<1x128xf32>
    %125 = arith.addf %123, %124 : vector<1x128xf32>
    %126 = arith.addf %102, %125 : vector<1x128xf32>
    %c0_63 = arith.constant 0 : index
    %c1664 = arith.constant 1664 : index
    %127 = vector.load %arg11[%c0_63, %c1664] : memref<1x1920xf32, #tpu.memory_space<vmem>>, vector<1x128xf32>
    %c0_64 = arith.constant 0 : index
    %c1792 = arith.constant 1792 : index
    %128 = vector.load %arg11[%c0_64, %c1792] : memref<1x1920xf32, #tpu.memory_space<vmem>>, vector<1x128xf32>
    %cst_65 = arith.constant dense<0.000000e+00> : vector<1xf32>
    %129 = vector.multi_reduction <add>, %126, %cst_65 [1] : vector<1x128xf32> to vector<1xf32>
    %130 = vector.shape_cast %129 : vector<1xf32> to vector<1x1xf32>
    %cst_66 = arith.constant 1.280000e+02 : f32
    %131 = vector.broadcast %cst_66 : f32 to vector<1x1xf32>
    %132 = arith.divf %130, %131 : vector<1x1xf32>
    %133 = vector.broadcast %132 : vector<1x1xf32> to vector<1x128xf32>
    %134 = arith.subf %126, %133 : vector<1x128xf32>
    %135 = arith.mulf %134, %134 : vector<1x128xf32>
    %cst_67 = arith.constant dense<0.000000e+00> : vector<1xf32>
    %136 = vector.multi_reduction <add>, %135, %cst_67 [1] : vector<1x128xf32> to vector<1xf32>
    %137 = vector.shape_cast %136 : vector<1xf32> to vector<1x1xf32>
    %cst_68 = arith.constant 1.280000e+02 : f32
    %138 = vector.broadcast %cst_68 : f32 to vector<1x1xf32>
    %139 = arith.divf %137, %138 : vector<1x1xf32>
    %140 = vector.broadcast %132 : vector<1x1xf32> to vector<1x128xf32>
    %141 = arith.subf %126, %140 : vector<1x128xf32>
    %cst_69 = arith.constant 9.99999974E-6 : f32
    %142 = vector.broadcast %cst_69 : f32 to vector<1x1xf32>
    %143 = arith.addf %139, %142 : vector<1x1xf32>
    %144 = math.rsqrt %143 : vector<1x1xf32>
    %145 = vector.broadcast %144 : vector<1x1xf32> to vector<1x128xf32>
    %146 = arith.mulf %141, %145 : vector<1x128xf32>
    %147 = arith.mulf %146, %127 : vector<1x128xf32>
    %148 = arith.addf %147, %128 : vector<1x128xf32>
    %c0_70 = arith.constant 0 : index
    %c0_71 = arith.constant 0 : index
    %149 = vector.load %arg1[%c0_70, %c0_71] : memref<8x256xbf16, #tpu.memory_space<vmem>>, vector<8x256xbf16>
    %c0_72 = arith.constant 0 : index
    %c128_73 = arith.constant 128 : index
    %150 = vector.load %arg7[%c0_72, %c128_73] : memref<1x1920xf32, #tpu.memory_space<vmem>>, vector<1x128xf32>
    %151 = arith.addf %150, %148 : vector<1x128xf32>
    %c0_74 = arith.constant 0 : index
    %c0_75 = arith.constant 0 : index
    %152 = vector.load %arg4[%c0_74, %c0_75] : memref<256x128xbf16, #tpu.memory_space<vmem>>, vector<256x128xbf16>
    %cst_76 = arith.constant dense<0.000000e+00> : vector<8x128xf32>
    %153 = tpu.matmul %149, %152, %cst_76 {dimension_numbers = #tpu.dot_dimension_numbers<[1], [0], [0], [1], [0, 0, 1, 1], [], []>} : vector<8x256xbf16>, vector<256x128xbf16>, vector<8x128xf32> -> vector<8x128xf32>
    %c0_77 = arith.constant 0 : index
    %c0_78 = arith.constant 0 : index
    %154 = vector.load %arg7[%c0_77, %c0_78] : memref<1x1920xf32, #tpu.memory_space<vmem>>, vector<1x128xf32>
    %155 = vector.broadcast %154 : vector<1x128xf32> to vector<8x128xf32>
    %156 = arith.addf %153, %155 : vector<8x128xf32>
    %157 = arith.truncf %156 : vector<8x128xf32> to vector<8x128xbf16>
    %c0_79 = arith.constant 0 : index
    %c128_80 = arith.constant 128 : index
    %158 = vector.load %arg5[%c0_79, %c128_80] : memref<128x1024xbf16, #tpu.memory_space<vmem>>, vector<128x256xbf16>
    %cst_81 = arith.constant dense<0.000000e+00> : vector<8x256xf32>
    %159 = tpu.matmul %157, %158, %cst_81 {dimension_numbers = #tpu.dot_dimension_numbers<[1], [0], [0], [1], [0, 0, 1, 1], [], []>} : vector<8x128xbf16>, vector<128x256xbf16>, vector<8x256xf32> -> vector<8x256xf32>
    %c0_82 = arith.constant 0 : index
    %c384_83 = arith.constant 384 : index
    %160 = vector.load %arg7[%c0_82, %c384_83] : memref<1x1920xf32, #tpu.memory_space<vmem>>, vector<1x256xf32>
    %161 = vector.broadcast %160 : vector<1x256xf32> to vector<8x256xf32>
    %162 = arith.addf %159, %161 : vector<8x256xf32>
    %163 = vector.extract_strided_slice %162 {offsets = [0, 0], sizes = [8, 128], strides = [1, 1]} : vector<8x256xf32> to vector<8x128xf32>
    %164 = arith.truncf %163 : vector<8x128xf32> to vector<8x128xbf16>
    %165 = vector.extract_strided_slice %162 {offsets = [0, 128], sizes = [8, 128], strides = [1, 1]} : vector<8x256xf32> to vector<8x128xf32>
    %166 = arith.truncf %165 : vector<8x128xf32> to vector<8x128xbf16>
    %c0_84 = arith.constant 0 : index
    %c0_85 = arith.constant 0 : index
    %167 = vector.load %arg5[%c0_84, %c0_85] : memref<128x1024xbf16, #tpu.memory_space<vmem>>, vector<128x128xbf16>
    %168 = arith.truncf %151 : vector<1x128xf32> to vector<1x128xbf16>
    %cst_86 = arith.constant dense<0.000000e+00> : vector<1x128xf32>
    %169 = tpu.matmul %168, %167, %cst_86 {dimension_numbers = #tpu.dot_dimension_numbers<[1], [0], [0], [1], [0, 0, 1, 1], [], []>} : vector<1x128xbf16>, vector<128x128xbf16>, vector<1x128xf32> -> vector<1x128xf32>
    %c0_87 = arith.constant 0 : index
    %c256_88 = arith.constant 256 : index
    %170 = vector.load %arg7[%c0_87, %c256_88] : memref<1x1920xf32, #tpu.memory_space<vmem>>, vector<1x128xf32>
    %171 = arith.addf %169, %170 : vector<1x128xf32>
    %172 = arith.truncf %171 : vector<1x128xf32> to vector<1x128xbf16>
    %173 = vector.shape_cast %172 : vector<1x128xbf16> to vector<1x1x128xbf16>
    %174 = vector.shape_cast %164 : vector<8x128xbf16> to vector<1x8x128xbf16>
    %175 = vector.broadcast %173 : vector<1x1x128xbf16> to vector<1x8x128xbf16>
    %176 = arith.mulf %175, %174 : vector<1x8x128xbf16>
    %177 = vector.shape_cast %176 : vector<1x8x128xbf16> to vector<8x128xbf16>
    %cst_89 = arith.constant dense<0.000000e+00> : vector<8x128xf32>
    %178 = tpu.matmul %177, %0, %cst_89 {dimension_numbers = #tpu.dot_dimension_numbers<[1], [0], [0], [1], [0, 0, 1, 1], [], []>} : vector<8x128xbf16>, vector<128x128xbf16>, vector<8x128xf32> -> vector<8x128xf32>
    %cst_90 = arith.constant 1.250000e-01 : f32
    %179 = vector.broadcast %cst_90 : f32 to vector<8x128xf32>
    %180 = arith.mulf %178, %179 : vector<8x128xf32>
    %181 = tpu.iota {dimensions = array<i32: 0>} : vector<8x128xi32>
    %c7_i32 = arith.constant 7 : i32
    %182 = vector.broadcast %c7_i32 : i32 to vector<8x128xi32>
    %183 = arith.andi %181, %182 : vector<8x128xi32>
    %c4_i32 = arith.constant 4 : i32
    %184 = vector.broadcast %c4_i32 : i32 to vector<8x128xi32>
    %185 = arith.cmpi slt, %183, %184 : vector<8x128xi32>
    %cst_91 = arith.constant -1.000000e+30 : f32
    %186 = vector.broadcast %cst_91 : f32 to vector<8x128xf32>
    %187 = arith.select %185, %180, %186 : vector<8x128xi1>, vector<8x128xf32>
    %188 = vector.shape_cast %187 : vector<8x128xf32> to vector<1x8x128xf32>
    %cst_92 = arith.constant dense<0xFF800000> : vector<1x128xf32>
    %189 = vector.multi_reduction <maximumf>, %188, %cst_92 [1] : vector<1x8x128xf32> to vector<1x128xf32>
    %190 = vector.shape_cast %189 : vector<1x128xf32> to vector<1x1x128xf32>
    %191 = vector.broadcast %190 : vector<1x1x128xf32> to vector<1x8x128xf32>
    %192 = arith.subf %188, %191 : vector<1x8x128xf32>
    %193 = math.exp %192 : vector<1x8x128xf32>
    %cst_93 = arith.constant dense<0.000000e+00> : vector<1x128xf32>
    %194 = vector.multi_reduction <add>, %193, %cst_93 [1] : vector<1x8x128xf32> to vector<1x128xf32>
    %195 = vector.shape_cast %194 : vector<1x128xf32> to vector<1x1x128xf32>
    %196 = tpu.reciprocal %195 {approx = true} : vector<1x1x128xf32> -> vector<1x1x128xf32>
    %197 = vector.broadcast %196 : vector<1x1x128xf32> to vector<1x8x128xf32>
    %198 = arith.mulf %193, %197 : vector<1x8x128xf32>
    %199 = arith.truncf %198 : vector<1x8x128xf32> to vector<1x8x128xbf16>
    %200 = vector.shape_cast %199 : vector<1x8x128xbf16> to vector<8x128xbf16>
    %cst_94 = arith.constant dense<0.000000e+00> : vector<8x128xf32>
    %201 = tpu.matmul %200, %1, %cst_94 {dimension_numbers = #tpu.dot_dimension_numbers<[1], [0], [0], [1], [0, 0, 1, 1], [], []>} : vector<8x128xbf16>, vector<128x128xbf16>, vector<8x128xf32> -> vector<8x128xf32>
    %202 = arith.extf %166 : vector<8x128xbf16> to vector<8x128xf32>
    %203 = arith.mulf %201, %202 : vector<8x128xf32>
    %204 = vector.shape_cast %203 : vector<8x128xf32> to vector<1x8x128xf32>
    %cst_95 = arith.constant dense<0.000000e+00> : vector<1x128xf32>
    %205 = vector.multi_reduction <add>, %204, %cst_95 [1] : vector<1x8x128xf32> to vector<1x128xf32>
    %c0_96 = arith.constant 0 : index
    %c384_97 = arith.constant 384 : index
    %206 = vector.load %arg5[%c0_96, %c384_97] : memref<128x1024xbf16, #tpu.memory_space<vmem>>, vector<128x128xbf16>
    %207 = arith.truncf %205 : vector<1x128xf32> to vector<1x128xbf16>
    %cst_98 = arith.constant dense<0.000000e+00> : vector<1x128xf32>
    %208 = tpu.matmul %207, %206, %cst_98 {dimension_numbers = #tpu.dot_dimension_numbers<[1], [0], [0], [1], [0, 0, 1, 1], [], []>} : vector<1x128xbf16>, vector<128x128xbf16>, vector<1x128xf32> -> vector<1x128xf32>
    %c0_99 = arith.constant 0 : index
    %c640_100 = arith.constant 640 : index
    %209 = vector.load %arg7[%c0_99, %c640_100] : memref<1x1920xf32, #tpu.memory_space<vmem>>, vector<1x128xf32>
    %210 = arith.addf %208, %209 : vector<1x128xf32>
    %211 = arith.addf %151, %210 : vector<1x128xf32>
    %c0_101 = arith.constant 0 : index
    %c768_102 = arith.constant 768 : index
    %212 = vector.load %arg7[%c0_101, %c768_102] : memref<1x1920xf32, #tpu.memory_space<vmem>>, vector<1x128xf32>
    %c0_103 = arith.constant 0 : index
    %c896_104 = arith.constant 896 : index
    %213 = vector.load %arg7[%c0_103, %c896_104] : memref<1x1920xf32, #tpu.memory_space<vmem>>, vector<1x128xf32>
    %cst_105 = arith.constant dense<0.000000e+00> : vector<1xf32>
    %214 = vector.multi_reduction <add>, %211, %cst_105 [1] : vector<1x128xf32> to vector<1xf32>
    %215 = vector.shape_cast %214 : vector<1xf32> to vector<1x1xf32>
    %cst_106 = arith.constant 1.280000e+02 : f32
    %216 = vector.broadcast %cst_106 : f32 to vector<1x1xf32>
    %217 = arith.divf %215, %216 : vector<1x1xf32>
    %218 = vector.broadcast %217 : vector<1x1xf32> to vector<1x128xf32>
    %219 = arith.subf %211, %218 : vector<1x128xf32>
    %220 = arith.mulf %219, %219 : vector<1x128xf32>
    %cst_107 = arith.constant dense<0.000000e+00> : vector<1xf32>
    %221 = vector.multi_reduction <add>, %220, %cst_107 [1] : vector<1x128xf32> to vector<1xf32>
    %222 = vector.shape_cast %221 : vector<1xf32> to vector<1x1xf32>
    %cst_108 = arith.constant 1.280000e+02 : f32
    %223 = vector.broadcast %cst_108 : f32 to vector<1x1xf32>
    %224 = arith.divf %222, %223 : vector<1x1xf32>
    %225 = vector.broadcast %217 : vector<1x1xf32> to vector<1x128xf32>
    %226 = arith.subf %211, %225 : vector<1x128xf32>
    %cst_109 = arith.constant 9.99999974E-6 : f32
    %227 = vector.broadcast %cst_109 : f32 to vector<1x1xf32>
    %228 = arith.addf %224, %227 : vector<1x1xf32>
    %229 = math.rsqrt %228 : vector<1x1xf32>
    %230 = vector.broadcast %229 : vector<1x1xf32> to vector<1x128xf32>
    %231 = arith.mulf %226, %230 : vector<1x128xf32>
    %232 = arith.mulf %231, %212 : vector<1x128xf32>
    %233 = arith.addf %232, %213 : vector<1x128xf32>
    %c0_110 = arith.constant 0 : index
    %c512_111 = arith.constant 512 : index
    %234 = vector.load %arg5[%c0_110, %c512_111] : memref<128x1024xbf16, #tpu.memory_space<vmem>>, vector<128x512xbf16>
    %235 = arith.truncf %233 : vector<1x128xf32> to vector<1x128xbf16>
    %cst_112 = arith.constant dense<0.000000e+00> : vector<1x512xf32>
    %236 = tpu.matmul %235, %234, %cst_112 {dimension_numbers = #tpu.dot_dimension_numbers<[1], [0], [0], [1], [0, 0, 1, 1], [], []>} : vector<1x128xbf16>, vector<128x512xbf16>, vector<1x512xf32> -> vector<1x512xf32>
    %c0_113 = arith.constant 0 : index
    %c1024_114 = arith.constant 1024 : index
    %237 = vector.load %arg7[%c0_113, %c1024_114] : memref<1x1920xf32, #tpu.memory_space<vmem>>, vector<1x512xf32>
    %238 = arith.addf %236, %237 : vector<1x512xf32>
    %cst_115 = arith.constant 5.000000e-01 : f32
    %239 = vector.broadcast %cst_115 : f32 to vector<1x512xf32>
    %240 = arith.mulf %239, %238 : vector<1x512xf32>
    %cst_116 = arith.constant 4.471500e-02 : f32
    %241 = vector.broadcast %cst_116 : f32 to vector<1x512xf32>
    %242 = arith.mulf %241, %238 : vector<1x512xf32>
    %243 = arith.mulf %242, %238 : vector<1x512xf32>
    %244 = arith.mulf %243, %238 : vector<1x512xf32>
    %245 = arith.addf %238, %244 : vector<1x512xf32>
    %cst_117 = arith.constant 0.797884583 : f32
    %246 = vector.broadcast %cst_117 : f32 to vector<1x512xf32>
    %247 = arith.mulf %246, %245 : vector<1x512xf32>
    %248 = math.tanh %247 : vector<1x512xf32>
    %cst_118 = arith.constant 1.000000e+00 : f32
    %249 = vector.broadcast %cst_118 : f32 to vector<1x512xf32>
    %250 = arith.addf %249, %248 : vector<1x512xf32>
    %251 = arith.mulf %240, %250 : vector<1x512xf32>
    %252 = arith.truncf %251 : vector<1x512xf32> to vector<1x512xbf16>
    %c0_119 = arith.constant 0 : index
    %c0_120 = arith.constant 0 : index
    %253 = vector.load %arg6[%c0_119, %c0_120] : memref<512x128xbf16, #tpu.memory_space<vmem>>, vector<512x128xbf16>
    %cst_121 = arith.constant dense<0.000000e+00> : vector<1x128xf32>
    %254 = tpu.matmul %252, %253, %cst_121 {dimension_numbers = #tpu.dot_dimension_numbers<[1], [0], [0], [1], [0, 0, 1, 1], [], []>} : vector<1x512xbf16>, vector<512x128xbf16>, vector<1x128xf32> -> vector<1x128xf32>
    %c0_122 = arith.constant 0 : index
    %c1536_123 = arith.constant 1536 : index
    %255 = vector.load %arg7[%c0_122, %c1536_123] : memref<1x1920xf32, #tpu.memory_space<vmem>>, vector<1x128xf32>
    %256 = arith.addf %254, %255 : vector<1x128xf32>
    %257 = arith.addf %233, %256 : vector<1x128xf32>
    %c0_124 = arith.constant 0 : index
    %c1664_125 = arith.constant 1664 : index
    %258 = vector.load %arg7[%c0_124, %c1664_125] : memref<1x1920xf32, #tpu.memory_space<vmem>>, vector<1x128xf32>
    %c0_126 = arith.constant 0 : index
    %c1792_127 = arith.constant 1792 : index
    %259 = vector.load %arg7[%c0_126, %c1792_127] : memref<1x1920xf32, #tpu.memory_space<vmem>>, vector<1x128xf32>
    %cst_128 = arith.constant dense<0.000000e+00> : vector<1xf32>
    %260 = vector.multi_reduction <add>, %257, %cst_128 [1] : vector<1x128xf32> to vector<1xf32>
    %261 = vector.shape_cast %260 : vector<1xf32> to vector<1x1xf32>
    %cst_129 = arith.constant 1.280000e+02 : f32
    %262 = vector.broadcast %cst_129 : f32 to vector<1x1xf32>
    %263 = arith.divf %261, %262 : vector<1x1xf32>
    %264 = vector.broadcast %263 : vector<1x1xf32> to vector<1x128xf32>
    %265 = arith.subf %257, %264 : vector<1x128xf32>
    %266 = arith.mulf %265, %265 : vector<1x128xf32>
    %cst_130 = arith.constant dense<0.000000e+00> : vector<1xf32>
    %267 = vector.multi_reduction <add>, %266, %cst_130 [1] : vector<1x128xf32> to vector<1xf32>
    %268 = vector.shape_cast %267 : vector<1xf32> to vector<1x1xf32>
    %cst_131 = arith.constant 1.280000e+02 : f32
    %269 = vector.broadcast %cst_131 : f32 to vector<1x1xf32>
    %270 = arith.divf %268, %269 : vector<1x1xf32>
    %271 = vector.broadcast %263 : vector<1x1xf32> to vector<1x128xf32>
    %272 = arith.subf %257, %271 : vector<1x128xf32>
    %cst_132 = arith.constant 9.99999974E-6 : f32
    %273 = vector.broadcast %cst_132 : f32 to vector<1x1xf32>
    %274 = arith.addf %270, %273 : vector<1x1xf32>
    %275 = math.rsqrt %274 : vector<1x1xf32>
    %276 = vector.broadcast %275 : vector<1x1xf32> to vector<1x128xf32>
    %277 = arith.mulf %272, %276 : vector<1x128xf32>
    %278 = arith.mulf %277, %258 : vector<1x128xf32>
    %279 = arith.addf %278, %259 : vector<1x128xf32>
    %c0_133 = arith.constant 0 : index
    %c0_134 = arith.constant 0 : index
    %280 = vector.load %arg15[%c0_133, %c0_134] : memref<256x128xbf16, #tpu.memory_space<vmem>>, vector<128x128xbf16>
    %281 = arith.truncf %279 : vector<1x128xf32> to vector<1x128xbf16>
    %cst_135 = arith.constant dense<0.000000e+00> : vector<1x128xf32>
    %282 = tpu.matmul %281, %280, %cst_135 {dimension_numbers = #tpu.dot_dimension_numbers<[1], [0], [0], [1], [0, 0, 1, 1], [], []>} : vector<1x128xbf16>, vector<128x128xbf16>, vector<1x128xf32> -> vector<1x128xf32>
    %c128_136 = arith.constant 128 : index
    %c0_137 = arith.constant 0 : index
    %283 = vector.load %arg15[%c128_136, %c0_137] : memref<256x128xbf16, #tpu.memory_space<vmem>>, vector<128x128xbf16>
    %284 = arith.truncf %25 : vector<1x128xf32> to vector<1x128xbf16>
    %cst_138 = arith.constant dense<0.000000e+00> : vector<1x128xf32>
    %285 = tpu.matmul %284, %283, %cst_138 {dimension_numbers = #tpu.dot_dimension_numbers<[1], [0], [0], [1], [0, 0, 1, 1], [], []>} : vector<1x128xbf16>, vector<128x128xbf16>, vector<1x128xf32> -> vector<1x128xf32>
    %286 = arith.addf %282, %285 : vector<1x128xf32>
    %c0_139 = arith.constant 0 : index
    %c0_140 = arith.constant 0 : index
    %287 = vector.load %arg16[%c0_139, %c0_140] : memref<1x128xf32, #tpu.memory_space<vmem>>, vector<1x128xf32>
    %288 = arith.addf %286, %287 : vector<1x128xf32>
    %c0_141 = arith.constant 0 : index
    %c0_142 = arith.constant 0 : index
    %c0_143 = arith.constant 0 : index
    %289 = vector.load %arg19[%c0_141, %c0_142, %c0_143] : memref<1x1x128xf32, #tpu.memory_space<vmem>>, vector<1x1x128xf32>
    %290 = vector.shape_cast %289 : vector<1x1x128xf32> to vector<1x128xf32>
    %291 = vector.shape_cast %288 : vector<1x128xf32> to vector<1x1x128xf32>
    tpu.vector_store %arg19[%c0_141, %c0_142, %c0_143], %291 {strides = array<i32>} : memref<1x1x128xf32, #tpu.memory_space<vmem>>, vector<1x1x128xf32>,
    return
  }
  func.func @transform_0(%arg0: i32) -> (i32, i32) {
    %c0_i32 = arith.constant 0 : i32
    %c0_i32_0 = arith.constant 0 : i32
    return %arg0, %c0_i32 : i32, i32
  }
  func.func @transform_1(%arg0: i32) -> (i32, i32) {
    %c0_i32 = arith.constant 0 : i32
    %c0_i32_0 = arith.constant 0 : i32
    return %arg0, %c0_i32 : i32, i32
  }
  func.func @transform_2(%arg0: i32) -> (i32, i32, i32) {
    %c0_i32 = arith.constant 0 : i32
    %c0_i32_0 = arith.constant 0 : i32
    %c0_i32_1 = arith.constant 0 : i32
    return %arg0, %c0_i32, %c0_i32_0 : i32, i32, i32
  }
  func.func @transform_3(%arg0: i32) -> (i32, i32) {
    %c0_i32 = arith.constant 0 : i32
    %c0_i32_0 = arith.constant 0 : i32
    %c0_i32_1 = arith.constant 0 : i32
    return %c0_i32, %c0_i32_0 : i32, i32
  }
  func.func @transform_4(%arg0: i32) -> (i32, i32) {
    %c0_i32 = arith.constant 0 : i32
    %c0_i32_0 = arith.constant 0 : i32
    %c0_i32_1 = arith.constant 0 : i32
    return %c0_i32, %c0_i32_0 : i32, i32
  }
  func.func @transform_5(%arg0: i32) -> (i32, i32) {
    %c0_i32 = arith.constant 0 : i32
    %c0_i32_0 = arith.constant 0 : i32
    %c0_i32_1 = arith.constant 0 : i32
    return %c0_i32, %c0_i32_0 : i32, i32
  }
  func.func @transform_6(%arg0: i32) -> (i32, i32) {
    %c0_i32 = arith.constant 0 : i32
    %c0_i32_0 = arith.constant 0 : i32
    %c0_i32_1 = arith.constant 0 : i32
    return %c0_i32, %c0_i32_0 : i32, i32
  }
  func.func @transform_7(%arg0: i32) -> (i32, i32) {
    %c0_i32 = arith.constant 0 : i32
    %c0_i32_0 = arith.constant 0 : i32
    %c0_i32_1 = arith.constant 0 : i32
    return %c0_i32, %c0_i32_0 : i32, i32
  }
  func.func @transform_8(%arg0: i32) -> (i32, i32) {
    %c0_i32 = arith.constant 0 : i32
    %c0_i32_0 = arith.constant 0 : i32
    %c0_i32_1 = arith.constant 0 : i32
    return %c0_i32, %c0_i32_0 : i32, i32
  }
  func.func @transform_9(%arg0: i32) -> (i32, i32) {
    %c0_i32 = arith.constant 0 : i32
    %c0_i32_0 = arith.constant 0 : i32
    %c0_i32_1 = arith.constant 0 : i32
    return %c0_i32, %c0_i32_0 : i32, i32
  }
  func.func @transform_10(%arg0: i32) -> (i32, i32) {
    %c0_i32 = arith.constant 0 : i32
    %c0_i32_0 = arith.constant 0 : i32
    %c0_i32_1 = arith.constant 0 : i32
    return %c0_i32, %c0_i32_0 : i32, i32
  }
  func.func @transform_11(%arg0: i32) -> (i32, i32) {
    %c0_i32 = arith.constant 0 : i32
    %c0_i32_0 = arith.constant 0 : i32
    %c0_i32_1 = arith.constant 0 : i32
    return %c0_i32, %c0_i32_0 : i32, i32
  }
  func.func @transform_12(%arg0: i32) -> (i32, i32) {
    %c0_i32 = arith.constant 0 : i32
    %c0_i32_0 = arith.constant 0 : i32
    %c0_i32_1 = arith.constant 0 : i32
    return %c0_i32, %c0_i32_0 : i32, i32
  }
  func.func @transform_13(%arg0: i32) -> (i32, i32) {
    %c0_i32 = arith.constant 0 : i32
    %c0_i32_0 = arith.constant 0 : i32
    %c0_i32_1 = arith.constant 0 : i32
    return %c0_i32, %c0_i32_0 : i32, i32
  }
  func.func @transform_14(%arg0: i32) -> (i32, i32) {
    %c0_i32 = arith.constant 0 : i32
    %c0_i32_0 = arith.constant 0 : i32
    %c0_i32_1 = arith.constant 0 : i32
    return %c0_i32, %c0_i32_0 : i32, i32
  }
  func.func @transform_15(%arg0: i32) -> (i32, i32) {
    %c0_i32 = arith.constant 0 : i32
    %c0_i32_0 = arith.constant 0 : i32
    %c0_i32_1 = arith.constant 0 : i32
    return %c0_i32, %c0_i32_0 : i32, i32
  }
  func.func @transform_16(%arg0: i32) -> (i32, i32) {
    %c0_i32 = arith.constant 0 : i32
    %c0_i32_0 = arith.constant 0 : i32
    %c0_i32_1 = arith.constant 0 : i32
    return %c0_i32, %c0_i32_0 : i32, i32
  }
  func.func @transform_17(%arg0: i32) -> (i32, i32) {
    %c0_i32 = arith.constant 0 : i32
    %c0_i32_0 = arith.constant 0 : i32
    %c0_i32_1 = arith.constant 0 : i32
    return %c0_i32, %c0_i32_0 : i32, i32
  }
  func.func @transform_18(%arg0: i32) -> (i32, i32, i32) {
    %c0_i32 = arith.constant 0 : i32
    %c0_i32_0 = arith.constant 0 : i32
    %c0_i32_1 = arith.constant 0 : i32
    return %arg0, %c0_i32, %c0_i32_0 : i32, i32, i32
  }
}

</mosaic_0001>

<bundles_post_ra>
// kernel: action_decoder_head.1
= control target key start
LH: loop header
LB: loop body
LE: loop exit
PB: predicated region body
PF: predicated region fallthrough
CT: control target
= control target key end

     0   :  { %s6484_s0 = inlined_call_operand.vmem [shape: bf16[16,256], index: 0, kind: input, shape index: {}]   ;;  %s6485_s1 = inlined_call_operand.vmem [shape: bf16[32,256], index: 1, kind: input, shape index: {}]   ;;  %s6486_s2 = inlined_call_operand.vmem [shape: bf16[2,1,128], index: 2, kind: input, shape index: {}]   ;;  %s6487_s3 = inlined_call_operand.vmem [shape: bf16[256,128], index: 3, kind: input, shape index: {}]   ;;  %s6488_s4 = inlined_call_operand.hbm [shape: bf16[128,1024], index: 4, kind: input, shape index: {}]   ;;  %s6489_s5 = inlined_call_operand.hbm [shape: bf16[512,128], index: 5, kind: input, shape index: {}]   ;;  %s6490_s6 = inlined_call_operand.vmem [shape: f32[1,1920], index: 6, kind: input, shape index: {}]   ;;  %s6491_s7 = inlined_call_operand.hbm [shape: bf16[256,128], index: 7, kind: input, shape index: {}]   ;;  %s6492_s8 = inlined_call_operand.hbm [shape: bf16[128,1024], index: 8, kind: input, shape index: {}]   ;;  %s6493_s9 = inlined_call_operand.hbm [shape: bf16[512,128], index: 9, kind: input, shape index: {}]   ;;  %s6494_s10 = inlined_call_operand.vmem [shape: f32[1,1920], index: 10, kind: input, shape index: {}]   ;;  %s6495_s11 = inlined_call_operand.hbm [shape: bf16[128,128], index: 11, kind: input, shape index: {}]   ;;  %s6496_s12 = inlined_call_operand.hbm [shape: bf16[128,128], index: 12, kind: input, shape index: {}]   ;;  %s6497_s13 = inlined_call_operand.vmem [shape: f32[1,256], index: 13, kind: input, shape index: {}]   ;;  %s6498_s14 = inlined_call_operand.hbm [shape: bf16[256,128], index: 14, kind: input, shape index: {}]   ;;  %s6499_s15 = inlined_call_operand.vmem [shape: f32[1,128], index: 15, kind: input, shape index: {}]   ;;  %s6500_s16 = inlined_call_operand.hbm [shape: bf16[128,128], index: 16, kind: input, shape index: {}]   ;;  %s6501_s17 = inlined_call_operand.hbm [shape: bf16[128,128], index: 17, kind: input, shape index: {}]   ;;  %s6502_s18 = inlined_call_operand.hbm [shape: f32[2,1,128], index: 18, kind: output, shape index: {}]  }
   0x1   :  { %6519 = sst [smem:[#allocation34_spill]] %s6484_s0 }
   0x2   :  { %6520 = sst [smem:[#allocation35_spill]] %s6485_s1 }
   0x3   :  { %6521 = sst [smem:[#allocation36_spill]] %s6486_s2 }
   0x4   :  { %6522 = sst [smem:[#allocation37_spill]] %s6502_s18 }
   0x5   :  { %23 = vsyncpa [#allocation3], 0 }
   0x6   :  { %24 = vsyncpa [#allocation6], 0 }
   0x7   :  { %25 = vsyncpa [#allocation9], 0 }
   0x8   :  { %26 = vsyncpa [#allocation12], 0 }
   0x9   :  { %27 = vsyncpa [#allocation15], 0 }
   0xa   :  { %28 = vsyncpa [#allocation18], 0 }
   0xb   :  { %29 = vsyncpa [#allocation4], 0 }
   0xc   :  { %31 = vsyncpa [#allocation4 + $0x1], 0  ;;  %s5882_s27 = smov 0   ;;  %s5884_s28 = smov 0  }
   0xd   :  { %s5886_s29 = smov 0   ;;  %s5888_s30 = smov 0  }
   0xe LB: > { %6523 = sst [smem:[#allocation27_spill]] %s5755_s27  ;;  %s5903_s0 = sadd.s32 4294967295, %s5767_s30   ;;  %s5767_s30 = sphi %s5888_s30, %s6560_s30   ;;  %s5763_s29 = sphi %s5886_s29, %s6562_s29   ;;  %s5759_s28 = sphi %s5884_s28, %s6564_s28   ;;  %s5755_s27 = sphi %s5882_s27, %s6563_s27  }
   0xf   : > { %6524 = sst [smem:[#allocation28_spill]] %s5763_s29  ;;  %s4283_s19 = sadd.s32 4294967294, %s5767_s30  }
  0x10   : > { %6525 = sst [smem:[#allocation29_spill]] %s5767_s30  ;;  %s5907_s1 = sadd.s32 1, %s5767_s30  }
  0x11   : > { %6526 = sst [smem:[#allocation30_spill]] %s5907_s1  ;;  %s437_s20 = sadd.s32 1, %s5763_s29 }
  0x12   : > { %s434_s21 = ssub.s32 %s5767_s30, %s5907_s1  ;;  %p447_p0 = scmp.ne.s32.totalorder %s5763_s29, %s5759_s28 }
  0x13   : > { %p435_p1 = scmp.eq.s32.totalorder %s434_s21, 0  ;;  %p448_p2 = scmp.eq.s32.totalorder %s5903_s0, 1 }
  0x14   : > { %p453_p3 = scmp.ne.s32.totalorder %s5759_s28, %s5755_s27  ;;  %p454_p4 = scmp.eq.s32.totalorder %s4283_s19, 1 }
  0x15   : > { %s5918_s22 = scalar_select %p435_p1, %s5763_s29, %s437_s20  }
  0x16   : > { %p5920_p5 = por %p448_p2, %p447_p0  ;;  %p5924_p6 = por %p454_p4, %p453_p3 }
  0x17   : > { %6527 = sst [smem:[#allocation31_spill]] %s5918_s22  ;;  %p4284_p7 = scmp.ge.s32.totalorder %s5767_s30, 1 }
  0x18   : > { %s6528_s2 = scalar_select %p5920_p5, 1, 0 }
  0x19   : > { %s6530_s23 = scalar_select %p5924_p6, 1, 0 }
  0x1a   : > { %6529 = sst [smem:[#allocation32_spill]] %s6528_s2  ;;  %p461_p8 = scmp.lt.s32.totalorder %s5767_s30, 3 }
  0x1b   : > { %6531 = sst [smem:[#allocation33_spill]] %s6530_s23  ;;  %p6514_p9 = scmp.eq.s32.totalorder %s5903_s0, 0 }
  0x1c   : > { %p5931_p10 = pnand %p4284_p7, %p461_p8  ;;  %s5769_s25 = smov [#allocation5]  }
  0x1d   : > { %s489_s26 = sshll.u32 %s5769_s25, 4  ;;  %s5770_s20 = smov [#allocation8]   ;;  %s490_s26 = int_to_ptr.vmem [resolvable:$true] %s489_s26 }
  0x1e   : > { %p5117_p11 = pneg %p5931_p10  ;;  %s518_s21 = sshll.u32 %s5770_s20, 4  ;;  %s519_s21 = int_to_ptr.vmem [resolvable:$true] %s518_s21 }
  0x1f   : > { %s5434_s29 = scalar_lea.vmem %s490_s26, 4096  ;;  %p5442_p3 = scmp.lt.s32.totalorder %s490_s26, %s490_s26 }
  0x20   : > { %p5939_p12 = pnand %p6514_p9, %p5117_p11  ;;  %p5435_p0 = scmp.ne.s32.totalorder %s490_s26, %s5434_s29 }
  0x21   : > { %p5443_p4 = scmp.lt.s32.totalorder %s5434_s29, %s5434_s29 }
  0x22   : > { %p5945_p13 = pneg %p5939_p12 }
  0x23   : > { %p5444_p7 = por %p5443_p4, %p5442_p3 }
  0x24   : > { %p5437_p1 = pnand %p5435_p0, %p5945_p13 }
  0x26   : > { %p5438_p2 = pneg %p5437_p1 }
  0x28   : > { %p5445_p8 = pnand %p5444_p7, %p5438_p2 }
  0x2a   : > { %5448 = shalt.err (!%p5445_p8)
}
  0x2b   : > { %s6515_s25 = smov 64   ;;  %s6517_s20 = smov 4  }
  0x2c   : > { %5123 = dma.hbm_to_vmem [thread:$0]  (!%p5939_p12), %s6489_s5, 4096, %s490_s26, [#allocation6], %s6515_s25, %s6515_s25, %s6517_s20  }
  0x2d   : > { %s5773_s27 = smov [#allocation11]   ;;  %s5460_s18 = scalar_lea.vmem %s519_s21, 8192 }
  0x2e   : > { %s547_s30 = sshll.u32 %s5773_s27, 4  ;;  %p5461_p11 = scmp.ne.s32.totalorder %s519_s21, %s5460_s18  ;;  %s548_s30 = int_to_ptr.vmem [resolvable:$true] %s547_s30 }
  0x2f   : > { %p5468_p2 = scmp.lt.s32.totalorder %s519_s21, %s519_s21  ;;  %p5469_p3 = scmp.lt.s32.totalorder %s5460_s18, %s5460_s18 }
  0x30   : > { %p5463_p0 = pnand %p5461_p11, %p5945_p13 }
  0x31   : > { %p5470_p4 = por %p5469_p3, %p5468_p2 }
  0x32   : > { %p5464_p1 = pneg %p5463_p0 }
  0x34   : > { %p5471_p7 = pnand %p5470_p4, %p5464_p1 }
  0x36   : > { %5474 = shalt.err (!%p5471_p7)
}
  0x37   : > { %s6512_s29 = smov 512   ;;  %s6513_s2 = smov 32  }
  0x38   : > { %5129 = dma.hbm_to_vmem [thread:$0]  (!%p5939_p12), %s6492_s8, 8192, %s519_s21, [#allocation9], %s6512_s29, %s6512_s29, %s6513_s2  }
  0x39   : > { %s5486_s23 = scalar_lea.vmem %s548_s30, 1024  ;;  %p5494_p1 = scmp.lt.s32.totalorder %s548_s30, %s548_s30 }
  0x3a   : > { %p5487_p8 = scmp.ne.s32.totalorder %s548_s30, %s5486_s23  ;;  %p5495_p2 = scmp.lt.s32.totalorder %s5486_s23, %s5486_s23 }
  0x3c   : > { %p5489_p11 = pnand %p5487_p8, %p5945_p13  ;;  %p5496_p3 = por %p5495_p2, %p5494_p1 }
  0x3e   : > { %p5490_p0 = pneg %p5489_p11 }
  0x40   : > { %p5497_p4 = pnand %p5496_p3, %p5490_p0 }
  0x42   : > { %5500 = shalt.err (!%p5497_p4)
}
  0x43   : > { %5135 = dma.hbm_to_vmem [thread:$0]  (!%p5939_p12), %s6495_s11, 1024, %s548_s30, [#allocation12], %s6515_s25, %s6515_s25, %s6517_s20  }
  0x44   : > { %s5776_s21 = smov [#allocation14]   ;;  %s5777_s27 = smov [#allocation2]  }
  0x45   : > { %s576_s1 = sshll.u32 %s5776_s21, 4  ;;  %s476_s29 = sshll.u32 %s5777_s27, 4  ;;  %s577_s1 = int_to_ptr.vmem [resolvable:$true] %s576_s1  ;;  %s477_s29 = int_to_ptr.vmem [resolvable:$true] %s476_s29 }
  0x46   : > { %s5512_s2 = scalar_lea.vmem %s577_s1, 2048  ;;  %p5520_p0 = scmp.lt.s32.totalorder %s577_s1, %s577_s1 }
  0x47   : > { %p5513_p7 = scmp.ne.s32.totalorder %s577_s1, %s5512_s2  ;;  %p5521_p1 = scmp.lt.s32.totalorder %s5512_s2, %s5512_s2 }
  0x49   : > { %p5515_p8 = pnand %p5513_p7, %p5945_p13  ;;  %p5522_p2 = por %p5521_p1, %p5520_p0 }
  0x4b   : > { %p5516_p11 = pneg %p5515_p8 }
  0x4d   : > { %p5523_p3 = pnand %p5522_p2, %p5516_p11 }
  0x4f   : > { %5526 = shalt.err (!%p5523_p3)
}
  0x50   : > { %5141 = dma.hbm_to_vmem [thread:$0]  (!%p5939_p12), %s6498_s14, 2048, %s577_s1, [#allocation15], %s6515_s25, %s6515_s25, %s6517_s20  }
  0x51   : > { %s5538_s18 = scalar_lea.vmem %s477_s29, 8192  ;;  %p5546_p9 = scmp.lt.s32.totalorder %s477_s29, %s477_s29 }
  0x52   : > { %p5539_p4 = scmp.ne.s32.totalorder %s477_s29, %s5538_s18  ;;  %p5547_p0 = scmp.lt.s32.totalorder %s5538_s18, %s5538_s18 }
  0x54   : > { %p5541_p7 = pnand %p5539_p4, %p5945_p13  ;;  %p5548_p11 = por %p5547_p0, %p5546_p9 }
  0x56   : > { %p5542_p8 = pneg %p5541_p7 }
  0x58   : > { %p5549_p1 = pnand %p5548_p11, %p5542_p8 }
  0x5a   : > { %5552 = shalt.err (!%p5549_p1)
}
  0x5b   : > { %s6535_s2 = smov 32   ;;  %s6536_s26 = smov 512  }
  0x5c   : > { %5120 = dma.hbm_to_vmem [thread:$0]  (!%p5939_p12), %s6488_s4, 8192, %s477_s29, [#allocation3], %s6536_s26, %s6536_s26, %s6535_s2  }
  0x5d   : > { %s5778_s1 = smov [#allocation7]   ;;  %s5779_s23 = smov [#allocation10]  }
  0x5e   : > { %s505_s30 = sshll.u32 %s5778_s1, 4  ;;  %s531_s25 = sshll.u32 %s5779_s23, 4  ;;  %s506_s30 = int_to_ptr.vmem [resolvable:$true] %s505_s30  ;;  %s532_s25 = int_to_ptr.vmem [resolvable:$true] %s531_s25 }
  0x5f   : > { %s5564_s20 = scalar_lea.vmem %s506_s30, 2048  ;;  %p5572_p4 = scmp.lt.s32.totalorder %s506_s30, %s506_s30 }
  0x60   : > { %p5565_p2 = scmp.ne.s32.totalorder %s506_s30, %s5564_s20  ;;  %p5573_p7 = scmp.lt.s32.totalorder %s5564_s20, %s5564_s20 }
  0x62   : > { %p5567_p9 = pnand %p5565_p2, %p5945_p13  ;;  %p5574_p8 = por %p5573_p7, %p5572_p4 }
  0x64   : > { %p5568_p3 = pneg %p5567_p9 }
  0x66   : > { %p5575_p0 = pnand %p5574_p8, %p5568_p3 }
  0x68   : > { %5578 = shalt.err (!%p5575_p0)
}
  0x69   : > { %s6537_s18 = smov 4   ;;  %s6538_s21 = smov 64  }
  0x6a   : > { %5126 = dma.hbm_to_vmem [thread:$0]  (!%p5939_p12), %s6491_s7, 2048, %s506_s30, [#allocation6], %s6538_s21, %s6538_s21, %s6537_s18  }
  0x6b   : > { %s5590_s26 = scalar_lea.vmem %s532_s25, 4096  ;;  %p5598_p9 = scmp.lt.s32.totalorder %s532_s25, %s532_s25 }
  0x6c   : > { %p5591_p11 = scmp.ne.s32.totalorder %s532_s25, %s5590_s26  ;;  %p5599_p4 = scmp.lt.s32.totalorder %s5590_s26, %s5590_s26 }
  0x6e   : > { %p5593_p1 = pnand %p5591_p11, %p5945_p13  ;;  %p5600_p3 = por %p5599_p4, %p5598_p9 }
  0x70   : > { %p5594_p2 = pneg %p5593_p1 }
  0x72   : > { %p5601_p7 = pnand %p5600_p3, %p5594_p2 }
  0x74   : > { %5604 = shalt.err (!%p5601_p7)
}
  0x75   : > { %5132 = dma.hbm_to_vmem [thread:$0]  (!%p5939_p12), %s6493_s9, 4096, %s532_s25, [#allocation9], %s6538_s21, %s6538_s21, %s6537_s18  }
  0x76   : > { %s5780_s1 = smov [#allocation13]   ;;  %s5781_s23 = smov [#allocation16]  }
  0x77   : > { %s560_s30 = sshll.u32 %s5780_s1, 4  ;;  %s592_s29 = sshll.u32 %s5781_s23, 4  ;;  %s561_s30 = int_to_ptr.vmem [resolvable:$true] %s560_s30  ;;  %s593_s29 = int_to_ptr.vmem [resolvable:$true] %s592_s29 }
  0x78   : > { %s5616_s2 = scalar_lea.vmem %s561_s30, 1024  ;;  %p5624_p1 = scmp.lt.s32.totalorder %s561_s30, %s561_s30 }
  0x79   : > { %p5617_p8 = scmp.ne.s32.totalorder %s561_s30, %s5616_s2  ;;  %p5625_p2 = scmp.lt.s32.totalorder %s5616_s2, %s5616_s2 }
  0x7b   : > { %p5619_p0 = pnand %p5617_p8, %p5945_p13  ;;  %p5626_p9 = por %p5625_p2, %p5624_p1 }
  0x7d   : > { %p5620_p11 = pneg %p5619_p0 }
  0x7f   : > { %p5627_p4 = pnand %p5626_p9, %p5620_p11 }
  0x81   : > { %5630 = shalt.err (!%p5627_p4)
}
  0x82   : > { %5138 = dma.hbm_to_vmem [thread:$0]  (!%p5939_p12), %s6496_s12, 1024, %s561_s30, [#allocation12], %s6538_s21, %s6538_s21, %s6537_s18  }
  0x83   : > { %s5642_s20 = scalar_lea.vmem %s593_s29, 1024  ;;  %p5650_p0 = scmp.lt.s32.totalorder %s593_s29, %s593_s29 }
  0x84   : > { %p5643_p3 = scmp.ne.s32.totalorder %s593_s29, %s5642_s20  ;;  %p5651_p1 = scmp.lt.s32.totalorder %s5642_s20, %s5642_s20 }
  0x86   : > { %p5645_p7 = pnand %p5643_p3, %p5945_p13  ;;  %p5652_p11 = por %p5651_p1, %p5650_p0 }
  0x88   : > { %p5646_p8 = pneg %p5645_p7 }
  0x8a   : > { %p5653_p2 = pnand %p5652_p11, %p5646_p8 }
  0x8c   : > { %5656 = shalt.err (!%p5653_p2)
}
  0x8d   : > { %5144 = dma.hbm_to_vmem [thread:$0]  (!%p5939_p12), %s6500_s16, 1024, %s593_s29, [#allocation15], %s6538_s21, %s6538_s21, %s6537_s18  }
  0x8e   : > { %s5782_s30 = smov [#allocation17]  }
  0x8f   : > { %s605_s23 = sshll.u32 %s5782_s30, 4  ;;  %s606_s23 = int_to_ptr.vmem [resolvable:$true] %s605_s23 }
  0x90   : > { %s5668_s2 = scalar_lea.vmem %s606_s23, 1024  ;;  %p5676_p7 = scmp.lt.s32.totalorder %s606_s23, %s606_s23 }
  0x91   : > { %p5669_p9 = scmp.ne.s32.totalorder %s606_s23, %s5668_s2  ;;  %p5677_p8 = scmp.lt.s32.totalorder %s5668_s2, %s5668_s2 }
  0x93   : > { %p5671_p4 = pnand %p5669_p9, %p5945_p13  ;;  %p5678_p0 = por %p5677_p8, %p5676_p7 }
  0x95   : > { %p5672_p3 = pneg %p5671_p4 }
  0x97   : > { %p5679_p1 = pnand %p5678_p0, %p5672_p3 }
  0x99   : > { %5682 = shalt.err (!%p5679_p1)
}
  0x9a   : > { %5147 = dma.hbm_to_vmem [thread:$0]  (!%p5939_p12), %s6501_s17, 1024, %s606_s23, [#allocation18], %s6538_s21, %s6538_s21, %s6537_s18  }
  0x9b   : > { %645 = sbr.rel (%p5931_p10) target bundleno = 4527 (0x11af), region = 92  ;;  %p6539_p13 = scmp.eq.s32.totalorder (!%p5931_p10), %s5903_s0, 0 }
  0xa0   : > { %5726 = dma.done.wait (%p6539_p13), [#allocation3], 8192   ;;  %p6540_p11 = pmov %p6539_p13 }
  0xa2   : > { %5728 = vsyncadd (%p6540_p11), [#allocation3], 4294959104  ;;  %p6541_p2 = pmov %p6540_p11 }
  0xa4   : > { %5730 = dma.done.wait (%p6541_p2), [#allocation6], 6144   ;;  %p6542_p9 = pmov %p6541_p2 }
  0xa5   : > { %p6543_p4 = pmov %p6541_p2 }
  0xa6   : > { %5732 = vsyncadd (%p6542_p9), [#allocation6], 4294961152 }
  0xa7   : > { %5734 = dma.done.wait (%p6543_p4), [#allocation9], 12288   ;;  %p6544_p12 = pmov %p6541_p2 }
  0xa8   : > { %p6545_p10 = pmov %p6541_p2 }
  0xa9   : > { %5736 = vsyncadd (%p6544_p12), [#allocation9], 4294955008 }
  0xaa   : > { %5738 = dma.done.wait (%p6545_p10), [#allocation12], 2048   ;;  %p6546_p3 = pmov %p6541_p2 }
  0xab   : > { %p6547_p7 = pmov %p6541_p2 }
  0xac   : > { %5740 = vsyncadd (%p6546_p3), [#allocation12], 4294965248 }
  0xad   : > { %5742 = dma.done.wait (%p6547_p7), [#allocation15], 3072   ;;  %p6548_p8 = pmov %p6541_p2 }
  0xae   : > { %p6549_p0 = pmov %p6541_p2 }
  0xaf   : > { %5744 = vsyncadd (%p6548_p8), [#allocation15], 4294964224 }
  0xb0   : > { %5746 = dma.done.wait (%p6549_p0), [#allocation18], 1024   ;;  %p6550_p1 = pmov %p6549_p0 }
  0xb1   : > { %v5783_v0 = vmov 0.0   ;;  %vm5784_vm0 = vmmov 0   ;;  %v5222_v1 = vld [vmem:[#allocation11 + $0x38] sm:$0xff]   ;;  %v5223_v2 = vld [vmem:[#allocation11 + $0x30] sm:$0xff]   ;;  %v5224_v3 = vld [vmem:[#allocation11 + $0x28] sm:$0xff]   ;;  %s4309_s22 = sshll.u32 %s5903_s0, 1 }
  0xb2   : > { %5748 = vsyncadd (%p6550_p1), [#allocation18], 4294966272  ;;  %4835 = vmatprep.subr.bf16.mxu0 %v5783_v0  ;;  %4851 = vmatprep.mubr.msk.bf16.mxu0 %vm5784_vm0, %v5783_v0  ;;  %v5225_v4 = vld [vmem:[#allocation11 + $0x20] sm:$0xff]   ;;  %p749_p13 = scmp.lt.s32.totalorder %s4309_s22, 3  ;;  %v5226_v5 = vld [vmem:[#allocation11 + $0x18] sm:$0xff]   ;;  %p743_p11 = scmp.lt.s32.totalorder %s5903_s0, 1 }
  0xb3   : > { %4855 = vmatprep.subr.bf16.mxu1 %v5783_v0  ;;  %4871 = vmatprep.mubr.msk.bf16.mxu1 %vm5784_vm0, %v5783_v0  ;;  %v5227_v6 = vld [vmem:[#allocation11 + $0x10] sm:$0xff]   ;;  %v5228_v7 = vld [vmem:[#allocation11 + $0x8] sm:$0xff]   ;;  %s6551_s26 = sld [smem:[#allocation35_spill]]  ;;  %v5229_v8 = vld [vmem:[#allocation11] sm:$0xff]   ;;  %vm1794_vm1 = vcmask 1040384  }
  0xb4   : > { %4836 = vmatpush3.bf16.msra.mxu0 %v5222_v1  ;;  %s6566_s22 = smov (!%p749_p13, %s4309_s22), 3  ;;  %s6552_s30 = sld [smem:[#allocation36_spill]]  ;;  %v5230_v9 = vld [vmem:[#allocation7 + $0x78] sm:$0xff]   ;;  %v5232_v13 = vld [vmem:[#allocation7 + $0x70] sm:$0xff]   ;;  %v5234_v15 = vld [vmem:[#allocation7 + $0x68] sm:$0xff]  }
  0xb5   : > { %4837 = vmatprep.subr.bf16.mxu0 %v5783_v0  ;;  %s4594_s24 = sshll.u32 %s6566_s22, 3  ;;  %v5231_v11 = vld [vmem:[#allocation7 + $0x38] sm:$0xff]   ;;  %v5233_v14 = vld [vmem:[#allocation7 + $0x30] sm:$0xff]   ;;  %v5235_v16 = vld [vmem:[#allocation7 + $0x28] sm:$0xff]   ;;  %s6553_s25 = sld [smem:[#allocation34_spill]] }
  0xb6   : > { %s6089_s19 = scalar_select %p743_p11, %s5903_s0, 1  ;;  %v5236_v17 = vld [vmem:[#allocation7 + $0x60] sm:$0xff]   ;;  %v5238_v19 = vld [vmem:[#allocation7 + $0x58] sm:$0xff]   ;;  %v5240_v21 = vld [vmem:[#allocation7 + $0x50] sm:$0xff]  }
  0xb7   : > { %v5237_v18 = vld [vmem:[#allocation7 + $0x20] sm:$0xff]   ;;  %v5239_v20 = vld [vmem:[#allocation7 + $0x18] sm:$0xff]   ;;  %v5241_v22 = vld [vmem:[#allocation7 + $0x10] sm:$0xff]   ;;  %s741_s22 = sand.u32 1, %s5759_s28  }
  0xb8   : > { %4838 = vmatpush3.bf16.msra.mxu0 %v5223_v2  ;;  %v5242_v23 = vld [vmem:[#allocation7 + $0x48] sm:$0xff]   ;;  %v5244_v25 = vld [vmem:[#allocation7 + $0x40] sm:$0xff]   ;;  %v5249_v28 = vld [vmem:[#allocation13 + $0x38] sm:$0xff]  }
  0xb9   : > { %4839 = vmatprep.subr.bf16.mxu0 %v5783_v0  ;;  %s6095_s20 = scalar_lea.vmem %s6551_s26, %s4594_s24  ;;  %v5243_v24 = vld [vmem:[#allocation7 + $0x8] sm:$0xff]   ;;  %v5245_v26 = vld [vmem:[#allocation7] sm:$0xff]   ;;  %4856 = vmatpush3.bf16.msra.mxu1 %v5249_v28  ;;  %v5250_v29 = vld [vmem:[#allocation13 + $0x30] sm:$0xff]   ;;  %s4590_s26 = sshll.u32 %s5903_s0, 4 }
  0xba   : > { %s757_s23 = scalar_lea.vmem %s6552_s30, %s6089_s19  ;;  %v5248_v12 = vld [vmem:[%s6095_s20 + $0x4] ss:$8 sps:$4 sm:$0xff]   ;;  %v5246_v27 = vld [vmem:[%s6095_s20] ss:$8 sps:$4 sm:$0xff]   ;;  %4857 = vmatprep.subr.bf16.mxu1 %v5783_v0  ;;  %v5253_v41 = vld [vmem:[#allocation13 + $0x18] sm:$0xff]   ;;  %s4593_s30 = sshll.u32 %s6089_s19, 3 }
  0xbb   : > { %v791_v10 = vld [vmem:[%s757_s23] sm:$0x1]  ;;  %v5251_v30 = vld [vmem:[#allocation13 + $0x28] sm:$0xff]   ;;  %v5254_v42 = vld [vmem:[#allocation13 + $0x10] sm:$0xff]   ;;  %s747_s29 = scalar_lea.vmem %s6553_s25, %s4593_s30  ;;  %s742_s19 = scalar_lea.vmem [#allocation19], %s741_s22 }
  0xbc   : > { %4840 = vmatpush3.bf16.msra.mxu0 %v5224_v3  ;;  %v1369_v31 = vld [vmem:[#allocation8 + $0x1c0] sm:$0xf]  ;;  %v6109_v37 = vld [vmem:[#allocation8 + $0x1c4] sm:$0xff]  ;;  %s4109_s20 = sshll.u32 %s742_s19, 4  ;;  %s6555_s30 = sld [smem:[#allocation37_spill]]  ;;  %s6445_s20 = int_to_ptr.vmem [resolvable:$true] %s4109_s20 }
  0xbd   : > { %4841 = vmatprep.subr.bf16.mxu0 %v5783_v0  ;;  %4858 = vmatpush3.bf16.msra.mxu1 %v5250_v29  ;;  %v5252_v32 = vld [vmem:[#allocation13 + $0x20] sm:$0xff]   ;;  %v5255_v43 = vld [vmem:[#allocation13 + $0x8] sm:$0xff]   ;;  %s4097_s25 = scalar_lea.sflag [#allocation4], %s741_s22  ;;  %s5683_s0 = scalar_lea.vmem %s6445_s20, 16 }
  0xbe   : > { %4859 = vmatprep.subr.bf16.mxu1 %v5783_v0  ;;  %v1370_v33 = vld [vmem:[#allocation8 + $0x1e0] sm:$0xf]  ;;  %v6111_v38 = vld [vmem:[#allocation8 + $0x1e4] sm:$0xff]  ;;  %p5684_p2 = scmp.ne.s32.totalorder %s6445_s20, %s5683_s0 }
  0xbf   : > { %v1367_v34 = vld [vmem:[#allocation8 + $0x180] sm:$0xf]  ;;  %v4370_v35 = vcombine.low %v1369_v31, %v1370_v33  ;;  %v4361_v39 = vcombine.low %v6109_v37, %v6111_v38  ;;  %v4362_v45 = vcombine.high %v6109_v37, %v6111_v38  ;;  %v1211_v28 = vld [vmem:[#allocation8 + $0x124] sm:$0xff] }
  0xc0   : > { %4842 = vmatpush3.bf16.msra.mxu0 %v5225_v4  ;;  %v1368_v36 = vld [vmem:[#allocation8 + $0x1a0] sm:$0xf]  ;;  %v1209_v33 = vld [vmem:[#allocation8 + $0xe4] sm:$0xff]  ;;  %p5685_p9 = pnand %p5684_p2, %p5920_p5 }
  0xc1   : > { %4843 = vmatprep.subr.bf16.mxu0 %v5783_v0  ;;  %4860 = vmatpush3.bf16.msra.mxu1 %v5251_v30  ;;  %v4369_v40 = vcombine.low %v1367_v34, %v1368_v36  ;;  %v5256_v44 = vld [vmem:[#allocation13] sm:$0xff]  }
  0xc2   : > { %4861 = vmatprep.subr.bf16.mxu1 %v5783_v0  ;;  %v1365_v46 = vld [vmem:[#allocation8 + $0x140] sm:$0xf]  ;;  %v1206_v37 = vld [vmem:[#allocation8 + $0x84] sm:$0xff]  ;;  %s6556_s23 = smov %s6555_s30  ;;  %s6443_s2 = scalar_lea.hbm %s6555_s30, %s4590_s26 }
  0xc3   : > { %v1366_v47 = vld [vmem:[#allocation8 + $0x160] sm:$0xf]  ;;  %v1207_v38 = vld [vmem:[#allocation8 + $0xa4] sm:$0xff]  ;;  %p5686_p4 = pneg %p5685_p9 }
  0xc4   : > { %4844 = vmatpush3.bf16.msra.mxu0 %v5226_v5  ;;  %v4368_v48 = vcombine.low %v1365_v46, %v1366_v47  ;;  %v1363_v49 = vld [vmem:[#allocation8 + $0x100] sm:$0xf]  ;;  %v1202_v47 = vld [vmem:[#allocation8 + $0x4] sm:$0xff] }
  0xc5   : > { %4845 = vmatprep.subr.bf16.mxu0 %v5783_v0  ;;  %4862 = vmatpush3.bf16.msra.mxu1 %v5252_v32  ;;  %v1364_v50 = vld [vmem:[#allocation8 + $0x120] sm:$0xf]  ;;  %v1208_v32 = vld [vmem:[#allocation8 + $0xc4] sm:$0xff] }
  0xc6   : > { %4863 = vmatprep.subr.bf16.mxu1 %v5783_v0  ;;  %v4367_v51 = vcombine.low %v1363_v49, %v1364_v50  ;;  %v1361_v52 = vld [vmem:[#allocation8 + $0xc0] sm:$0xf] }
  0xc7   : > { %v1362_v53 = vld [vmem:[#allocation8 + $0xe0] sm:$0xf] }
  0xc8   : > { %4846 = vmatpush3.bf16.msra.mxu0 %v5227_v6  ;;  %v4366_v54 = vcombine.low %v1361_v52, %v1362_v53  ;;  %v1359_v55 = vld [vmem:[#allocation8 + $0x80] sm:$0xf] }
  0xc9   : > { %4847 = vmatprep.subr.bf16.mxu0 %v5783_v0  ;;  %4864 = vmatpush3.bf16.msra.mxu1 %v5253_v41  ;;  %v1360_v56 = vld [vmem:[#allocation8 + $0xa0] sm:$0xf] }
  0xca   : > { %4865 = vmatprep.subr.bf16.mxu1 %v5783_v0  ;;  %v4365_v57 = vcombine.low %v1359_v55, %v1360_v56  ;;  %v1357_v58 = vld [vmem:[#allocation8 + $0x40] sm:$0xf] }
  0xcb   : > { %v1358_v59 = vld [vmem:[#allocation8 + $0x60] sm:$0xf] }
  0xcc   : > { %4848 = vmatpush3.bf16.msra.mxu0 %v5228_v7  ;;  %v4364_v60 = vcombine.low %v1357_v58, %v1358_v59  ;;  %v1355_v61 = vld [vmem:[#allocation8] sm:$0xf]  ;;  %v5257_v58 = vld [vmem:[#allocation16 + $0x38] sm:$0xff]   ;;  %v5258_v59 = vld [vmem:[#allocation16 + $0x30] sm:$0xff]  }
  0xcd   : > { %4849 = vmatprep.subr.bf16.mxu0 %v5783_v0  ;;  %4866 = vmatpush3.bf16.msra.mxu1 %v5254_v42  ;;  %v1356_v62 = vld [vmem:[#allocation8 + $0x20] sm:$0xf]  ;;  %v1204_v42 = vld [vmem:[#allocation8 + $0x44] sm:$0xff] }
  0xce   : > { %4867 = vmatprep.subr.bf16.mxu1 %v5783_v0  ;;  %v4363_v63 = vcombine.low %v1355_v61, %v1356_v62  ;;  %v6132_v1 = vld [vmem:[%s6494_s10 + $0x1] sm:$0x1]  ;;  %v808_v3 = vld [vmem:[%s6497_s13] sm:$0x1]  ;;  %v5261_v62 = vld [vmem:[#allocation16 + $0x18] sm:$0xff]  }
  0xcf   : > { %v1371_v2 = vpack.c.bf16 %v6132_v1, %v6132_v1  ;;  %v4328_v53 = vld [vmem:[%s6494_s10] ss:$0 sm:$0xff] }
  0xd0   : > { %4850 = vmatpush3.bf16.msra.mxu0 %v5229_v8  ;;  %v5260_v61 = vld [vmem:[#allocation16 + $0x20] sm:$0xff]  }
  0xd1   : > { %4613 = vmatprep.subr.bf16.mxu0 %v5230_v9  ;;  %4868 = vmatpush3.bf16.msra.mxu1 %v5255_v43  ;;  %v1205_v43 = vld [vmem:[#allocation8 + $0x64] sm:$0xff] }
  0xd2   : > { %4869 = vmatprep.subr.bf16.mxu1 %v5783_v0  ;;  %v4349_v49 = vcombine.low %v1204_v42, %v1205_v43 }
  0xd3   : > { %4852 = vmatmul.mubr.bf16.vlgmr.msra.gmra.mxu0 %v791_v10 }
  0xd4   : > { %4614 = vmatpush3.bf16.msra.mxu0 %v5231_v11  ;;  %1192 = vmatprep.mubr.bf16.mxu0 %v5248_v12 }
  0xd5   : > { %4615 = vmatprep.subr.bf16.mxu0 %v5232_v13  ;;  %4870 = vmatpush3.bf16.msra.mxu1 %v5256_v44  ;;  %v4351_v44 = vcombine.low %v1206_v37, %v1207_v38 }
  0xd6   : > { %1310 = vmatprep.subr.bf16.mxu1 %v4362_v45  ;;  %v4350_v45 = vcombine.high %v1204_v42, %v1205_v43  ;;  %v5271_v42 = vld [vmem:[#allocation17 + $0x8] sm:$0xff]   ;;  %v5272_v43 = vld [vmem:[#allocation17] sm:$0xff]  }
  0xd8   : > { %4616 = vmatpush3.bf16.msra.mxu0 %v5233_v14 }
  0xd9   : > { %4617 = vmatprep.subr.bf16.mxu0 %v5234_v15 }
  0xdc   : > { %4618 = vmatpush3.bf16.msra.mxu0 %v5235_v16 }
  0xdd   : > { %4619 = vmatprep.subr.bf16.mxu0 %v5236_v17  ;;  %v1214_v17 = vld [vmem:[#allocation8 + $0x184] sm:$0xff] }
  0xe0   : > { %4620 = vmatpush3.bf16.msra.mxu0 %v5237_v18  ;;  %v1215_v18 = vld [vmem:[#allocation8 + $0x1a4] sm:$0xff] }
  0xe1   : > { %4621 = vmatprep.subr.bf16.mxu0 %v5238_v19 }
  0xe4   : > { %4622 = vmatpush3.bf16.msra.mxu0 %v5239_v20 }
  0xe5   : > { %4623 = vmatprep.subr.bf16.mxu0 %v5240_v21  ;;  %v4360_v21 = vcombine.high %v1214_v17, %v1215_v18 }
  0xe8   : > { %4624 = vmatpush3.bf16.msra.mxu0 %v5241_v22  ;;  %v1212_v22 = vld [vmem:[#allocation8 + $0x144] sm:$0xff] }
  0xe9   : > { %4625 = vmatprep.subr.bf16.mxu0 %v5242_v23  ;;  %v1213_v23 = vld [vmem:[#allocation8 + $0x164] sm:$0xff] }
  0xea   : > { %v4357_v29 = vcombine.low %v1212_v22, %v1213_v23 }
  0xec   : > { %4626 = vmatpush3.bf16.msra.mxu0 %v5243_v24  ;;  %v4359_v24 = vcombine.low %v1214_v17, %v1215_v18 }
  0xed   : > { %4627 = vmatprep.subr.bf16.mxu0 %v5244_v25  ;;  %v5785_v25 = vmov 0  }
  0xf0   : > { %4628 = vmatpush3.bf16.msra.mxu0 %v5245_v26  ;;  %v4358_v26 = vcombine.high %v1212_v22, %v1213_v23 }
  0xf1   : > { %4875 = vmatprep.subr.bf16.mxu0 %v5783_v0 }
  0xf3   : > { %1193 = vmatmul.mubr.bf16.vlgmr.msra.gmra.mxu0 %v5246_v27  ;;  %v1210_v27 = vld [vmem:[#allocation8 + $0x104] sm:$0xff] }
  0xf4   : > { %4891 = vmatprep.mubr.msk.bf16.mxu0 %vm5784_vm0, %v5783_v0  ;;  %4876 = vmatpush3.bf16.msra.mxu0 %v4370_v35  ;;  %v4356_v30 = vcombine.high %v1210_v27, %v1211_v28  ;;  %v4355_v34 = vcombine.low %v1210_v27, %v1211_v28  ;;  %v4354_v35 = vcombine.high %v1208_v32, %v1209_v33 }
  0xf5   : > { %4877 = vmatprep.subr.bf16.mxu0 %v5783_v0 }
  0xf8   : > { %4878 = vmatpush3.bf16.msra.mxu0 %v4369_v40  ;;  %v4352_v40 = vcombine.high %v1206_v37, %v1207_v38  ;;  %v5266_v37 = vld [vmem:[#allocation17 + $0x30] sm:$0xff]   ;;  %v5267_v38 = vld [vmem:[#allocation17 + $0x28] sm:$0xff]  }
  0xf9   : > { %4879 = vmatprep.subr.bf16.mxu0 %v5783_v0 }
  0xfc   : > { %4880 = vmatpush3.bf16.msra.mxu0 %v4368_v48  ;;  %v1203_v48 = vld [vmem:[#allocation8 + $0x24] sm:$0xff] }
  0xfd   : > { %4881 = vmatprep.subr.bf16.mxu0 %v5783_v0  ;;  %v4348_v52 = vcombine.high %v1202_v47, %v1203_v48 }
 0x100   : > { %4882 = vmatpush3.bf16.msra.mxu0 %v4367_v51 }
 0x101   : > { %4883 = vmatprep.subr.bf16.mxu0 %v5783_v0 }
 0x104   : > { %4884 = vmatpush3.bf16.msra.mxu0 %v4366_v54  ;;  %v4347_v54 = vcombine.low %v1202_v47, %v1203_v48  ;;  %v1698_v48 = vld [vmem:[#allocation8 + $0x1ac] sm:$0xf] }
 0x105   : > { %4885 = vmatprep.subr.bf16.mxu0 %v5783_v0 }
 0x108   : > { %4886 = vmatpush3.bf16.msra.mxu0 %v4365_v57 }
 0x109   : > { %4887 = vmatprep.subr.bf16.mxu0 %v5783_v0 }
 0x10c   : > { %4888 = vmatpush3.bf16.msra.mxu0 %v4364_v60  ;;  %v5259_v60 = vld [vmem:[#allocation16 + $0x28] sm:$0xff]  }
 0x10d   : > { %4889 = vmatprep.subr.bf16.mxu0 %v5783_v0 }
 0x110   : > { %4890 = vmatpush3.bf16.msra.mxu0 %v4363_v63 }
 0x111   : > { %4915 = vmatprep.subr.bf16.mxu0 %v5783_v0 }
 0x113   : > { %4892 = vmatmul.mubr.bf16.vlgmr.msra.gmra.mxu0 %v1371_v2 }
 0x114   : > { %4931 = vmatprep.mubr.msk.bf16.mxu0 %vm5784_vm0, %v5783_v0 }
 0x193   : > { %v891_v4 = vpop.f32.mrf.mxu0 }
 0x194   : > { %v892_v5 = vadd.f32 %v891_v4, %v808_v3  ;;  %v5262_v4 = vld [vmem:[#allocation16 + $0x10] sm:$0xff]  }
 0x195   : > { %v4853_v6 = vpop.f32.mrf.mxu0 }
 0x196   : > { %v898_v7 = vmul.f32 0.044715, %v892_v5  ;;  %v897_v15 = vmul.f32 0.5, %v892_v5  ;;  %v5263_v6 = vld [vmem:[#allocation16 + $0x8] sm:$0xff]  }
 0x197   : > { %v894_v8 = vpop.f32.mrf.mxu0 }
 0x198   : > { %v899_v9 = vmul.f32 %v898_v7, %v892_v5  ;;  %v5264_v7 = vld [vmem:[#allocation16] sm:$0xff]  }
 0x199   : > { %v4854_v10 = vpop.f32.mrf.mxu0 }
 0x19a   : > { %v900_v11 = vmul.f32 %v899_v9, %v892_v5 }
 0x19c   : > { %v901_v12 = vadd.f32 %v900_v11, %v892_v5 }
 0x19e   : > { %v902_v13 = vmul.f32 0.7978846, %v901_v12  ;;  %v1220_v12 = vlaneseq }
 0x1a0   : > { %5371 = vtanh.f32 %v902_v13  ;;  %v1372_v13 = vld [vmem:[%s6494_s10 + $0x2] sm:$0x1] }
 0x1ad   : > { %v5372_v14 = vpop.eup %5371 }
 0x1ae   : > { %v904_v16 = vadd.f32 1.0, %v5372_v14  ;;  %v6165_v14 = vshrl.u32 %v1220_v12, 7 }
 0x1b0   : > { %v905_v19 = vmul.f32 %v904_v16, %v897_v15  ;;  %v6168_v16 = vsub.s32 1, %v6165_v14  ;;  %v6171_v17 = vsub.s32 0, %v6165_v14 }
 0x1b2   : > { %v922_v20 = vpack.c.bf16 %v905_v19, %v905_v19  ;;  %v1218_v19 = vld [vmem:[%s6494_s10 + $0x3] sm:$0x3] }
 0x1b3   : > { %v4629_v31 = vpop.f32.mrf.mxu0  ;;  %v1223_v23 = vrot.slane %v1218_v19, %v6171_v17 }
 0x1b4   : > { %4872 = vmatmul.mubr.bf16.vlgmr.msra.gmra.mxu1 %v922_v20  ;;  %v1227_v20 = vrot.slane %v1218_v19, %v6168_v16 }
 0x1b5   : > { %1311 = vmatpush1.bf16.msra.mxu1 %v4361_v39  ;;  %1342 = vmatprep.mubr.bf16.mxu1 %v5785_v25  ;;  %v4630_v36 = vpop.f32.mrf.mxu0  ;;  %v4353_v39 = vcombine.low %v1208_v32, %v1209_v33 }
 0x1b6   : > { %1312 = vmatprep.subr.bf16.mxu1 %v4360_v21  ;;  %v4631_v50 = vadd.f32 %v4630_v36, %v4629_v31  ;;  %v5265_v36 = vld [vmem:[#allocation17 + $0x38] sm:$0xff]  }
 0x1b7   : > { %v4632_v41 = vpop.f32.mrf.mxu0  ;;  %4916 = vmatpush3.bf16.msra.mxu0 %v5265_v36  ;;  %v1687_v36 = vld [vmem:[#allocation8 + $0x4c] sm:$0xf] }
 0x1b8   : > { %v1195_v55 = vadd.f32 %v4631_v50, %v4328_v53  ;;  %4917 = vmatprep.subr.bf16.mxu0 %v5783_v0 }
 0x1b9   : > { %1313 = vmatpush1.bf16.msra.mxu1 %v4359_v24  ;;  %v4633_v46 = vpop.f32.mrf.mxu0 }
 0x1ba   : > { %1314 = vmatprep.subr.bf16.mxu1 %v4358_v26  ;;  %v4634_v51 = vadd.f32 %v4633_v46, %v4632_v41  ;;  %v5270_v41 = vld [vmem:[#allocation17 + $0x10] sm:$0xff]   ;;  %v1697_v46 = vld [vmem:[#allocation8 + $0x18c] sm:$0xf] }
 0x1bb   : > { %4918 = vmatpush3.bf16.msra.mxu0 %v5266_v37  ;;  %v1688_v37 = vld [vmem:[#allocation8 + $0x6c] sm:$0xf] }
 0x1bc   : > { %v1198_v56 = vadd.f32 %v4634_v51, %v4328_v53  ;;  %4919 = vmatprep.subr.bf16.mxu0 %v5783_v0 }
 0x1bd   : > { %1315 = vmatpush1.bf16.msra.mxu1 %v4357_v29 }
 0x1be   : > { %1316 = vmatprep.subr.bf16.mxu1 %v4356_v30  ;;  %v1201_v57 = vpack.c.bf16 %v1198_v56, %v1195_v55 }
 0x1bf   : > { %4920 = vmatpush3.bf16.msra.mxu0 %v5267_v38  ;;  %v4388_v38 = vcombine.low %v1687_v36, %v1688_v37  ;;  %v1827_v37 = vld [vmem:[#allocation8 + $0x110] sm:$0xff] }
 0x1c0   : > { %4921 = vmatprep.subr.bf16.mxu0 %v5783_v0 }
 0x1c1   : > { %1317 = vmatpush1.bf16.msra.mxu1 %v4355_v34 }
 0x1c2   : > { %1318 = vmatprep.subr.bf16.mxu1 %v4354_v35 }
 0x1c5   : > { %1319 = vmatpush1.bf16.msra.mxu1 %v4353_v39  ;;  %v5268_v39 = vld [vmem:[#allocation17 + $0x20] sm:$0xff]  }
 0x1c6   : > { %1320 = vmatprep.subr.bf16.mxu1 %v4352_v40  ;;  %4922 = vmatpush3.bf16.msra.mxu0 %v5268_v39  ;;  %v5269_v40 = vld [vmem:[#allocation17 + $0x18] sm:$0xff]   ;;  %v1685_v39 = vld [vmem:[#allocation8 + $0xc] sm:$0xf] }
 0x1c7   : > { %4923 = vmatprep.subr.bf16.mxu0 %v5783_v0 }
 0x1c9   : > { %1321 = vmatpush1.bf16.msra.mxu1 %v4351_v44  ;;  %v1699_v44 = vld [vmem:[#allocation8 + $0x1cc] sm:$0xf] }
 0x1ca   : > { %1322 = vmatprep.subr.bf16.mxu1 %v4350_v45  ;;  %4924 = vmatpush3.bf16.msra.mxu0 %v5269_v40  ;;  %v1700_v45 = vld [vmem:[#allocation8 + $0x1ec] sm:$0xf] }
 0x1cb   : > { %4925 = vmatprep.subr.bf16.mxu0 %v5783_v0  ;;  %v4394_v47 = vcombine.low %v1699_v44, %v1700_v45  ;;  %v1686_v40 = vld [vmem:[#allocation8 + $0x2c] sm:$0xf] }
 0x1cd   : > { %1323 = vmatpush1.bf16.msra.mxu1 %v4349_v49  ;;  %v4393_v49 = vcombine.low %v1697_v46, %v1698_v48 }
 0x1ce   : > { %1324 = vmatprep.subr.bf16.mxu1 %v4348_v52  ;;  %4926 = vmatpush3.bf16.msra.mxu0 %v5270_v41  ;;  %v4387_v41 = vcombine.low %v1685_v39, %v1686_v40  ;;  %v1828_v39 = vld [vmem:[#allocation8 + $0x118] sm:$0xff] }
 0x1cf   : > { %4927 = vmatprep.subr.bf16.mxu0 %v5783_v0 }
 0x1d1   : > { %1325 = vmatpush1.bf16.msra.mxu1 %v4347_v54 }
 0x1d2   : > { %4895 = vmatprep.subr.bf16.mxu1 %v5783_v0  ;;  %4928 = vmatpush3.bf16.msra.mxu0 %v5271_v42 }
 0x1d3   : > { %v1455_v63 = vpop.f32.mrf.mxu0  ;;  %4929 = vmatprep.subr.bf16.mxu0 %v5783_v0 }
 0x1d4   : > { %1343 = vmatmul.mubr.bf16.vlgmr.msra.gmra.mxu1 %v1201_v57  ;;  %v1456_v15 = vadd.f32 %v1455_v63, %v1372_v13 }
 0x1d5   : > { %4911 = vmatprep.mubr.msk.bf16.mxu1 %vm5784_vm0, %v5783_v0  ;;  %4896 = vmatpush3.bf16.msra.mxu1 %v5257_v58  ;;  %v4893_v2 = vpop.f32.mrf.mxu0 }
 0x1d6   : > { %4897 = vmatprep.subr.bf16.mxu1 %v5783_v0  ;;  %v1461_v18 = vpack.c.bf16 %v1456_v15, %v1456_v15  ;;  %4930 = vmatpush3.bf16.msra.mxu0 %v5272_v43 }
 0x1d7   : > { %v1458_v3 = vpop.f32.mrf.mxu0 }
 0x1d8   : > { %v1463_v22 = vpack.i.b16 %v1461_v18, %v1461_v18 }
 0x1d9   : > { %4898 = vmatpush3.bf16.msra.mxu1 %v5258_v59  ;;  %v4894_v5 = vpop.f32.mrf.mxu0 }
 0x1da   : > { %4899 = vmatprep.subr.bf16.mxu1 %v5783_v0  ;;  %v1468_v28 = vrot.slane %v1463_v22, %v6171_v17  ;;  %v1695_v22 = vld [vmem:[#allocation8 + $0x14c] sm:$0xf] }
 0x1dd   : > { %4900 = vmatpush3.bf16.msra.mxu1 %v5259_v60 }
 0x1de   : > { %4901 = vmatprep.subr.bf16.mxu1 %v5783_v0 }
 0x1e1   : > { %4902 = vmatpush3.bf16.msra.mxu1 %v5260_v61 }
 0x1e2   : > { %4903 = vmatprep.subr.bf16.mxu1 %v5783_v0 }
 0x1e5   : > { %4904 = vmatpush3.bf16.msra.mxu1 %v5261_v62 }
 0x1e6   : > { %4905 = vmatprep.subr.bf16.mxu1 %v5783_v0 }
 0x1e9   : > { %4906 = vmatpush3.bf16.msra.mxu1 %v5262_v4 }
 0x1ea   : > { %4907 = vmatprep.subr.bf16.mxu1 %v5783_v0 }
 0x1ed   : > { %4908 = vmatpush3.bf16.msra.mxu1 %v5263_v6 }
 0x1ee   : > { %4909 = vmatprep.subr.bf16.mxu1 %v5783_v0 }
 0x1f1   : > { %4910 = vmatpush3.bf16.msra.mxu1 %v5264_v7 }
 0x1f2   : > { %4935 = vmatprep.subr.bf16.mxu1 %v5783_v0 }
 0x274   : > { %v6160_v8 = vpop.f32.mrf.mxu1 }
 0x276   : > { %v4873_v9 = vpop.f32.mrf.mxu1 }
 0x278   : > { %v1009_v10 = vpop.f32.mrf.mxu1 }
 0x27a   : > { %v4874_v11 = vpop.f32.mrf.mxu1 }
 0x294   : > { %v1344_v21 = vpop.f32.mrf.mxu1 }
 0x295   : > { %v1345_v29 = vadd.f32 %v1344_v21, %v1223_v23 }
 0x296   : > { %v1346_v24 = vpop.f32.mrf.mxu1 }
 0x297   : > { %v1347_v26 = vadd.f32 %v1346_v24, %v1227_v20 }
 0x298   : > { %v1348_v27 = vpop.f32.mrf.mxu1 }
 0x299   : > { %v1349_v30 = vadd.f32 %v1348_v27, %v1223_v23  ;;  %v1696_v23 = vld [vmem:[#allocation8 + $0x16c] sm:$0xf] }
 0x29a   : > { %v1350_v31 = vpop.f32.mrf.mxu1  ;;  %v4392_v24 = vcombine.low %v1695_v22, %v1696_v23  ;;  %v1694_v27 = vld [vmem:[#allocation8 + $0x12c] sm:$0xf] }
 0x29b   : > { %v1353_v32 = vpack.c.bf16 %v1349_v30, %v1345_v29  ;;  %v1351_v33 = vadd.f32 %v1350_v31, %v1227_v20  ;;  %v1691_v29 = vld [vmem:[#allocation8 + $0xcc] sm:$0xf] }
 0x29c   : > { %v1692_v30 = vld [vmem:[#allocation8 + $0xec] sm:$0xf] }
 0x29d   : > { %v1469_v34 = vmul.bf16 %v1468_v28, %v1353_v32  ;;  %v6179_v35 = vpack.c.bf16 %v1351_v33, %v1347_v26  ;;  %v1693_v26 = vld [vmem:[#allocation8 + $0x10c] sm:$0xf]  ;;  %v4390_v31 = vcombine.low %v1691_v29, %v1692_v30  ;;  %v1833_v29 = vld [vmem:[#allocation8 + $0x170] sm:$0xff]  ;;  %v1832_v30 = vld [vmem:[#allocation8 + $0x158] sm:$0xff] }
 0x29e   : > { %v4391_v28 = vcombine.low %v1693_v26, %v1694_v27  ;;  %v1689_v32 = vld [vmem:[#allocation8 + $0x8c] sm:$0xf] }
 0x29f   : > { %4912 = vmatmul.mubr.bf16.vlgmr.msra.gmra.mxu1 %v1469_v34  ;;  %v1690_v33 = vld [vmem:[#allocation8 + $0xac] sm:$0xf]  ;;  %v1674_v44 = vunpack.c.l.bf16 %v6179_v35  ;;  %v1675_v45 = vunpack.c.h.bf16 %v6179_v35 }
 0x2a0   : > { %4951 = vmatprep.mubr.msk.bf16.mxu1 %vm5784_vm0, %v5783_v0  ;;  %4936 = vmatpush3.bf16.msra.mxu1 %v4394_v47  ;;  %v4389_v34 = vcombine.low %v1689_v32, %v1690_v33  ;;  %v1834_v32 = vld [vmem:[#allocation8 + $0x178] sm:$0xff] }
 0x2a1   : > { %4937 = vmatprep.subr.bf16.mxu1 %v5783_v0  ;;  %v4418_v36 = vcombine.high %v1832_v30, %v1834_v32 }
 0x2a4   : > { %4938 = vmatpush3.bf16.msra.mxu1 %v4393_v49 }
 0x2a5   : > { %4939 = vmatprep.subr.bf16.mxu1 %v5783_v0 }
 0x2a8   : > { %4940 = vmatpush3.bf16.msra.mxu1 %v4392_v24 }
 0x2a9   : > { %4941 = vmatprep.subr.bf16.mxu1 %v5783_v0 }
 0x2ac   : > { %4942 = vmatpush3.bf16.msra.mxu1 %v4391_v28  ;;  %v1831_v28 = vld [vmem:[#allocation8 + $0x150] sm:$0xff] }
 0x2ad   : > { %4943 = vmatprep.subr.bf16.mxu1 %v5783_v0  ;;  %v4415_v33 = vcombine.low %v1831_v28, %v1833_v29 }
 0x2b0   : > { %4944 = vmatpush3.bf16.msra.mxu1 %v4390_v31  ;;  %v4416_v31 = vcombine.high %v1831_v28, %v1833_v29  ;;  %v5273_v29 = vld [vmem:[#allocation10 + $0x78] sm:$0xff]  }
 0x2b1   : > { %4945 = vmatprep.subr.bf16.mxu1 %v5783_v0 }
 0x2b4   : > { %4946 = vmatpush3.bf16.msra.mxu1 %v4389_v34  ;;  %v4417_v34 = vcombine.low %v1832_v30, %v1834_v32  ;;  %v5274_v30 = vld [vmem:[#allocation10 + $0xf8] sm:$0xff]  }
 0x2b5   : > { %4947 = vmatprep.subr.bf16.mxu1 %v5783_v0  ;;  %v5276_v32 = vld [vmem:[#allocation10 + $0xb8] sm:$0xff]  }
 0x2b8   : > { %4948 = vmatpush3.bf16.msra.mxu1 %v4388_v38  ;;  %v1829_v38 = vld [vmem:[#allocation8 + $0x130] sm:$0xff] }
 0x2b9   : > { %4949 = vmatprep.subr.bf16.mxu1 %v5783_v0  ;;  %v4411_v40 = vcombine.low %v1827_v37, %v1829_v38 }
 0x2bc   : > { %4950 = vmatpush3.bf16.msra.mxu1 %v4387_v41  ;;  %v4412_v41 = vcombine.high %v1827_v37, %v1829_v38  ;;  %v5281_v37 = vld [vmem:[#allocation10 + $0x68] sm:$0xff]  }
 0x2bd   : > { %v5282_v38 = vld [vmem:[#allocation10 + $0xe8] sm:$0xff]  }
 0x35f   : > { %v1552_v50 = vpop.f32.mrf.mxu1 }
 0x360   : > { %v1559_v53 = vmul.f32 0.125, %v1552_v50 }
 0x361   : > { %v4913_v51 = vpop.f32.mrf.mxu1 }
 0x363   : > { %v1555_v52 = vpop.f32.mrf.mxu1 }
 0x364   : > { %v1560_v54 = vmul.f32 0.125, %v1555_v52 }
 0x365   : > { %v4914_v55 = vpop.f32.mrf.mxu1 }
 0x366   : > { %v1561_v56 = vmax.f32 %v1559_v53, %v1560_v54 }
 0x368   : > { %v1562_v57 = vrot.slane %v1561_v56, 4 }
 0x36a   : > { %v1563_v58 = vmax.f32 %v1561_v56, %v1562_v57 }
 0x36c   : > { %v1564_v59 = vrot.slane %v1563_v58, 2 }
 0x36e   : > { %v1565_v60 = vmax.f32 %v1563_v58, %v1564_v59  ;;  %v1702_v58 = vld [vmem:[%s6494_s10 + $0x5] sm:$0x1] }
 0x370   : > { %v1566_v61 = vrot.slane %v1565_v60, 1 }
 0x372   : > { %v1567_v62 = vmax.f32 %v1565_v60, %v1566_v61 }
 0x374   : > { %v1568_v63 = vsub.f32 %v1559_v53, %v1567_v62  ;;  %v1569_v2 = vsub.f32 %v1560_v54, %v1567_v62 }
 0x376   : > { %v1570_v3 = vmul.f32 1.442695, %v1568_v63  ;;  %v1572_v4 = vmul.f32 1.442695, %v1569_v2 }
 0x378   : > { %5373 = vpow2.f32 %v1570_v3  ;;  %v1839_v3 = vld [vmem:[#allocation8 + $0x1d0] sm:$0xff] }
 0x379   : > { %5375 = vpow2.f32 %v1572_v4  ;;  %v1841_v4 = vld [vmem:[#allocation8 + $0x1f0] sm:$0xff] }
 0x385   : > { %v5374_v5 = vpop.eup %5373 }
 0x386   : > { %v5376_v6 = vpop.eup %5375 }
 0x387   : > { %v1574_v7 = vadd.f32 %v5376_v6, %v5374_v5 }
 0x389   : > { %v1575_v9 = vrot.slane %v1574_v7, 4 }
 0x38b   : > { %v1576_v10 = vadd.f32 %v1575_v9, %v1574_v7  ;;  %v4424_v7 = vcombine.high %v1839_v3, %v1841_v4  ;;  %v1842_v9 = vld [vmem:[#allocation8 + $0x1f8] sm:$0xff] }
 0x38d   : > { %v1577_v11 = vrot.slane %v1576_v10, 2  ;;  %2026 = vmatprep.subr.bf16.mxu0 %v4424_v7  ;;  %v1814_v7 = vld [vmem:[#allocation8 + $0x38] sm:$0xff] }
 0x38f   : > { %v1578_v12 = vadd.f32 %v1577_v11, %v1576_v10  ;;  %v1835_v10 = vld [vmem:[#allocation8 + $0x190] sm:$0xff] }
 0x390   : > { %v1837_v11 = vld [vmem:[#allocation8 + $0x1b0] sm:$0xff] }
 0x391   : > { %v1579_v13 = vrot.slane %v1578_v12, 1 }
 0x393   : > { %v1580_v15 = vadd.f32 %v1579_v13, %v1578_v12 }
 0x395   : > { %5377 = vrcp.f32 %v1580_v15  ;;  %v4420_v15 = vcombine.high %v1835_v10, %v1837_v11 }
 0x3a2   : > { %v5378_v18 = vpop.eup %5377 }
 0x3a3   : > { %v1582_v19 = vmul.f32 %v5378_v18, %v5374_v5  ;;  %v1583_v20 = vmul.f32 %v5378_v18, %v5376_v6  ;;  %v1840_v5 = vld [vmem:[#allocation8 + $0x1d8] sm:$0xff]  ;;  %v4423_v6 = vcombine.low %v1839_v3, %v1841_v4  ;;  %v1811_v4 = vld [vmem:[#allocation8 + $0x10] sm:$0xff] }
 0x3a4   : > { %v4425_v12 = vcombine.low %v1840_v5, %v1842_v9  ;;  %v4426_v13 = vcombine.high %v1840_v5, %v1842_v9  ;;  %v1836_v18 = vld [vmem:[#allocation8 + $0x198] sm:$0xff]  ;;  %v1813_v5 = vld [vmem:[#allocation8 + $0x30] sm:$0xff] }
 0x3a5   : > { %v1584_v21 = vpack.c.bf16 %v1583_v20, %v1582_v19  ;;  %v1838_v19 = vld [vmem:[#allocation8 + $0x1b8] sm:$0xff]  ;;  %v4419_v20 = vcombine.low %v1835_v10, %v1837_v11  ;;  %v4396_v11 = vcombine.high %v1811_v4, %v1813_v5 }
 0x3a6   : > { %2067 = vmatprep.subr.bf16.mxu1 %v4426_v13  ;;  %v4395_v13 = vcombine.low %v1811_v4, %v1813_v5 }
 0x3a7   : > { %4932 = vmatmul.mubr.bf16.vlgmr.msra.gmra.mxu0 %v1584_v21  ;;  %v4421_v21 = vcombine.low %v1836_v18, %v1838_v19 }
 0x3a8   : > { %2058 = vmatprep.mubr.bf16.mxu0 %v5785_v25  ;;  %2027 = vmatpush1.bf16.msra.mxu0 %v4423_v6  ;;  %v1812_v6 = vld [vmem:[#allocation8 + $0x18] sm:$0xff] }
 0x3a9   : > { %2028 = vmatprep.subr.bf16.mxu0 %v4420_v15  ;;  %v4397_v15 = vcombine.low %v1812_v6, %v1814_v7 }
 0x3ac   : > { %2029 = vmatpush1.bf16.msra.mxu0 %v4419_v20 }
 0x3ad   : > { %2030 = vmatprep.subr.bf16.mxu0 %v4416_v31  ;;  %v5275_v31 = vld [vmem:[#allocation10 + $0x38] sm:$0xff]  }
 0x3b0   : > { %2031 = vmatpush1.bf16.msra.mxu0 %v4415_v33  ;;  %v5278_v33 = vld [vmem:[#allocation10 + $0xf0] sm:$0xff]  }
 0x3b1   : > { %2032 = vmatprep.subr.bf16.mxu0 %v4412_v41  ;;  %v5285_v41 = vld [vmem:[#allocation10 + $0x60] sm:$0xff]  }
 0x3b4   : > { %2033 = vmatpush1.bf16.msra.mxu0 %v4411_v40  ;;  %v5284_v40 = vld [vmem:[#allocation10 + $0xa8] sm:$0xff]  }
 0x467   : > { %v1667_v42 = vpop.f32.mrf.mxu0 }
 0x468   : > { %v1676_v47 = vmul.f32 %v1674_v44, %v1667_v42  ;;  %v1830_v42 = vld [vmem:[#allocation8 + $0x138] sm:$0xff]  ;;  %v1825_v44 = vld [vmem:[#allocation8 + $0xf0] sm:$0xff] }
 0x469   : > { %v4933_v43 = vpop.f32.mrf.mxu0 }
 0x46a   : > { %v1823_v43 = vld [vmem:[#allocation8 + $0xd0] sm:$0xff] }
 0x46b   : > { %v1670_v46 = vpop.f32.mrf.mxu0 }
 0x46c   : > { %v1677_v48 = vmul.f32 %v1675_v45, %v1670_v46  ;;  %v4413_v45 = vcombine.low %v1828_v39, %v1830_v42  ;;  %v4414_v46 = vcombine.high %v1828_v39, %v1830_v42  ;;  %v5283_v39 = vld [vmem:[#allocation10 + $0x28] sm:$0xff]   ;;  %v5286_v42 = vld [vmem:[#allocation10 + $0xe0] sm:$0xff]  }
 0x46d   : > { %v4934_v49 = vpop.f32.mrf.mxu0 }
 0x46e   : > { %v1678_v50 = vadd.f32 %v1677_v48, %v1676_v47  ;;  %v4408_v47 = vcombine.high %v1823_v43, %v1825_v44  ;;  %v1824_v48 = vld [vmem:[#allocation8 + $0xd8] sm:$0xff] }
 0x46f   : > { %v1826_v49 = vld [vmem:[#allocation8 + $0xf8] sm:$0xff] }
 0x470   : > { %v1679_v51 = vrot.slane %v1678_v50, 4  ;;  %2034 = vmatprep.subr.bf16.mxu0 %v4408_v47  ;;  %v5291_v47 = vld [vmem:[#allocation10 + $0x18] sm:$0xff]  }
 0x472   : > { %v1680_v52 = vadd.f32 %v1679_v51, %v1678_v50  ;;  %v1819_v50 = vld [vmem:[#allocation8 + $0x90] sm:$0xff]  ;;  %v4410_v51 = vcombine.high %v1824_v48, %v1826_v49 }
 0x474   : > { %v1681_v53 = vrot.slane %v1680_v52, 2 }
 0x476   : > { %v1682_v54 = vadd.f32 %v1681_v53, %v1680_v52  ;;  %v1821_v52 = vld [vmem:[#allocation8 + $0xb0] sm:$0xff]  ;;  %v1820_v53 = vld [vmem:[#allocation8 + $0x98] sm:$0xff] }
 0x478   : > { %v1683_v55 = vrot.slane %v1682_v54, 1 }
 0x47a   : > { %v1684_v56 = vadd.f32 %v1683_v55, %v1682_v54  ;;  %v1822_v54 = vld [vmem:[#allocation8 + $0xb8] sm:$0xff]  ;;  %v4407_v55 = vcombine.low %v1823_v43, %v1825_v44  ;;  %v5287_v43 = vld [vmem:[#allocation10 + $0x20] sm:$0xff]  }
 0x47b   : > { %v5288_v44 = vld [vmem:[#allocation10 + $0xa0] sm:$0xff]  }
 0x47c   : > { %v1701_v57 = vpack.c.bf16 %v1684_v56, %v1684_v56  ;;  %v4409_v56 = vcombine.low %v1824_v48, %v1826_v49  ;;  %2035 = vmatpush1.bf16.msra.mxu0 %v4407_v55  ;;  %v5292_v48 = vld [vmem:[#allocation10 + $0x98] sm:$0xff]   ;;  %v5293_v49 = vld [vmem:[#allocation10 + $0x50] sm:$0xff]   ;;  %v5299_v55 = vld [vmem:[#allocation10 + $0x8] sm:$0xff]  }
 0x47e   : > { %4952 = vmatmul.mubr.bf16.vlgmr.msra.gmra.mxu1 %v1701_v57  ;;  %v4404_v57 = vcombine.high %v1819_v50, %v1821_v52 }
 0x47f   : > { %2099 = vmatprep.mubr.bf16.mxu1 %v5785_v25  ;;  %2068 = vmatpush1.bf16.msra.mxu1 %v4425_v12  ;;  %v4398_v12 = vcombine.high %v1812_v6, %v1814_v7 }
 0x480   : > { %2036 = vmatprep.subr.bf16.mxu0 %v4404_v57  ;;  %v5301_v57 = vld [vmem:[#allocation10 + $0x40] sm:$0xff]  }
 0x53e   : > { %v1785_v35 = vpop.f32.mrf.mxu1 }
 0x53f   : > { %v1786_v59 = vadd.f32 %v1785_v35, %v1702_v58  ;;  %v4406_v58 = vcombine.high %v1820_v53, %v1822_v54  ;;  %v1815_v35 = vld [vmem:[#allocation8 + $0x50] sm:$0xff] }
 0x540   : > { %v4953_v60 = vpop.f32.mrf.mxu1 }
 0x541   : > { %v1791_v61 = vadd.f32 %v1786_v59, %v6132_v1  ;;  %v4422_v1 = vcombine.high %v1836_v18, %v1838_v19  ;;  %v1817_v59 = vld [vmem:[#allocation8 + $0x70] sm:$0xff]  ;;  %v1816_v60 = vld [vmem:[#allocation8 + $0x58] sm:$0xff] }
 0x542   : > { %v1788_v62 = vpop.f32.mrf.mxu1  ;;  %v4399_v9 = vcombine.low %v1815_v35, %v1817_v59 }
 0x543   : > { %v1795_v63 = vsel %vm1794_vm1, %v1791_v61, 0.0  ;;  %2069 = vmatprep.subr.bf16.mxu1 %v4422_v1  ;;  %v4403_v62 = vcombine.low %v1819_v50, %v1821_v52  ;;  %v5294_v50 = vld [vmem:[#allocation10 + $0xd0] sm:$0xff]  }
 0x544   : > { %1796 = vadd.xlane.f32.xlu0 %v1795_v63  ;;  %v4954_v2 = vpop.f32.mrf.mxu1  ;;  %2070 = vmatpush1.bf16.msra.mxu1 %v4421_v21  ;;  %v4405_v63 = vcombine.low %v1820_v53, %v1822_v54  ;;  %v1792_v21 = vld [vmem:[%s6494_s10 + $0x6] sm:$0x1]  ;;  %v5296_v52 = vld [vmem:[#allocation10 + $0x90] sm:$0xff]   ;;  %v5297_v53 = vld [vmem:[#allocation10 + $0x48] sm:$0xff]  }
 0x545   : > { %2071 = vmatprep.subr.bf16.mxu1 %v4418_v36  ;;  %v4400_v2 = vcombine.high %v1815_v35, %v1817_v59  ;;  %2037 = vmatpush1.bf16.msra.mxu0 %v4403_v62  ;;  %v5280_v36 = vld [vmem:[#allocation10 + $0xb0] sm:$0xff]   ;;  %v5298_v54 = vld [vmem:[#allocation10 + $0xc8] sm:$0xff]   ;;  %v5303_v35 = vld [vmem:[#allocation10] sm:$0xff]   ;;  %v2020_v62 = vsub.s32 3, %v6165_v14 }
 0x546   : > { %v5304_v59 = vld [vmem:[#allocation10 + $0x80] sm:$0xff]  }
 0x547   : > { %2038 = vmatprep.subr.bf16.mxu0 %v4400_v2 }
 0x548   : > { %2072 = vmatpush1.bf16.msra.mxu1 %v4417_v34  ;;  %v5279_v34 = vld [vmem:[#allocation10 + $0x30] sm:$0xff]  }
 0x549   : > { %2073 = vmatprep.subr.bf16.mxu1 %v4414_v46  ;;  %2039 = vmatpush1.bf16.msra.mxu0 %v4399_v9  ;;  %v5290_v46 = vld [vmem:[#allocation10 + $0xd8] sm:$0xff]  }
 0x54a   : > { %2040 = vmatprep.subr.bf16.mxu0 %v4396_v11 }
 0x54c   : > { %2074 = vmatpush1.bf16.msra.mxu1 %v4413_v45  ;;  %v5289_v45 = vld [vmem:[#allocation10 + $0x58] sm:$0xff]  }
 0x54d   : > { %2075 = vmatprep.subr.bf16.mxu1 %v4410_v51  ;;  %2041 = vmatpush1.bf16.msra.mxu0 %v4395_v13  ;;  %v5295_v51 = vld [vmem:[#allocation10 + $0x10] sm:$0xff]  }
 0x54e   : > { %4671 = vmatprep.subr.bf16.mxu0 %v5273_v29 }
 0x550   : > { %2076 = vmatpush1.bf16.msra.mxu1 %v4409_v56  ;;  %v5300_v56 = vld [vmem:[#allocation10 + $0x88] sm:$0xff]  }
 0x551   : > { %2077 = vmatprep.subr.bf16.mxu1 %v4406_v58  ;;  %v5302_v58 = vld [vmem:[#allocation10 + $0xc0] sm:$0xff]  }
 0x554   : > { %2078 = vmatpush1.bf16.msra.mxu1 %v4405_v63 }
 0x5cd   : > { %v1797_v22 = vpop.xlane.xlu0 %1796 }
 0x5ce   : > { %v1799_v23 = vmul.f32 0.0078125, %v1797_v22 }
 0x5d0   : > { %v6206_v24 = vsub.f32 %v1791_v61, %v1799_v23  ;;  %v1818_v61 = vld [vmem:[#allocation8 + $0x78] sm:$0xff]  ;;  %v1793_v23 = vld [vmem:[%s6494_s10 + $0x7] sm:$0x1] }
 0x5d1   : > { %v4402_v3 = vcombine.high %v1816_v60, %v1818_v61  ;;  %v4401_v10 = vcombine.low %v1816_v60, %v1818_v61  ;;  %v2016_v60 = vsub.s32 2, %v6165_v14  ;;  %v1844_v61 = vld [vmem:[%s6494_s10 + $0x8] sm:$0xf] }
 0x5d2   : > { %v1801_v26 = vmul.f32 %v6206_v24, %v6206_v24  ;;  %v2009_v63 = vrot.slane %v1844_v61, %v6171_v17  ;;  %v2021_v4 = vrot.slane %v1844_v61, %v2020_v62 }
 0x5d3   : > { %2079 = vmatprep.subr.bf16.mxu1 %v4402_v3  ;;  %v2017_v2 = vrot.slane %v1844_v61, %v2016_v60  ;;  %v2013_v3 = vrot.slane %v1844_v61, %v6168_v16 }
 0x5d4   : > { %v1802_v27 = vsel %vm1794_vm1, %v1801_v26, 0.0  ;;  %2080 = vmatpush1.bf16.msra.mxu1 %v4401_v10 }
 0x5d5   : > { %1803 = vadd.xlane.f32.xlu0 %v1802_v27  ;;  %2081 = vmatprep.subr.bf16.mxu1 %v4398_v12 }
 0x5d8   : > { %2082 = vmatpush1.bf16.msra.mxu1 %v4397_v15 }
 0x5d9   : > { %4693 = vmatprep.subr.bf16.mxu1 %v5274_v30 }
 0x65e   : > { %v1804_v18 = vpop.xlane.xlu0 %1803 }
 0x65f   : > { %v1805_v19 = vmul.f32 0.0078125, %v1804_v18 }
 0x661   : > { %v1806_v1 = vadd.f32 1e-05, %v1805_v19 }
 0x663   : > { %5379 = vrsqrt.f32 %v1806_v1 }
 0x670   : > { %v5380_v20 = vpop.eup %5379 }
 0x671   : > { %v1808_v22 = vmul.f32 %v5380_v20, %v6206_v24  ;;  %v5277_v24 = vld [vmem:[#allocation10 + $0x70] sm:$0xff]  }
 0x673   : > { %v1809_v26 = vmul.f32 %v1808_v22, %v1792_v21 }
 0x675   : > { %v6218_v27 = vadd.f32 %v1809_v26, %v1793_v23 }
 0x677   : > { %v1843_v28 = vpack.c.bf16 %v6218_v27, %v6218_v27 }
 0x679   : > { %2059 = vmatmul.mubr.bf16.vlgmr.msra.gmra.mxu0 %v1843_v28  ;;  %2100 = vmatmul.mubr.bf16.vlgmr.msra.gmra.mxu1 %v1843_v28 }
 0x67a   : > { %4672 = vmatpush3.bf16.msra.mxu0 %v5275_v31  ;;  %4694 = vmatpush3.bf16.msra.mxu1 %v5276_v32 }
 0x67b   : > { %4673 = vmatprep.subr.bf16.mxu0 %v5277_v24  ;;  %4695 = vmatprep.subr.bf16.mxu1 %v5278_v33 }
 0x67e   : > { %4674 = vmatpush3.bf16.msra.mxu0 %v5279_v34  ;;  %4696 = vmatpush3.bf16.msra.mxu1 %v5280_v36 }
 0x67f   : > { %4675 = vmatprep.subr.bf16.mxu0 %v5281_v37  ;;  %4697 = vmatprep.subr.bf16.mxu1 %v5282_v38 }
 0x682   : > { %4676 = vmatpush3.bf16.msra.mxu0 %v5283_v39  ;;  %4698 = vmatpush3.bf16.msra.mxu1 %v5284_v40 }
 0x683   : > { %4677 = vmatprep.subr.bf16.mxu0 %v5285_v41  ;;  %4699 = vmatprep.subr.bf16.mxu1 %v5286_v42 }
 0x686   : > { %4678 = vmatpush3.bf16.msra.mxu0 %v5287_v43  ;;  %4700 = vmatpush3.bf16.msra.mxu1 %v5288_v44 }
 0x687   : > { %4679 = vmatprep.subr.bf16.mxu0 %v5289_v45  ;;  %4701 = vmatprep.subr.bf16.mxu1 %v5290_v46 }
 0x68a   : > { %4680 = vmatpush3.bf16.msra.mxu0 %v5291_v47  ;;  %4702 = vmatpush3.bf16.msra.mxu1 %v5292_v48 }
 0x68b   : > { %4681 = vmatprep.subr.bf16.mxu0 %v5293_v49  ;;  %4703 = vmatprep.subr.bf16.mxu1 %v5294_v50 }
 0x68e   : > { %4682 = vmatpush3.bf16.msra.mxu0 %v5295_v51  ;;  %4704 = vmatpush3.bf16.msra.mxu1 %v5296_v52 }
 0x68f   : > { %4683 = vmatprep.subr.bf16.mxu0 %v5297_v53  ;;  %4705 = vmatprep.subr.bf16.mxu1 %v5298_v54 }
 0x692   : > { %4684 = vmatpush3.bf16.msra.mxu0 %v5299_v55  ;;  %4706 = vmatpush3.bf16.msra.mxu1 %v5300_v56 }
 0x693   : > { %4685 = vmatprep.subr.bf16.mxu0 %v5301_v57  ;;  %4707 = vmatprep.subr.bf16.mxu1 %v5302_v58 }
 0x696   : > { %4686 = vmatpush3.bf16.msra.mxu0 %v5303_v35  ;;  %4708 = vmatpush3.bf16.msra.mxu1 %v5304_v59 }
 0x739   : > { %v2060_v5 = vpop.f32.mrf.mxu0  ;;  %v2101_v6 = vpop.f32.mrf.mxu1 }
 0x73a   : > { %v2061_v7 = vadd.f32 %v2060_v5, %v2009_v63  ;;  %v2102_v9 = vadd.f32 %v2101_v6, %v2017_v2  ;;  %v5305_v2 = vld [vmem:[%s6487_s3 + $0x78] sm:$0xff]   ;;  %v5308_v5 = vld [vmem:[%s6487_s3 + $0x30] sm:$0xff]   ;;  %v5309_v6 = vld [vmem:[%s6487_s3 + $0x68] sm:$0xff]  }
 0x73b   : > { %v2062_v10 = vpop.f32.mrf.mxu0  ;;  %v2103_v11 = vpop.f32.mrf.mxu1  ;;  %4715 = vmatprep.subr.bf16.mxu0 %v5305_v2 }
 0x73c   : > { %v2112_v12 = vmul.f32 0.044715, %v2061_v7  ;;  %v2114_v13 = vmul.f32 0.044715, %v2102_v9  ;;  %v2063_v15 = vadd.f32 %v2062_v10, %v2013_v3  ;;  %v2104_v18 = vadd.f32 %v2103_v11, %v2021_v4  ;;  %v5306_v3 = vld [vmem:[%s6487_s3 + $0x38] sm:$0xff]   ;;  %v5307_v4 = vld [vmem:[%s6487_s3 + $0x70] sm:$0xff]  }
 0x73d   : > { %v2064_v19 = vpop.f32.mrf.mxu0  ;;  %v2105_v1 = vpop.f32.mrf.mxu1  ;;  %v2108_v47 = vmul.f32 0.5, %v2061_v7  ;;  %v2110_v52 = vmul.f32 0.5, %v2102_v9  ;;  %v5310_v10 = vld [vmem:[%s6487_s3 + $0x28] sm:$0xff]   ;;  %v5311_v11 = vld [vmem:[%s6487_s3 + $0x60] sm:$0xff]  }
 0x73e   : > { %v2116_v20 = vmul.f32 %v2112_v12, %v2061_v7  ;;  %v2118_v21 = vmul.f32 %v2114_v13, %v2102_v9  ;;  %v2113_v22 = vmul.f32 0.044715, %v2063_v15  ;;  %v2115_v23 = vmul.f32 0.044715, %v2104_v18  ;;  %v5312_v12 = vld [vmem:[%s6487_s3 + $0x20] sm:$0xff]   ;;  %v5313_v13 = vld [vmem:[%s6487_s3 + $0x58] sm:$0xff]  }
 0x73f   : > { %v2065_v26 = vpop.f32.mrf.mxu0  ;;  %v2106_v28 = vpop.f32.mrf.mxu1  ;;  %v2109_v50 = vmul.f32 0.5, %v2063_v15  ;;  %v2111_v53 = vmul.f32 0.5, %v2104_v18  ;;  %v5316_v19 = vld [vmem:[%s6487_s3 + $0x10] sm:$0xff]   ;;  %v5317_v1 = vld [vmem:[%s6487_s3 + $0x48] sm:$0xff]  }
 0x740   : > { %v2120_v29 = vmul.f32 %v2116_v20, %v2061_v7  ;;  %v2122_v30 = vmul.f32 %v2118_v21, %v2102_v9  ;;  %v2117_v31 = vmul.f32 %v2113_v22, %v2063_v15  ;;  %v2119_v32 = vmul.f32 %v2115_v23, %v2104_v18  ;;  %v5318_v20 = vld [vmem:[%s6487_s3 + $0x8] sm:$0xff]   ;;  %v5319_v21 = vld [vmem:[%s6487_s3 + $0x40] sm:$0xff]  }
 0x741   : > { %v5320_v22 = vld [vmem:[%s6487_s3] sm:$0xff]  }
 0x742   : > { %v2124_v24 = vadd.f32 %v2120_v29, %v2061_v7  ;;  %v2126_v33 = vadd.f32 %v2122_v30, %v2102_v9  ;;  %v2121_v34 = vmul.f32 %v2117_v31, %v2063_v15  ;;  %v2123_v36 = vmul.f32 %v2119_v32, %v2104_v18  ;;  %v2503_v7 = vld [vmem:[%s747_s29] sm:$0xff]  ;;  %v2212_v29 = vld [vmem:[%s6494_s10 + $0xc] sm:$0x1]  ;;  %s5786_s29 = smov [#allocation19]  }
 0x743   : > { %v4461_v9 = vcombine.high %v2503_v7, %v2503_v7  ;;  %v4460_v23 = vcombine.low %v2503_v7, %v2503_v7  ;;  %v2851_v7 = vld [vmem:[#allocation2 + $0x160] sm:$0xf]  ;;  %s5687_s24 = sshll.u32 %s5786_s29, 4  ;;  %s5688_s24 = int_to_ptr.vmem [resolvable:$false] %s5687_s24 }
 0x744   : > { %v2128_v37 = vmul.f32 0.7978846, %v2124_v24  ;;  %v2130_v38 = vmul.f32 0.7978846, %v2126_v33  ;;  %v2125_v39 = vadd.f32 %v2121_v34, %v2063_v15  ;;  %v2127_v40 = vadd.f32 %v2123_v36, %v2104_v18  ;;  %v5314_v15 = vld [vmem:[%s6487_s3 + $0x18] sm:$0xff]   ;;  %v5315_v18 = vld [vmem:[%s6487_s3 + $0x50] sm:$0xff]   ;;  %p5690_p12 = scmp.lt.s32.totalorder %s6445_s20, %s5688_s24 }
 0x745   : > { %s5689_s18 = scalar_lea.vmem %s5688_s24, 32 }
 0x746   : > { %v2129_v41 = vmul.f32 0.7978846, %v2125_v39  ;;  %v2131_v42 = vmul.f32 0.7978846, %v2127_v40  ;;  %5381 = vtanh.f32 %v2128_v37  ;;  %p5691_p10 = scmp.lt.s32.totalorder %s5689_s18, %s5683_s0 }
 0x747   : > { %5383 = vtanh.f32 %v2130_v38 }
 0x748   : > { %5385 = vtanh.f32 %v2129_v41  ;;  %p5692_p3 = por %p5691_p10, %p5690_p12 }
 0x749   : > { %5387 = vtanh.f32 %v2131_v42  ;;  %v2703_v42 = vld [vmem:[#allocation2 + $0x1c4] sm:$0xff] }
 0x74a   : > { %p5693_p7 = pnand %p5692_p3, %p5686_p4 }
 0x753   : > { %v5382_v43 = vpop.eup %5381 }
 0x754   : > { %v5384_v44 = vpop.eup %5383  ;;  %v2136_v45 = vadd.f32 1.0, %v5382_v43  ;;  %v2704_v43 = vld [vmem:[#allocation2 + $0x1e4] sm:$0xff] }
 0x755   : > { %v5386_v46 = vpop.eup %5385  ;;  %v2138_v48 = vadd.f32 1.0, %v5384_v44  ;;  %v2701_v44 = vld [vmem:[#allocation2 + $0x184] sm:$0xff] }
 0x756   : > { %v5388_v49 = vpop.eup %5387  ;;  %v2137_v51 = vadd.f32 1.0, %v5386_v46  ;;  %v2140_v55 = vmul.f32 %v2136_v45, %v2108_v47  ;;  %v4492_v45 = vcombine.low %v2703_v42, %v2704_v43  ;;  %v4493_v46 = vcombine.high %v2703_v42, %v2704_v43  ;;  %v2702_v47 = vld [vmem:[#allocation2 + $0x1a4] sm:$0xff]  ;;  %v4459_v43 = vld [vmem:[%s6490_s6] ss:$0 sm:$0xff] }
 0x757   : > { %v2139_v54 = vadd.f32 1.0, %v5388_v49  ;;  %v2142_v57 = vmul.f32 %v2138_v48, %v2110_v52  ;;  %v2854_v48 = vld [vmem:[#allocation2 + $0x1c0] sm:$0xf]  ;;  %v4490_v52 = vcombine.low %v2701_v44, %v2702_v47 }
 0x758   : > { %v2141_v56 = vmul.f32 %v2137_v51, %v2109_v50  ;;  %v2144_v61 = vpack.c.bf16 %v2140_v55, %v2140_v55  ;;  %v2855_v49 = vld [vmem:[#allocation2 + $0x1e0] sm:$0xf]  ;;  %v4491_v50 = vcombine.high %v2701_v44, %v2702_v47  ;;  %2797 = vmatprep.subr.bf16.mxu1 %v4493_v46 }
 0x759   : > { %v2143_v58 = vmul.f32 %v2139_v54, %v2111_v53  ;;  %v2146_v63 = vpack.c.bf16 %v2142_v57, %v2142_v57  ;;  %v4501_v51 = vcombine.low %v2854_v48, %v2855_v49  ;;  %v2699_v57 = vld [vmem:[#allocation2 + $0x144] sm:$0xff]  ;;  %v2842_v46 = vld [vmem:[#allocation2 + $0x40] sm:$0xf] }
 0x75a   : > { %v2145_v35 = vpack.c.bf16 %v2141_v56, %v2141_v56  ;;  %v2843_v47 = vld [vmem:[#allocation2 + $0x60] sm:$0xf] }
 0x75b   : > { %v2147_v59 = vpack.c.bf16 %v2143_v58, %v2143_v58  ;;  %v2700_v58 = vld [vmem:[#allocation2 + $0x164] sm:$0xff] }
 0x75c   : > { %2437 = vmatprep.mubr.bf16.mxu0 %v2145_v35  ;;  %v4489_v35 = vcombine.high %v2699_v57, %v2700_v58 }
 0x75d   : > { %2477 = vmatprep.mubr.bf16.mxu1 %v2147_v59  ;;  %2438 = vmatmul.mubr.bf16.vlgmr.msra.gmra.mxu0 %v2144_v61  ;;  %v2852_v59 = vld [vmem:[#allocation2 + $0x180] sm:$0xf] }
 0x75e   : > { %2478 = vmatmul.mubr.bf16.vlgmr.msra.gmra.mxu1 %v2146_v63  ;;  %4716 = vmatpush3.bf16.msra.mxu0 %v5306_v3  ;;  %v2853_v61 = vld [vmem:[#allocation2 + $0x1a0] sm:$0xf]  ;;  %v4488_v63 = vcombine.low %v2699_v57, %v2700_v58  ;;  %v2697_v3 = vld [vmem:[#allocation2 + $0x104] sm:$0xff] }
 0x75f   : > { %2829 = vmatprep.mubr.bf16.mxu1 %v5785_v25  ;;  %4717 = vmatprep.subr.bf16.mxu0 %v5307_v4  ;;  %v4500_v2 = vcombine.low %v2852_v59, %v2853_v61  ;;  %v2698_v4 = vld [vmem:[#allocation2 + $0x124] sm:$0xff]  ;;  %v5412_v59 = vld [vmem:[#allocation16 + $0x10] sm:$0xff]  }
 0x760   : > { %2680 = vmatprep.mubr.bf16.mxu0 %v4461_v9  ;;  %2798 = vmatpush1.bf16.msra.mxu1 %v4492_v45  ;;  %v4486_v9 = vcombine.low %v2697_v3, %v2698_v4  ;;  %v5409_v57 = vld [vmem:[#allocation16 + $0x28] sm:$0xff]   ;;  %v5410_v58 = vld [vmem:[#allocation16 + $0x20] sm:$0xff]  }
 0x761   : > { %2799 = vmatprep.subr.bf16.mxu1 %v4491_v50  ;;  %v4495_v50 = vcombine.low %v2842_v46, %v2843_v47  ;;  %v5413_v61 = vld [vmem:[#allocation16 + $0x8] sm:$0xff]  }
 0x762   : > { %4718 = vmatpush3.bf16.msra.mxu0 %v5308_v5  ;;  %v4487_v5 = vcombine.high %v2697_v3, %v2698_v4  ;;  %v3081_v47 = vld [vmem:[#allocation2 + $0x1cc] sm:$0xf] }
 0x763   : > { %4719 = vmatprep.subr.bf16.mxu0 %v5309_v6  ;;  %v2850_v6 = vld [vmem:[#allocation2 + $0x140] sm:$0xf] }
 0x764   : > { %2800 = vmatpush1.bf16.msra.mxu1 %v4490_v52  ;;  %v2841_v52 = vld [vmem:[#allocation2 + $0x20] sm:$0xf] }
 0x765   : > { %2801 = vmatprep.subr.bf16.mxu1 %v4489_v35  ;;  %v5411_v35 = vld [vmem:[#allocation16 + $0x18] sm:$0xff]  }
 0x766   : > { %4720 = vmatpush3.bf16.msra.mxu0 %v5310_v10  ;;  %v4499_v10 = vcombine.low %v2850_v6, %v2851_v7  ;;  %v2486_v6 = vld [vmem:[%s6494_s10 + $0xd] sm:$0x1] }
 0x767   : > { %4721 = vmatprep.subr.bf16.mxu0 %v5311_v11  ;;  %v2695_v11 = vld [vmem:[#allocation2 + $0xc4] sm:$0xff] }
 0x768   : > { %2802 = vmatpush1.bf16.msra.mxu1 %v4488_v63  ;;  %v5414_v63 = vld [vmem:[#allocation16] sm:$0xff]  }
 0x769   : > { %2803 = vmatprep.subr.bf16.mxu1 %v4487_v5 }
 0x76a   : > { %4722 = vmatpush3.bf16.msra.mxu0 %v5312_v12  ;;  %v2696_v12 = vld [vmem:[#allocation2 + $0xe4] sm:$0xff] }
 0x76b   : > { %4723 = vmatprep.subr.bf16.mxu0 %v5313_v13  ;;  %v2848_v13 = vld [vmem:[#allocation2 + $0x100] sm:$0xf] }
 0x76c   : > { %2804 = vmatpush1.bf16.msra.mxu1 %v4486_v9  ;;  %v2487_v9 = vld [vmem:[%s6494_s10 + $0xe] sm:$0x1] }
 0x76e   : > { %4724 = vmatpush3.bf16.msra.mxu0 %v5314_v15 }
 0x76f   : > { %4725 = vmatprep.subr.bf16.mxu0 %v5315_v18  ;;  %v4485_v18 = vcombine.high %v2695_v11, %v2696_v12 }
 0x771   : > { %2805 = vmatprep.subr.bf16.mxu1 %v4485_v18  ;;  %v5415_v18 = vld [vmem:[#allocation17 + $0x38] sm:$0xff]  }
 0x772   : > { %4726 = vmatpush3.bf16.msra.mxu0 %v5316_v19  ;;  %v2849_v19 = vld [vmem:[#allocation2 + $0x120] sm:$0xf] }
 0x773   : > { %4727 = vmatprep.subr.bf16.mxu0 %v5317_v1  ;;  %v2693_v1 = vld [vmem:[#allocation2 + $0x84] sm:$0xff] }
 0x776   : > { %4728 = vmatpush3.bf16.msra.mxu0 %v5318_v20  ;;  %v2694_v20 = vld [vmem:[#allocation2 + $0xa4] sm:$0xff] }
 0x777   : > { %4729 = vmatprep.subr.bf16.mxu0 %v5319_v21  ;;  %v4484_v21 = vcombine.low %v2695_v11, %v2696_v12  ;;  %v2504_v11 = vld [vmem:[%s6490_s6 + $0x1] sm:$0x1] }
 0x779   : > { %2806 = vmatpush1.bf16.msra.mxu1 %v4484_v21  ;;  %v5420_v21 = vld [vmem:[#allocation17 + $0x10] sm:$0xff]  }
 0x77a   : > { %4730 = vmatpush3.bf16.msra.mxu0 %v5320_v22  ;;  %v4498_v22 = vcombine.low %v2848_v13, %v2849_v19  ;;  %v5417_v19 = vld [vmem:[#allocation17 + $0x28] sm:$0xff]  }
 0x77b   : > { %4955 = vmatprep.subr.bf16.mxu0 %v5783_v0 }
 0x77d   : > { %2681 = vmatmul.mubr.bf16.vlgmr.msra.gmra.mxu0 %v4460_v23 }
 0x77e   : > { %4971 = vmatprep.mubr.msk.bf16.mxu0 %vm5784_vm0, %v5783_v0  ;;  %4956 = vmatpush3.bf16.msra.mxu0 %v4501_v51  ;;  %v2840_v51 = vld [vmem:[#allocation2] sm:$0xf] }
 0x77f   : > { %4957 = vmatprep.subr.bf16.mxu0 %v5783_v0 }
 0x782   : > { %4958 = vmatpush3.bf16.msra.mxu0 %v4500_v2 }
 0x783   : > { %4959 = vmatprep.subr.bf16.mxu0 %v5783_v0 }
 0x786   : > { %4960 = vmatpush3.bf16.msra.mxu0 %v4499_v10 }
 0x787   : > { %4961 = vmatprep.subr.bf16.mxu0 %v5783_v0 }
 0x78a   : > { %4962 = vmatpush3.bf16.msra.mxu0 %v4498_v22  ;;  %v5421_v22 = vld [vmem:[#allocation17 + $0x8] sm:$0xff]  }
 0x78b   : > { %4963 = vmatprep.subr.bf16.mxu0 %v5783_v0 }
 0x81d   : > { %v4687_v26 = vpop.f32.mrf.mxu0 }
 0x81e   : > { %v4709_v28 = vpop.f32.mrf.mxu1 }
 0x81f   : > { %v4688_v30 = vpop.f32.mrf.mxu0 }
 0x820   : > { %v4689_v31 = vadd.f32 %v4688_v30, %v4687_v26  ;;  %v4710_v32 = vpop.f32.mrf.mxu1  ;;  %v4483_v26 = vcombine.high %v2693_v1, %v2694_v20  ;;  %v2691_v30 = vld [vmem:[#allocation2 + $0x44] sm:$0xff] }
 0x821   : > { %v4690_v24 = vpop.f32.mrf.mxu0  ;;  %v4711_v34 = vadd.f32 %v4710_v32, %v4709_v28  ;;  %v2846_v28 = vld [vmem:[#allocation2 + $0xc0] sm:$0xf] }
 0x822   : > { %v2440_v33 = vadd.f32 %v4689_v31, %v2212_v29  ;;  %v4712_v36 = vpop.f32.mrf.mxu1  ;;  %v2847_v29 = vld [vmem:[#allocation2 + $0xe0] sm:$0xf]  ;;  %v2692_v31 = vld [vmem:[#allocation2 + $0x64] sm:$0xff]  ;;  %v4482_v24 = vcombine.low %v2693_v1, %v2694_v20  ;;  %2807 = vmatprep.subr.bf16.mxu1 %v4483_v26  ;;  %v5419_v20 = vld [vmem:[#allocation17 + $0x18] sm:$0xff]  }
 0x823   : > { %v4691_v37 = vpop.f32.mrf.mxu0  ;;  %v4481_v36 = vcombine.high %v2691_v30, %v2692_v31  ;;  %v4480_v42 = vcombine.low %v2691_v30, %v2692_v31  ;;  %v5418_v1 = vld [vmem:[#allocation17 + $0x20] sm:$0xff]  }
 0x824   : > { %v2480_v38 = vadd.f32 %v4711_v34, %v2440_v33  ;;  %v4713_v39 = vpop.f32.mrf.mxu1  ;;  %v4497_v33 = vcombine.low %v2846_v28, %v2847_v29  ;;  %v2844_v37 = vld [vmem:[#allocation2 + $0x80] sm:$0xf]  ;;  %2808 = vmatpush1.bf16.msra.mxu1 %v4482_v24 }
 0x825   : > { %v2689_v39 = vld [vmem:[#allocation2 + $0x4] sm:$0xff]  ;;  %2809 = vmatprep.subr.bf16.mxu1 %v4481_v36 }
 0x826   : > { %v2485_v40 = vadd.f32 %v2480_v38, %v6218_v27  ;;  %v2845_v38 = vld [vmem:[#allocation2 + $0xa0] sm:$0xf]  ;;  %4964 = vmatpush3.bf16.msra.mxu0 %v4497_v33 }
 0x827   : > { %v4496_v44 = vcombine.low %v2844_v37, %v2845_v38  ;;  %4965 = vmatprep.subr.bf16.mxu0 %v5783_v0  ;;  %v2705_v26 = vld [vmem:[%s6490_s6 + $0x3] sm:$0x3]  ;;  %v2857_v33 = vld [vmem:[%s6490_s6 + $0x2] sm:$0x1] }
 0x828   : > { %v2488_v41 = vsel %vm1794_vm1, %v2485_v40, 0.0  ;;  %2810 = vmatpush1.bf16.msra.mxu1 %v4480_v42  ;;  %v2714_v28 = vrot.slane %v2705_v26, %v6168_v16 }
 0x829   : > { %2489 = vadd.xlane.f32.xlu1 %v2488_v41 }
 0x82a   : > { %4966 = vmatpush3.bf16.msra.mxu0 %v4496_v44 }
 0x82b   : > { %4967 = vmatprep.subr.bf16.mxu0 %v5783_v0 }
 0x82e   : > { %4968 = vmatpush3.bf16.msra.mxu0 %v4495_v50 }
 0x82f   : > { %4969 = vmatprep.subr.bf16.mxu0 %v5783_v0 }
 0x83d   : > { %v4731_v15 = vpop.f32.mrf.mxu0 }
 0x83f   : > { %v4732_v23 = vpop.f32.mrf.mxu0 }
 0x840   : > { %v4733_v41 = vadd.f32 %v4732_v23, %v4731_v15  ;;  %v5422_v23 = vld [vmem:[#allocation17] sm:$0xff]  }
 0x841   : > { %v4734_v32 = vpop.f32.mrf.mxu0 }
 0x842   : > { %v2683_v48 = vadd.f32 %v4733_v41, %v4459_v43 }
 0x843   : > { %v4735_v34 = vpop.f32.mrf.mxu0 }
 0x844   : > { %v2710_v34 = vrot.slane %v2705_v26, %v6171_v17 }
 0x8b2   : > { %v2490_v27 = vpop.xlane.xlu1 %2489 }
 0x8b3   : > { %v2491_v53 = vmul.f32 0.0078125, %v2490_v27  ;;  %v2688_v27 = vpack.c.bf16 %v2683_v48, %v2683_v48  ;;  %v3082_v48 = vld [vmem:[#allocation2 + $0x1ec] sm:$0xf] }
 0x8b4   : > { %v4509_v50 = vcombine.low %v3081_v47, %v3082_v48 }
 0x8b5   : > { %v6295_v54 = vsub.f32 %v2485_v40, %v2491_v53  ;;  %v2690_v40 = vld [vmem:[#allocation2 + $0x24] sm:$0xff]  ;;  %v4494_v53 = vcombine.low %v2840_v51, %v2841_v52  ;;  %v3080_v51 = vld [vmem:[#allocation2 + $0x1ac] sm:$0xf] }
 0x8b6   : > { %v4479_v45 = vcombine.high %v2689_v39, %v2690_v40  ;;  %v4478_v49 = vcombine.low %v2689_v39, %v2690_v40 }
 0x8b7   : > { %v2493_v55 = vmul.f32 %v6295_v54, %v6295_v54  ;;  %4970 = vmatpush3.bf16.msra.mxu0 %v4494_v53  ;;  %v3078_v53 = vld [vmem:[#allocation2 + $0x16c] sm:$0xf] }
 0x8b8   : > { %2811 = vmatprep.subr.bf16.mxu1 %v4479_v45  ;;  %4995 = vmatprep.subr.bf16.mxu0 %v5783_v0 }
 0x8b9   : > { %v2494_v56 = vsel %vm1794_vm1, %v2493_v55, 0.0  ;;  %2812 = vmatpush1.bf16.msra.mxu1 %v4478_v49  ;;  %v5407_v55 = vld [vmem:[#allocation16 + $0x38] sm:$0xff]   ;;  %v3079_v49 = vld [vmem:[#allocation2 + $0x18c] sm:$0xf] }
 0x8ba   : > { %2495 = vadd.xlane.f32.xlu1 %v2494_v56  ;;  %4975 = vmatprep.subr.bf16.mxu1 %v5783_v0  ;;  %v5408_v56 = vld [vmem:[#allocation16 + $0x30] sm:$0xff]   ;;  %v4508_v52 = vcombine.low %v3079_v49, %v3080_v51 }
 0x8bc   : > { %2830 = vmatmul.mubr.bf16.vlgmr.msra.gmra.mxu1 %v2688_v27  ;;  %v3077_v27 = vld [vmem:[#allocation2 + $0x14c] sm:$0xf] }
 0x8bd   : > { %4976 = vmatpush3.bf16.msra.mxu1 %v5407_v55  ;;  %4991 = vmatprep.mubr.msk.bf16.mxu1 %vm5784_vm0, %v5783_v0  ;;  %v4507_v55 = vcombine.low %v3077_v27, %v3078_v53 }
 0x8be   : > { %4977 = vmatprep.subr.bf16.mxu1 %v5783_v0 }
 0x8c1   : > { %4978 = vmatpush3.bf16.msra.mxu1 %v5408_v56  ;;  %v3075_v56 = vld [vmem:[#allocation2 + $0x10c] sm:$0xf] }
 0x8c2   : > { %4979 = vmatprep.subr.bf16.mxu1 %v5783_v0 }
 0x8c5   : > { %4980 = vmatpush3.bf16.msra.mxu1 %v5409_v57  ;;  %v3076_v57 = vld [vmem:[#allocation2 + $0x12c] sm:$0xf] }
 0x8c6   : > { %4981 = vmatprep.subr.bf16.mxu1 %v5783_v0 }
 0x8c9   : > { %4982 = vmatpush3.bf16.msra.mxu1 %v5410_v58  ;;  %v4506_v58 = vcombine.low %v3075_v56, %v3076_v57 }
 0x8ca   : > { %4983 = vmatprep.subr.bf16.mxu1 %v5783_v0 }
 0x8cd   : > { %4984 = vmatpush3.bf16.msra.mxu1 %v5411_v35  ;;  %v2998_v35 = vand.u32 7, %v6165_v14 }
 0x8ce   : > { %4985 = vmatprep.subr.bf16.mxu1 %v5783_v0 }
 0x8cf   : > { %vm2999_vm2 = vcmp.lt.s32.totalorder %v2998_v35, 4 }
 0x8d1   : > { %4986 = vmatpush3.bf16.msra.mxu1 %v5412_v59 }
 0x8d2   : > { %4987 = vmatprep.subr.bf16.mxu1 %v5783_v0 }
 0x8d5   : > { %4988 = vmatpush3.bf16.msra.mxu1 %v5413_v61 }
 0x8d6   : > { %4989 = vmatprep.subr.bf16.mxu1 %v5783_v0 }
 0x8d9   : > { %4990 = vmatpush3.bf16.msra.mxu1 %v5414_v63 }
 0x8da   : > { %5015 = vmatprep.subr.bf16.mxu1 %v5783_v0 }
 0x943   : > { %v2496_v2 = vpop.xlane.xlu1 %2495 }
 0x944   : > { %v2497_v3 = vmul.f32 0.0078125, %v2496_v2 }
 0x946   : > { %v2498_v4 = vadd.f32 1e-05, %v2497_v3 }
 0x948   : > { %5389 = vrsqrt.f32 %v2498_v4 }
 0x955   : > { %v5390_v5 = vpop.eup %5389 }
 0x956   : > { %v2500_v7 = vmul.f32 %v5390_v5, %v6295_v54  ;;  %v5416_v54 = vld [vmem:[#allocation17 + $0x30] sm:$0xff]  }
 0x958   : > { %v2501_v10 = vmul.f32 %v2500_v7, %v2486_v6 }
 0x95a   : > { %v2502_v12 = vadd.f32 %v2501_v10, %v2487_v9 }
 0x95c   : > { %v6331_v13 = vadd.f32 %v2504_v11, %v2502_v12 }
 0x95e   : > { %v2856_v15 = vpack.c.bf16 %v6331_v13, %v6331_v13 }
 0x960   : > { %4972 = vmatmul.mubr.bf16.vlgmr.msra.gmra.mxu0 %v2856_v15 }
 0x961   : > { %4996 = vmatpush3.bf16.msra.mxu0 %v5415_v18  ;;  %5011 = vmatprep.mubr.msk.bf16.mxu0 %vm5784_vm0, %v5783_v0 }
 0x962   : > { %4997 = vmatprep.subr.bf16.mxu0 %v5783_v0 }
 0x965   : > { %4998 = vmatpush3.bf16.msra.mxu0 %v5416_v54 }
 0x966   : > { %4999 = vmatprep.subr.bf16.mxu0 %v5783_v0 }
 0x969   : > { %5000 = vmatpush3.bf16.msra.mxu0 %v5417_v19 }
 0x96a   : > { %5001 = vmatprep.subr.bf16.mxu0 %v5783_v0 }
 0x96d   : > { %5002 = vmatpush3.bf16.msra.mxu0 %v5418_v1 }
 0x96e   : > { %5003 = vmatprep.subr.bf16.mxu0 %v5783_v0 }
 0x971   : > { %5004 = vmatpush3.bf16.msra.mxu0 %v5419_v20 }
 0x972   : > { %5005 = vmatprep.subr.bf16.mxu0 %v5783_v0 }
 0x975   : > { %5006 = vmatpush3.bf16.msra.mxu0 %v5420_v21 }
 0x976   : > { %5007 = vmatprep.subr.bf16.mxu0 %v5783_v0 }
 0x979   : > { %5008 = vmatpush3.bf16.msra.mxu0 %v5421_v22 }
 0x97a   : > { %5009 = vmatprep.subr.bf16.mxu0 %v5783_v0 }
 0x97c   : > { %v2831_v29 = vpop.f32.mrf.mxu1 }
 0x97d   : > { %5010 = vmatpush3.bf16.msra.mxu0 %v5422_v23  ;;  %v2832_v39 = vadd.f32 %v2831_v29, %v2710_v34  ;;  %v3073_v29 = vld [vmem:[#allocation2 + $0xcc] sm:$0xf] }
 0x97e   : > { %v2833_v30 = vpop.f32.mrf.mxu1 }
 0x97f   : > { %v6348_v31 = vadd.f32 %v2833_v30, %v2714_v28  ;;  %v2838_v44 = vpack.c.bf16 %v2832_v39, %v2832_v39  ;;  %v3074_v30 = vld [vmem:[#allocation2 + $0xec] sm:$0xf] }
 0x980   : > { %v2835_v32 = vpop.f32.mrf.mxu1  ;;  %v3067_v39 = vld [vmem:[#allocation2 + $0xc] sm:$0xf] }
 0x981   : > { %v4505_v32 = vcombine.low %v3073_v29, %v3074_v30  ;;  %v3212_v29 = vld [vmem:[#allocation2 + $0x158] sm:$0xff] }
 0x982   : > { %v2836_v24 = vpop.f32.mrf.mxu1 }
 0x983   : > { %v3071_v24 = vld [vmem:[#allocation2 + $0x8c] sm:$0xf] }
 0xa20   : > { %v2940_v36 = vpop.f32.mrf.mxu0 }
 0xa21   : > { %v2941_v37 = vadd.f32 %v2940_v36, %v2857_v33  ;;  %v3072_v33 = vld [vmem:[#allocation2 + $0xac] sm:$0xf] }
 0xa22   : > { %v4973_v38 = vpop.f32.mrf.mxu0  ;;  %v4504_v34 = vcombine.low %v3071_v24, %v3072_v33  ;;  %v3069_v36 = vld [vmem:[#allocation2 + $0x4c] sm:$0xf] }
 0xa23   : > { %v2946_v40 = vpack.c.bf16 %v2941_v37, %v2941_v37  ;;  %v3070_v37 = vld [vmem:[#allocation2 + $0x6c] sm:$0xf] }
 0xa24   : > { %v2943_v41 = vpop.f32.mrf.mxu0  ;;  %v4503_v38 = vcombine.low %v3069_v36, %v3070_v37  ;;  %v3207_v36 = vld [vmem:[#allocation2 + $0x110] sm:$0xff] }
 0xa25   : > { %v2948_v42 = vpack.i.b16 %v2946_v40, %v2946_v40  ;;  %v3068_v40 = vld [vmem:[#allocation2 + $0x2c] sm:$0xf]  ;;  %v3209_v37 = vld [vmem:[#allocation2 + $0x130] sm:$0xff] }
 0xa26   : > { %v4974_v43 = vpop.f32.mrf.mxu0  ;;  %v4502_v41 = vcombine.low %v3067_v39, %v3068_v40  ;;  %v4526_v39 = vcombine.low %v3207_v36, %v3209_v37  ;;  %v4527_v40 = vcombine.high %v3207_v36, %v3209_v37  ;;  %v5330_v36 = vld [vmem:[#allocation5 + $0xb0] sm:$0xff]   ;;  %v5331_v37 = vld [vmem:[#allocation5 + $0x68] sm:$0xff]  }
 0xa27   : > { %v2953_v45 = vrot.slane %v2948_v42, %v6171_v17  ;;  %v2839_v42 = vpack.c.bf16 %v6348_v31, %v6348_v31  ;;  %v3084_v31 = vld [vmem:[%s6490_s6 + $0x5] sm:$0x1] }
 0xa29   : > { %v2954_v46 = vmul.bf16 %v2953_v45, %v2838_v44  ;;  %v3059_v43 = vunpack.c.l.bf16 %v2839_v42  ;;  %v3203_v42 = vld [vmem:[#allocation2 + $0xd0] sm:$0xff] }
 0xa2b   : > { %4992 = vmatmul.mubr.bf16.vlgmr.msra.gmra.mxu1 %v2954_v46 }
 0xa2c   : > { %5031 = vmatprep.mubr.msk.bf16.mxu1 %vm5784_vm0, %v5783_v0  ;;  %5016 = vmatpush3.bf16.msra.mxu1 %v4509_v50 }
 0xa2d   : > { %5017 = vmatprep.subr.bf16.mxu1 %v5783_v0 }
 0xa30   : > { %5018 = vmatpush3.bf16.msra.mxu1 %v4508_v52 }
 0xa31   : > { %5019 = vmatprep.subr.bf16.mxu1 %v5783_v0 }
 0xa34   : > { %5020 = vmatpush3.bf16.msra.mxu1 %v4507_v55 }
 0xa35   : > { %5021 = vmatprep.subr.bf16.mxu1 %v5783_v0 }
 0xa38   : > { %5022 = vmatpush3.bf16.msra.mxu1 %v4506_v58 }
 0xa39   : > { %5023 = vmatprep.subr.bf16.mxu1 %v5783_v0 }
 0xa3c   : > { %5024 = vmatpush3.bf16.msra.mxu1 %v4505_v32  ;;  %v3214_v32 = vld [vmem:[#allocation2 + $0x178] sm:$0xff] }
 0xa3d   : > { %5025 = vmatprep.subr.bf16.mxu1 %v5783_v0  ;;  %v4532_v33 = vcombine.low %v3212_v29, %v3214_v32 }
 0xa40   : > { %5026 = vmatpush3.bf16.msra.mxu1 %v4504_v34  ;;  %v4533_v34 = vcombine.high %v3212_v29, %v3214_v32  ;;  %v5323_v29 = vld [vmem:[#allocation5 + $0x78] sm:$0xff]  }
 0xa41   : > { %5027 = vmatprep.subr.bf16.mxu1 %v5783_v0  ;;  %v5325_v32 = vld [vmem:[#allocation5 + $0xf8] sm:$0xff]  }
 0xa44   : > { %5028 = vmatpush3.bf16.msra.mxu1 %v4503_v38  ;;  %v3208_v38 = vld [vmem:[#allocation2 + $0x118] sm:$0xff] }
 0xa45   : > { %5029 = vmatprep.subr.bf16.mxu1 %v5783_v0 }
 0xa48   : > { %5030 = vmatpush3.bf16.msra.mxu1 %v4502_v41  ;;  %v3210_v41 = vld [vmem:[#allocation2 + $0x138] sm:$0xff] }
 0xaeb   : > { %v2989_v59 = vpop.f32.mrf.mxu1 }
 0xaec   : > { %v2995_v61 = vmul.f32 0.125, %v2989_v59 }
 0xaed   : > { %v4993_v63 = vpop.f32.mrf.mxu1 }
 0xaee   : > { %v3000_v2 = vsel %vm2999_vm2, %v2995_v61, -1e+30 }
 0xaef   : > { %v3001_v3 = vrot.slane %v3000_v2, 4  ;;  %v2992_v4 = vpop.f32.mrf.mxu1 }
 0xaf0   : > { %v3220_v4 = vld [vmem:[#allocation2 + $0x1d8] sm:$0xff] }
 0xaf1   : > { %v3002_v5 = vmax.f32 %v3000_v2, %v3001_v3  ;;  %v4994_v6 = vpop.f32.mrf.mxu1  ;;  %v3221_v3 = vld [vmem:[#allocation2 + $0x1f0] sm:$0xff] }
 0xaf3   : > { %v3003_v7 = vrot.slane %v3002_v5, 2 }
 0xaf5   : > { %v3004_v9 = vmax.f32 %v3002_v5, %v3003_v7  ;;  %v3215_v7 = vld [vmem:[#allocation2 + $0x190] sm:$0xff] }
 0xaf7   : > { %v3005_v10 = vrot.slane %v3004_v9, 1 }
 0xaf9   : > { %v3006_v11 = vmax.f32 %v3004_v9, %v3005_v10  ;;  %v3217_v9 = vld [vmem:[#allocation2 + $0x1b0] sm:$0xff] }
 0xafb   : > { %v3007_v12 = vsub.f32 %v3000_v2, %v3006_v11  ;;  %v3219_v2 = vld [vmem:[#allocation2 + $0x1d0] sm:$0xff] }
 0xafc   : > { %v4538_v5 = vcombine.low %v3219_v2, %v3221_v3  ;;  %v4539_v6 = vcombine.high %v3219_v2, %v3221_v3 }
 0xafd   : > { %v3008_v15 = vmul.f32 1.442695, %v3007_v12  ;;  %v4535_v12 = vcombine.high %v3215_v7, %v3217_v9 }
 0xafe   : > { %3406 = vmatprep.subr.bf16.mxu0 %v4539_v6  ;;  %v3192_v6 = vld [vmem:[#allocation2 + $0x18] sm:$0xff] }
 0xaff   : > { %5391 = vpow2.f32 %v3008_v15  ;;  %v3216_v15 = vld [vmem:[#allocation2 + $0x198] sm:$0xff] }
 0xb0c   : > { %v5392_v18 = vpop.eup %5391 }
 0xb0d   : > { %v3010_v54 = vrot.slane %v5392_v18, 4 }
 0xb0f   : > { %v3011_v19 = vadd.f32 %v5392_v18, %v3010_v54  ;;  %v4534_v54 = vcombine.low %v3215_v7, %v3217_v9 }
 0xb11   : > { %v3012_v1 = vrot.slane %v3011_v19, 2 }
 0xb13   : > { %v3013_v20 = vadd.f32 %v3012_v1, %v3011_v19 }
 0xb15   : > { %v3014_v21 = vrot.slane %v3013_v20, 1 }
 0xb17   : > { %v3015_v22 = vadd.f32 %v3014_v21, %v3013_v20 }
 0xb19   : > { %5393 = vrcp.f32 %v3015_v22 }
 0xb26   : > { %v5394_v23 = vpop.eup %5393 }
 0xb27   : > { %v3017_v26 = vmul.f32 %v5394_v23, %v5392_v18  ;;  %v3218_v18 = vld [vmem:[#allocation2 + $0x1b8] sm:$0xff] }
 0xb28   : > { %v4536_v19 = vcombine.low %v3216_v15, %v3218_v18 }
 0xb29   : > { %v3018_v28 = vpack.c.bf16 %v3017_v26, %v3017_v26  ;;  %v3211_v26 = vld [vmem:[#allocation2 + $0x150] sm:$0xff] }
 0xb2b   : > { %5012 = vmatmul.mubr.bf16.vlgmr.msra.gmra.mxu0 %v3018_v28  ;;  %v3213_v28 = vld [vmem:[#allocation2 + $0x170] sm:$0xff] }
 0xb2c   : > { %3438 = vmatprep.mubr.bf16.mxu0 %v5785_v25  ;;  %3407 = vmatpush1.bf16.msra.mxu0 %v4538_v5  ;;  %v4531_v30 = vcombine.high %v3211_v26, %v3213_v28  ;;  %v4530_v24 = vcombine.low %v3211_v26, %v3213_v28  ;;  %v3193_v5 = vld [vmem:[#allocation2 + $0x30] sm:$0xff] }
 0xb2d   : > { %3408 = vmatprep.subr.bf16.mxu0 %v4535_v12 }
 0xb30   : > { %3409 = vmatpush1.bf16.msra.mxu0 %v4534_v54 }
 0xb31   : > { %3410 = vmatprep.subr.bf16.mxu0 %v4531_v30  ;;  %v5324_v30 = vld [vmem:[#allocation5 + $0x38] sm:$0xff]  }
 0xb34   : > { %3411 = vmatpush1.bf16.msra.mxu0 %v4530_v24  ;;  %v5326_v24 = vld [vmem:[#allocation5 + $0xb8] sm:$0xff]  }
 0xb35   : > { %3412 = vmatprep.subr.bf16.mxu0 %v4527_v40  ;;  %v5334_v40 = vld [vmem:[#allocation5 + $0xa8] sm:$0xff]  }
 0xb38   : > { %3413 = vmatpush1.bf16.msra.mxu0 %v4526_v39  ;;  %v5333_v39 = vld [vmem:[#allocation5 + $0xe8] sm:$0xff]  }
 0xbeb   : > { %v3053_v44 = vpop.f32.mrf.mxu0 }
 0xbec   : > { %v3060_v45 = vmul.f32 %v3059_v43, %v3053_v44  ;;  %v3205_v43 = vld [vmem:[#allocation2 + $0xf0] sm:$0xff]  ;;  %v4528_v44 = vcombine.low %v3208_v38, %v3210_v41 }
 0xbed   : > { %v5013_v46 = vpop.f32.mrf.mxu0 }
 0xbee   : > { %v3061_v47 = vrot.slane %v3060_v45, 4  ;;  %v4523_v46 = vcombine.high %v3203_v42, %v3205_v43 }
 0xbef   : > { %v3056_v48 = vpop.f32.mrf.mxu0 }
 0xbf0   : > { %v3062_v49 = vadd.f32 %v3061_v47, %v3060_v45  ;;  %v4529_v45 = vcombine.high %v3208_v38, %v3210_v41  ;;  %v3204_v47 = vld [vmem:[#allocation2 + $0xd8] sm:$0xff]  ;;  %3414 = vmatprep.subr.bf16.mxu0 %v4523_v46  ;;  %v5332_v38 = vld [vmem:[#allocation5 + $0x28] sm:$0xff]   ;;  %v5335_v41 = vld [vmem:[#allocation5 + $0x60] sm:$0xff]  }
 0xbf1   : > { %v5014_v50 = vpop.f32.mrf.mxu0  ;;  %v3206_v48 = vld [vmem:[#allocation2 + $0xf8] sm:$0xff] }
 0xbf2   : > { %v3063_v51 = vrot.slane %v3062_v49, 2  ;;  %v4525_v50 = vcombine.high %v3204_v47, %v3206_v48  ;;  %v5341_v46 = vld [vmem:[#allocation5 + $0xd8] sm:$0xff]  }
 0xbf4   : > { %v3064_v52 = vadd.f32 %v3063_v51, %v3062_v49  ;;  %v3199_v49 = vld [vmem:[#allocation2 + $0x90] sm:$0xff] }
 0xbf5   : > { %v3201_v51 = vld [vmem:[#allocation2 + $0xb0] sm:$0xff] }
 0xbf6   : > { %v3065_v27 = vrot.slane %v3064_v52, 1 }
 0xbf8   : > { %v3066_v53 = vadd.f32 %v3065_v27, %v3064_v52  ;;  %v3200_v52 = vld [vmem:[#allocation2 + $0x98] sm:$0xff] }
 0xbf9   : > { %v3202_v27 = vld [vmem:[#allocation2 + $0xb8] sm:$0xff] }
 0xbfa   : > { %v3083_v55 = vpack.c.bf16 %v3066_v53, %v3066_v53  ;;  %v4522_v53 = vcombine.low %v3203_v42, %v3205_v43  ;;  %v5337_v42 = vld [vmem:[#allocation5 + $0xe0] sm:$0xff]  }
 0xbfb   : > { %v5336_v43 = vld [vmem:[#allocation5 + $0x20] sm:$0xff]  }
 0xbfc   : > { %5032 = vmatmul.mubr.bf16.vlgmr.msra.gmra.mxu1 %v3083_v55  ;;  %v4524_v55 = vcombine.low %v3204_v47, %v3206_v48  ;;  %3415 = vmatpush1.bf16.msra.mxu0 %v4522_v53  ;;  %v5340_v47 = vld [vmem:[#allocation5 + $0x18] sm:$0xff]   ;;  %v5349_v53 = vld [vmem:[#allocation5 + $0xc8] sm:$0xff]  }
 0xbfd   : > { %3479 = vmatprep.mubr.bf16.mxu1 %v5785_v25  ;;  %v3222_v25 = vld [vmem:[#allocation2 + $0x1f8] sm:$0xff] }
 0xbfe   : > { %v4540_v10 = vcombine.low %v3220_v4, %v3222_v25  ;;  %v4541_v11 = vcombine.high %v3220_v4, %v3222_v25  ;;  %v3191_v4 = vld [vmem:[#allocation2 + $0x10] sm:$0xff]  ;;  %v3194_v25 = vld [vmem:[#allocation2 + $0x38] sm:$0xff] }
 0xbff   : > { %v4510_v12 = vcombine.low %v3191_v4, %v3193_v5  ;;  %v5342_v48 = vld [vmem:[#allocation5 + $0x98] sm:$0xff]  }
 0xc00   : > { %3447 = vmatprep.subr.bf16.mxu1 %v4541_v11  ;;  %v4513_v11 = vcombine.high %v3192_v6, %v3194_v25 }
 0xc01   : > { %3448 = vmatpush1.bf16.msra.mxu1 %v4540_v10  ;;  %v4511_v10 = vcombine.high %v3191_v4, %v3193_v5 }
 0xcbc   : > { %v3167_v56 = vpop.f32.mrf.mxu1 }
 0xcbd   : > { %v3168_v57 = vadd.f32 %v3167_v56, %v3084_v31  ;;  %v4519_v31 = vcombine.high %v3199_v49, %v3201_v51  ;;  %v4521_v56 = vcombine.high %v3200_v52, %v3202_v27 }
 0xcbe   : > { %v5033_v58 = vpop.f32.mrf.mxu1 }
 0xcbf   : > { %v3173_v35 = vadd.f32 %v3168_v57, %v6331_v13  ;;  %v4537_v13 = vcombine.high %v3216_v15, %v3218_v18  ;;  %v3195_v57 = vld [vmem:[#allocation2 + $0x50] sm:$0xff]  ;;  %3416 = vmatprep.subr.bf16.mxu0 %v4519_v31  ;;  %v4512_v15 = vcombine.low %v3192_v6, %v3194_v25  ;;  %v5350_v31 = vld [vmem:[#allocation5 + $0x88] sm:$0xff]  }
 0xcc0   : > { %v3170_v59 = vpop.f32.mrf.mxu1  ;;  %v3197_v58 = vld [vmem:[#allocation2 + $0x70] sm:$0xff] }
 0xcc1   : > { %v3176_v61 = vsel %vm1794_vm1, %v3173_v35, 0.0  ;;  %3449 = vmatprep.subr.bf16.mxu1 %v4537_v13  ;;  %v3198_v59 = vld [vmem:[#allocation2 + $0x78] sm:$0xff]  ;;  %v4515_v2 = vcombine.high %v3195_v57, %v3197_v58  ;;  %v4514_v7 = vcombine.low %v3195_v57, %v3197_v58  ;;  %v5353_v57 = vld [vmem:[#allocation5 + $0xc0] sm:$0xff]  }
 0xcc2   : > { %3177 = vadd.xlane.f32.xlu0 %v3176_v61  ;;  %v5034_v63 = vpop.f32.mrf.mxu1  ;;  %3450 = vmatpush1.bf16.msra.mxu1 %v4536_v19  ;;  %v4518_v61 = vcombine.low %v3199_v49, %v3201_v51  ;;  %v5343_v49 = vld [vmem:[#allocation5 + $0x50] sm:$0xff]   ;;  %v5352_v58 = vld [vmem:[#allocation5] sm:$0xff]  }
 0xcc3   : > { %3451 = vmatprep.subr.bf16.mxu1 %v4533_v34  ;;  %v4520_v63 = vcombine.low %v3200_v52, %v3202_v27  ;;  %v5329_v34 = vld [vmem:[#allocation5 + $0xf0] sm:$0xff]   ;;  %v5347_v27 = vld [vmem:[#allocation5 + $0x48] sm:$0xff]  }
 0xcc4   : > { %3417 = vmatpush1.bf16.msra.mxu0 %v4518_v61  ;;  %v5344_v51 = vld [vmem:[#allocation5 + $0x10] sm:$0xff]  }
 0xcc5   : > { %3418 = vmatprep.subr.bf16.mxu0 %v4515_v2  ;;  %v5346_v52 = vld [vmem:[#allocation5 + $0x90] sm:$0xff]  }
 0xcc6   : > { %3452 = vmatpush1.bf16.msra.mxu1 %v4532_v33  ;;  %v5328_v33 = vld [vmem:[#allocation5 + $0x30] sm:$0xff]  }
 0xcc7   : > { %3453 = vmatprep.subr.bf16.mxu1 %v4529_v45  ;;  %v5339_v45 = vld [vmem:[#allocation5 + $0x58] sm:$0xff]  }
 0xcc8   : > { %3419 = vmatpush1.bf16.msra.mxu0 %v4514_v7 }
 0xcc9   : > { %3420 = vmatprep.subr.bf16.mxu0 %v4511_v10 }
 0xcca   : > { %3454 = vmatpush1.bf16.msra.mxu1 %v4528_v44  ;;  %v5338_v44 = vld [vmem:[#allocation5 + $0xa0] sm:$0xff]  }
 0xccb   : > { %3455 = vmatprep.subr.bf16.mxu1 %v4525_v50  ;;  %v5345_v50 = vld [vmem:[#allocation5 + $0xd0] sm:$0xff]  }
 0xccc   : > { %3421 = vmatpush1.bf16.msra.mxu0 %v4510_v12 }
 0xccd   : > { %4773 = vmatprep.subr.bf16.mxu0 %v5323_v29 }
 0xcce   : > { %3456 = vmatpush1.bf16.msra.mxu1 %v4524_v55  ;;  %v5348_v55 = vld [vmem:[#allocation5 + $0x8] sm:$0xff]  }
 0xccf   : > { %3457 = vmatprep.subr.bf16.mxu1 %v4521_v56  ;;  %v5351_v56 = vld [vmem:[#allocation5 + $0x40] sm:$0xff]  }
 0xcd2   : > { %3458 = vmatpush1.bf16.msra.mxu1 %v4520_v63 }
 0xd4b   : > { %v3178_v1 = vpop.xlane.xlu0 %3177 }
 0xd4c   : > { %v3179_v20 = vmul.f32 0.0078125, %v3178_v1  ;;  %v3174_v1 = vld [vmem:[%s6490_s6 + $0x6] sm:$0x1] }
 0xd4e   : > { %v6374_v21 = vsub.f32 %v3173_v35, %v3179_v20  ;;  %v3196_v35 = vld [vmem:[#allocation2 + $0x58] sm:$0xff] }
 0xd4f   : > { %v4517_v3 = vcombine.high %v3196_v35, %v3198_v59  ;;  %v4516_v9 = vcombine.low %v3196_v35, %v3198_v59  ;;  %v5354_v35 = vld [vmem:[#allocation5 + $0x80] sm:$0xff]   ;;  %v3224_v59 = vld [vmem:[%s6490_s6 + $0x8] sm:$0xf] }
 0xd50   : > { %v3181_v22 = vmul.f32 %v6374_v21, %v6374_v21  ;;  %v3389_v61 = vrot.slane %v3224_v59, %v6171_v17  ;;  %v3397_v63 = vrot.slane %v3224_v59, %v2016_v60  ;;  %v3393_v2 = vrot.slane %v3224_v59, %v6168_v16 }
 0xd51   : > { %3459 = vmatprep.subr.bf16.mxu1 %v4517_v3  ;;  %v3401_v3 = vrot.slane %v3224_v59, %v2020_v62  ;;  %v5359_v59 = vld [vmem:[#allocation14 + $0x58] sm:$0xff]  }
 0xd52   : > { %v3182_v23 = vsel %vm1794_vm1, %v3181_v22, 0.0  ;;  %3460 = vmatpush1.bf16.msra.mxu1 %v4516_v9  ;;  %v3175_v22 = vld [vmem:[%s6490_s6 + $0x7] sm:$0x1] }
 0xd53   : > { %3183 = vadd.xlane.f32.xlu1 %v3182_v23  ;;  %3461 = vmatprep.subr.bf16.mxu1 %v4513_v11 }
 0xd56   : > { %3462 = vmatpush1.bf16.msra.mxu1 %v4512_v15 }
 0xd57   : > { %4795 = vmatprep.subr.bf16.mxu1 %v5325_v32 }
 0xddc   : > { %v3184_v18 = vpop.xlane.xlu1 %3183 }
 0xddd   : > { %v3185_v13 = vmul.f32 0.0078125, %v3184_v18 }
 0xddf   : > { %v3186_v54 = vadd.f32 1e-05, %v3185_v13 }
 0xde1   : > { %5395 = vrsqrt.f32 %v3186_v54 }
 0xdee   : > { %v5396_v19 = vpop.eup %5395 }
 0xdef   : > { %v3188_v20 = vmul.f32 %v5396_v19, %v6374_v21  ;;  %v5327_v21 = vld [vmem:[#allocation5 + $0x70] sm:$0xff]  }
 0xdf1   : > { %v3189_v23 = vmul.f32 %v3188_v20, %v3174_v1 }
 0xdf3   : > { %v6386_v26 = vadd.f32 %v3189_v23, %v3175_v22 }
 0xdf5   : > { %v3223_v28 = vpack.c.bf16 %v6386_v26, %v6386_v26 }
 0xdf7   : > { %3439 = vmatmul.mubr.bf16.vlgmr.msra.gmra.mxu0 %v3223_v28  ;;  %3480 = vmatmul.mubr.bf16.vlgmr.msra.gmra.mxu1 %v3223_v28 }
 0xdf8   : > { %4774 = vmatpush3.bf16.msra.mxu0 %v5324_v30  ;;  %4796 = vmatpush3.bf16.msra.mxu1 %v5326_v24 }
 0xdf9   : > { %4775 = vmatprep.subr.bf16.mxu0 %v5327_v21  ;;  %4797 = vmatprep.subr.bf16.mxu1 %v5329_v34 }
 0xdfc   : > { %4776 = vmatpush3.bf16.msra.mxu0 %v5328_v33  ;;  %4798 = vmatpush3.bf16.msra.mxu1 %v5330_v36 }
 0xdfd   : > { %4777 = vmatprep.subr.bf16.mxu0 %v5331_v37  ;;  %4799 = vmatprep.subr.bf16.mxu1 %v5333_v39 }
 0xe00   : > { %4778 = vmatpush3.bf16.msra.mxu0 %v5332_v38  ;;  %4800 = vmatpush3.bf16.msra.mxu1 %v5334_v40 }
 0xe01   : > { %4779 = vmatprep.subr.bf16.mxu0 %v5335_v41  ;;  %4801 = vmatprep.subr.bf16.mxu1 %v5337_v42 }
 0xe04   : > { %4780 = vmatpush3.bf16.msra.mxu0 %v5336_v43  ;;  %4802 = vmatpush3.bf16.msra.mxu1 %v5338_v44 }
 0xe05   : > { %4781 = vmatprep.subr.bf16.mxu0 %v5339_v45  ;;  %4803 = vmatprep.subr.bf16.mxu1 %v5341_v46 }
 0xe08   : > { %4782 = vmatpush3.bf16.msra.mxu0 %v5340_v47  ;;  %4804 = vmatpush3.bf16.msra.mxu1 %v5342_v48 }
 0xe09   : > { %4783 = vmatprep.subr.bf16.mxu0 %v5343_v49  ;;  %4805 = vmatprep.subr.bf16.mxu1 %v5345_v50 }
 0xe0c   : > { %4784 = vmatpush3.bf16.msra.mxu0 %v5344_v51  ;;  %4806 = vmatpush3.bf16.msra.mxu1 %v5346_v52 }
 0xe0d   : > { %4785 = vmatprep.subr.bf16.mxu0 %v5347_v27  ;;  %4807 = vmatprep.subr.bf16.mxu1 %v5349_v53  ;;  %v5355_v53 = vld [vmem:[#allocation14 + $0x78] sm:$0xff]  }
 0xe10   : > { %4786 = vmatpush3.bf16.msra.mxu0 %v5348_v55  ;;  %4808 = vmatpush3.bf16.msra.mxu1 %v5350_v31 }
 0xe11   : > { %4787 = vmatprep.subr.bf16.mxu0 %v5351_v56  ;;  %4809 = vmatprep.subr.bf16.mxu1 %v5353_v57  ;;  %v5356_v57 = vld [vmem:[#allocation14 + $0x70] sm:$0xff]  }
 0xe14   : > { %4788 = vmatpush3.bf16.msra.mxu0 %v5352_v58  ;;  %4810 = vmatpush3.bf16.msra.mxu1 %v5354_v35  ;;  %v5357_v58 = vld [vmem:[#allocation14 + $0x68] sm:$0xff]   ;;  %v5358_v35 = vld [vmem:[#allocation14 + $0x60] sm:$0xff]  }
 0xe15   : > { %5035 = vmatprep.subr.bf16.mxu0 %v5783_v0  ;;  %5055 = vmatprep.subr.bf16.mxu1 %v5783_v0 }
 0xeb7   : > { %v3440_v4 = vpop.f32.mrf.mxu0  ;;  %v3481_v5 = vpop.f32.mrf.mxu1 }
 0xeb8   : > { %v3441_v6 = vadd.f32 %v3440_v4, %v3389_v61  ;;  %v3482_v25 = vadd.f32 %v3481_v5, %v3397_v63  ;;  %v5360_v61 = vld [vmem:[#allocation14 + $0x50] sm:$0xff]   ;;  %v5361_v63 = vld [vmem:[#allocation14 + $0x48] sm:$0xff]  }
 0xeb9   : > { %v3442_v7 = vpop.f32.mrf.mxu0  ;;  %v3483_v9 = vpop.f32.mrf.mxu1 }
 0xeba   : > { %v3492_v10 = vmul.f32 0.044715, %v3441_v6  ;;  %v3494_v11 = vmul.f32 0.044715, %v3482_v25  ;;  %v3443_v12 = vadd.f32 %v3442_v7, %v3393_v2  ;;  %v3484_v15 = vadd.f32 %v3483_v9, %v3401_v3  ;;  %v923_v2 = vld [vmem:[%s6497_s13 + $0x1] sm:$0x1] }
 0xebb   : > { %v3444_v18 = vpop.f32.mrf.mxu0  ;;  %v3485_v17 = vpop.f32.mrf.mxu1  ;;  %v3488_v41 = vmul.f32 0.5, %v3441_v6  ;;  %v3490_v46 = vmul.f32 0.5, %v3482_v25  ;;  %v5362_v3 = vld [vmem:[#allocation14 + $0x40] sm:$0xff]   ;;  %v1007_v4 = vadd.f32 %v6160_v8, %v923_v2  ;;  %v3592_v7 = vld [vmem:[%s6490_s6 + $0xc] sm:$0x1] }
 0xebc   : > { %v3496_v13 = vmul.f32 %v3492_v10, %v3441_v6  ;;  %v3498_v54 = vmul.f32 %v3494_v11, %v3482_v25  ;;  %v3493_v60 = vmul.f32 0.044715, %v3443_v12  ;;  %v3495_v19 = vmul.f32 0.044715, %v3484_v15 }
 0xebd   : > { %v3445_v16 = vpop.f32.mrf.mxu0  ;;  %v3486_v1 = vpop.f32.mrf.mxu1  ;;  %v3489_v44 = vmul.f32 0.5, %v3443_v12  ;;  %v3491_v47 = vmul.f32 0.5, %v3484_v15  ;;  %v3916_v5 = vpack.c.bf16 %v1007_v4, %v1007_v4 }
 0xebe   : > { %v3500_v14 = vmul.f32 %v3496_v13, %v3441_v6  ;;  %v3502_v62 = vmul.f32 %v3498_v54, %v3482_v25  ;;  %v3497_v20 = vmul.f32 %v3493_v60, %v3443_v12  ;;  %v3499_v22 = vmul.f32 %v3495_v19, %v3484_v15  ;;  %v5363_v16 = vld [vmem:[#allocation14 + $0x38] sm:$0xff]   ;;  %v5364_v1 = vld [vmem:[#allocation14 + $0x30] sm:$0xff]  }
 0xec0   : > { %v3504_v23 = vadd.f32 %v3500_v14, %v3441_v6  ;;  %v3506_v28 = vadd.f32 %v3502_v62, %v3482_v25  ;;  %v3501_v29 = vmul.f32 %v3497_v20, %v3443_v12  ;;  %v3503_v30 = vmul.f32 %v3499_v22, %v3484_v15 }
 0xec2   : > { %v3508_v32 = vmul.f32 0.7978846, %v3504_v23  ;;  %v3510_v24 = vmul.f32 0.7978846, %v3506_v28  ;;  %v3505_v21 = vadd.f32 %v3501_v29, %v3443_v12  ;;  %v3507_v33 = vadd.f32 %v3503_v30, %v3484_v15 }
 0xec4   : > { %v3509_v34 = vmul.f32 0.7978846, %v3505_v21  ;;  %v3511_v36 = vmul.f32 0.7978846, %v3507_v33  ;;  %5397 = vtanh.f32 %v3508_v32  ;;  %v5365_v32 = vld [vmem:[#allocation14 + $0x28] sm:$0xff]   ;;  %v5367_v21 = vld [vmem:[#allocation14 + $0x18] sm:$0xff]  }
 0xec5   : > { %5399 = vtanh.f32 %v3510_v24  ;;  %v5366_v24 = vld [vmem:[#allocation14 + $0x20] sm:$0xff]   ;;  %v5368_v33 = vld [vmem:[#allocation14 + $0x10] sm:$0xff]  }
 0xec6   : > { %5401 = vtanh.f32 %v3509_v34  ;;  %v5369_v34 = vld [vmem:[#allocation14 + $0x8] sm:$0xff]  }
 0xec7   : > { %5403 = vtanh.f32 %v3511_v36  ;;  %v5370_v36 = vld [vmem:[#allocation14] sm:$0xff]  }
 0xed1   : > { %v5398_v37 = vpop.eup %5397 }
 0xed2   : > { %v5400_v38 = vpop.eup %5399  ;;  %v3516_v39 = vadd.f32 1.0, %v5398_v37 }
 0xed3   : > { %v5402_v40 = vpop.eup %5401  ;;  %v3518_v42 = vadd.f32 1.0, %v5400_v38 }
 0xed4   : > { %v5404_v43 = vpop.eup %5403  ;;  %v3517_v45 = vadd.f32 1.0, %v5402_v40  ;;  %v3520_v49 = vmul.f32 %v3516_v39, %v3488_v41  ;;  %v3866_v41 = vld [vmem:[%s6490_s6 + $0xd] sm:$0x1] }
 0xed5   : > { %v3519_v48 = vadd.f32 1.0, %v5404_v43  ;;  %v3522_v51 = vmul.f32 %v3518_v42, %v3490_v46  ;;  %v3867_v43 = vld [vmem:[%s6490_s6 + $0xe] sm:$0x1] }
 0xed6   : > { %v3521_v50 = vmul.f32 %v3517_v45, %v3489_v44  ;;  %v3524_v31 = vpack.c.bf16 %v3520_v49, %v3520_v49 }
 0xed7   : > { %v3523_v52 = vmul.f32 %v3519_v48, %v3491_v47  ;;  %v3526_v56 = vpack.c.bf16 %v3522_v51, %v3522_v51  ;;  %v4093_v47 = vld [vmem:[%s6499_s15] sm:$0x1] }
 0xed8   : > { %v3525_v27 = vpack.c.bf16 %v3521_v50, %v3521_v50 }
 0xed9   : > { %v3527_v55 = vpack.c.bf16 %v3523_v52, %v3523_v52 }
 0xeda   : > { %3817 = vmatprep.mubr.bf16.mxu0 %v3525_v27 }
 0xedb   : > { %3857 = vmatprep.mubr.bf16.mxu1 %v3527_v55  ;;  %3818 = vmatmul.mubr.bf16.vlgmr.msra.gmra.mxu0 %v3524_v31 }
 0xedc   : > { %3858 = vmatmul.mubr.bf16.vlgmr.msra.gmra.mxu1 %v3526_v56  ;;  %5036 = vmatpush3.bf16.msra.mxu0 %v5355_v53 }
 0xedd   : > { %5037 = vmatprep.subr.bf16.mxu0 %v5783_v0  ;;  %5051 = vmatprep.mubr.msk.bf16.mxu0 %vm5784_vm0, %v5783_v0 }
 0xede   : > { %5071 = vmatprep.mubr.msk.bf16.mxu1 %vm5784_vm0, %v5783_v0  ;;  %5056 = vmatpush3.bf16.msra.mxu1 %v5363_v16 }
 0xedf   : > { %5057 = vmatprep.subr.bf16.mxu1 %v5783_v0 }
 0xee0   : > { %5038 = vmatpush3.bf16.msra.mxu0 %v5356_v57 }
 0xee1   : > { %5039 = vmatprep.subr.bf16.mxu0 %v5783_v0 }
 0xee2   : > { %5058 = vmatpush3.bf16.msra.mxu1 %v5364_v1 }
 0xee3   : > { %5059 = vmatprep.subr.bf16.mxu1 %v5783_v0 }
 0xee4   : > { %5040 = vmatpush3.bf16.msra.mxu0 %v5357_v58 }
 0xee5   : > { %5041 = vmatprep.subr.bf16.mxu0 %v5783_v0 }
 0xee6   : > { %5060 = vmatpush3.bf16.msra.mxu1 %v5365_v32 }
 0xee7   : > { %5061 = vmatprep.subr.bf16.mxu1 %v5783_v0 }
 0xee8   : > { %5042 = vmatpush3.bf16.msra.mxu0 %v5358_v35 }
 0xee9   : > { %5043 = vmatprep.subr.bf16.mxu0 %v5783_v0 }
 0xeea   : > { %5062 = vmatpush3.bf16.msra.mxu1 %v5366_v24 }
 0xeeb   : > { %5063 = vmatprep.subr.bf16.mxu1 %v5783_v0 }
 0xeec   : > { %5044 = vmatpush3.bf16.msra.mxu0 %v5359_v59 }
 0xeed   : > { %5045 = vmatprep.subr.bf16.mxu0 %v5783_v0 }
 0xeee   : > { %5064 = vmatpush3.bf16.msra.mxu1 %v5367_v21 }
 0xeef   : > { %5065 = vmatprep.subr.bf16.mxu1 %v5783_v0 }
 0xef0   : > { %5046 = vmatpush3.bf16.msra.mxu0 %v5360_v61 }
 0xef1   : > { %5047 = vmatprep.subr.bf16.mxu0 %v5783_v0 }
 0xef2   : > { %5066 = vmatpush3.bf16.msra.mxu1 %v5368_v33 }
 0xef3   : > { %5067 = vmatprep.subr.bf16.mxu1 %v5783_v0 }
 0xef4   : > { %5048 = vmatpush3.bf16.msra.mxu0 %v5361_v63 }
 0xef5   : > { %5049 = vmatprep.subr.bf16.mxu0 %v5783_v0 }
 0xef6   : > { %5068 = vmatpush3.bf16.msra.mxu1 %v5369_v34 }
 0xef7   : > { %5069 = vmatprep.subr.bf16.mxu1 %v5783_v0 }
 0xef8   : > { %5050 = vmatpush3.bf16.msra.mxu0 %v5362_v3 }
 0xefa   : > { %5070 = vmatpush3.bf16.msra.mxu1 %v5370_v36 }
 0xefb   : > { %5052 = vmatmul.mubr.bf16.vlgmr.msra.gmra.mxu0 %v3916_v5 }
 0xf9b   : > { %v4789_v6 = vpop.f32.mrf.mxu0 }
 0xf9c   : > { %v4811_v25 = vpop.f32.mrf.mxu1 }
 0xf9d   : > { %v4790_v9 = vpop.f32.mrf.mxu0 }
 0xf9e   : > { %v4791_v10 = vadd.f32 %v4790_v9, %v4789_v6  ;;  %v4812_v11 = vpop.f32.mrf.mxu1 }
 0xf9f   : > { %v4792_v12 = vpop.f32.mrf.mxu0  ;;  %v4813_v18 = vadd.f32 %v4812_v11, %v4811_v25 }
 0xfa0   : > { %v3820_v15 = vadd.f32 %v4791_v10, %v3592_v7  ;;  %v4814_v17 = vpop.f32.mrf.mxu1 }
 0xfa1   : > { %v4793_v13 = vpop.f32.mrf.mxu0 }
 0xfa2   : > { %v3860_v8 = vadd.f32 %v4813_v18, %v3820_v15  ;;  %v4815_v54 = vpop.f32.mrf.mxu1 }
 0xfa4   : > { %v3865_v60 = vadd.f32 %v3860_v8, %v6386_v26 }
 0xfa6   : > { %v3868_v19 = vsel %vm1794_vm1, %v3865_v60, 0.0 }
 0xfa7   : > { %3869 = vadd.xlane.f32.xlu0 %v3868_v19 }
 0xfbb   : > { %v3999_v14 = vpop.f32.mrf.mxu0 }
 0xfbd   : > { %v5053_v62 = vpop.f32.mrf.mxu0 }
 0xfbf   : > { %v4002_v20 = vpop.f32.mrf.mxu0 }
 0xfc1   : > { %v5054_v22 = vpop.f32.mrf.mxu0 }
0x1030   : > { %v3870_v23 = vpop.xlane.xlu0 %3869 }
0x1031   : > { %v3871_v28 = vmul.f32 0.0078125, %v3870_v23 }
0x1033   : > { %v3872_v29 = vsub.f32 %v3865_v60, %v3871_v28 }
0x1035   : > { %v3873_v30 = vmul.f32 %v3872_v29, %v3872_v29 }
0x1037   : > { %v3874_v26 = vsel %vm1794_vm1, %v3873_v30, 0.0 }
0x1038   : > { %3875 = vadd.xlane.f32.xlu1 %v3874_v26 }
0x10c1   : > { %v3876_v37 = vpop.xlane.xlu1 %3875 }
0x10c2   : > { %v3877_v38 = vmul.f32 0.0078125, %v3876_v37 }
0x10c4   : > { %v3878_v39 = vadd.f32 1e-05, %v3877_v38 }
0x10c6   : > { %5405 = vrsqrt.f32 %v3878_v39 }
0x10d3   : > { %v5406_v40 = vpop.eup %5405 }
0x10d4   : > { %v3880_v42 = vmul.f32 %v5406_v40, %v3872_v29 }
0x10d6   : > { %v3881_v44 = vmul.f32 %v3880_v42, %v3866_v41 }
0x10d8   : > { %v3882_v45 = vadd.f32 %v3881_v44, %v3867_v43 }
0x10da   : > { %v3899_v46 = vpack.c.bf16 %v3882_v45, %v3882_v45 }
0x10dc   : > { %5072 = vmatmul.mubr.bf16.vlgmr.msra.gmra.mxu1 %v3899_v46 }
0x119c   : > { %v4087_v0 = vpop.f32.mrf.mxu1 }
0x119d   : > { %v4088_v48 = vadd.f32 %v4087_v0, %v3999_v14 }
0x119e   : > { %v5073_v49 = vpop.f32.mrf.mxu1 }
0x119f   : > { %v4094_v50 = vadd.f32 %v4093_v47, %v4088_v48 }
0x11a0   : > { %v4090_v51 = vpop.f32.mrf.mxu1 }
0x11a1   : > { %4095 = vst [vmem:[%s742_s19] sm:$0x1] %v4094_v50 }
0x11a2   : > { %v5074_v52 = vpop.f32.mrf.mxu1 }
0x11a3   : > { %5696 = shalt.err (!%p5693_p7)
}
0x11a4   : > { %s5697_s26 = scalar_lea.hbm %s6443_s2, 16  ;;  %s5701_s27 = scalar_lea.hbm %s6556_s23, 32 }
0x11a5   : > { %p5698_p8 = scmp.ne.s32.totalorder %s6443_s2, %s5697_s26  ;;  %p5702_p13 = scmp.lt.s32.totalorder %s6443_s2, %s6556_s23 }
0x11a6   : > { %p5703_p11 = scmp.lt.s32.totalorder %s5701_s27, %s5697_s26 }
0x11a7   : > { %p5699_p0 = pnand %p5698_p8, %p5920_p5 }
0x11a8   : > { %p5704_p2 = por %p5703_p11, %p5702_p13 }
0x11a9   : > { %p5700_p1 = pneg %p5699_p0 }
0x11ab   : > { %p5705_p9 = pnand %p5704_p2, %p5700_p1 }
0x11ad   : > { %5708 = shalt.err (!%p5705_p9)
}
0x11ae   : > { %5115 = dma.vmem_to_hbm [thread:$0]  (%p5920_p5), %s6445_s20, 16, %s6443_s2, %s4097_s25  }
0x11af PF: > { %s6557_s0 = sld [smem:[#allocation29_spill]] }
0x11b0   : > { %s6558_s29 = sld [smem:[#allocation27_spill]] }
0x11b5   : > { %p5172_p4 = scmp.ge.s32.totalorder %s6557_s0, 2 }
0x11b6   : > { %s4121_s18 = sand.u32 1, %s6558_s29  }
0x11b7   : > { %p5149_p12 = pnand %p5172_p4, %p5924_p6  ;;  %s4122_s22 = scalar_lea.sflag [#allocation4], %s4121_s18 }
0x11b9   : > { %p5150_p10 = pneg %p5149_p12 }
0x11bb   : > { %5750 = dma.done.wait (%p5150_p10), %s4122_s22, 16  }
0x11bc   : > { %5752 = vsyncadd (%p5150_p10), %s4122_s22, 4294967280  ;;  %s6560_s30 = sld [smem:[#allocation30_spill]]  ;;  %s6563_s27 = smov %s5759_s28 }
0x11bd   : > { %s6561_s26 = sld [smem:[#allocation28_spill]] }
0x11be   : > { %s6562_s29 = sld [smem:[#allocation31_spill]] }
0x11c2   : > { %p34_p3 = scmp.ge.s32.totalorder %s6560_s30, 4  }
0x11c3   : > { %s6564_s28 = smov %s6561_s26 }
0x11c4   :  { %36 = sbr.rel (!%p34_p3) target bundleno = 14 (0xe), region = 174 }
0x11c9   :  { %4126 = vsyncpa [#allocation3], 1 }
0x11ca   :  { %4128 = vsyncpa [#allocation3 + $0x1], 1 }
0x11cb   :  { %4129 = vsyncpa [#allocation6], 1 }
0x11cc   :  { %4130 = vsyncpa [#allocation9], 1 }
0x11cd   :  { %4131 = vsyncpa [#allocation12], 1 }
0x11ce   :  { %4132 = vsyncpa [#allocation15], 1 }
0x11cf   :  { %4133 = vsyncpa [#allocation18], 1 }
0x11d0   :  { %4134 = vsyncpa [#allocation4], 1 }
0x11d1   :  { %4136 = vsyncpa [#allocation4 + $0x1], 1 }

// kernel: action_decoder_head.1
= control target key start
LH: loop header
LB: loop body
LE: loop exit
PB: predicated region body
PF: predicated region fallthrough
CT: control target
= control target key end

     0   :  { %s6484_s0 = inlined_call_operand.vmem [shape: bf16[16,256], index: 0, kind: input, shape index: {}]   ;;  %s6485_s1 = inlined_call_operand.vmem [shape: bf16[32,256], index: 1, kind: input, shape index: {}]   ;;  %s6486_s2 = inlined_call_operand.vmem [shape: bf16[2,1,128], index: 2, kind: input, shape index: {}]   ;;  %s6487_s3 = inlined_call_operand.vmem [shape: bf16[256,128], index: 3, kind: input, shape index: {}]   ;;  %s6488_s4 = inlined_call_operand.hbm [shape: bf16[128,1024], index: 4, kind: input, shape index: {}]   ;;  %s6489_s5 = inlined_call_operand.hbm [shape: bf16[512,128], index: 5, kind: input, shape index: {}]   ;;  %s6490_s6 = inlined_call_operand.vmem [shape: f32[1,1920], index: 6, kind: input, shape index: {}]   ;;  %s6491_s7 = inlined_call_operand.hbm [shape: bf16[256,128], index: 7, kind: input, shape index: {}]   ;;  %s6492_s8 = inlined_call_operand.hbm [shape: bf16[128,1024], index: 8, kind: input, shape index: {}]   ;;  %s6493_s9 = inlined_call_operand.hbm [shape: bf16[512,128], index: 9, kind: input, shape index: {}]   ;;  %s6494_s10 = inlined_call_operand.vmem [shape: f32[1,1920], index: 10, kind: input, shape index: {}]   ;;  %s6495_s11 = inlined_call_operand.hbm [shape: bf16[128,128], index: 11, kind: input, shape index: {}]   ;;  %s6496_s12 = inlined_call_operand.hbm [shape: bf16[128,128], index: 12, kind: input, shape index: {}]   ;;  %s6497_s13 = inlined_call_operand.vmem [shape: f32[1,256], index: 13, kind: input, shape index: {}]   ;;  %s6498_s14 = inlined_call_operand.hbm [shape: bf16[256,128], index: 14, kind: input, shape index: {}]   ;;  %s6499_s15 = inlined_call_operand.vmem [shape: f32[1,128], index: 15, kind: input, shape index: {}]   ;;  %s6500_s16 = inlined_call_operand.hbm [shape: bf16[128,128], index: 16, kind: input, shape index: {}]   ;;  %s6501_s17 = inlined_call_operand.hbm [shape: bf16[128,128], index: 17, kind: input, shape index: {}]   ;;  %s6502_s18 = inlined_call_operand.hbm [shape: f32[2,1,128], index: 18, kind: output, shape index: {}]  }
   0x1   :  { %6519 = sst [smem:[#allocation34_spill]] %s6484_s0 }
   0x2   :  { %6520 = sst [smem:[#allocation35_spill]] %s6485_s1 }
   0x3   :  { %6521 = sst [smem:[#allocation36_spill]] %s6486_s2 }
   0x4   :  { %6522 = sst [smem:[#allocation37_spill]] %s6502_s18 }
   0x5   :  { %23 = vsyncpa [#allocation3], 0 }
   0x6   :  { %24 = vsyncpa [#allocation6], 0 }
   0x7   :  { %25 = vsyncpa [#allocation9], 0 }
   0x8   :  { %26 = vsyncpa [#allocation12], 0 }
   0x9   :  { %27 = vsyncpa [#allocation15], 0 }
   0xa   :  { %28 = vsyncpa [#allocation18], 0 }
   0xb   :  { %29 = vsyncpa [#allocation4], 0 }
   0xc   :  { %31 = vsyncpa [#allocation4 + $0x1], 0  ;;  %s5882_s27 = smov 0   ;;  %s5884_s28 = smov 0  }
   0xd   :  { %s5886_s29 = smov 0   ;;  %s5888_s30 = smov 0  }
   0xe LB: > { %6523 = sst [smem:[#allocation27_spill]] %s5755_s27  ;;  %s5903_s0 = sadd.s32 4294967295, %s5767_s30   ;;  %s5767_s30 = sphi %s5888_s30, %s6560_s30   ;;  %s5763_s29 = sphi %s5886_s29, %s6562_s29   ;;  %s5759_s28 = sphi %s5884_s28, %s6564_s28   ;;  %s5755_s27 = sphi %s5882_s27, %s6563_s27  }
   0xf   : > { %6524 = sst [smem:[#allocation28_spill]] %s5763_s29  ;;  %s4283_s19 = sadd.s32 4294967294, %s5767_s30  }
  0x10   : > { %6525 = sst [smem:[#allocation29_spill]] %s5767_s30  ;;  %s5907_s1 = sadd.s32 1, %s5767_s30  }
  0x11   : > { %6526 = sst [smem:[#allocation30_spill]] %s5907_s1  ;;  %s437_s20 = sadd.s32 1, %s5763_s29 }
  0x12   : > { %s434_s21 = ssub.s32 %s5767_s30, %s5907_s1  ;;  %p447_p0 = scmp.ne.s32.totalorder %s5763_s29, %s5759_s28 }
  0x13   : > { %p435_p1 = scmp.eq.s32.totalorder %s434_s21, 0  ;;  %p448_p2 = scmp.eq.s32.totalorder %s5903_s0, 1 }
  0x14   : > { %p453_p3 = scmp.ne.s32.totalorder %s5759_s28, %s5755_s27  ;;  %p454_p4 = scmp.eq.s32.totalorder %s4283_s19, 1 }
  0x15   : > { %s5918_s22 = scalar_select %p435_p1, %s5763_s29, %s437_s20  }
  0x16   : > { %p5920_p5 = por %p448_p2, %p447_p0  ;;  %p5924_p6 = por %p454_p4, %p453_p3 }
  0x17   : > { %6527 = sst [smem:[#allocation31_spill]] %s5918_s22  ;;  %p4284_p7 = scmp.ge.s32.totalorder %s5767_s30, 1 }
  0x18   : > { %s6528_s2 = scalar_select %p5920_p5, 1, 0 }
  0x19   : > { %s6530_s23 = scalar_select %p5924_p6, 1, 0 }
  0x1a   : > { %6529 = sst [smem:[#allocation32_spill]] %s6528_s2  ;;  %p461_p8 = scmp.lt.s32.totalorder %s5767_s30, 3 }
  0x1b   : > { %6531 = sst [smem:[#allocation33_spill]] %s6530_s23  ;;  %p6514_p9 = scmp.eq.s32.totalorder %s5903_s0, 0 }
  0x1c   : > { %p5931_p10 = pnand %p4284_p7, %p461_p8  ;;  %s5769_s25 = smov [#allocation5]  }
  0x1d   : > { %s489_s26 = sshll.u32 %s5769_s25, 4  ;;  %s5770_s20 = smov [#allocation8]   ;;  %s490_s26 = int_to_ptr.vmem [resolvable:$true] %s489_s26 }
  0x1e   : > { %p5117_p11 = pneg %p5931_p10  ;;  %s518_s21 = sshll.u32 %s5770_s20, 4  ;;  %s519_s21 = int_to_ptr.vmem [resolvable:$true] %s518_s21 }
  0x1f   : > { %s5434_s29 = scalar_lea.vmem %s490_s26, 4096  ;;  %p5442_p3 = scmp.lt.s32.totalorder %s490_s26, %s490_s26 }
  0x20   : > { %p5939_p12 = pnand %p6514_p9, %p5117_p11  ;;  %p5435_p0 = scmp.ne.s32.totalorder %s490_s26, %s5434_s29 }
  0x21   : > { %p5443_p4 = scmp.lt.s32.totalorder %s5434_s29, %s5434_s29 }
  0x22   : > { %p5945_p13 = pneg %p5939_p12 }
  0x23   : > { %p5444_p7 = por %p5443_p4, %p5442_p3 }
  0x24   : > { %p5437_p1 = pnand %p5435_p0, %p5945_p13 }
  0x26   : > { %p5438_p2 = pneg %p5437_p1 }
  0x28   : > { %p5445_p8 = pnand %p5444_p7, %p5438_p2 }
  0x2a   : > { %5448 = shalt.err (!%p5445_p8)
}
  0x2b   : > { %s6515_s25 = smov 64   ;;  %s6517_s20 = smov 4  }
  0x2c   : > { %5123 = dma.hbm_to_vmem [thread:$0]  (!%p5939_p12), %s6489_s5, 4096, %s490_s26, [#allocation6], %s6515_s25, %s6515_s25, %s6517_s20  }
  0x2d   : > { %s5773_s27 = smov [#allocation11]   ;;  %s5460_s18 = scalar_lea.vmem %s519_s21, 8192 }
  0x2e   : > { %s547_s30 = sshll.u32 %s5773_s27, 4  ;;  %p5461_p11 = scmp.ne.s32.totalorder %s519_s21, %s5460_s18  ;;  %s548_s30 = int_to_ptr.vmem [resolvable:$true] %s547_s30 }
  0x2f   : > { %p5468_p2 = scmp.lt.s32.totalorder %s519_s21, %s519_s21  ;;  %p5469_p3 = scmp.lt.s32.totalorder %s5460_s18, %s5460_s18 }
  0x30   : > { %p5463_p0 = pnand %p5461_p11, %p5945_p13 }
  0x31   : > { %p5470_p4 = por %p5469_p3, %p5468_p2 }
  0x32   : > { %p5464_p1 = pneg %p5463_p0 }
  0x34   : > { %p5471_p7 = pnand %p5470_p4, %p5464_p1 }
  0x36   : > { %5474 = shalt.err (!%p5471_p7)
}
  0x37   : > { %s6512_s29 = smov 512   ;;  %s6513_s2 = smov 32  }
  0x38   : > { %5129 = dma.hbm_to_vmem [thread:$0]  (!%p5939_p12), %s6492_s8, 8192, %s519_s21, [#allocation9], %s6512_s29, %s6512_s29, %s6513_s2  }
  0x39   : > { %s5486_s23 = scalar_lea.vmem %s548_s30, 1024  ;;  %p5494_p1 = scmp.lt.s32.totalorder %s548_s30, %s548_s30 }
  0x3a   : > { %p5487_p8 = scmp.ne.s32.totalorder %s548_s30, %s5486_s23  ;;  %p5495_p2 = scmp.lt.s32.totalorder %s5486_s23, %s5486_s23 }
  0x3c   : > { %p5489_p11 = pnand %p5487_p8, %p5945_p13  ;;  %p5496_p3 = por %p5495_p2, %p5494_p1 }
  0x3e   : > { %p5490_p0 = pneg %p5489_p11 }
  0x40   : > { %p5497_p4 = pnand %p5496_p3, %p5490_p0 }
  0x42   : > { %5500 = shalt.err (!%p5497_p4)
}
  0x43   : > { %5135 = dma.hbm_to_vmem [thread:$0]  (!%p5939_p12), %s6495_s11, 1024, %s548_s30, [#allocation12], %s6515_s25, %s6515_s25, %s6517_s20  }
  0x44   : > { %s5776_s21 = smov [#allocation14]   ;;  %s5777_s27 = smov [#allocation2]  }
  0x45   : > { %s576_s1 = sshll.u32 %s5776_s21, 4  ;;  %s476_s29 = sshll.u32 %s5777_s27, 4  ;;  %s577_s1 = int_to_ptr.vmem [resolvable:$true] %s576_s1  ;;  %s477_s29 = int_to_ptr.vmem [resolvable:$true] %s476_s29 }
  0x46   : > { %s5512_s2 = scalar_lea.vmem %s577_s1, 2048  ;;  %p5520_p0 = scmp.lt.s32.totalorder %s577_s1, %s577_s1 }
  0x47   : > { %p5513_p7 = scmp.ne.s32.totalorder %s577_s1, %s5512_s2  ;;  %p5521_p1 = scmp.lt.s32.totalorder %s5512_s2, %s5512_s2 }
  0x49   : > { %p5515_p8 = pnand %p5513_p7, %p5945_p13  ;;  %p5522_p2 = por %p5521_p1, %p5520_p0 }
  0x4b   : > { %p5516_p11 = pneg %p5515_p8 }
  0x4d   : > { %p5523_p3 = pnand %p5522_p2, %p5516_p11 }
  0x4f   : > { %5526 = shalt.err (!%p5523_p3)
}
  0x50   : > { %5141 = dma.hbm_to_vmem [thread:$0]  (!%p5939_p12), %s6498_s14, 2048, %s577_s1, [#allocation15], %s6515_s25, %s6515_s25, %s6517_s20  }
  0x51   : > { %s5538_s18 = scalar_lea.vmem %s477_s29, 8192  ;;  %p5546_p9 = scmp.lt.s32.totalorder %s477_s29, %s477_s29 }
  0x52   : > { %p5539_p4 = scmp.ne.s32.totalorder %s477_s29, %s5538_s18  ;;  %p5547_p0 = scmp.lt.s32.totalorder %s5538_s18, %s5538_s18 }
  0x54   : > { %p5541_p7 = pnand %p5539_p4, %p5945_p13  ;;  %p5548_p11 = por %p5547_p0, %p5546_p9 }
  0x56   : > { %p5542_p8 = pneg %p5541_p7 }
  0x58   : > { %p5549_p1 = pnand %p5548_p11, %p5542_p8 }
  0x5a   : > { %5552 = shalt.err (!%p5549_p1)
}
  0x5b   : > { %s6535_s2 = smov 32   ;;  %s6536_s26 = smov 512  }
  0x5c   : > { %5120 = dma.hbm_to_vmem [thread:$0]  (!%p5939_p12), %s6488_s4, 8192, %s477_s29, [#allocation3], %s6536_s26, %s6536_s26, %s6535_s2  }
  0x5d   : > { %s5778_s1 = smov [#allocation7]   ;;  %s5779_s23 = smov [#allocation10]  }
  0x5e   : > { %s505_s30 = sshll.u32 %s5778_s1, 4  ;;  %s531_s25 = sshll.u32 %s5779_s23, 4  ;;  %s506_s30 = int_to_ptr.vmem [resolvable:$true] %s505_s30  ;;  %s532_s25 = int_to_ptr.vmem [resolvable:$true] %s531_s25 }
  0x5f   : > { %s5564_s20 = scalar_lea.vmem %s506_s30, 2048  ;;  %p5572_p4 = scmp.lt.s32.totalorder %s506_s30, %s506_s30 }
  0x60   : > { %p5565_p2 = scmp.ne.s32.totalorder %s506_s30, %s5564_s20  ;;  %p5573_p7 = scmp.lt.s32.totalorder %s5564_s20, %s5564_s20 }
  0x62   : > { %p5567_p9 = pnand %p5565_p2, %p5945_p13  ;;  %p5574_p8 = por %p5573_p7, %p5572_p4 }
  0x64   : > { %p5568_p3 = pneg %p5567_p9 }
  0x66   : > { %p5575_p0 = pnand %p5574_p8, %p5568_p3 }
  0x68   : > { %5578 = shalt.err (!%p5575_p0)
}
  0x69   : > { %s6537_s18 = smov 4   ;;  %s6538_s21 = smov 64  }
  0x6a   : > { %5126 = dma.hbm_to_vmem [thread:$0]  (!%p5939_p12), %s6491_s7, 2048, %s506_s30, [#allocation6], %s6538_s21, %s6538_s21, %s6537_s18  }
  0x6b   : > { %s5590_s26 = scalar_lea.vmem %s532_s25, 4096  ;;  %p5598_p9 = scmp.lt.s32.totalorder %s532_s25, %s532_s25 }
  0x6c   : > { %p5591_p11 = scmp.ne.s32.totalorder %s532_s25, %s5590_s26  ;;  %p5599_p4 = scmp.lt.s32.totalorder %s5590_s26, %s5590_s26 }
  0x6e   : > { %p5593_p1 = pnand %p5591_p11, %p5945_p13  ;;  %p5600_p3 = por %p5599_p4, %p5598_p9 }
  0x70   : > { %p5594_p2 = pneg %p5593_p1 }
  0x72   : > { %p5601_p7 = pnand %p5600_p3, %p5594_p2 }
  0x74   : > { %5604 = shalt.err (!%p5601_p7)
}
  0x75   : > { %5132 = dma.hbm_to_vmem [thread:$0]  (!%p5939_p12), %s6493_s9, 4096, %s532_s25, [#allocation9], %s6538_s21, %s6538_s21, %s6537_s18  }
  0x76   : > { %s5780_s1 = smov [#allocation13]   ;;  %s5781_s23 = smov [#allocation16]  }
  0x77   : > { %s560_s30 = sshll.u32 %s5780_s1, 4  ;;  %s592_s29 = sshll.u32 %s5781_s23, 4  ;;  %s561_s30 = int_to_ptr.vmem [resolvable:$true] %s560_s30  ;;  %s593_s29 = int_to_ptr.vmem [resolvable:$true] %s592_s29 }
  0x78   : > { %s5616_s2 = scalar_lea.vmem %s561_s30, 1024  ;;  %p5624_p1 = scmp.lt.s32.totalorder %s561_s30, %s561_s30 }
  0x79   : > { %p5617_p8 = scmp.ne.s32.totalorder %s561_s30, %s5616_s2  ;;  %p5625_p2 = scmp.lt.s32.totalorder %s5616_s2, %s5616_s2 }
  0x7b   : > { %p5619_p0 = pnand %p5617_p8, %p5945_p13  ;;  %p5626_p9 = por %p5625_p2, %p5624_p1 }
  0x7d   : > { %p5620_p11 = pneg %p5619_p0 }
  0x7f   : > { %p5627_p4 = pnand %p5626_p9, %p5620_p11 }
  0x81   : > { %5630 = shalt.err (!%p5627_p4)
}
  0x82   : > { %5138 = dma.hbm_to_vmem [thread:$0]  (!%p5939_p12), %s6496_s12, 1024, %s561_s30, [#allocation12], %s6538_s21, %s6538_s21, %s6537_s18  }
  0x83   : > { %s5642_s20 = scalar_lea.vmem %s593_s29, 1024  ;;  %p5650_p0 = scmp.lt.s32.totalorder %s593_s29, %s593_s29 }
  0x84   : > { %p5643_p3 = scmp.ne.s32.totalorder %s593_s29, %s5642_s20  ;;  %p5651_p1 = scmp.lt.s32.totalorder %s5642_s20, %s5642_s20 }
  0x86   : > { %p5645_p7 = pnand %p5643_p3, %p5945_p13  ;;  %p5652_p11 = por %p5651_p1, %p5650_p0 }
  0x88   : > { %p5646_p8 = pneg %p5645_p7 }
  0x8a   : > { %p5653_p2 = pnand %p5652_p11, %p5646_p8 }
  0x8c   : > { %5656 = shalt.err (!%p5653_p2)
}
  0x8d   : > { %5144 = dma.hbm_to_vmem [thread:$0]  (!%p5939_p12), %s6500_s16, 1024, %s593_s29, [#allocation15], %s6538_s21, %s6538_s21, %s6537_s18  }
  0x8e   : > { %s5782_s30 = smov [#allocation17]  }
  0x8f   : > { %s605_s23 = sshll.u32 %s5782_s30, 4  ;;  %s606_s23 = int_to_ptr.vmem [resolvable:$true] %s605_s23 }
  0x90   : > { %s5668_s2 = scalar_lea.vmem %s606_s23, 1024  ;;  %p5676_p7 = scmp.lt.s32.totalorder %s606_s23, %s606_s23 }
  0x91   : > { %p5669_p9 = scmp.ne.s32.totalorder %s606_s23, %s5668_s2  ;;  %p5677_p8 = scmp.lt.s32.totalorder %s5668_s2, %s5668_s2 }
  0x93   : > { %p5671_p4 = pnand %p5669_p9, %p5945_p13  ;;  %p5678_p0 = por %p5677_p8, %p5676_p7 }
  0x95   : > { %p5672_p3 = pneg %p5671_p4 }
  0x97   : > { %p5679_p1 = pnand %p5678_p0, %p5672_p3 }
  0x99   : > { %5682 = shalt.err (!%p5679_p1)
}
  0x9a   : > { %5147 = dma.hbm_to_vmem [thread:$0]  (!%p5939_p12), %s6501_s17, 1024, %s606_s23, [#allocation18], %s6538_s21, %s6538_s21, %s6537_s18  }
  0x9b   : > { %645 = sbr.rel (%p5931_p10) target bundleno = 4527 (0x11af), region = 92  ;;  %p6539_p13 = scmp.eq.s32.totalorder (!%p5931_p10), %s5903_s0, 0 }
  0xa0   : > { %5726 = dma.done.wait (%p6539_p13), [#allocation3], 8192   ;;  %p6540_p11 = pmov %p6539_p13 }
  0xa2   : > { %5728 = vsyncadd (%p6540_p11), [#allocation3], 4294959104  ;;  %p6541_p2 = pmov %p6540_p11 }
  0xa4   : > { %5730 = dma.done.wait (%p6541_p2), [#allocation6], 6144   ;;  %p6542_p9 = pmov %p6541_p2 }
  0xa5   : > { %p6543_p4 = pmov %p6541_p2 }
  0xa6   : > { %5732 = vsyncadd (%p6542_p9), [#allocation6], 4294961152 }
  0xa7   : > { %5734 = dma.done.wait (%p6543_p4), [#allocation9], 12288   ;;  %p6544_p12 = pmov %p6541_p2 }
  0xa8   : > { %p6545_p10 = pmov %p6541_p2 }
  0xa9   : > { %5736 = vsyncadd (%p6544_p12), [#allocation9], 4294955008 }
  0xaa   : > { %5738 = dma.done.wait (%p6545_p10), [#allocation12], 2048   ;;  %p6546_p3 = pmov %p6541_p2 }
  0xab   : > { %p6547_p7 = pmov %p6541_p2 }
  0xac   : > { %5740 = vsyncadd (%p6546_p3), [#allocation12], 4294965248 }
  0xad   : > { %5742 = dma.done.wait (%p6547_p7), [#allocation15], 3072   ;;  %p6548_p8 = pmov %p6541_p2 }
  0xae   : > { %p6549_p0 = pmov %p6541_p2 }
  0xaf   : > { %5744 = vsyncadd (%p6548_p8), [#allocation15], 4294964224 }
  0xb0   : > { %5746 = dma.done.wait (%p6549_p0), [#allocation18], 1024   ;;  %p6550_p1 = pmov %p6549_p0 }
  0xb1   : > { %v5783_v0 = vmov 0.0   ;;  %vm5784_vm0 = vmmov 0   ;;  %v5222_v1 = vld [vmem:[#allocation11 + $0x38] sm:$0xff]   ;;  %v5223_v2 = vld [vmem:[#allocation11 + $0x30] sm:$0xff]   ;;  %v5224_v3 = vld [vmem:[#allocation11 + $0x28] sm:$0xff]   ;;  %s4309_s22 = sshll.u32 %s5903_s0, 1 }
  0xb2   : > { %5748 = vsyncadd (%p6550_p1), [#allocation18], 4294966272  ;;  %4835 = vmatprep.subr.bf16.mxu0 %v5783_v0  ;;  %4851 = vmatprep.mubr.msk.bf16.mxu0 %vm5784_vm0, %v5783_v0  ;;  %v5225_v4 = vld [vmem:[#allocation11 + $0x20] sm:$0xff]   ;;  %p749_p13 = scmp.lt.s32.totalorder %s4309_s22, 3  ;;  %v5226_v5 = vld [vmem:[#allocation11 + $0x18] sm:$0xff]   ;;  %p743_p11 = scmp.lt.s32.totalorder %s5903_s0, 1 }
  0xb3   : > { %4855 = vmatprep.subr.bf16.mxu1 %v5783_v0  ;;  %4871 = vmatprep.mubr.msk.bf16.mxu1 %vm5784_vm0, %v5783_v0  ;;  %v5227_v6 = vld [vmem:[#allocation11 + $0x10] sm:$0xff]   ;;  %v5228_v7 = vld [vmem:[#allocation11 + $0x8] sm:$0xff]   ;;  %s6551_s26 = sld [smem:[#allocation35_spill]]  ;;  %v5229_v8 = vld [vmem:[#allocation11] sm:$0xff]   ;;  %vm1794_vm1 = vcmask 1040384  }
  0xb4   : > { %4836 = vmatpush3.bf16.msra.mxu0 %v5222_v1  ;;  %s6566_s22 = smov (!%p749_p13, %s4309_s22), 3  ;;  %s6552_s30 = sld [smem:[#allocation36_spill]]  ;;  %v5230_v9 = vld [vmem:[#allocation7 + $0x78] sm:$0xff]   ;;  %v5232_v13 = vld [vmem:[#allocation7 + $0x70] sm:$0xff]   ;;  %v5234_v15 = vld [vmem:[#allocation7 + $0x68] sm:$0xff]  }
  0xb5   : > { %4837 = vmatprep.subr.bf16.mxu0 %v5783_v0  ;;  %s4594_s24 = sshll.u32 %s6566_s22, 3  ;;  %v5231_v11 = vld [vmem:[#allocation7 + $0x38] sm:$0xff]   ;;  %v5233_v14 = vld [vmem:[#allocation7 + $0x30] sm:$0xff]   ;;  %v5235_v16 = vld [vmem:[#allocation7 + $0x28] sm:$0xff]   ;;  %s6553_s25 = sld [smem:[#allocation34_spill]] }
  0xb6   : > { %s6089_s19 = scalar_select %p743_p11, %s5903_s0, 1  ;;  %v5236_v17 = vld [vmem:[#allocation7 + $0x60] sm:$0xff]   ;;  %v5238_v19 = vld [vmem:[#allocation7 + $0x58] sm:$0xff]   ;;  %v5240_v21 = vld [vmem:[#allocation7 + $0x50] sm:$0xff]  }
  0xb7   : > { %v5237_v18 = vld [vmem:[#allocation7 + $0x20] sm:$0xff]   ;;  %v5239_v20 = vld [vmem:[#allocation7 + $0x18] sm:$0xff]   ;;  %v5241_v22 = vld [vmem:[#allocation7 + $0x10] sm:$0xff]   ;;  %s741_s22 = sand.u32 1, %s5759_s28  }
  0xb8   : > { %4838 = vmatpush3.bf16.msra.mxu0 %v5223_v2  ;;  %v5242_v23 = vld [vmem:[#allocation7 + $0x48] sm:$0xff]   ;;  %v5244_v25 = vld [vmem:[#allocation7 + $0x40] sm:$0xff]   ;;  %v5249_v28 = vld [vmem:[#allocation13 + $0x38] sm:$0xff]  }
  0xb9   : > { %4839 = vmatprep.subr.bf16.mxu0 %v5783_v0  ;;  %s6095_s20 = scalar_lea.vmem %s6551_s26, %s4594_s24  ;;  %v5243_v24 = vld [vmem:[#allocation7 + $0x8] sm:$0xff]   ;;  %v5245_v26 = vld [vmem:[#allocation7] sm:$0xff]   ;;  %4856 = vmatpush3.bf16.msra.mxu1 %v5249_v28  ;;  %v5250_v29 = vld [vmem:[#allocation13 + $0x30] sm:$0xff]   ;;  %s4590_s26 = sshll.u32 %s5903_s0, 4 }
  0xba   : > { %s757_s23 = scalar_lea.vmem %s6552_s30, %s6089_s19  ;;  %v5248_v12 = vld [vmem:[%s6095_s20 + $0x4] ss:$8 sps:$4 sm:$0xff]   ;;  %v5246_v27 = vld [vmem:[%s6095_s20] ss:$8 sps:$4 sm:$0xff]   ;;  %4857 = vmatprep.subr.bf16.mxu1 %v5783_v0  ;;  %v5253_v41 = vld [vmem:[#allocation13 + $0x18] sm:$0xff]   ;;  %s4593_s30 = sshll.u32 %s6089_s19, 3 }
  0xbb   : > { %v791_v10 = vld [vmem:[%s757_s23] sm:$0x1]  ;;  %v5251_v30 = vld [vmem:[#allocation13 + $0x28] sm:$0xff]   ;;  %v5254_v42 = vld [vmem:[#allocation13 + $0x10] sm:$0xff]   ;;  %s747_s29 = scalar_lea.vmem %s6553_s25, %s4593_s30  ;;  %s742_s19 = scalar_lea.vmem [#allocation19], %s741_s22 }
  0xbc   : > { %4840 = vmatpush3.bf16.msra.mxu0 %v5224_v3  ;;  %v1369_v31 = vld [vmem:[#allocation8 + $0x1c0] sm:$0xf]  ;;  %v6109_v37 = vld [vmem:[#allocation8 + $0x1c4] sm:$0xff]  ;;  %s4109_s20 = sshll.u32 %s742_s19, 4  ;;  %s6555_s30 = sld [smem:[#allocation37_spill]]  ;;  %s6445_s20 = int_to_ptr.vmem [resolvable:$true] %s4109_s20 }
  0xbd   : > { %4841 = vmatprep.subr.bf16.mxu0 %v5783_v0  ;;  %4858 = vmatpush3.bf16.msra.mxu1 %v5250_v29  ;;  %v5252_v32 = vld [vmem:[#allocation13 + $0x20] sm:$0xff]   ;;  %v5255_v43 = vld [vmem:[#allocation13 + $0x8] sm:$0xff]   ;;  %s4097_s25 = scalar_lea.sflag [#allocation4], %s741_s22  ;;  %s5683_s0 = scalar_lea.vmem %s6445_s20, 16 }
  0xbe   : > { %4859 = vmatprep.subr.bf16.mxu1 %v5783_v0  ;;  %v1370_v33 = vld [vmem:[#allocation8 + $0x1e0] sm:$0xf]  ;;  %v6111_v38 = vld [vmem:[#allocation8 + $0x1e4] sm:$0xff]  ;;  %p5684_p2 = scmp.ne.s32.totalorder %s6445_s20, %s5683_s0 }
  0xbf   : > { %v1367_v34 = vld [vmem:[#allocation8 + $0x180] sm:$0xf]  ;;  %v4370_v35 = vcombine.low %v1369_v31, %v1370_v33  ;;  %v4361_v39 = vcombine.low %v6109_v37, %v6111_v38  ;;  %v4362_v45 = vcombine.high %v6109_v37, %v6111_v38  ;;  %v1211_v28 = vld [vmem:[#allocation8 + $0x124] sm:$0xff] }
  0xc0   : > { %4842 = vmatpush3.bf16.msra.mxu0 %v5225_v4  ;;  %v1368_v36 = vld [vmem:[#allocation8 + $0x1a0] sm:$0xf]  ;;  %v1209_v33 = vld [vmem:[#allocation8 + $0xe4] sm:$0xff]  ;;  %p5685_p9 = pnand %p5684_p2, %p5920_p5 }
  0xc1   : > { %4843 = vmatprep.subr.bf16.mxu0 %v5783_v0  ;;  %4860 = vmatpush3.bf16.msra.mxu1 %v5251_v30  ;;  %v4369_v40 = vcombine.low %v1367_v34, %v1368_v36  ;;  %v5256_v44 = vld [vmem:[#allocation13] sm:$0xff]  }
  0xc2   : > { %4861 = vmatprep.subr.bf16.mxu1 %v5783_v0  ;;  %v1365_v46 = vld [vmem:[#allocation8 + $0x140] sm:$0xf]  ;;  %v1206_v37 = vld [vmem:[#allocation8 + $0x84] sm:$0xff]  ;;  %s6556_s23 = smov %s6555_s30  ;;  %s6443_s2 = scalar_lea.hbm %s6555_s30, %s4590_s26 }
  0xc3   : > { %v1366_v47 = vld [vmem:[#allocation8 + $0x160] sm:$0xf]  ;;  %v1207_v38 = vld [vmem:[#allocation8 + $0xa4] sm:$0xff]  ;;  %p5686_p4 = pneg %p5685_p9 }
  0xc4   : > { %4844 = vmatpush3.bf16.msra.mxu0 %v5226_v5  ;;  %v4368_v48 = vcombine.low %v1365_v46, %v1366_v47  ;;  %v1363_v49 = vld [vmem:[#allocation8 + $0x100] sm:$0xf]  ;;  %v1202_v47 = vld [vmem:[#allocation8 + $0x4] sm:$0xff] }
  0xc5   : > { %4845 = vmatprep.subr.bf16.mxu0 %v5783_v0  ;;  %4862 = vmatpush3.bf16.msra.mxu1 %v5252_v32  ;;  %v1364_v50 = vld [vmem:[#allocation8 + $0x120] sm:$0xf]  ;;  %v1208_v32 = vld [vmem:[#allocation8 + $0xc4] sm:$0xff] }
  0xc6   : > { %4863 = vmatprep.subr.bf16.mxu1 %v5783_v0  ;;  %v4367_v51 = vcombine.low %v1363_v49, %v1364_v50  ;;  %v1361_v52 = vld [vmem:[#allocation8 + $0xc0] sm:$0xf] }
  0xc7   : > { %v1362_v53 = vld [vmem:[#allocation8 + $0xe0] sm:$0xf] }
  0xc8   : > { %4846 = vmatpush3.bf16.msra.mxu0 %v5227_v6  ;;  %v4366_v54 = vcombine.low %v1361_v52, %v1362_v53  ;;  %v1359_v55 = vld [vmem:[#allocation8 + $0x80] sm:$0xf] }
  0xc9   : > { %4847 = vmatprep.subr.bf16.mxu0 %v5783_v0  ;;  %4864 = vmatpush3.bf16.msra.mxu1 %v5253_v41  ;;  %v1360_v56 = vld [vmem:[#allocation8 + $0xa0] sm:$0xf] }
  0xca   : > { %4865 = vmatprep.subr.bf16.mxu1 %v5783_v0  ;;  %v4365_v57 = vcombine.low %v1359_v55, %v1360_v56  ;;  %v1357_v58 = vld [vmem:[#allocation8 + $0x40] sm:$0xf] }
  0xcb   : > { %v1358_v59 = vld [vmem:[#allocation8 + $0x60] sm:$0xf] }
  0xcc   : > { %4848 = vmatpush3.bf16.msra.mxu0 %v5228_v7  ;;  %v4364_v60 = vcombine.low %v1357_v58, %v1358_v59  ;;  %v1355_v61 = vld [vmem:[#allocation8] sm:$0xf]  ;;  %v5257_v58 = vld [vmem:[#allocation16 + $0x38] sm:$0xff]   ;;  %v5258_v59 = vld [vmem:[#allocation16 + $0x30] sm:$0xff]  }
  0xcd   : > { %4849 = vmatprep.subr.bf16.mxu0 %v5783_v0  ;;  %4866 = vmatpush3.bf16.msra.mxu1 %v5254_v42  ;;  %v1356_v62 = vld [vmem:[#allocation8 + $0x20] sm:$0xf]  ;;  %v1204_v42 = vld [vmem:[#allocation8 + $0x44] sm:$0xff] }
  0xce   : > { %4867 = vmatprep.subr.bf16.mxu1 %v5783_v0  ;;  %v4363_v63 = vcombine.low %v1355_v61, %v1356_v62  ;;  %v6132_v1 = vld [vmem:[%s6494_s10 + $0x1] sm:$0x1]  ;;  %v808_v3 = vld [vmem:[%s6497_s13] sm:$0x1]  ;;  %v5261_v62 = vld [vmem:[#allocation16 + $0x18] sm:$0xff]  }
  0xcf   : > { %v1371_v2 = vpack.c.bf16 %v6132_v1, %v6132_v1  ;;  %v4328_v53 = vld [vmem:[%s6494_s10] ss:$0 sm:$0xff] }
  0xd0   : > { %4850 = vmatpush3.bf16.msra.mxu0 %v5229_v8  ;;  %v5260_v61 = vld [vmem:[#allocation16 + $0x20] sm:$0xff]  }
  0xd1   : > { %4613 = vmatprep.subr.bf16.mxu0 %v5230_v9  ;;  %4868 = vmatpush3.bf16.msra.mxu1 %v5255_v43  ;;  %v1205_v43 = vld [vmem:[#allocation8 + $0x64] sm:$0xff] }
  0xd2   : > { %4869 = vmatprep.subr.bf16.mxu1 %v5783_v0  ;;  %v4349_v49 = vcombine.low %v1204_v42, %v1205_v43 }
  0xd3   : > { %4852 = vmatmul.mubr.bf16.vlgmr.msra.gmra.mxu0 %v791_v10 }
  0xd4   : > { %4614 = vmatpush3.bf16.msra.mxu0 %v5231_v11  ;;  %1192 = vmatprep.mubr.bf16.mxu0 %v5248_v12 }
  0xd5   : > { %4615 = vmatprep.subr.bf16.mxu0 %v5232_v13  ;;  %4870 = vmatpush3.bf16.msra.mxu1 %v5256_v44  ;;  %v4351_v44 = vcombine.low %v1206_v37, %v1207_v38 }
  0xd6   : > { %1310 = vmatprep.subr.bf16.mxu1 %v4362_v45  ;;  %v4350_v45 = vcombine.high %v1204_v42, %v1205_v43  ;;  %v5271_v42 = vld [vmem:[#allocation17 + $0x8] sm:$0xff]   ;;  %v5272_v43 = vld [vmem:[#allocation17] sm:$0xff]  }
  0xd8   : > { %4616 = vmatpush3.bf16.msra.mxu0 %v5233_v14 }
  0xd9   : > { %4617 = vmatprep.subr.bf16.mxu0 %v5234_v15 }
  0xdc   : > { %4618 = vmatpush3.bf16.msra.mxu0 %v5235_v16 }
  0xdd   : > { %4619 = vmatprep.subr.bf16.mxu0 %v5236_v17  ;;  %v1214_v17 = vld [vmem:[#allocation8 + $0x184] sm:$0xff] }
  0xe0   : > { %4620 = vmatpush3.bf16.msra.mxu0 %v5237_v18  ;;  %v1215_v18 = vld [vmem:[#allocation8 + $0x1a4] sm:$0xff] }
  0xe1   : > { %4621 = vmatprep.subr.bf16.mxu0 %v5238_v19 }
  0xe4   : > { %4622 = vmatpush3.bf16.msra.mxu0 %v5239_v20 }
  0xe5   : > { %4623 = vmatprep.subr.bf16.mxu0 %v5240_v21  ;;  %v4360_v21 = vcombine.high %v1214_v17, %v1215_v18 }
  0xe8   : > { %4624 = vmatpush3.bf16.msra.mxu0 %v5241_v22  ;;  %v1212_v22 = vld [vmem:[#allocation8 + $0x144] sm:$0xff] }
  0xe9   : > { %4625 = vmatprep.subr.bf16.mxu0 %v5242_v23  ;;  %v1213_v23 = vld [vmem:[#allocation8 + $0x164] sm:$0xff] }
  0xea   : > { %v4357_v29 = vcombine.low %v1212_v22, %v1213_v23 }
  0xec   : > { %4626 = vmatpush3.bf16.msra.mxu0 %v5243_v24  ;;  %v4359_v24 = vcombine.low %v1214_v17, %v1215_v18 }
  0xed   : > { %4627 = vmatprep.subr.bf16.mxu0 %v5244_v25  ;;  %v5785_v25 = vmov 0  }
  0xf0   : > { %4628 = vmatpush3.bf16.msra.mxu0 %v5245_v26  ;;  %v4358_v26 = vcombine.high %v1212_v22, %v1213_v23 }
  0xf1   : > { %4875 = vmatprep.subr.bf16.mxu0 %v5783_v0 }
  0xf3   : > { %1193 = vmatmul.mubr.bf16.vlgmr.msra.gmra.mxu0 %v5246_v27  ;;  %v1210_v27 = vld [vmem:[#allocation8 + $0x104] sm:$0xff] }
  0xf4   : > { %4891 = vmatprep.mubr.msk.bf16.mxu0 %vm5784_vm0, %v5783_v0  ;;  %4876 = vmatpush3.bf16.msra.mxu0 %v4370_v35  ;;  %v4356_v30 = vcombine.high %v1210_v27, %v1211_v28  ;;  %v4355_v34 = vcombine.low %v1210_v27, %v1211_v28  ;;  %v4354_v35 = vcombine.high %v1208_v32, %v1209_v33 }
  0xf5   : > { %4877 = vmatprep.subr.bf16.mxu0 %v5783_v0 }
  0xf8   : > { %4878 = vmatpush3.bf16.msra.mxu0 %v4369_v40  ;;  %v4352_v40 = vcombine.high %v1206_v37, %v1207_v38  ;;  %v5266_v37 = vld [vmem:[#allocation17 + $0x30] sm:$0xff]   ;;  %v5267_v38 = vld [vmem:[#allocation17 + $0x28] sm:$0xff]  }
  0xf9   : > { %4879 = vmatprep.subr.bf16.mxu0 %v5783_v0 }
  0xfc   : > { %4880 = vmatpush3.bf16.msra.mxu0 %v4368_v48  ;;  %v1203_v48 = vld [vmem:[#allocation8 + $0x24] sm:$0xff] }
  0xfd   : > { %4881 = vmatprep.subr.bf16.mxu0 %v5783_v0  ;;  %v4348_v52 = vcombine.high %v1202_v47, %v1203_v48 }
 0x100   : > { %4882 = vmatpush3.bf16.msra.mxu0 %v4367_v51 }
 0x101   : > { %4883 = vmatprep.subr.bf16.mxu0 %v5783_v0 }
 0x104   : > { %4884 = vmatpush3.bf16.msra.mxu0 %v4366_v54  ;;  %v4347_v54 = vcombine.low %v1202_v47, %v1203_v48  ;;  %v1698_v48 = vld [vmem:[#allocation8 + $0x1ac] sm:$0xf] }
 0x105   : > { %4885 = vmatprep.subr.bf16.mxu0 %v5783_v0 }
 0x108   : > { %4886 = vmatpush3.bf16.msra.mxu0 %v4365_v57 }
 0x109   : > { %4887 = vmatprep.subr.bf16.mxu0 %v5783_v0 }
 0x10c   : > { %4888 = vmatpush3.bf16.msra.mxu0 %v4364_v60  ;;  %v5259_v60 = vld [vmem:[#allocation16 + $0x28] sm:$0xff]  }
 0x10d   : > { %4889 = vmatprep.subr.bf16.mxu0 %v5783_v0 }
 0x110   : > { %4890 = vmatpush3.bf16.msra.mxu0 %v4363_v63 }
 0x111   : > { %4915 = vmatprep.subr.bf16.mxu0 %v5783_v0 }
 0x113   : > { %4892 = vmatmul.mubr.bf16.vlgmr.msra.gmra.mxu0 %v1371_v2 }
 0x114   : > { %4931 = vmatprep.mubr.msk.bf16.mxu0 %vm5784_vm0, %v5783_v0 }
 0x193   : > { %v891_v4 = vpop.f32.mrf.mxu0 }
 0x194   : > { %v892_v5 = vadd.f32 %v891_v4, %v808_v3  ;;  %v5262_v4 = vld [vmem:[#allocation16 + $0x10] sm:$0xff]  }
 0x195   : > { %v4853_v6 = vpop.f32.mrf.mxu0 }
 0x196   : > { %v898_v7 = vmul.f32 0.044715, %v892_v5  ;;  %v897_v15 = vmul.f32 0.5, %v892_v5  ;;  %v5263_v6 = vld [vmem:[#allocation16 + $0x8] sm:$0xff]  }
 0x197   : > { %v894_v8 = vpop.f32.mrf.mxu0 }
 0x198   : > { %v899_v9 = vmul.f32 %v898_v7, %v892_v5  ;;  %v5264_v7 = vld [vmem:[#allocation16] sm:$0xff]  }
 0x199   : > { %v4854_v10 = vpop.f32.mrf.mxu0 }
 0x19a   : > { %v900_v11 = vmul.f32 %v899_v9, %v892_v5 }
 0x19c   : > { %v901_v12 = vadd.f32 %v900_v11, %v892_v5 }
 0x19e   : > { %v902_v13 = vmul.f32 0.7978846, %v901_v12  ;;  %v1220_v12 = vlaneseq }
 0x1a0   : > { %5371 = vtanh.f32 %v902_v13  ;;  %v1372_v13 = vld [vmem:[%s6494_s10 + $0x2] sm:$0x1] }
 0x1ad   : > { %v5372_v14 = vpop.eup %5371 }
 0x1ae   : > { %v904_v16 = vadd.f32 1.0, %v5372_v14  ;;  %v6165_v14 = vshrl.u32 %v1220_v12, 7 }
 0x1b0   : > { %v905_v19 = vmul.f32 %v904_v16, %v897_v15  ;;  %v6168_v16 = vsub.s32 1, %v6165_v14  ;;  %v6171_v17 = vsub.s32 0, %v6165_v14 }
 0x1b2   : > { %v922_v20 = vpack.c.bf16 %v905_v19, %v905_v19  ;;  %v1218_v19 = vld [vmem:[%s6494_s10 + $0x3] sm:$0x3] }
 0x1b3   : > { %v4629_v31 = vpop.f32.mrf.mxu0  ;;  %v1223_v23 = vrot.slane %v1218_v19, %v6171_v17 }
 0x1b4   : > { %4872 = vmatmul.mubr.bf16.vlgmr.msra.gmra.mxu1 %v922_v20  ;;  %v1227_v20 = vrot.slane %v1218_v19, %v6168_v16 }
 0x1b5   : > { %1311 = vmatpush1.bf16.msra.mxu1 %v4361_v39  ;;  %1342 = vmatprep.mubr.bf16.mxu1 %v5785_v25  ;;  %v4630_v36 = vpop.f32.mrf.mxu0  ;;  %v4353_v39 = vcombine.low %v1208_v32, %v1209_v33 }
 0x1b6   : > { %1312 = vmatprep.subr.bf16.mxu1 %v4360_v21  ;;  %v4631_v50 = vadd.f32 %v4630_v36, %v4629_v31  ;;  %v5265_v36 = vld [vmem:[#allocation17 + $0x38] sm:$0xff]  }
 0x1b7   : > { %v4632_v41 = vpop.f32.mrf.mxu0  ;;  %4916 = vmatpush3.bf16.msra.mxu0 %v5265_v36  ;;  %v1687_v36 = vld [vmem:[#allocation8 + $0x4c] sm:$0xf] }
 0x1b8   : > { %v1195_v55 = vadd.f32 %v4631_v50, %v4328_v53  ;;  %4917 = vmatprep.subr.bf16.mxu0 %v5783_v0 }
 0x1b9   : > { %1313 = vmatpush1.bf16.msra.mxu1 %v4359_v24  ;;  %v4633_v46 = vpop.f32.mrf.mxu0 }
 0x1ba   : > { %1314 = vmatprep.subr.bf16.mxu1 %v4358_v26  ;;  %v4634_v51 = vadd.f32 %v4633_v46, %v4632_v41  ;;  %v5270_v41 = vld [vmem:[#allocation17 + $0x10] sm:$0xff]   ;;  %v1697_v46 = vld [vmem:[#allocation8 + $0x18c] sm:$0xf] }
 0x1bb   : > { %4918 = vmatpush3.bf16.msra.mxu0 %v5266_v37  ;;  %v1688_v37 = vld [vmem:[#allocation8 + $0x6c] sm:$0xf] }
 0x1bc   : > { %v1198_v56 = vadd.f32 %v4634_v51, %v4328_v53  ;;  %4919 = vmatprep.subr.bf16.mxu0 %v5783_v0 }
 0x1bd   : > { %1315 = vmatpush1.bf16.msra.mxu1 %v4357_v29 }
 0x1be   : > { %1316 = vmatprep.subr.bf16.mxu1 %v4356_v30  ;;  %v1201_v57 = vpack.c.bf16 %v1198_v56, %v1195_v55 }
 0x1bf   : > { %4920 = vmatpush3.bf16.msra.mxu0 %v5267_v38  ;;  %v4388_v38 = vcombine.low %v1687_v36, %v1688_v37  ;;  %v1827_v37 = vld [vmem:[#allocation8 + $0x110] sm:$0xff] }
 0x1c0   : > { %4921 = vmatprep.subr.bf16.mxu0 %v5783_v0 }
 0x1c1   : > { %1317 = vmatpush1.bf16.msra.mxu1 %v4355_v34 }
 0x1c2   : > { %1318 = vmatprep.subr.bf16.mxu1 %v4354_v35 }
 0x1c5   : > { %1319 = vmatpush1.bf16.msra.mxu1 %v4353_v39  ;;  %v5268_v39 = vld [vmem:[#allocation17 + $0x20] sm:$0xff]  }
 0x1c6   : > { %1320 = vmatprep.subr.bf16.mxu1 %v4352_v40  ;;  %4922 = vmatpush3.bf16.msra.mxu0 %v5268_v39  ;;  %v5269_v40 = vld [vmem:[#allocation17 + $0x18] sm:$0xff]   ;;  %v1685_v39 = vld [vmem:[#allocation8 + $0xc] sm:$0xf] }
 0x1c7   : > { %4923 = vmatprep.subr.bf16.mxu0 %v5783_v0 }
 0x1c9   : > { %1321 = vmatpush1.bf16.msra.mxu1 %v4351_v44  ;;  %v1699_v44 = vld [vmem:[#allocation8 + $0x1cc] sm:$0xf] }
 0x1ca   : > { %1322 = vmatprep.subr.bf16.mxu1 %v4350_v45  ;;  %4924 = vmatpush3.bf16.msra.mxu0 %v5269_v40  ;;  %v1700_v45 = vld [vmem:[#allocation8 + $0x1ec] sm:$0xf] }
 0x1cb   : > { %4925 = vmatprep.subr.bf16.mxu0 %v5783_v0  ;;  %v4394_v47 = vcombine.low %v1699_v44, %v1700_v45  ;;  %v1686_v40 = vld [vmem:[#allocation8 + $0x2c] sm:$0xf] }
 0x1cd   : > { %1323 = vmatpush1.bf16.msra.mxu1 %v4349_v49  ;;  %v4393_v49 = vcombine.low %v1697_v46, %v1698_v48 }
 0x1ce   : > { %1324 = vmatprep.subr.bf16.mxu1 %v4348_v52  ;;  %4926 = vmatpush3.bf16.msra.mxu0 %v5270_v41  ;;  %v4387_v41 = vcombine.low %v1685_v39, %v1686_v40  ;;  %v1828_v39 = vld [vmem:[#allocation8 + $0x118] sm:$0xff] }
 0x1cf   : > { %4927 = vmatprep.subr.bf16.mxu0 %v5783_v0 }
 0x1d1   : > { %1325 = vmatpush1.bf16.msra.mxu1 %v4347_v54 }
 0x1d2   : > { %4895 = vmatprep.subr.bf16.mxu1 %v5783_v0  ;;  %4928 = vmatpush3.bf16.msra.mxu0 %v5271_v42 }
 0x1d3   : > { %v1455_v63 = vpop.f32.mrf.mxu0  ;;  %4929 = vmatprep.subr.bf16.mxu0 %v5783_v0 }
 0x1d4   : > { %1343 = vmatmul.mubr.bf16.vlgmr.msra.gmra.mxu1 %v1201_v57  ;;  %v1456_v15 = vadd.f32 %v1455_v63, %v1372_v13 }
 0x1d5   : > { %4911 = vmatprep.mubr.msk.bf16.mxu1 %vm5784_vm0, %v5783_v0  ;;  %4896 = vmatpush3.bf16.msra.mxu1 %v5257_v58  ;;  %v4893_v2 = vpop.f32.mrf.mxu0 }
 0x1d6   : > { %4897 = vmatprep.subr.bf16.mxu1 %v5783_v0  ;;  %v1461_v18 = vpack.c.bf16 %v1456_v15, %v1456_v15  ;;  %4930 = vmatpush3.bf16.msra.mxu0 %v5272_v43 }
 0x1d7   : > { %v1458_v3 = vpop.f32.mrf.mxu0 }
 0x1d8   : > { %v1463_v22 = vpack.i.b16 %v1461_v18, %v1461_v18 }
 0x1d9   : > { %4898 = vmatpush3.bf16.msra.mxu1 %v5258_v59  ;;  %v4894_v5 = vpop.f32.mrf.mxu0 }
 0x1da   : > { %4899 = vmatprep.subr.bf16.mxu1 %v5783_v0  ;;  %v1468_v28 = vrot.slane %v1463_v22, %v6171_v17  ;;  %v1695_v22 = vld [vmem:[#allocation8 + $0x14c] sm:$0xf] }
 0x1dd   : > { %4900 = vmatpush3.bf16.msra.mxu1 %v5259_v60 }
 0x1de   : > { %4901 = vmatprep.subr.bf16.mxu1 %v5783_v0 }
 0x1e1   : > { %4902 = vmatpush3.bf16.msra.mxu1 %v5260_v61 }
 0x1e2   : > { %4903 = vmatprep.subr.bf16.mxu1 %v5783_v0 }
 0x1e5   : > { %4904 = vmatpush3.bf16.msra.mxu1 %v5261_v62 }
 0x1e6   : > { %4905 = vmatprep.subr.bf16.mxu1 %v5783_v0 }
 0x1e9   : > { %4906 = vmatpush3.bf16.msra.mxu1 %v5262_v4 }
 0x1ea   : > { %4907 = vmatprep.subr.bf16.mxu1 %v5783_v0 }
 0x1ed   : > { %4908 = vmatpush3.bf16.msra.mxu1 %v5263_v6 }
 0x1ee   : > { %4909 = vmatprep.subr.bf16.mxu1 %v5783_v0 }
 0x1f1   : > { %4910 = vmatpush3.bf16.msra.mxu1 %v5264_v7 }
 0x1f2   : > { %4935 = vmatprep.subr.bf16.mxu1 %v5783_v0 }
 0x274   : > { %v6160_v8 = vpop.f32.mrf.mxu1 }
 0x276   : > { %v4873_v9 = vpop.f32.mrf.mxu1 }
 0x278   : > { %v1009_v10 = vpop.f32.mrf.mxu1 }
 0x27a   : > { %v4874_v11 = vpop.f32.mrf.mxu1 }
 0x294   : > { %v1344_v21 = vpop.f32.mrf.mxu1 }
 0x295   : > { %v1345_v29 = vadd.f32 %v1344_v21, %v1223_v23 }
 0x296   : > { %v1346_v24 = vpop.f32.mrf.mxu1 }
 0x297   : > { %v1347_v26 = vadd.f32 %v1346_v24, %v1227_v20 }
 0x298   : > { %v1348_v27 = vpop.f32.mrf.mxu1 }
 0x299   : > { %v1349_v30 = vadd.f32 %v1348_v27, %v1223_v23  ;;  %v1696_v23 = vld [vmem:[#allocation8 + $0x16c] sm:$0xf] }
 0x29a   : > { %v1350_v31 = vpop.f32.mrf.mxu1  ;;  %v4392_v24 = vcombine.low %v1695_v22, %v1696_v23  ;;  %v1694_v27 = vld [vmem:[#allocation8 + $0x12c] sm:$0xf] }
 0x29b   : > { %v1353_v32 = vpack.c.bf16 %v1349_v30, %v1345_v29  ;;  %v1351_v33 = vadd.f32 %v1350_v31, %v1227_v20  ;;  %v1691_v29 = vld [vmem:[#allocation8 + $0xcc] sm:$0xf] }
 0x29c   : > { %v1692_v30 = vld [vmem:[#allocation8 + $0xec] sm:$0xf] }
 0x29d   : > { %v1469_v34 = vmul.bf16 %v1468_v28, %v1353_v32  ;;  %v6179_v35 = vpack.c.bf16 %v1351_v33, %v1347_v26  ;;  %v1693_v26 = vld [vmem:[#allocation8 + $0x10c] sm:$0xf]  ;;  %v4390_v31 = vcombine.low %v1691_v29, %v1692_v30  ;;  %v1833_v29 = vld [vmem:[#allocation8 + $0x170] sm:$0xff]  ;;  %v1832_v30 = vld [vmem:[#allocation8 + $0x158] sm:$0xff] }
 0x29e   : > { %v4391_v28 = vcombine.low %v1693_v26, %v1694_v27  ;;  %v1689_v32 = vld [vmem:[#allocation8 + $0x8c] sm:$0xf] }
 0x29f   : > { %4912 = vmatmul.mubr.bf16.vlgmr.msra.gmra.mxu1 %v1469_v34  ;;  %v1690_v33 = vld [vmem:[#allocation8 + $0xac] sm:$0xf]  ;;  %v1674_v44 = vunpack.c.l.bf16 %v6179_v35  ;;  %v1675_v45 = vunpack.c.h.bf16 %v6179_v35 }
 0x2a0   : > { %4951 = vmatprep.mubr.msk.bf16.mxu1 %vm5784_vm0, %v5783_v0  ;;  %4936 = vmatpush3.bf16.msra.mxu1 %v4394_v47  ;;  %v4389_v34 = vcombine.low %v1689_v32, %v1690_v33  ;;  %v1834_v32 = vld [vmem:[#allocation8 + $0x178] sm:$0xff] }
 0x2a1   : > { %4937 = vmatprep.subr.bf16.mxu1 %v5783_v0  ;;  %v4418_v36 = vcombine.high %v1832_v30, %v1834_v32 }
 0x2a4   : > { %4938 = vmatpush3.bf16.msra.mxu1 %v4393_v49 }
 0x2a5   : > { %4939 = vmatprep.subr.bf16.mxu1 %v5783_v0 }
 0x2a8   : > { %4940 = vmatpush3.bf16.msra.mxu1 %v4392_v24 }
 0x2a9   : > { %4941 = vmatprep.subr.bf16.mxu1 %v5783_v0 }
 0x2ac   : > { %4942 = vmatpush3.bf16.msra.mxu1 %v4391_v28  ;;  %v1831_v28 = vld [vmem:[#allocation8 + $0x150] sm:$0xff] }
 0x2ad   : > { %4943 = vmatprep.subr.bf16.mxu1 %v5783_v0  ;;  %v4415_v33 = vcombine.low %v1831_v28, %v1833_v29 }
 0x2b0   : > { %4944 = vmatpush3.bf16.msra.mxu1 %v4390_v31  ;;  %v4416_v31 = vcombine.high %v1831_v28, %v1833_v29  ;;  %v5273_v29 = vld [vmem:[#allocation10 + $0x78] sm:$0xff]  }
 0x2b1   : > { %4945 = vmatprep.subr.bf16.mxu1 %v5783_v0 }
 0x2b4   : > { %4946 = vmatpush3.bf16.msra.mxu1 %v4389_v34  ;;  %v4417_v34 = vcombine.low %v1832_v30, %v1834_v32  ;;  %v5274_v30 = vld [vmem:[#allocation10 + $0xf8] sm:$0xff]  }
 0x2b5   : > { %4947 = vmatprep.subr.bf16.mxu1 %v5783_v0  ;;  %v5276_v32 = vld [vmem:[#allocation10 + $0xb8] sm:$0xff]  }
 0x2b8   : > { %4948 = vmatpush3.bf16.msra.mxu1 %v4388_v38  ;;  %v1829_v38 = vld [vmem:[#allocation8 + $0x130] sm:$0xff] }
 0x2b9   : > { %4949 = vmatprep.subr.bf16.mxu1 %v5783_v0  ;;  %v4411_v40 = vcombine.low %v1827_v37, %v1829_v38 }
 0x2bc   : > { %4950 = vmatpush3.bf16.msra.mxu1 %v4387_v41  ;;  %v4412_v41 = vcombine.high %v1827_v37, %v1829_v38  ;;  %v5281_v37 = vld [vmem:[#allocation10 + $0x68] sm:$0xff]  }
 0x2bd   : > { %v5282_v38 = vld [vmem:[#allocation10 + $0xe8] sm:$0xff]  }
 0x35f   : > { %v1552_v50 = vpop.f32.mrf.mxu1 }
 0x360   : > { %v1559_v53 = vmul.f32 0.125, %v1552_v50 }
 0x361   : > { %v4913_v51 = vpop.f32.mrf.mxu1 }
 0x363   : > { %v1555_v52 = vpop.f32.mrf.mxu1 }
 0x364   : > { %v1560_v54 = vmul.f32 0.125, %v1555_v52 }
 0x365   : > { %v4914_v55 = vpop.f32.mrf.mxu1 }
 0x366   : > { %v1561_v56 = vmax.f32 %v1559_v53, %v1560_v54 }
 0x368   : > { %v1562_v57 = vrot.slane %v1561_v56, 4 }
 0x36a   : > { %v1563_v58 = vmax.f32 %v1561_v56, %v1562_v57 }
 0x36c   : > { %v1564_v59 = vrot.slane %v1563_v58, 2 }
 0x36e   : > { %v1565_v60 = vmax.f32 %v1563_v58, %v1564_v59  ;;  %v1702_v58 = vld [vmem:[%s6494_s10 + $0x5] sm:$0x1] }
 0x370   : > { %v1566_v61 = vrot.slane %v1565_v60, 1 }
 0x372   : > { %v1567_v62 = vmax.f32 %v1565_v60, %v1566_v61 }
 0x374   : > { %v1568_v63 = vsub.f32 %v1559_v53, %v1567_v62  ;;  %v1569_v2 = vsub.f32 %v1560_v54, %v1567_v62 }
 0x376   : > { %v1570_v3 = vmul.f32 1.442695, %v1568_v63  ;;  %v1572_v4 = vmul.f32 1.442695, %v1569_v2 }
 0x378   : > { %5373 = vpow2.f32 %v1570_v3  ;;  %v1839_v3 = vld [vmem:[#allocation8 + $0x1d0] sm:$0xff] }
 0x379   : > { %5375 = vpow2.f32 %v1572_v4  ;;  %v1841_v4 = vld [vmem:[#allocation8 + $0x1f0] sm:$0xff] }
 0x385   : > { %v5374_v5 = vpop.eup %5373 }
 0x386   : > { %v5376_v6 = vpop.eup %5375 }
 0x387   : > { %v1574_v7 = vadd.f32 %v5376_v6, %v5374_v5 }
 0x389   : > { %v1575_v9 = vrot.slane %v1574_v7, 4 }
 0x38b   : > { %v1576_v10 = vadd.f32 %v1575_v9, %v1574_v7  ;;  %v4424_v7 = vcombine.high %v1839_v3, %v1841_v4  ;;  %v1842_v9 = vld [vmem:[#allocation8 + $0x1f8] sm:$0xff] }
 0x38d   : > { %v1577_v11 = vrot.slane %v1576_v10, 2  ;;  %2026 = vmatprep.subr.bf16.mxu0 %v4424_v7  ;;  %v1814_v7 = vld [vmem:[#allocation8 + $0x38] sm:$0xff] }
 0x38f   : > { %v1578_v12 = vadd.f32 %v1577_v11, %v1576_v10  ;;  %v1835_v10 = vld [vmem:[#allocation8 + $0x190] sm:$0xff] }
 0x390   : > { %v1837_v11 = vld [vmem:[#allocation8 + $0x1b0] sm:$0xff] }
 0x391   : > { %v1579_v13 = vrot.slane %v1578_v12, 1 }
 0x393   : > { %v1580_v15 = vadd.f32 %v1579_v13, %v1578_v12 }
 0x395   : > { %5377 = vrcp.f32 %v1580_v15  ;;  %v4420_v15 = vcombine.high %v1835_v10, %v1837_v11 }
 0x3a2   : > { %v5378_v18 = vpop.eup %5377 }
 0x3a3   : > { %v1582_v19 = vmul.f32 %v5378_v18, %v5374_v5  ;;  %v1583_v20 = vmul.f32 %v5378_v18, %v5376_v6  ;;  %v1840_v5 = vld [vmem:[#allocation8 + $0x1d8] sm:$0xff]  ;;  %v4423_v6 = vcombine.low %v1839_v3, %v1841_v4  ;;  %v1811_v4 = vld [vmem:[#allocation8 + $0x10] sm:$0xff] }
 0x3a4   : > { %v4425_v12 = vcombine.low %v1840_v5, %v1842_v9  ;;  %v4426_v13 = vcombine.high %v1840_v5, %v1842_v9  ;;  %v1836_v18 = vld [vmem:[#allocation8 + $0x198] sm:$0xff]  ;;  %v1813_v5 = vld [vmem:[#allocation8 + $0x30] sm:$0xff] }
 0x3a5   : > { %v1584_v21 = vpack.c.bf16 %v1583_v20, %v1582_v19  ;;  %v1838_v19 = vld [vmem:[#allocation8 + $0x1b8] sm:$0xff]  ;;  %v4419_v20 = vcombine.low %v1835_v10, %v1837_v11  ;;  %v4396_v11 = vcombine.high %v1811_v4, %v1813_v5 }
 0x3a6   : > { %2067 = vmatprep.subr.bf16.mxu1 %v4426_v13  ;;  %v4395_v13 = vcombine.low %v1811_v4, %v1813_v5 }
 0x3a7   : > { %4932 = vmatmul.mubr.bf16.vlgmr.msra.gmra.mxu0 %v1584_v21  ;;  %v4421_v21 = vcombine.low %v1836_v18, %v1838_v19 }
 0x3a8   : > { %2058 = vmatprep.mubr.bf16.mxu0 %v5785_v25  ;;  %2027 = vmatpush1.bf16.msra.mxu0 %v4423_v6  ;;  %v1812_v6 = vld [vmem:[#allocation8 + $0x18] sm:$0xff] }
 0x3a9   : > { %2028 = vmatprep.subr.bf16.mxu0 %v4420_v15  ;;  %v4397_v15 = vcombine.low %v1812_v6, %v1814_v7 }
 0x3ac   : > { %2029 = vmatpush1.bf16.msra.mxu0 %v4419_v20 }
 0x3ad   : > { %2030 = vmatprep.subr.bf16.mxu0 %v4416_v31  ;;  %v5275_v31 = vld [vmem:[#allocation10 + $0x38] sm:$0xff]  }
 0x3b0   : > { %2031 = vmatpush1.bf16.msra.mxu0 %v4415_v33  ;;  %v5278_v33 = vld [vmem:[#allocation10 + $0xf0] sm:$0xff]  }
 0x3b1   : > { %2032 = vmatprep.subr.bf16.mxu0 %v4412_v41  ;;  %v5285_v41 = vld [vmem:[#allocation10 + $0x60] sm:$0xff]  }
 0x3b4   : > { %2033 = vmatpush1.bf16.msra.mxu0 %v4411_v40  ;;  %v5284_v40 = vld [vmem:[#allocation10 + $0xa8] sm:$0xff]  }
 0x467   : > { %v1667_v42 = vpop.f32.mrf.mxu0 }
 0x468   : > { %v1676_v47 = vmul.f32 %v1674_v44, %v1667_v42  ;;  %v1830_v42 = vld [vmem:[#allocation8 + $0x138] sm:$0xff]  ;;  %v1825_v44 = vld [vmem:[#allocation8 + $0xf0] sm:$0xff] }
 0x469   : > { %v4933_v43 = vpop.f32.mrf.mxu0 }
 0x46a   : > { %v1823_v43 = vld [vmem:[#allocation8 + $0xd0] sm:$0xff] }
 0x46b   : > { %v1670_v46 = vpop.f32.mrf.mxu0 }
 0x46c   : > { %v1677_v48 = vmul.f32 %v1675_v45, %v1670_v46  ;;  %v4413_v45 = vcombine.low %v1828_v39, %v1830_v42  ;;  %v4414_v46 = vcombine.high %v1828_v39, %v1830_v42  ;;  %v5283_v39 = vld [vmem:[#allocation10 + $0x28] sm:$0xff]   ;;  %v5286_v42 = vld [vmem:[#allocation10 + $0xe0] sm:$0xff]  }
 0x46d   : > { %v4934_v49 = vpop.f32.mrf.mxu0 }
 0x46e   : > { %v1678_v50 = vadd.f32 %v1677_v48, %v1676_v47  ;;  %v4408_v47 = vcombine.high %v1823_v43, %v1825_v44  ;;  %v1824_v48 = vld [vmem:[#allocation8 + $0xd8] sm:$0xff] }
 0x46f   : > { %v1826_v49 = vld [vmem:[#allocation8 + $0xf8] sm:$0xff] }
 0x470   : > { %v1679_v51 = vrot.slane %v1678_v50, 4  ;;  %2034 = vmatprep.subr.bf16.mxu0 %v4408_v47  ;;  %v5291_v47 = vld [vmem:[#allocation10 + $0x18] sm:$0xff]  }
 0x472   : > { %v1680_v52 = vadd.f32 %v1679_v51, %v1678_v50  ;;  %v1819_v50 = vld [vmem:[#allocation8 + $0x90] sm:$0xff]  ;;  %v4410_v51 = vcombine.high %v1824_v48, %v1826_v49 }
 0x474   : > { %v1681_v53 = vrot.slane %v1680_v52, 2 }
 0x476   : > { %v1682_v54 = vadd.f32 %v1681_v53, %v1680_v52  ;;  %v1821_v52 = vld [vmem:[#allocation8 + $0xb0] sm:$0xff]  ;;  %v1820_v53 = vld [vmem:[#allocation8 + $0x98] sm:$0xff] }
 0x478   : > { %v1683_v55 = vrot.slane %v1682_v54, 1 }
 0x47a   : > { %v1684_v56 = vadd.f32 %v1683_v55, %v1682_v54  ;;  %v1822_v54 = vld [vmem:[#allocation8 + $0xb8] sm:$0xff]  ;;  %v4407_v55 = vcombine.low %v1823_v43, %v1825_v44  ;;  %v5287_v43 = vld [vmem:[#allocation10 + $0x20] sm:$0xff]  }
 0x47b   : > { %v5288_v44 = vld [vmem:[#allocation10 + $0xa0] sm:$0xff]  }
 0x47c   : > { %v1701_v57 = vpack.c.bf16 %v1684_v56, %v1684_v56  ;;  %v4409_v56 = vcombine.low %v1824_v48, %v1826_v49  ;;  %2035 = vmatpush1.bf16.msra.mxu0 %v4407_v55  ;;  %v5292_v48 = vld [vmem:[#allocation10 + $0x98] sm:$0xff]   ;;  %v5293_v49 = vld [vmem:[#allocation10 + $0x50] sm:$0xff]   ;;  %v5299_v55 = vld [vmem:[#allocation10 + $0x8] sm:$0xff]  }
 0x47e   : > { %4952 = vmatmul.mubr.bf16.vlgmr.msra.gmra.mxu1 %v1701_v57  ;;  %v4404_v57 = vcombine.high %v1819_v50, %v1821_v52 }
 0x47f   : > { %2099 = vmatprep.mubr.bf16.mxu1 %v5785_v25  ;;  %2068 = vmatpush1.bf16.msra.mxu1 %v4425_v12  ;;  %v4398_v12 = vcombine.high %v1812_v6, %v1814_v7 }
 0x480   : > { %2036 = vmatprep.subr.bf16.mxu0 %v4404_v57  ;;  %v5301_v57 = vld [vmem:[#allocation10 + $0x40] sm:$0xff]  }
 0x53e   : > { %v1785_v35 = vpop.f32.mrf.mxu1 }
 0x53f   : > { %v1786_v59 = vadd.f32 %v1785_v35, %v1702_v58  ;;  %v4406_v58 = vcombine.high %v1820_v53, %v1822_v54  ;;  %v1815_v35 = vld [vmem:[#allocation8 + $0x50] sm:$0xff] }
 0x540   : > { %v4953_v60 = vpop.f32.mrf.mxu1 }
 0x541   : > { %v1791_v61 = vadd.f32 %v1786_v59, %v6132_v1  ;;  %v4422_v1 = vcombine.high %v1836_v18, %v1838_v19  ;;  %v1817_v59 = vld [vmem:[#allocation8 + $0x70] sm:$0xff]  ;;  %v1816_v60 = vld [vmem:[#allocation8 + $0x58] sm:$0xff] }
 0x542   : > { %v1788_v62 = vpop.f32.mrf.mxu1  ;;  %v4399_v9 = vcombine.low %v1815_v35, %v1817_v59 }
 0x543   : > { %v1795_v63 = vsel %vm1794_vm1, %v1791_v61, 0.0  ;;  %2069 = vmatprep.subr.bf16.mxu1 %v4422_v1  ;;  %v4403_v62 = vcombine.low %v1819_v50, %v1821_v52  ;;  %v5294_v50 = vld [vmem:[#allocation10 + $0xd0] sm:$0xff]  }
 0x544   : > { %1796 = vadd.xlane.f32.xlu0 %v1795_v63  ;;  %v4954_v2 = vpop.f32.mrf.mxu1  ;;  %2070 = vmatpush1.bf16.msra.mxu1 %v4421_v21  ;;  %v4405_v63 = vcombine.low %v1820_v53, %v1822_v54  ;;  %v1792_v21 = vld [vmem:[%s6494_s10 + $0x6] sm:$0x1]  ;;  %v5296_v52 = vld [vmem:[#allocation10 + $0x90] sm:$0xff]   ;;  %v5297_v53 = vld [vmem:[#allocation10 + $0x48] sm:$0xff]  }
 0x545   : > { %2071 = vmatprep.subr.bf16.mxu1 %v4418_v36  ;;  %v4400_v2 = vcombine.high %v1815_v35, %v1817_v59  ;;  %2037 = vmatpush1.bf16.msra.mxu0 %v4403_v62  ;;  %v5280_v36 = vld [vmem:[#allocation10 + $0xb0] sm:$0xff]   ;;  %v5298_v54 = vld [vmem:[#allocation10 + $0xc8] sm:$0xff]   ;;  %v5303_v35 = vld [vmem:[#allocation10] sm:$0xff]   ;;  %v2020_v62 = vsub.s32 3, %v6165_v14 }
 0x546   : > { %v5304_v59 = vld [vmem:[#allocation10 + $0x80] sm:$0xff]  }
 0x547   : > { %2038 = vmatprep.subr.bf16.mxu0 %v4400_v2 }
 0x548   : > { %2072 = vmatpush1.bf16.msra.mxu1 %v4417_v34  ;;  %v5279_v34 = vld [vmem:[#allocation10 + $0x30] sm:$0xff]  }
 0x549   : > { %2073 = vmatprep.subr.bf16.mxu1 %v4414_v46  ;;  %2039 = vmatpush1.bf16.msra.mxu0 %v4399_v9  ;;  %v5290_v46 = vld [vmem:[#allocation10 + $0xd8] sm:$0xff]  }
 0x54a   : > { %2040 = vmatprep.subr.bf16.mxu0 %v4396_v11 }
 0x54c   : > { %2074 = vmatpush1.bf16.msra.mxu1 %v4413_v45  ;;  %v5289_v45 = vld [vmem:[#allocation10 + $0x58] sm:$0xff]  }
 0x54d   : > { %2075 = vmatprep.subr.bf16.mxu1 %v4410_v51  ;;  %2041 = vmatpush1.bf16.msra.mxu0 %v4395_v13  ;;  %v5295_v51 = vld [vmem:[#allocation10 + $0x10] sm:$0xff]  }
 0x54e   : > { %4671 = vmatprep.subr.bf16.mxu0 %v5273_v29 }
 0x550   : > { %2076 = vmatpush1.bf16.msra.mxu1 %v4409_v56  ;;  %v5300_v56 = vld [vmem:[#allocation10 + $0x88] sm:$0xff]  }
 0x551   : > { %2077 = vmatprep.subr.bf16.mxu1 %v4406_v58  ;;  %v5302_v58 = vld [vmem:[#allocation10 + $0xc0] sm:$0xff]  }
 0x554   : > { %2078 = vmatpush1.bf16.msra.mxu1 %v4405_v63 }
 0x5cd   : > { %v1797_v22 = vpop.xlane.xlu0 %1796 }
 0x5ce   : > { %v1799_v23 = vmul.f32 0.0078125, %v1797_v22 }
 0x5d0   : > { %v6206_v24 = vsub.f32 %v1791_v61, %v1799_v23  ;;  %v1818_v61 = vld [vmem:[#allocation8 + $0x78] sm:$0xff]  ;;  %v1793_v23 = vld [vmem:[%s6494_s10 + $0x7] sm:$0x1] }
 0x5d1   : > { %v4402_v3 = vcombine.high %v1816_v60, %v1818_v61  ;;  %v4401_v10 = vcombine.low %v1816_v60, %v1818_v61  ;;  %v2016_v60 = vsub.s32 2, %v6165_v14  ;;  %v1844_v61 = vld [vmem:[%s6494_s10 + $0x8] sm:$0xf] }
 0x5d2   : > { %v1801_v26 = vmul.f32 %v6206_v24, %v6206_v24  ;;  %v2009_v63 = vrot.slane %v1844_v61, %v6171_v17  ;;  %v2021_v4 = vrot.slane %v1844_v61, %v2020_v62 }
 0x5d3   : > { %2079 = vmatprep.subr.bf16.mxu1 %v4402_v3  ;;  %v2017_v2 = vrot.slane %v1844_v61, %v2016_v60  ;;  %v2013_v3 = vrot.slane %v1844_v61, %v6168_v16 }
 0x5d4   : > { %v1802_v27 = vsel %vm1794_vm1, %v1801_v26, 0.0  ;;  %2080 = vmatpush1.bf16.msra.mxu1 %v4401_v10 }
 0x5d5   : > { %1803 = vadd.xlane.f32.xlu0 %v1802_v27  ;;  %2081 = vmatprep.subr.bf16.mxu1 %v4398_v12 }
 0x5d8   : > { %2082 = vmatpush1.bf16.msra.mxu1 %v4397_v15 }
 0x5d9   : > { %4693 = vmatprep.subr.bf16.mxu1 %v5274_v30 }
 0x65e   : > { %v1804_v18 = vpop.xlane.xlu0 %1803 }
 0x65f   : > { %v1805_v19 = vmul.f32 0.0078125, %v1804_v18 }
 0x661   : > { %v1806_v1 = vadd.f32 1e-05, %v1805_v19 }
 0x663   : > { %5379 = vrsqrt.f32 %v1806_v1 }
 0x670   : > { %v5380_v20 = vpop.eup %5379 }
 0x671   : > { %v1808_v22 = vmul.f32 %v5380_v20, %v6206_v24  ;;  %v5277_v24 = vld [vmem:[#allocation10 + $0x70] sm:$0xff]  }
 0x673   : > { %v1809_v26 = vmul.f32 %v1808_v22, %v1792_v21 }
 0x675   : > { %v6218_v27 = vadd.f32 %v1809_v26, %v1793_v23 }
 0x677   : > { %v1843_v28 = vpack.c.bf16 %v6218_v27, %v6218_v27 }
 0x679   : > { %2059 = vmatmul.mubr.bf16.vlgmr.msra.gmra.mxu0 %v1843_v28  ;;  %2100 = vmatmul.mubr.bf16.vlgmr.msra.gmra.mxu1 %v1843_v28 }
 0x67a   : > { %4672 = vmatpush3.bf16.msra.mxu0 %v5275_v31  ;;  %4694 = vmatpush3.bf16.msra.mxu1 %v5276_v32 }
 0x67b   : > { %4673 = vmatprep.subr.bf16.mxu0 %v5277_v24  ;;  %4695 = vmatprep.subr.bf16.mxu1 %v5278_v33 }
 0x67e   : > { %4674 = vmatpush3.bf16.msra.mxu0 %v5279_v34  ;;  %4696 = vmatpush3.bf16.msra.mxu1 %v5280_v36 }
 0x67f   : > { %4675 = vmatprep.subr.bf16.mxu0 %v5281_v37  ;;  %4697 = vmatprep.subr.bf16.mxu1 %v5282_v38 }
 0x682   : > { %4676 = vmatpush3.bf16.msra.mxu0 %v5283_v39  ;;  %4698 = vmatpush3.bf16.msra.mxu1 %v5284_v40 }
 0x683   : > { %4677 = vmatprep.subr.bf16.mxu0 %v5285_v41  ;;  %4699 = vmatprep.subr.bf16.mxu1 %v5286_v42 }
 0x686   : > { %4678 = vmatpush3.bf16.msra.mxu0 %v5287_v43  ;;  %4700 = vmatpush3.bf16.msra.mxu1 %v5288_v44 }
 0x687   : > { %4679 = vmatprep.subr.bf16.mxu0 %v5289_v45  ;;  %4701 = vmatprep.subr.bf16.mxu1 %v5290_v46 }
 0x68a   : > { %4680 = vmatpush3.bf16.msra.mxu0 %v5291_v47  ;;  %4702 = vmatpush3.bf16.msra.mxu1 %v5292_v48 }
 0x68b   : > { %4681 = vmatprep.subr.bf16.mxu0 %v5293_v49  ;;  %4703 = vmatprep.subr.bf16.mxu1 %v5294_v50 }
 0x68e   : > { %4682 = vmatpush3.bf16.msra.mxu0 %v5295_v51  ;;  %4704 = vmatpush3.bf16.msra.mxu1 %v5296_v52 }
 0x68f   : > { %4683 = vmatprep.subr.bf16.mxu0 %v5297_v53  ;;  %4705 = vmatprep.subr.bf16.mxu1 %v5298_v54 }
 0x692   : > { %4684 = vmatpush3.bf16.msra.mxu0 %v5299_v55  ;;  %4706 = vmatpush3.bf16.msra.mxu1 %v5300_v56 }
 0x693   : > { %4685 = vmatprep.subr.bf16.mxu0 %v5301_v57  ;;  %4707 = vmatprep.subr.bf16.mxu1 %v5302_v58 }
 0x696   : > { %4686 = vmatpush3.bf16.msra.mxu0 %v5303_v35  ;;  %4708 = vmatpush3.bf16.msra.mxu1 %v5304_v59 }
 0x739   : > { %v2060_v5 = vpop.f32.mrf.mxu0  ;;  %v2101_v6 = vpop.f32.mrf.mxu1 }
 0x73a   : > { %v2061_v7 = vadd.f32 %v2060_v5, %v2009_v63  ;;  %v2102_v9 = vadd.f32 %v2101_v6, %v2017_v2  ;;  %v5305_v2 = vld [vmem:[%s6487_s3 + $0x78] sm:$0xff]   ;;  %v5308_v5 = vld [vmem:[%s6487_s3 + $0x30] sm:$0xff]   ;;  %v5309_v6 = vld [vmem:[%s6487_s3 + $0x68] sm:$0xff]  }
 0x73b   : > { %v2062_v10 = vpop.f32.mrf.mxu0  ;;  %v2103_v11 = vpop.f32.mrf.mxu1  ;;  %4715 = vmatprep.subr.bf16.mxu0 %v5305_v2 }
 0x73c   : > { %v2112_v12 = vmul.f32 0.044715, %v2061_v7  ;;  %v2114_v13 = vmul.f32 0.044715, %v2102_v9  ;;  %v2063_v15 = vadd.f32 %v2062_v10, %v2013_v3  ;;  %v2104_v18 = vadd.f32 %v2103_v11, %v2021_v4  ;;  %v5306_v3 = vld [vmem:[%s6487_s3 + $0x38] sm:$0xff]   ;;  %v5307_v4 = vld [vmem:[%s6487_s3 + $0x70] sm:$0xff]  }
 0x73d   : > { %v2064_v19 = vpop.f32.mrf.mxu0  ;;  %v2105_v1 = vpop.f32.mrf.mxu1  ;;  %v2108_v47 = vmul.f32 0.5, %v2061_v7  ;;  %v2110_v52 = vmul.f32 0.5, %v2102_v9  ;;  %v5310_v10 = vld [vmem:[%s6487_s3 + $0x28] sm:$0xff]   ;;  %v5311_v11 = vld [vmem:[%s6487_s3 + $0x60] sm:$0xff]  }
 0x73e   : > { %v2116_v20 = vmul.f32 %v2112_v12, %v2061_v7  ;;  %v2118_v21 = vmul.f32 %v2114_v13, %v2102_v9  ;;  %v2113_v22 = vmul.f32 0.044715, %v2063_v15  ;;  %v2115_v23 = vmul.f32 0.044715, %v2104_v18  ;;  %v5312_v12 = vld [vmem:[%s6487_s3 + $0x20] sm:$0xff]   ;;  %v5313_v13 = vld [vmem:[%s6487_s3 + $0x58] sm:$0xff]  }
 0x73f   : > { %v2065_v26 = vpop.f32.mrf.mxu0  ;;  %v2106_v28 = vpop.f32.mrf.mxu1  ;;  %v2109_v50 = vmul.f32 0.5, %v2063_v15  ;;  %v2111_v53 = vmul.f32 0.5, %v2104_v18  ;;  %v5316_v19 = vld [vmem:[%s6487_s3 + $0x10] sm:$0xff]   ;;  %v5317_v1 = vld [vmem:[%s6487_s3 + $0x48] sm:$0xff]  }
 0x740   : > { %v2120_v29 = vmul.f32 %v2116_v20, %v2061_v7  ;;  %v2122_v30 = vmul.f32 %v2118_v21, %v2102_v9  ;;  %v2117_v31 = vmul.f32 %v2113_v22, %v2063_v15  ;;  %v2119_v32 = vmul.f32 %v2115_v23, %v2104_v18  ;;  %v5318_v20 = vld [vmem:[%s6487_s3 + $0x8] sm:$0xff]   ;;  %v5319_v21 = vld [vmem:[%s6487_s3 + $0x40] sm:$0xff]  }
 0x741   : > { %v5320_v22 = vld [vmem:[%s6487_s3] sm:$0xff]  }
 0x742   : > { %v2124_v24 = vadd.f32 %v2120_v29, %v2061_v7  ;;  %v2126_v33 = vadd.f32 %v2122_v30, %v2102_v9  ;;  %v2121_v34 = vmul.f32 %v2117_v31, %v2063_v15  ;;  %v2123_v36 = vmul.f32 %v2119_v32, %v2104_v18  ;;  %v2503_v7 = vld [vmem:[%s747_s29] sm:$0xff]  ;;  %v2212_v29 = vld [vmem:[%s6494_s10 + $0xc] sm:$0x1]  ;;  %s5786_s29 = smov [#allocation19]  }
 0x743   : > { %v4461_v9 = vcombine.high %v2503_v7, %v2503_v7  ;;  %v4460_v23 = vcombine.low %v2503_v7, %v2503_v7  ;;  %v2851_v7 = vld [vmem:[#allocation2 + $0x160] sm:$0xf]  ;;  %s5687_s24 = sshll.u32 %s5786_s29, 4  ;;  %s5688_s24 = int_to_ptr.vmem [resolvable:$false] %s5687_s24 }
 0x744   : > { %v2128_v37 = vmul.f32 0.7978846, %v2124_v24  ;;  %v2130_v38 = vmul.f32 0.7978846, %v2126_v33  ;;  %v2125_v39 = vadd.f32 %v2121_v34, %v2063_v15  ;;  %v2127_v40 = vadd.f32 %v2123_v36, %v2104_v18  ;;  %v5314_v15 = vld [vmem:[%s6487_s3 + $0x18] sm:$0xff]   ;;  %v5315_v18 = vld [vmem:[%s6487_s3 + $0x50] sm:$0xff]   ;;  %p5690_p12 = scmp.lt.s32.totalorder %s6445_s20, %s5688_s24 }
 0x745   : > { %s5689_s18 = scalar_lea.vmem %s5688_s24, 32 }
 0x746   : > { %v2129_v41 = vmul.f32 0.7978846, %v2125_v39  ;;  %v2131_v42 = vmul.f32 0.7978846, %v2127_v40  ;;  %5381 = vtanh.f32 %v2128_v37  ;;  %p5691_p10 = scmp.lt.s32.totalorder %s5689_s18, %s5683_s0 }
 0x747   : > { %5383 = vtanh.f32 %v2130_v38 }
 0x748   : > { %5385 = vtanh.f32 %v2129_v41  ;;  %p5692_p3 = por %p5691_p10, %p5690_p12 }
 0x749   : > { %5387 = vtanh.f32 %v2131_v42  ;;  %v2703_v42 = vld [vmem:[#allocation2 + $0x1c4] sm:$0xff] }
 0x74a   : > { %p5693_p7 = pnand %p5692_p3, %p5686_p4 }
 0x753   : > { %v5382_v43 = vpop.eup %5381 }
 0x754   : > { %v5384_v44 = vpop.eup %5383  ;;  %v2136_v45 = vadd.f32 1.0, %v5382_v43  ;;  %v2704_v43 = vld [vmem:[#allocation2 + $0x1e4] sm:$0xff] }
 0x755   : > { %v5386_v46 = vpop.eup %5385  ;;  %v2138_v48 = vadd.f32 1.0, %v5384_v44  ;;  %v2701_v44 = vld [vmem:[#allocation2 + $0x184] sm:$0xff] }
 0x756   : > { %v5388_v49 = vpop.eup %5387  ;;  %v2137_v51 = vadd.f32 1.0, %v5386_v46  ;;  %v2140_v55 = vmul.f32 %v2136_v45, %v2108_v47  ;;  %v4492_v45 = vcombine.low %v2703_v42, %v2704_v43  ;;  %v4493_v46 = vcombine.high %v2703_v42, %v2704_v43  ;;  %v2702_v47 = vld [vmem:[#allocation2 + $0x1a4] sm:$0xff]  ;;  %v4459_v43 = vld [vmem:[%s6490_s6] ss:$0 sm:$0xff] }
 0x757   : > { %v2139_v54 = vadd.f32 1.0, %v5388_v49  ;;  %v2142_v57 = vmul.f32 %v2138_v48, %v2110_v52  ;;  %v2854_v48 = vld [vmem:[#allocation2 + $0x1c0] sm:$0xf]  ;;  %v4490_v52 = vcombine.low %v2701_v44, %v2702_v47 }
 0x758   : > { %v2141_v56 = vmul.f32 %v2137_v51, %v2109_v50  ;;  %v2144_v61 = vpack.c.bf16 %v2140_v55, %v2140_v55  ;;  %v2855_v49 = vld [vmem:[#allocation2 + $0x1e0] sm:$0xf]  ;;  %v4491_v50 = vcombine.high %v2701_v44, %v2702_v47  ;;  %2797 = vmatprep.subr.bf16.mxu1 %v4493_v46 }
 0x759   : > { %v2143_v58 = vmul.f32 %v2139_v54, %v2111_v53  ;;  %v2146_v63 = vpack.c.bf16 %v2142_v57, %v2142_v57  ;;  %v4501_v51 = vcombine.low %v2854_v48, %v2855_v49  ;;  %v2699_v57 = vld [vmem:[#allocation2 + $0x144] sm:$0xff]  ;;  %v2842_v46 = vld [vmem:[#allocation2 + $0x40] sm:$0xf] }
 0x75a   : > { %v2145_v35 = vpack.c.bf16 %v2141_v56, %v2141_v56  ;;  %v2843_v47 = vld [vmem:[#allocation2 + $0x60] sm:$0xf] }
 0x75b   : > { %v2147_v59 = vpack.c.bf16 %v2143_v58, %v2143_v58  ;;  %v2700_v58 = vld [vmem:[#allocation2 + $0x164] sm:$0xff] }
 0x75c   : > { %2437 = vmatprep.mubr.bf16.mxu0 %v2145_v35  ;;  %v4489_v35 = vcombine.high %v2699_v57, %v2700_v58 }
 0x75d   : > { %2477 = vmatprep.mubr.bf16.mxu1 %v2147_v59  ;;  %2438 = vmatmul.mubr.bf16.vlgmr.msra.gmra.mxu0 %v2144_v61  ;;  %v2852_v59 = vld [vmem:[#allocation2 + $0x180] sm:$0xf] }
 0x75e   : > { %2478 = vmatmul.mubr.bf16.vlgmr.msra.gmra.mxu1 %v2146_v63  ;;  %4716 = vmatpush3.bf16.msra.mxu0 %v5306_v3  ;;  %v2853_v61 = vld [vmem:[#allocation2 + $0x1a0] sm:$0xf]  ;;  %v4488_v63 = vcombine.low %v2699_v57, %v2700_v58  ;;  %v2697_v3 = vld [vmem:[#allocation2 + $0x104] sm:$0xff] }
 0x75f   : > { %2829 = vmatprep.mubr.bf16.mxu1 %v5785_v25  ;;  %4717 = vmatprep.subr.bf16.mxu0 %v5307_v4  ;;  %v4500_v2 = vcombine.low %v2852_v59, %v2853_v61  ;;  %v2698_v4 = vld [vmem:[#allocation2 + $0x124] sm:$0xff]  ;;  %v5412_v59 = vld [vmem:[#allocation16 + $0x10] sm:$0xff]  }
 0x760   : > { %2680 = vmatprep.mubr.bf16.mxu0 %v4461_v9  ;;  %2798 = vmatpush1.bf16.msra.mxu1 %v4492_v45  ;;  %v4486_v9 = vcombine.low %v2697_v3, %v2698_v4  ;;  %v5409_v57 = vld [vmem:[#allocation16 + $0x28] sm:$0xff]   ;;  %v5410_v58 = vld [vmem:[#allocation16 + $0x20] sm:$0xff]  }
 0x761   : > { %2799 = vmatprep.subr.bf16.mxu1 %v4491_v50  ;;  %v4495_v50 = vcombine.low %v2842_v46, %v2843_v47  ;;  %v5413_v61 = vld [vmem:[#allocation16 + $0x8] sm:$0xff]  }
 0x762   : > { %4718 = vmatpush3.bf16.msra.mxu0 %v5308_v5  ;;  %v4487_v5 = vcombine.high %v2697_v3, %v2698_v4  ;;  %v3081_v47 = vld [vmem:[#allocation2 + $0x1cc] sm:$0xf] }
 0x763   : > { %4719 = vmatprep.subr.bf16.mxu0 %v5309_v6  ;;  %v2850_v6 = vld [vmem:[#allocation2 + $0x140] sm:$0xf] }
 0x764   : > { %2800 = vmatpush1.bf16.msra.mxu1 %v4490_v52  ;;  %v2841_v52 = vld [vmem:[#allocation2 + $0x20] sm:$0xf] }
 0x765   : > { %2801 = vmatprep.subr.bf16.mxu1 %v4489_v35  ;;  %v5411_v35 = vld [vmem:[#allocation16 + $0x18] sm:$0xff]  }
 0x766   : > { %4720 = vmatpush3.bf16.msra.mxu0 %v5310_v10  ;;  %v4499_v10 = vcombine.low %v2850_v6, %v2851_v7  ;;  %v2486_v6 = vld [vmem:[%s6494_s10 + $0xd] sm:$0x1] }
 0x767   : > { %4721 = vmatprep.subr.bf16.mxu0 %v5311_v11  ;;  %v2695_v11 = vld [vmem:[#allocation2 + $0xc4] sm:$0xff] }
 0x768   : > { %2802 = vmatpush1.bf16.msra.mxu1 %v4488_v63  ;;  %v5414_v63 = vld [vmem:[#allocation16] sm:$0xff]  }
 0x769   : > { %2803 = vmatprep.subr.bf16.mxu1 %v4487_v5 }
 0x76a   : > { %4722 = vmatpush3.bf16.msra.mxu0 %v5312_v12  ;;  %v2696_v12 = vld [vmem:[#allocation2 + $0xe4] sm:$0xff] }
 0x76b   : > { %4723 = vmatprep.subr.bf16.mxu0 %v5313_v13  ;;  %v2848_v13 = vld [vmem:[#allocation2 + $0x100] sm:$0xf] }
 0x76c   : > { %2804 = vmatpush1.bf16.msra.mxu1 %v4486_v9  ;;  %v2487_v9 = vld [vmem:[%s6494_s10 + $0xe] sm:$0x1] }
 0x76e   : > { %4724 = vmatpush3.bf16.msra.mxu0 %v5314_v15 }
 0x76f   : > { %4725 = vmatprep.subr.bf16.mxu0 %v5315_v18  ;;  %v4485_v18 = vcombine.high %v2695_v11, %v2696_v12 }
 0x771   : > { %2805 = vmatprep.subr.bf16.mxu1 %v4485_v18  ;;  %v5415_v18 = vld [vmem:[#allocation17 + $0x38] sm:$0xff]  }
 0x772   : > { %4726 = vmatpush3.bf16.msra.mxu0 %v5316_v19  ;;  %v2849_v19 = vld [vmem:[#allocation2 + $0x120] sm:$0xf] }
 0x773   : > { %4727 = vmatprep.subr.bf16.mxu0 %v5317_v1  ;;  %v2693_v1 = vld [vmem:[#allocation2 + $0x84] sm:$0xff] }
 0x776   : > { %4728 = vmatpush3.bf16.msra.mxu0 %v5318_v20  ;;  %v2694_v20 = vld [vmem:[#allocation2 + $0xa4] sm:$0xff] }
 0x777   : > { %4729 = vmatprep.subr.bf16.mxu0 %v5319_v21  ;;  %v4484_v21 = vcombine.low %v2695_v11, %v2696_v12  ;;  %v2504_v11 = vld [vmem:[%s6490_s6 + $0x1] sm:$0x1] }
 0x779   : > { %2806 = vmatpush1.bf16.msra.mxu1 %v4484_v21  ;;  %v5420_v21 = vld [vmem:[#allocation17 + $0x10] sm:$0xff]  }
 0x77a   : > { %4730 = vmatpush3.bf16.msra.mxu0 %v5320_v22  ;;  %v4498_v22 = vcombine.low %v2848_v13, %v2849_v19  ;;  %v5417_v19 = vld [vmem:[#allocation17 + $0x28] sm:$0xff]  }
 0x77b   : > { %4955 = vmatprep.subr.bf16.mxu0 %v5783_v0 }
 0x77d   : > { %2681 = vmatmul.mubr.bf16.vlgmr.msra.gmra.mxu0 %v4460_v23 }
 0x77e   : > { %4971 = vmatprep.mubr.msk.bf16.mxu0 %vm5784_vm0, %v5783_v0  ;;  %4956 = vmatpush3.bf16.msra.mxu0 %v4501_v51  ;;  %v2840_v51 = vld [vmem:[#allocation2] sm:$0xf] }
 0x77f   : > { %4957 = vmatprep.subr.bf16.mxu0 %v5783_v0 }
 0x782   : > { %4958 = vmatpush3.bf16.msra.mxu0 %v4500_v2 }
 0x783   : > { %4959 = vmatprep.subr.bf16.mxu0 %v5783_v0 }
 0x786   : > { %4960 = vmatpush3.bf16.msra.mxu0 %v4499_v10 }
 0x787   : > { %4961 = vmatprep.subr.bf16.mxu0 %v5783_v0 }
 0x78a   : > { %4962 = vmatpush3.bf16.msra.mxu0 %v4498_v22  ;;  %v5421_v22 = vld [vmem:[#allocation17 + $0x8] sm:$0xff]  }
 0x78b   : > { %4963 = vmatprep.subr.bf16.mxu0 %v5783_v0 }
 0x81d   : > { %v4687_v26 = vpop.f32.mrf.mxu0 }
 0x81e   : > { %v4709_v28 = vpop.f32.mrf.mxu1 }
 0x81f   : > { %v4688_v30 = vpop.f32.mrf.mxu0 }
 0x820   : > { %v4689_v31 = vadd.f32 %v4688_v30, %v4687_v26  ;;  %v4710_v32 = vpop.f32.mrf.mxu1  ;;  %v4483_v26 = vcombine.high %v2693_v1, %v2694_v20  ;;  %v2691_v30 = vld [vmem:[#allocation2 + $0x44] sm:$0xff] }
 0x821   : > { %v4690_v24 = vpop.f32.mrf.mxu0  ;;  %v4711_v34 = vadd.f32 %v4710_v32, %v4709_v28  ;;  %v2846_v28 = vld [vmem:[#allocation2 + $0xc0] sm:$0xf] }
 0x822   : > { %v2440_v33 = vadd.f32 %v4689_v31, %v2212_v29  ;;  %v4712_v36 = vpop.f32.mrf.mxu1  ;;  %v2847_v29 = vld [vmem:[#allocation2 + $0xe0] sm:$0xf]  ;;  %v2692_v31 = vld [vmem:[#allocation2 + $0x64] sm:$0xff]  ;;  %v4482_v24 = vcombine.low %v2693_v1, %v2694_v20  ;;  %2807 = vmatprep.subr.bf16.mxu1 %v4483_v26  ;;  %v5419_v20 = vld [vmem:[#allocation17 + $0x18] sm:$0xff]  }
 0x823   : > { %v4691_v37 = vpop.f32.mrf.mxu0  ;;  %v4481_v36 = vcombine.high %v2691_v30, %v2692_v31  ;;  %v4480_v42 = vcombine.low %v2691_v30, %v2692_v31  ;;  %v5418_v1 = vld [vmem:[#allocation17 + $0x20] sm:$0xff]  }
 0x824   : > { %v2480_v38 = vadd.f32 %v4711_v34, %v2440_v33  ;;  %v4713_v39 = vpop.f32.mrf.mxu1  ;;  %v4497_v33 = vcombine.low %v2846_v28, %v2847_v29  ;;  %v2844_v37 = vld [vmem:[#allocation2 + $0x80] sm:$0xf]  ;;  %2808 = vmatpush1.bf16.msra.mxu1 %v4482_v24 }
 0x825   : > { %v2689_v39 = vld [vmem:[#allocation2 + $0x4] sm:$0xff]  ;;  %2809 = vmatprep.subr.bf16.mxu1 %v4481_v36 }
 0x826   : > { %v2485_v40 = vadd.f32 %v2480_v38, %v6218_v27  ;;  %v2845_v38 = vld [vmem:[#allocation2 + $0xa0] sm:$0xf]  ;;  %4964 = vmatpush3.bf16.msra.mxu0 %v4497_v33 }
 0x827   : > { %v4496_v44 = vcombine.low %v2844_v37, %v2845_v38  ;;  %4965 = vmatprep.subr.bf16.mxu0 %v5783_v0  ;;  %v2705_v26 = vld [vmem:[%s6490_s6 + $0x3] sm:$0x3]  ;;  %v2857_v33 = vld [vmem:[%s6490_s6 + $0x2] sm:$0x1] }
 0x828   : > { %v2488_v41 = vsel %vm1794_vm1, %v2485_v40, 0.0  ;;  %2810 = vmatpush1.bf16.msra.mxu1 %v4480_v42  ;;  %v2714_v28 = vrot.slane %v2705_v26, %v6168_v16 }
 0x829   : > { %2489 = vadd.xlane.f32.xlu1 %v2488_v41 }
 0x82a   : > { %4966 = vmatpush3.bf16.msra.mxu0 %v4496_v44 }
 0x82b   : > { %4967 = vmatprep.subr.bf16.mxu0 %v5783_v0 }
 0x82e   : > { %4968 = vmatpush3.bf16.msra.mxu0 %v4495_v50 }
 0x82f   : > { %4969 = vmatprep.subr.bf16.mxu0 %v5783_v0 }
 0x83d   : > { %v4731_v15 = vpop.f32.mrf.mxu0 }
 0x83f   : > { %v4732_v23 = vpop.f32.mrf.mxu0 }
 0x840   : > { %v4733_v41 = vadd.f32 %v4732_v23, %v4731_v15  ;;  %v5422_v23 = vld [vmem:[#allocation17] sm:$0xff]  }
 0x841   : > { %v4734_v32 = vpop.f32.mrf.mxu0 }
 0x842   : > { %v2683_v48 = vadd.f32 %v4733_v41, %v4459_v43 }
 0x843   : > { %v4735_v34 = vpop.f32.mrf.mxu0 }
 0x844   : > { %v2710_v34 = vrot.slane %v2705_v26, %v6171_v17 }
 0x8b2   : > { %v2490_v27 = vpop.xlane.xlu1 %2489 }
 0x8b3   : > { %v2491_v53 = vmul.f32 0.0078125, %v2490_v27  ;;  %v2688_v27 = vpack.c.bf16 %v2683_v48, %v2683_v48  ;;  %v3082_v48 = vld [vmem:[#allocation2 + $0x1ec] sm:$0xf] }
 0x8b4   : > { %v4509_v50 = vcombine.low %v3081_v47, %v3082_v48 }
 0x8b5   : > { %v6295_v54 = vsub.f32 %v2485_v40, %v2491_v53  ;;  %v2690_v40 = vld [vmem:[#allocation2 + $0x24] sm:$0xff]  ;;  %v4494_v53 = vcombine.low %v2840_v51, %v2841_v52  ;;  %v3080_v51 = vld [vmem:[#allocation2 + $0x1ac] sm:$0xf] }
 0x8b6   : > { %v4479_v45 = vcombine.high %v2689_v39, %v2690_v40  ;;  %v4478_v49 = vcombine.low %v2689_v39, %v2690_v40 }
 0x8b7   : > { %v2493_v55 = vmul.f32 %v6295_v54, %v6295_v54  ;;  %4970 = vmatpush3.bf16.msra.mxu0 %v4494_v53  ;;  %v3078_v53 = vld [vmem:[#allocation2 + $0x16c] sm:$0xf] }
 0x8b8   : > { %2811 = vmatprep.subr.bf16.mxu1 %v4479_v45  ;;  %4995 = vmatprep.subr.bf16.mxu0 %v5783_v0 }
 0x8b9   : > { %v2494_v56 = vsel %vm1794_vm1, %v2493_v55, 0.0  ;;  %2812 = vmatpush1.bf16.msra.mxu1 %v4478_v49  ;;  %v5407_v55 = vld [vmem:[#allocation16 + $0x38] sm:$0xff]   ;;  %v3079_v49 = vld [vmem:[#allocation2 + $0x18c] sm:$0xf] }
 0x8ba   : > { %2495 = vadd.xlane.f32.xlu1 %v2494_v56  ;;  %4975 = vmatprep.subr.bf16.mxu1 %v5783_v0  ;;  %v5408_v56 = vld [vmem:[#allocation16 + $0x30] sm:$0xff]   ;;  %v4508_v52 = vcombine.low %v3079_v49, %v3080_v51 }
 0x8bc   : > { %2830 = vmatmul.mubr.bf16.vlgmr.msra.gmra.mxu1 %v2688_v27  ;;  %v3077_v27 = vld [vmem:[#allocation2 + $0x14c] sm:$0xf] }
 0x8bd   : > { %4976 = vmatpush3.bf16.msra.mxu1 %v5407_v55  ;;  %4991 = vmatprep.mubr.msk.bf16.mxu1 %vm5784_vm0, %v5783_v0  ;;  %v4507_v55 = vcombine.low %v3077_v27, %v3078_v53 }
 0x8be   : > { %4977 = vmatprep.subr.bf16.mxu1 %v5783_v0 }
 0x8c1   : > { %4978 = vmatpush3.bf16.msra.mxu1 %v5408_v56  ;;  %v3075_v56 = vld [vmem:[#allocation2 + $0x10c] sm:$0xf] }
 0x8c2   : > { %4979 = vmatprep.subr.bf16.mxu1 %v5783_v0 }
 0x8c5   : > { %4980 = vmatpush3.bf16.msra.mxu1 %v5409_v57  ;;  %v3076_v57 = vld [vmem:[#allocation2 + $0x12c] sm:$0xf] }
 0x8c6   : > { %4981 = vmatprep.subr.bf16.mxu1 %v5783_v0 }
 0x8c9   : > { %4982 = vmatpush3.bf16.msra.mxu1 %v5410_v58  ;;  %v4506_v58 = vcombine.low %v3075_v56, %v3076_v57 }
 0x8ca   : > { %4983 = vmatprep.subr.bf16.mxu1 %v5783_v0 }
 0x8cd   : > { %4984 = vmatpush3.bf16.msra.mxu1 %v5411_v35  ;;  %v2998_v35 = vand.u32 7, %v6165_v14 }
 0x8ce   : > { %4985 = vmatprep.subr.bf16.mxu1 %v5783_v0 }
 0x8cf   : > { %vm2999_vm2 = vcmp.lt.s32.totalorder %v2998_v35, 4 }
 0x8d1   : > { %4986 = vmatpush3.bf16.msra.mxu1 %v5412_v59 }
 0x8d2   : > { %4987 = vmatprep.subr.bf16.mxu1 %v5783_v0 }
 0x8d5   : > { %4988 = vmatpush3.bf16.msra.mxu1 %v5413_v61 }
 0x8d6   : > { %4989 = vmatprep.subr.bf16.mxu1 %v5783_v0 }
 0x8d9   : > { %4990 = vmatpush3.bf16.msra.mxu1 %v5414_v63 }
 0x8da   : > { %5015 = vmatprep.subr.bf16.mxu1 %v5783_v0 }
 0x943   : > { %v2496_v2 = vpop.xlane.xlu1 %2495 }
 0x944   : > { %v2497_v3 = vmul.f32 0.0078125, %v2496_v2 }
 0x946   : > { %v2498_v4 = vadd.f32 1e-05, %v2497_v3 }
 0x948   : > { %5389 = vrsqrt.f32 %v2498_v4 }
 0x955   : > { %v5390_v5 = vpop.eup %5389 }
 0x956   : > { %v2500_v7 = vmul.f32 %v5390_v5, %v6295_v54  ;;  %v5416_v54 = vld [vmem:[#allocation17 + $0x30] sm:$0xff]  }
 0x958   : > { %v2501_v10 = vmul.f32 %v2500_v7, %v2486_v6 }
 0x95a   : > { %v2502_v12 = vadd.f32 %v2501_v10, %v2487_v9 }
 0x95c   : > { %v6331_v13 = vadd.f32 %v2504_v11, %v2502_v12 }
 0x95e   : > { %v2856_v15 = vpack.c.bf16 %v6331_v13, %v6331_v13 }
 0x960   : > { %4972 = vmatmul.mubr.bf16.vlgmr.msra.gmra.mxu0 %v2856_v15 }
 0x961   : > { %4996 = vmatpush3.bf16.msra.mxu0 %v5415_v18  ;;  %5011 = vmatprep.mubr.msk.bf16.mxu0 %vm5784_vm0, %v5783_v0 }
 0x962   : > { %4997 = vmatprep.subr.bf16.mxu0 %v5783_v0 }
 0x965   : > { %4998 = vmatpush3.bf16.msra.mxu0 %v5416_v54 }
 0x966   : > { %4999 = vmatprep.subr.bf16.mxu0 %v5783_v0 }
 0x969   : > { %5000 = vmatpush3.bf16.msra.mxu0 %v5417_v19 }
 0x96a   : > { %5001 = vmatprep.subr.bf16.mxu0 %v5783_v0 }
 0x96d   : > { %5002 = vmatpush3.bf16.msra.mxu0 %v5418_v1 }
 0x96e   : > { %5003 = vmatprep.subr.bf16.mxu0 %v5783_v0 }
 0x971   : > { %5004 = vmatpush3.bf16.msra.mxu0 %v5419_v20 }
 0x972   : > { %5005 = vmatprep.subr.bf16.mxu0 %v5783_v0 }
 0x975   : > { %5006 = vmatpush3.bf16.msra.mxu0 %v5420_v21 }
 0x976   : > { %5007 = vmatprep.subr.bf16.mxu0 %v5783_v0 }
 0x979   : > { %5008 = vmatpush3.bf16.msra.mxu0 %v5421_v22 }
 0x97a   : > { %5009 = vmatprep.subr.bf16.mxu0 %v5783_v0 }
 0x97c   : > { %v2831_v29 = vpop.f32.mrf.mxu1 }
 0x97d   : > { %5010 = vmatpush3.bf16.msra.mxu0 %v5422_v23  ;;  %v2832_v39 = vadd.f32 %v2831_v29, %v2710_v34  ;;  %v3073_v29 = vld [vmem:[#allocation2 + $0xcc] sm:$0xf] }
 0x97e   : > { %v2833_v30 = vpop.f32.mrf.mxu1 }
 0x97f   : > { %v6348_v31 = vadd.f32 %v2833_v30, %v2714_v28  ;;  %v2838_v44 = vpack.c.bf16 %v2832_v39, %v2832_v39  ;;  %v3074_v30 = vld [vmem:[#allocation2 + $0xec] sm:$0xf] }
 0x980   : > { %v2835_v32 = vpop.f32.mrf.mxu1  ;;  %v3067_v39 = vld [vmem:[#allocation2 + $0xc] sm:$0xf] }
 0x981   : > { %v4505_v32 = vcombine.low %v3073_v29, %v3074_v30  ;;  %v3212_v29 = vld [vmem:[#allocation2 + $0x158] sm:$0xff] }
 0x982   : > { %v2836_v24 = vpop.f32.mrf.mxu1 }
 0x983   : > { %v3071_v24 = vld [vmem:[#allocation2 + $0x8c] sm:$0xf] }
 0xa20   : > { %v2940_v36 = vpop.f32.mrf.mxu0 }
 0xa21   : > { %v2941_v37 = vadd.f32 %v2940_v36, %v2857_v33  ;;  %v3072_v33 = vld [vmem:[#allocation2 + $0xac] sm:$0xf] }
 0xa22   : > { %v4973_v38 = vpop.f32.mrf.mxu0  ;;  %v4504_v34 = vcombine.low %v3071_v24, %v3072_v33  ;;  %v3069_v36 = vld [vmem:[#allocation2 + $0x4c] sm:$0xf] }
 0xa23   : > { %v2946_v40 = vpack.c.bf16 %v2941_v37, %v2941_v37  ;;  %v3070_v37 = vld [vmem:[#allocation2 + $0x6c] sm:$0xf] }
 0xa24   : > { %v2943_v41 = vpop.f32.mrf.mxu0  ;;  %v4503_v38 = vcombine.low %v3069_v36, %v3070_v37  ;;  %v3207_v36 = vld [vmem:[#allocation2 + $0x110] sm:$0xff] }
 0xa25   : > { %v2948_v42 = vpack.i.b16 %v2946_v40, %v2946_v40  ;;  %v3068_v40 = vld [vmem:[#allocation2 + $0x2c] sm:$0xf]  ;;  %v3209_v37 = vld [vmem:[#allocation2 + $0x130] sm:$0xff] }
 0xa26   : > { %v4974_v43 = vpop.f32.mrf.mxu0  ;;  %v4502_v41 = vcombine.low %v3067_v39, %v3068_v40  ;;  %v4526_v39 = vcombine.low %v3207_v36, %v3209_v37  ;;  %v4527_v40 = vcombine.high %v3207_v36, %v3209_v37  ;;  %v5330_v36 = vld [vmem:[#allocation5 + $0xb0] sm:$0xff]   ;;  %v5331_v37 = vld [vmem:[#allocation5 + $0x68] sm:$0xff]  }
 0xa27   : > { %v2953_v45 = vrot.slane %v2948_v42, %v6171_v17  ;;  %v2839_v42 = vpack.c.bf16 %v6348_v31, %v6348_v31  ;;  %v3084_v31 = vld [vmem:[%s6490_s6 + $0x5] sm:$0x1] }
 0xa29   : > { %v2954_v46 = vmul.bf16 %v2953_v45, %v2838_v44  ;;  %v3059_v43 = vunpack.c.l.bf16 %v2839_v42  ;;  %v3203_v42 = vld [vmem:[#allocation2 + $0xd0] sm:$0xff] }
 0xa2b   : > { %4992 = vmatmul.mubr.bf16.vlgmr.msra.gmra.mxu1 %v2954_v46 }
 0xa2c   : > { %5031 = vmatprep.mubr.msk.bf16.mxu1 %vm5784_vm0, %v5783_v0  ;;  %5016 = vmatpush3.bf16.msra.mxu1 %v4509_v50 }
 0xa2d   : > { %5017 = vmatprep.subr.bf16.mxu1 %v5783_v0 }
 0xa30   : > { %5018 = vmatpush3.bf16.msra.mxu1 %v4508_v52 }
 0xa31   : > { %5019 = vmatprep.subr.bf16.mxu1 %v5783_v0 }
 0xa34   : > { %5020 = vmatpush3.bf16.msra.mxu1 %v4507_v55 }
 0xa35   : > { %5021 = vmatprep.subr.bf16.mxu1 %v5783_v0 }
 0xa38   : > { %5022 = vmatpush3.bf16.msra.mxu1 %v4506_v58 }
 0xa39   : > { %5023 = vmatprep.subr.bf16.mxu1 %v5783_v0 }
 0xa3c   : > { %5024 = vmatpush3.bf16.msra.mxu1 %v4505_v32  ;;  %v3214_v32 = vld [vmem:[#allocation2 + $0x178] sm:$0xff] }
 0xa3d   : > { %5025 = vmatprep.subr.bf16.mxu1 %v5783_v0  ;;  %v4532_v33 = vcombine.low %v3212_v29, %v3214_v32 }
 0xa40   : > { %5026 = vmatpush3.bf16.msra.mxu1 %v4504_v34  ;;  %v4533_v34 = vcombine.high %v3212_v29, %v3214_v32  ;;  %v5323_v29 = vld [vmem:[#allocation5 + $0x78] sm:$0xff]  }
 0xa41   : > { %5027 = vmatprep.subr.bf16.mxu1 %v5783_v0  ;;  %v5325_v32 = vld [vmem:[#allocation5 + $0xf8] sm:$0xff]  }
 0xa44   : > { %5028 = vmatpush3.bf16.msra.mxu1 %v4503_v38  ;;  %v3208_v38 = vld [vmem:[#allocation2 + $0x118] sm:$0xff] }
 0xa45   : > { %5029 = vmatprep.subr.bf16.mxu1 %v5783_v0 }
 0xa48   : > { %5030 = vmatpush3.bf16.msra.mxu1 %v4502_v41  ;;  %v3210_v41 = vld [vmem:[#allocation2 + $0x138] sm:$0xff] }
 0xaeb   : > { %v2989_v59 = vpop.f32.mrf.mxu1 }
 0xaec   : > { %v2995_v61 = vmul.f32 0.125, %v2989_v59 }
 0xaed   : > { %v4993_v63 = vpop.f32.mrf.mxu1 }
 0xaee   : > { %v3000_v2 = vsel %vm2999_vm2, %v2995_v61, -1e+30 }
 0xaef   : > { %v3001_v3 = vrot.slane %v3000_v2, 4  ;;  %v2992_v4 = vpop.f32.mrf.mxu1 }
 0xaf0   : > { %v3220_v4 = vld [vmem:[#allocation2 + $0x1d8] sm:$0xff] }
 0xaf1   : > { %v3002_v5 = vmax.f32 %v3000_v2, %v3001_v3  ;;  %v4994_v6 = vpop.f32.mrf.mxu1  ;;  %v3221_v3 = vld [vmem:[#allocation2 + $0x1f0] sm:$0xff] }
 0xaf3   : > { %v3003_v7 = vrot.slane %v3002_v5, 2 }
 0xaf5   : > { %v3004_v9 = vmax.f32 %v3002_v5, %v3003_v7  ;;  %v3215_v7 = vld [vmem:[#allocation2 + $0x190] sm:$0xff] }
 0xaf7   : > { %v3005_v10 = vrot.slane %v3004_v9, 1 }
 0xaf9   : > { %v3006_v11 = vmax.f32 %v3004_v9, %v3005_v10  ;;  %v3217_v9 = vld [vmem:[#allocation2 + $0x1b0] sm:$0xff] }
 0xafb   : > { %v3007_v12 = vsub.f32 %v3000_v2, %v3006_v11  ;;  %v3219_v2 = vld [vmem:[#allocation2 + $0x1d0] sm:$0xff] }
 0xafc   : > { %v4538_v5 = vcombine.low %v3219_v2, %v3221_v3  ;;  %v4539_v6 = vcombine.high %v3219_v2, %v3221_v3 }
 0xafd   : > { %v3008_v15 = vmul.f32 1.442695, %v3007_v12  ;;  %v4535_v12 = vcombine.high %v3215_v7, %v3217_v9 }
 0xafe   : > { %3406 = vmatprep.subr.bf16.mxu0 %v4539_v6  ;;  %v3192_v6 = vld [vmem:[#allocation2 + $0x18] sm:$0xff] }
 0xaff   : > { %5391 = vpow2.f32 %v3008_v15  ;;  %v3216_v15 = vld [vmem:[#allocation2 + $0x198] sm:$0xff] }
 0xb0c   : > { %v5392_v18 = vpop.eup %5391 }
 0xb0d   : > { %v3010_v54 = vrot.slane %v5392_v18, 4 }
 0xb0f   : > { %v3011_v19 = vadd.f32 %v5392_v18, %v3010_v54  ;;  %v4534_v54 = vcombine.low %v3215_v7, %v3217_v9 }
 0xb11   : > { %v3012_v1 = vrot.slane %v3011_v19, 2 }
 0xb13   : > { %v3013_v20 = vadd.f32 %v3012_v1, %v3011_v19 }
 0xb15   : > { %v3014_v21 = vrot.slane %v3013_v20, 1 }
 0xb17   : > { %v3015_v22 = vadd.f32 %v3014_v21, %v3013_v20 }
 0xb19   : > { %5393 = vrcp.f32 %v3015_v22 }
 0xb26   : > { %v5394_v23 = vpop.eup %5393 }
 0xb27   : > { %v3017_v26 = vmul.f32 %v5394_v23, %v5392_v18  ;;  %v3218_v18 = vld [vmem:[#allocation2 + $0x1b8] sm:$0xff] }
 0xb28   : > { %v4536_v19 = vcombine.low %v3216_v15, %v3218_v18 }
 0xb29   : > { %v3018_v28 = vpack.c.bf16 %v3017_v26, %v3017_v26  ;;  %v3211_v26 = vld [vmem:[#allocation2 + $0x150] sm:$0xff] }
 0xb2b   : > { %5012 = vmatmul.mubr.bf16.vlgmr.msra.gmra.mxu0 %v3018_v28  ;;  %v3213_v28 = vld [vmem:[#allocation2 + $0x170] sm:$0xff] }
 0xb2c   : > { %3438 = vmatprep.mubr.bf16.mxu0 %v5785_v25  ;;  %3407 = vmatpush1.bf16.msra.mxu0 %v4538_v5  ;;  %v4531_v30 = vcombine.high %v3211_v26, %v3213_v28  ;;  %v4530_v24 = vcombine.low %v3211_v26, %v3213_v28  ;;  %v3193_v5 = vld [vmem:[#allocation2 + $0x30] sm:$0xff] }
 0xb2d   : > { %3408 = vmatprep.subr.bf16.mxu0 %v4535_v12 }
 0xb30   : > { %3409 = vmatpush1.bf16.msra.mxu0 %v4534_v54 }
 0xb31   : > { %3410 = vmatprep.subr.bf16.mxu0 %v4531_v30  ;;  %v5324_v30 = vld [vmem:[#allocation5 + $0x38] sm:$0xff]  }
 0xb34   : > { %3411 = vmatpush1.bf16.msra.mxu0 %v4530_v24  ;;  %v5326_v24 = vld [vmem:[#allocation5 + $0xb8] sm:$0xff]  }
 0xb35   : > { %3412 = vmatprep.subr.bf16.mxu0 %v4527_v40  ;;  %v5334_v40 = vld [vmem:[#allocation5 + $0xa8] sm:$0xff]  }
 0xb38   : > { %3413 = vmatpush1.bf16.msra.mxu0 %v4526_v39  ;;  %v5333_v39 = vld [vmem:[#allocation5 + $0xe8] sm:$0xff]  }
 0xbeb   : > { %v3053_v44 = vpop.f32.mrf.mxu0 }
 0xbec   : > { %v3060_v45 = vmul.f32 %v3059_v43, %v3053_v44  ;;  %v3205_v43 = vld [vmem:[#allocation2 + $0xf0] sm:$0xff]  ;;  %v4528_v44 = vcombine.low %v3208_v38, %v3210_v41 }
 0xbed   : > { %v5013_v46 = vpop.f32.mrf.mxu0 }
 0xbee   : > { %v3061_v47 = vrot.slane %v3060_v45, 4  ;;  %v4523_v46 = vcombine.high %v3203_v42, %v3205_v43 }
 0xbef   : > { %v3056_v48 = vpop.f32.mrf.mxu0 }
 0xbf0   : > { %v3062_v49 = vadd.f32 %v3061_v47, %v3060_v45  ;;  %v4529_v45 = vcombine.high %v3208_v38, %v3210_v41  ;;  %v3204_v47 = vld [vmem:[#allocation2 + $0xd8] sm:$0xff]  ;;  %3414 = vmatprep.subr.bf16.mxu0 %v4523_v46  ;;  %v5332_v38 = vld [vmem:[#allocation5 + $0x28] sm:$0xff]   ;;  %v5335_v41 = vld [vmem:[#allocation5 + $0x60] sm:$0xff]  }
 0xbf1   : > { %v5014_v50 = vpop.f32.mrf.mxu0  ;;  %v3206_v48 = vld [vmem:[#allocation2 + $0xf8] sm:$0xff] }
 0xbf2   : > { %v3063_v51 = vrot.slane %v3062_v49, 2  ;;  %v4525_v50 = vcombine.high %v3204_v47, %v3206_v48  ;;  %v5341_v46 = vld [vmem:[#allocation5 + $0xd8] sm:$0xff]  }
 0xbf4   : > { %v3064_v52 = vadd.f32 %v3063_v51, %v3062_v49  ;;  %v3199_v49 = vld [vmem:[#allocation2 + $0x90] sm:$0xff] }
 0xbf5   : > { %v3201_v51 = vld [vmem:[#allocation2 + $0xb0] sm:$0xff] }
 0xbf6   : > { %v3065_v27 = vrot.slane %v3064_v52, 1 }
 0xbf8   : > { %v3066_v53 = vadd.f32 %v3065_v27, %v3064_v52  ;;  %v3200_v52 = vld [vmem:[#allocation2 + $0x98] sm:$0xff] }
 0xbf9   : > { %v3202_v27 = vld [vmem:[#allocation2 + $0xb8] sm:$0xff] }
 0xbfa   : > { %v3083_v55 = vpack.c.bf16 %v3066_v53, %v3066_v53  ;;  %v4522_v53 = vcombine.low %v3203_v42, %v3205_v43  ;;  %v5337_v42 = vld [vmem:[#allocation5 + $0xe0] sm:$0xff]  }
 0xbfb   : > { %v5336_v43 = vld [vmem:[#allocation5 + $0x20] sm:$0xff]  }
 0xbfc   : > { %5032 = vmatmul.mubr.bf16.vlgmr.msra.gmra.mxu1 %v3083_v55  ;;  %v4524_v55 = vcombine.low %v3204_v47, %v3206_v48  ;;  %3415 = vmatpush1.bf16.msra.mxu0 %v4522_v53  ;;  %v5340_v47 = vld [vmem:[#allocation5 + $0x18] sm:$0xff]   ;;  %v5349_v53 = vld [vmem:[#allocation5 + $0xc8] sm:$0xff]  }
 0xbfd   : > { %3479 = vmatprep.mubr.bf16.mxu1 %v5785_v25  ;;  %v3222_v25 = vld [vmem:[#allocation2 + $0x1f8] sm:$0xff] }
 0xbfe   : > { %v4540_v10 = vcombine.low %v3220_v4, %v3222_v25  ;;  %v4541_v11 = vcombine.high %v3220_v4, %v3222_v25  ;;  %v3191_v4 = vld [vmem:[#allocation2 + $0x10] sm:$0xff]  ;;  %v3194_v25 = vld [vmem:[#allocation2 + $0x38] sm:$0xff] }
 0xbff   : > { %v4510_v12 = vcombine.low %v3191_v4, %v3193_v5  ;;  %v5342_v48 = vld [vmem:[#allocation5 + $0x98] sm:$0xff]  }
 0xc00   : > { %3447 = vmatprep.subr.bf16.mxu1 %v4541_v11  ;;  %v4513_v11 = vcombine.high %v3192_v6, %v3194_v25 }
 0xc01   : > { %3448 = vmatpush1.bf16.msra.mxu1 %v4540_v10  ;;  %v4511_v10 = vcombine.high %v3191_v4, %v3193_v5 }
 0xcbc   : > { %v3167_v56 = vpop.f32.mrf.mxu1 }
 0xcbd   : > { %v3168_v57 = vadd.f32 %v3167_v56, %v3084_v31  ;;  %v4519_v31 = vcombine.high %v3199_v49, %v3201_v51  ;;  %v4521_v56 = vcombine.high %v3200_v52, %v3202_v27 }
 0xcbe   : > { %v5033_v58 = vpop.f32.mrf.mxu1 }
 0xcbf   : > { %v3173_v35 = vadd.f32 %v3168_v57, %v6331_v13  ;;  %v4537_v13 = vcombine.high %v3216_v15, %v3218_v18  ;;  %v3195_v57 = vld [vmem:[#allocation2 + $0x50] sm:$0xff]  ;;  %3416 = vmatprep.subr.bf16.mxu0 %v4519_v31  ;;  %v4512_v15 = vcombine.low %v3192_v6, %v3194_v25  ;;  %v5350_v31 = vld [vmem:[#allocation5 + $0x88] sm:$0xff]  }
 0xcc0   : > { %v3170_v59 = vpop.f32.mrf.mxu1  ;;  %v3197_v58 = vld [vmem:[#allocation2 + $0x70] sm:$0xff] }
 0xcc1   : > { %v3176_v61 = vsel %vm1794_vm1, %v3173_v35, 0.0  ;;  %3449 = vmatprep.subr.bf16.mxu1 %v4537_v13  ;;  %v3198_v59 = vld [vmem:[#allocation2 + $0x78] sm:$0xff]  ;;  %v4515_v2 = vcombine.high %v3195_v57, %v3197_v58  ;;  %v4514_v7 = vcombine.low %v3195_v57, %v3197_v58  ;;  %v5353_v57 = vld [vmem:[#allocation5 + $0xc0] sm:$0xff]  }
 0xcc2   : > { %3177 = vadd.xlane.f32.xlu0 %v3176_v61  ;;  %v5034_v63 = vpop.f32.mrf.mxu1  ;;  %3450 = vmatpush1.bf16.msra.mxu1 %v4536_v19  ;;  %v4518_v61 = vcombine.low %v3199_v49, %v3201_v51  ;;  %v5343_v49 = vld [vmem:[#allocation5 + $0x50] sm:$0xff]   ;;  %v5352_v58 = vld [vmem:[#allocation5] sm:$0xff]  }
 0xcc3   : > { %3451 = vmatprep.subr.bf16.mxu1 %v4533_v34  ;;  %v4520_v63 = vcombine.low %v3200_v52, %v3202_v27  ;;  %v5329_v34 = vld [vmem:[#allocation5 + $0xf0] sm:$0xff]   ;;  %v5347_v27 = vld [vmem:[#allocation5 + $0x48] sm:$0xff]  }
 0xcc4   : > { %3417 = vmatpush1.bf16.msra.mxu0 %v4518_v61  ;;  %v5344_v51 = vld [vmem:[#allocation5 + $0x10] sm:$0xff]  }
 0xcc5   : > { %3418 = vmatprep.subr.bf16.mxu0 %v4515_v2  ;;  %v5346_v52 = vld [vmem:[#allocation5 + $0x90] sm:$0xff]  }
 0xcc6   : > { %3452 = vmatpush1.bf16.msra.mxu1 %v4532_v33  ;;  %v5328_v33 = vld [vmem:[#allocation5 + $0x30] sm:$0xff]  }
 0xcc7   : > { %3453 = vmatprep.subr.bf16.mxu1 %v4529_v45  ;;  %v5339_v45 = vld [vmem:[#allocation5 + $0x58] sm:$0xff]  }
 0xcc8   : > { %3419 = vmatpush1.bf16.msra.mxu0 %v4514_v7 }
 0xcc9   : > { %3420 = vmatprep.subr.bf16.mxu0 %v4511_v10 }
 0xcca   : > { %3454 = vmatpush1.bf16.msra.mxu1 %v4528_v44  ;;  %v5338_v44 = vld [vmem:[#allocation5 + $0xa0] sm:$0xff]  }
 0xccb   : > { %3455 = vmatprep.subr.bf16.mxu1 %v4525_v50  ;;  %v5345_v50 = vld [vmem:[#allocation5 + $0xd0] sm:$0xff]  }
 0xccc   : > { %3421 = vmatpush1.bf16.msra.mxu0 %v4510_v12 }
 0xccd   : > { %4773 = vmatprep.subr.bf16.mxu0 %v5323_v29 }
 0xcce   : > { %3456 = vmatpush1.bf16.msra.mxu1 %v4524_v55  ;;  %v5348_v55 = vld [vmem:[#allocation5 + $0x8] sm:$0xff]  }
 0xccf   : > { %3457 = vmatprep.subr.bf16.mxu1 %v4521_v56  ;;  %v5351_v56 = vld [vmem:[#allocation5 + $0x40] sm:$0xff]  }
 0xcd2   : > { %3458 = vmatpush1.bf16.msra.mxu1 %v4520_v63 }
 0xd4b   : > { %v3178_v1 = vpop.xlane.xlu0 %3177 }
 0xd4c   : > { %v3179_v20 = vmul.f32 0.0078125, %v3178_v1  ;;  %v3174_v1 = vld [vmem:[%s6490_s6 + $0x6] sm:$0x1] }
 0xd4e   : > { %v6374_v21 = vsub.f32 %v3173_v35, %v3179_v20  ;;  %v3196_v35 = vld [vmem:[#allocation2 + $0x58] sm:$0xff] }
 0xd4f   : > { %v4517_v3 = vcombine.high %v3196_v35, %v3198_v59  ;;  %v4516_v9 = vcombine.low %v3196_v35, %v3198_v59  ;;  %v5354_v35 = vld [vmem:[#allocation5 + $0x80] sm:$0xff]   ;;  %v3224_v59 = vld [vmem:[%s6490_s6 + $0x8] sm:$0xf] }
 0xd50   : > { %v3181_v22 = vmul.f32 %v6374_v21, %v6374_v21  ;;  %v3389_v61 = vrot.slane %v3224_v59, %v6171_v17  ;;  %v3397_v63 = vrot.slane %v3224_v59, %v2016_v60  ;;  %v3393_v2 = vrot.slane %v3224_v59, %v6168_v16 }
 0xd51   : > { %3459 = vmatprep.subr.bf16.mxu1 %v4517_v3  ;;  %v3401_v3 = vrot.slane %v3224_v59, %v2020_v62  ;;  %v5359_v59 = vld [vmem:[#allocation14 + $0x58] sm:$0xff]  }
 0xd52   : > { %v3182_v23 = vsel %vm1794_vm1, %v3181_v22, 0.0  ;;  %3460 = vmatpush1.bf16.msra.mxu1 %v4516_v9  ;;  %v3175_v22 = vld [vmem:[%s6490_s6 + $0x7] sm:$0x1] }
 0xd53   : > { %3183 = vadd.xlane.f32.xlu1 %v3182_v23  ;;  %3461 = vmatprep.subr.bf16.mxu1 %v4513_v11 }
 0xd56   : > { %3462 = vmatpush1.bf16.msra.mxu1 %v4512_v15 }
 0xd57   : > { %4795 = vmatprep.subr.bf16.mxu1 %v5325_v32 }
 0xddc   : > { %v3184_v18 = vpop.xlane.xlu1 %3183 }
 0xddd   : > { %v3185_v13 = vmul.f32 0.0078125, %v3184_v18 }
 0xddf   : > { %v3186_v54 = vadd.f32 1e-05, %v3185_v13 }
 0xde1   : > { %5395 = vrsqrt.f32 %v3186_v54 }
 0xdee   : > { %v5396_v19 = vpop.eup %5395 }
 0xdef   : > { %v3188_v20 = vmul.f32 %v5396_v19, %v6374_v21  ;;  %v5327_v21 = vld [vmem:[#allocation5 + $0x70] sm:$0xff]  }
 0xdf1   : > { %v3189_v23 = vmul.f32 %v3188_v20, %v3174_v1 }
 0xdf3   : > { %v6386_v26 = vadd.f32 %v3189_v23, %v3175_v22 }
 0xdf5   : > { %v3223_v28 = vpack.c.bf16 %v6386_v26, %v6386_v26 }
 0xdf7   : > { %3439 = vmatmul.mubr.bf16.vlgmr.msra.gmra.mxu0 %v3223_v28  ;;  %3480 = vmatmul.mubr.bf16.vlgmr.msra.gmra.mxu1 %v3223_v28 }
 0xdf8   : > { %4774 = vmatpush3.bf16.msra.mxu0 %v5324_v30  ;;  %4796 = vmatpush3.bf16.msra.mxu1 %v5326_v24 }
 0xdf9   : > { %4775 = vmatprep.subr.bf16.mxu0 %v5327_v21  ;;  %4797 = vmatprep.subr.bf16.mxu1 %v5329_v34 }
 0xdfc   : > { %4776 = vmatpush3.bf16.msra.mxu0 %v5328_v33  ;;  %4798 = vmatpush3.bf16.msra.mxu1 %v5330_v36 }
 0xdfd   : > { %4777 = vmatprep.subr.bf16.mxu0 %v5331_v37  ;;  %4799 = vmatprep.subr.bf16.mxu1 %v5333_v39 }
 0xe00   : > { %4778 = vmatpush3.bf16.msra.mxu0 %v5332_v38  ;;  %4800 = vmatpush3.bf16.msra.mxu1 %v5334_v40 }
 0xe01   : > { %4779 = vmatprep.subr.bf16.mxu0 %v5335_v41  ;;  %4801 = vmatprep.subr.bf16.mxu1 %v5337_v42 }
 0xe04   : > { %4780 = vmatpush3.bf16.msra.mxu0 %v5336_v43  ;;  %4802 = vmatpush3.bf16.msra.mxu1 %v5338_v44 }
 0xe05   : > { %4781 = vmatprep.subr.bf16.mxu0 %v5339_v45  ;;  %4803 = vmatprep.subr.bf16.mxu1 %v5341_v46 }
 0xe08   : > { %4782 = vmatpush3.bf16.msra.mxu0 %v5340_v47  ;;  %4804 = vmatpush3.bf16.msra.mxu1 %v5342_v48 }
 0xe09   : > { %4783 = vmatprep.subr.bf16.mxu0 %v5343_v49  ;;  %4805 = vmatprep.subr.bf16.mxu1 %v5345_v50 }
 0xe0c   : > { %4784 = vmatpush3.bf16.msra.mxu0 %v5344_v51  ;;  %4806 = vmatpush3.bf16.msra.mxu1 %v5346_v52 }
 0xe0d   : > { %4785 = vmatprep.subr.bf16.mxu0 %v5347_v27  ;;  %4807 = vmatprep.subr.bf16.mxu1 %v5349_v53  ;;  %v5355_v53 = vld [vmem:[#allocation14 + $0x78] sm:$0xff]  }
 0xe10   : > { %4786 = vmatpush3.bf16.msra.mxu0 %v5348_v55  ;;  %4808 = vmatpush3.bf16.msra.mxu1 %v5350_v31 }
 0xe11   : > { %4787 = vmatprep.subr.bf16.mxu0 %v5351_v56  ;;  %4809 = vmatprep.subr.bf16.mxu1 %v5353_v57  ;;  %v5356_v57 = vld [vmem:[#allocation14 + $0x70] sm:$0xff]  }
 0xe14   : > { %4788 = vmatpush3.bf16.msra.mxu0 %v5352_v58  ;;  %4810 = vmatpush3.bf16.msra.mxu1 %v5354_v35  ;;  %v5357_v58 = vld [vmem:[#allocation14 + $0x68] sm:$0xff]   ;;  %v5358_v35 = vld [vmem:[#allocation14 + $0x60] sm:$0xff]  }
 0xe15   : > { %5035 = vmatprep.subr.bf16.mxu0 %v5783_v0  ;;  %5055 = vmatprep.subr.bf16.mxu1 %v5783_v0 }
 0xeb7   : > { %v3440_v4 = vpop.f32.mrf.mxu0  ;;  %v3481_v5 = vpop.f32.mrf.mxu1 }
 0xeb8   : > { %v3441_v6 = vadd.f32 %v3440_v4, %v3389_v61  ;;  %v3482_v25 = vadd.f32 %v3481_v5, %v3397_v63  ;;  %v5360_v61 = vld [vmem:[#allocation14 + $0x50] sm:$0xff]   ;;  %v5361_v63 = vld [vmem:[#allocation14 + $0x48] sm:$0xff]  }
 0xeb9   : > { %v3442_v7 = vpop.f32.mrf.mxu0  ;;  %v3483_v9 = vpop.f32.mrf.mxu1 }
 0xeba   : > { %v3492_v10 = vmul.f32 0.044715, %v3441_v6  ;;  %v3494_v11 = vmul.f32 0.044715, %v3482_v25  ;;  %v3443_v12 = vadd.f32 %v3442_v7, %v3393_v2  ;;  %v3484_v15 = vadd.f32 %v3483_v9, %v3401_v3  ;;  %v923_v2 = vld [vmem:[%s6497_s13 + $0x1] sm:$0x1] }
 0xebb   : > { %v3444_v18 = vpop.f32.mrf.mxu0  ;;  %v3485_v17 = vpop.f32.mrf.mxu1  ;;  %v3488_v41 = vmul.f32 0.5, %v3441_v6  ;;  %v3490_v46 = vmul.f32 0.5, %v3482_v25  ;;  %v5362_v3 = vld [vmem:[#allocation14 + $0x40] sm:$0xff]   ;;  %v1007_v4 = vadd.f32 %v6160_v8, %v923_v2  ;;  %v3592_v7 = vld [vmem:[%s6490_s6 + $0xc] sm:$0x1] }
 0xebc   : > { %v3496_v13 = vmul.f32 %v3492_v10, %v3441_v6  ;;  %v3498_v54 = vmul.f32 %v3494_v11, %v3482_v25  ;;  %v3493_v60 = vmul.f32 0.044715, %v3443_v12  ;;  %v3495_v19 = vmul.f32 0.044715, %v3484_v15 }
 0xebd   : > { %v3445_v16 = vpop.f32.mrf.mxu0  ;;  %v3486_v1 = vpop.f32.mrf.mxu1  ;;  %v3489_v44 = vmul.f32 0.5, %v3443_v12  ;;  %v3491_v47 = vmul.f32 0.5, %v3484_v15  ;;  %v3916_v5 = vpack.c.bf16 %v1007_v4, %v1007_v4 }
 0xebe   : > { %v3500_v14 = vmul.f32 %v3496_v13, %v3441_v6  ;;  %v3502_v62 = vmul.f32 %v3498_v54, %v3482_v25  ;;  %v3497_v20 = vmul.f32 %v3493_v60, %v3443_v12  ;;  %v3499_v22 = vmul.f32 %v3495_v19, %v3484_v15  ;;  %v5363_v16 = vld [vmem:[#allocation14 + $0x38] sm:$0xff]   ;;  %v5364_v1 = vld [vmem:[#allocation14 + $0x30] sm:$0xff]  }
 0xec0   : > { %v3504_v23 = vadd.f32 %v3500_v14, %v3441_v6  ;;  %v3506_v28 = vadd.f32 %v3502_v62, %v3482_v25  ;;  %v3501_v29 = vmul.f32 %v3497_v20, %v3443_v12  ;;  %v3503_v30 = vmul.f32 %v3499_v22, %v3484_v15 }
 0xec2   : > { %v3508_v32 = vmul.f32 0.7978846, %v3504_v23  ;;  %v3510_v24 = vmul.f32 0.7978846, %v3506_v28  ;;  %v3505_v21 = vadd.f32 %v3501_v29, %v3443_v12  ;;  %v3507_v33 = vadd.f32 %v3503_v30, %v3484_v15 }
 0xec4   : > { %v3509_v34 = vmul.f32 0.7978846, %v3505_v21  ;;  %v3511_v36 = vmul.f32 0.7978846, %v3507_v33  ;;  %5397 = vtanh.f32 %v3508_v32  ;;  %v5365_v32 = vld [vmem:[#allocation14 + $0x28] sm:$0xff]   ;;  %v5367_v21 = vld [vmem:[#allocation14 + $0x18] sm:$0xff]  }
 0xec5   : > { %5399 = vtanh.f32 %v3510_v24  ;;  %v5366_v24 = vld [vmem:[#allocation14 + $0x20] sm:$0xff]   ;;  %v5368_v33 = vld [vmem:[#allocation14 + $0x10] sm:$0xff]  }
 0xec6   : > { %5401 = vtanh.f32 %v3509_v34  ;;  %v5369_v34 = vld [vmem:[#allocation14 + $0x8] sm:$0xff]  }
 0xec7   : > { %5403 = vtanh.f32 %v3511_v36  ;;  %v5370_v36 = vld [vmem:[#allocation14] sm:$0xff]  }
 0xed1   : > { %v5398_v37 = vpop.eup %5397 }
 0xed2   : > { %v5400_v38 = vpop.eup %5399  ;;  %v3516_v39 = vadd.f32 1.0, %v5398_v37 }
 0xed3   : > { %v5402_v40 = vpop.eup %5401  ;;  %v3518_v42 = vadd.f32 1.0, %v5400_v38 }
 0xed4   : > { %v5404_v43 = vpop.eup %5403  ;;  %v3517_v45 = vadd.f32 1.0, %v5402_v40  ;;  %v3520_v49 = vmul.f32 %v3516_v39, %v3488_v41  ;;  %v3866_v41 = vld [vmem:[%s6490_s6 + $0xd] sm:$0x1] }
 0xed5   : > { %v3519_v48 = vadd.f32 1.0, %v5404_v43  ;;  %v3522_v51 = vmul.f32 %v3518_v42, %v3490_v46  ;;  %v3867_v43 = vld [vmem:[%s6490_s6 + $0xe] sm:$0x1] }
 0xed6   : > { %v3521_v50 = vmul.f32 %v3517_v45, %v3489_v44  ;;  %v3524_v31 = vpack.c.bf16 %v3520_v49, %v3520_v49 }
 0xed7   : > { %v3523_v52 = vmul.f32 %v3519_v48, %v3491_v47  ;;  %v3526_v56 = vpack.c.bf16 %v3522_v51, %v3522_v51  ;;  %v4093_v47 = vld [vmem:[%s6499_s15] sm:$0x1] }
 0xed8   : > { %v3525_v27 = vpack.c.bf16 %v3521_v50, %v3521_v50 }
 0xed9   : > { %v3527_v55 = vpack.c.bf16 %v3523_v52, %v3523_v52 }
 0xeda   : > { %3817 = vmatprep.mubr.bf16.mxu0 %v3525_v27 }
 0xedb   : > { %3857 = vmatprep.mubr.bf16.mxu1 %v3527_v55  ;;  %3818 = vmatmul.mubr.bf16.vlgmr.msra.gmra.mxu0 %v3524_v31 }
 0xedc   : > { %3858 = vmatmul.mubr.bf16.vlgmr.msra.gmra.mxu1 %v3526_v56  ;;  %5036 = vmatpush3.bf16.msra.mxu0 %v5355_v53 }
 0xedd   : > { %5037 = vmatprep.subr.bf16.mxu0 %v5783_v0  ;;  %5051 = vmatprep.mubr.msk.bf16.mxu0 %vm5784_vm0, %v5783_v0 }
 0xede   : > { %5071 = vmatprep.mubr.msk.bf16.mxu1 %vm5784_vm0, %v5783_v0  ;;  %5056 = vmatpush3.bf16.msra.mxu1 %v5363_v16 }
 0xedf   : > { %5057 = vmatprep.subr.bf16.mxu1 %v5783_v0 }
 0xee0   : > { %5038 = vmatpush3.bf16.msra.mxu0 %v5356_v57 }
 0xee1   : > { %5039 = vmatprep.subr.bf16.mxu0 %v5783_v0 }
 0xee2   : > { %5058 = vmatpush3.bf16.msra.mxu1 %v5364_v1 }
 0xee3   : > { %5059 = vmatprep.subr.bf16.mxu1 %v5783_v0 }
 0xee4   : > { %5040 = vmatpush3.bf16.msra.mxu0 %v5357_v58 }
 0xee5   : > { %5041 = vmatprep.subr.bf16.mxu0 %v5783_v0 }
 0xee6   : > { %5060 = vmatpush3.bf16.msra.mxu1 %v5365_v32 }
 0xee7   : > { %5061 = vmatprep.subr.bf16.mxu1 %v5783_v0 }
 0xee8   : > { %5042 = vmatpush3.bf16.msra.mxu0 %v5358_v35 }
 0xee9   : > { %5043 = vmatprep.subr.bf16.mxu0 %v5783_v0 }
 0xeea   : > { %5062 = vmatpush3.bf16.msra.mxu1 %v5366_v24 }
 0xeeb   : > { %5063 = vmatprep.subr.bf16.mxu1 %v5783_v0 }
 0xeec   : > { %5044 = vmatpush3.bf16.msra.mxu0 %v5359_v59 }
 0xeed   : > { %5045 = vmatprep.subr.bf16.mxu0 %v5783_v0 }
 0xeee   : > { %5064 = vmatpush3.bf16.msra.mxu1 %v5367_v21 }
 0xeef   : > { %5065 = vmatprep.subr.bf16.mxu1 %v5783_v0 }
 0xef0   : > { %5046 = vmatpush3.bf16.msra.mxu0 %v5360_v61 }
 0xef1   : > { %5047 = vmatprep.subr.bf16.mxu0 %v5783_v0 }
 0xef2   : > { %5066 = vmatpush3.bf16.msra.mxu1 %v5368_v33 }
 0xef3   : > { %5067 = vmatprep.subr.bf16.mxu1 %v5783_v0 }
 0xef4   : > { %5048 = vmatpush3.bf16.msra.mxu0 %v5361_v63 }
 0xef5   : > { %5049 = vmatprep.subr.bf16.mxu0 %v5783_v0 }
 0xef6   : > { %5068 = vmatpush3.bf16.msra.mxu1 %v5369_v34 }
 0xef7   : > { %5069 = vmatprep.subr.bf16.mxu1 %v5783_v0 }
 0xef8   : > { %5050 = vmatpush3.bf16.msra.mxu0 %v5362_v3 }
 0xefa   : > { %5070 = vmatpush3.bf16.msra.mxu1 %v5370_v36 }
 0xefb   : > { %5052 = vmatmul.mubr.bf16.vlgmr.msra.gmra.mxu0 %v3916_v5 }
 0xf9b   : > { %v4789_v6 = vpop.f32.mrf.mxu0 }
 0xf9c   : > { %v4811_v25 = vpop.f32.mrf.mxu1 }
 0xf9d   : > { %v4790_v9 = vpop.f32.mrf.mxu0 }
 0xf9e   : > { %v4791_v10 = vadd.f32 %v4790_v9, %v4789_v6  ;;  %v4812_v11 = vpop.f32.mrf.mxu1 }
 0xf9f   : > { %v4792_v12 = vpop.f32.mrf.mxu0  ;;  %v4813_v18 = vadd.f32 %v4812_v11, %v4811_v25 }
 0xfa0   : > { %v3820_v15 = vadd.f32 %v4791_v10, %v3592_v7  ;;  %v4814_v17 = vpop.f32.mrf.mxu1 }
 0xfa1   : > { %v4793_v13 = vpop.f32.mrf.mxu0 }
 0xfa2   : > { %v3860_v8 = vadd.f32 %v4813_v18, %v3820_v15  ;;  %v4815_v54 = vpop.f32.mrf.mxu1 }
 0xfa4   : > { %v3865_v60 = vadd.f32 %v3860_v8, %v6386_v26 }
 0xfa6   : > { %v3868_v19 = vsel %vm1794_vm1, %v3865_v60, 0.0 }
 0xfa7   : > { %3869 = vadd.xlane.f32.xlu0 %v3868_v19 }
 0xfbb   : > { %v3999_v14 = vpop.f32.mrf.mxu0 }
 0xfbd   : > { %v5053_v62 = vpop.f32.mrf.mxu0 }
 0xfbf   : > { %v4002_v20 = vpop.f32.mrf.mxu0 }
 0xfc1   : > { %v5054_v22 = vpop.f32.mrf.mxu0 }
0x1030   : > { %v3870_v23 = vpop.xlane.xlu0 %3869 }
0x1031   : > { %v3871_v28 = vmul.f32 0.0078125, %v3870_v23 }
0x1033   : > { %v3872_v29 = vsub.f32 %v3865_v60, %v3871_v28 }
0x1035   : > { %v3873_v30 = vmul.f32 %v3872_v29, %v3872_v29 }
0x1037   : > { %v3874_v26 = vsel %vm1794_vm1, %v3873_v30, 0.0 }
0x1038   : > { %3875 = vadd.xlane.f32.xlu1 %v3874_v26 }
0x10c1   : > { %v3876_v37 = vpop.xlane.xlu1 %3875 }
0x10c2   : > { %v3877_v38 = vmul.f32 0.0078125, %v3876_v37 }
0x10c4   : > { %v3878_v39 = vadd.f32 1e-05, %v3877_v38 }
0x10c6   : > { %5405 = vrsqrt.f32 %v3878_v39 }
0x10d3   : > { %v5406_v40 = vpop.eup %5405 }
0x10d4   : > { %v3880_v42 = vmul.f32 %v5406_v40, %v3872_v29 }
0x10d6   : > { %v3881_v44 = vmul.f32 %v3880_v42, %v3866_v41 }
0x10d8   : > { %v3882_v45 = vadd.f32 %v3881_v44, %v3867_v43 }
0x10da   : > { %v3899_v46 = vpack.c.bf16 %v3882_v45, %v3882_v45 }
0x10dc   : > { %5072 = vmatmul.mubr.bf16.vlgmr.msra.gmra.mxu1 %v3899_v46 }
0x119c   : > { %v4087_v0 = vpop.f32.mrf.mxu1 }
0x119d   : > { %v4088_v48 = vadd.f32 %v4087_v0, %v3999_v14 }
0x119e   : > { %v5073_v49 = vpop.f32.mrf.mxu1 }
0x119f   : > { %v4094_v50 = vadd.f32 %v4093_v47, %v4088_v48 }
0x11a0   : > { %v4090_v51 = vpop.f32.mrf.mxu1 }
0x11a1   : > { %4095 = vst [vmem:[%s742_s19] sm:$0x1] %v4094_v50 }
0x11a2   : > { %v5074_v52 = vpop.f32.mrf.mxu1 }
0x11a3   : > { %5696 = shalt.err (!%p5693_p7)
}
0x11a4   : > { %s5697_s26 = scalar_lea.hbm %s6443_s2, 16  ;;  %s5701_s27 = scalar_lea.hbm %s6556_s23, 32 }
0x11a5   : > { %p5698_p8 = scmp.ne.s32.totalorder %s6443_s2, %s5697_s26  ;;  %p5702_p13 = scmp.lt.s32.totalorder %s6443_s2, %s6556_s23 }
0x11a6   : > { %p5703_p11 = scmp.lt.s32.totalorder %s5701_s27, %s5697_s26 }
0x11a7   : > { %p5699_p0 = pnand %p5698_p8, %p5920_p5 }
0x11a8   : > { %p5704_p2 = por %p5703_p11, %p5702_p13 }
0x11a9   : > { %p5700_p1 = pneg %p5699_p0 }
0x11ab   : > { %p5705_p9 = pnand %p5704_p2, %p5700_p1 }
0x11ad   : > { %5708 = shalt.err (!%p5705_p9)
}
0x11ae   : > { %5115 = dma.vmem_to_hbm [thread:$0]  (%p5920_p5), %s6445_s20, 16, %s6443_s2, %s4097_s25  }
0x11af PF: > { %s6557_s0 = sld [smem:[#allocation29_spill]] }
0x11b0   : > { %s6558_s29 = sld [smem:[#allocation27_spill]] }
0x11b5   : > { %p5172_p4 = scmp.ge.s32.totalorder %s6557_s0, 2 }
0x11b6   : > { %s4121_s18 = sand.u32 1, %s6558_s29  }
0x11b7   : > { %p5149_p12 = pnand %p5172_p4, %p5924_p6  ;;  %s4122_s22 = scalar_lea.sflag [#allocation4], %s4121_s18 }
0x11b9   : > { %p5150_p10 = pneg %p5149_p12 }
0x11bb   : > { %5750 = dma.done.wait (%p5150_p10), %s4122_s22, 16  }
0x11bc   : > { %5752 = vsyncadd (%p5150_p10), %s4122_s22, 4294967280  ;;  %s6560_s30 = sld [smem:[#allocation30_spill]]  ;;  %s6563_s27 = smov %s5759_s28 }
0x11bd   : > { %s6561_s26 = sld [smem:[#allocation28_spill]] }
0x11be   : > { %s6562_s29 = sld [smem:[#allocation31_spill]] }
0x11c2   : > { %p34_p3 = scmp.ge.s32.totalorder %s6560_s30, 4  }
0x11c3   : > { %s6564_s28 = smov %s6561_s26 }
0x11c4   :  { %36 = sbr.rel (!%p34_p3) target bundleno = 14 (0xe), region = 174 }
0x11c9   :  { %4126 = vsyncpa [#allocation3], 1 }
0x11ca   :  { %4128 = vsyncpa [#allocation3 + $0x1], 1 }
0x11cb   :  { %4129 = vsyncpa [#allocation6], 1 }
0x11cc   :  { %4130 = vsyncpa [#allocation9], 1 }
0x11cd   :  { %4131 = vsyncpa [#allocation12], 1 }
0x11ce   :  { %4132 = vsyncpa [#allocation15], 1 }
0x11cf   :  { %4133 = vsyncpa [#allocation18], 1 }
0x11d0   :  { %4134 = vsyncpa [#allocation4], 1 }
0x11d1   :  { %4136 = vsyncpa [#allocation4 + $0x1], 1 }

</bundles_post_ra>
